<compile_context>
chip_gen: v6e
topology: v6e:2x2x1
jax: 0.10.0
libtpu: 0.0.40
codegen_flags: <defaults>
</compile_context>

<pallas_src>
import math

import jax
import jax.numpy as jnp
import numpy as np
from jax import lax
from jax.experimental import pallas as pl
from jax.experimental.pallas import tpu as pltpu

EPS = 1e-5
STEM_K = 9          # stem Conv1d kernel size
STEM_PAD = 4        # stem Conv1d padding
MAX_BATCH_TILE = 8  # batch items processed per grid step


# ----------------------------- host-side helpers ----------------------------

def _deinterleave_matrix(l_in):
    """0/1 matrix (2*l_out, l_in): rows [0:l_out] pick even input positions,
    rows [l_out:] pick odd ones. Used only for stride-2 convs / downsample."""
    l_out = (l_in - 1) // 2 + 1
    d = np.zeros((2 * l_out, l_in), np.float32)
    for i in range(l_out):
        d[i, 2 * i] = 1.0
        if 2 * i + 1 < l_in:
            d[l_out + i, 2 * i + 1] = 1.0
    return jnp.asarray(d, dtype=jnp.bfloat16), l_out


def _cost_estimate(b_pad, length, arch, geom, in_bytes, n_out):
    flops = 2 * b_pad * length * STEM_K * 32                  # stem matmul
    for meta, (l_in, l_out) in zip(arch["blocks"], geom):
        cin, cout = meta["cin"], meta["cout"]
        if meta["stride"] == 2:
            flops += 2 * b_pad * 2 * l_out * l_in * cin       # even/odd gathers
        flops += 2 * b_pad * 3 * l_out * cin * cout           # conv1 (3 taps)
        flops += 2 * b_pad * 3 * l_out * cout * cout          # conv2 (3 taps)
        if meta["down"]:
            flops += 2 * b_pad * l_out * cin * cout           # 1x1 downsample
    bytes_accessed = in_bytes + b_pad * n_out * 4
    return pl.CostEstimate(flops=int(flops), transcendentals=0,
                           bytes_accessed=int(bytes_accessed))


# --------------------------------- forward ----------------------------------

def resnet_forward(x, kparams, arch):
    """Forward pass matching the PyTorch module. x: (B, ...) -> (B, 256)."""
    batch = x.shape[0]
    xf = x.reshape(batch, -1).astype(jnp.float32)    # PyTorch: x.view(B, 1, -1)
    length = xf.shape[1]
    n_out = kparams["blocks"][-1]["w2"].shape[-1]

    # Batch blocking: bt items per grid step, activations stacked (bt*L, C).
    bt = batch if batch <= MAX_BATCH_TILE else MAX_BATCH_TILE
    b_pad = ((batch + bt - 1) // bt) * bt

    # Stem im2col on the network input (plain XLA): Conv1d(1->32, K=9, P=4)
    # becomes one (bt*L, 9) @ (9, 32) MXU matmul inside the kernel.
    xp = jnp.pad(xf, ((0, b_pad - batch), (STEM_PAD, STEM_PAD)))
    cols = jnp.stack([xp[:, t:t + length] for t in range(STEM_K)], axis=-1)
    cols = cols.reshape(b_pad * length, STEM_K).astype(jnp.bfloat16)

    # Static per-block geometry + host-precomputed stride-2 deinterleave matrices.
    run_blocks, geom = [], []
    l_cur = length
    for blk, meta in zip(kparams["blocks"], arch["blocks"]):
        entry = dict(blk)
        if meta["stride"] == 2:
            entry["deint"], l_out = _deinterleave_matrix(l_cur)
        else:
            l_out = l_cur
        geom.append((l_cur, l_out))
        run_blocks.append(entry)
        l_cur = l_out

    inputs = {"stem_w": kparams["stem_w"], "bias": kparams["bias"],
              "blocks": run_blocks}
    flat_inputs, treedef = jax.tree_util.tree_flatten(inputs)

    def kernel(*refs):
        x_ref, o_ref = refs[0], refs[-1]
        p = jax.tree_util.tree_unflatten(treedef, refs[1:-1])
        bias_ref = p["bias"]

        # Per-item boundary-row masks: zeroed rows give implicit conv padding
        # AND isolate batch items when rolling the stacked (bt*L, C) array.
        # Built once per unique length from a 2-D iota (no integer mod).
        mask_cache = {}

        def masks(l):
            if l not in mask_cache:
                rows = lax.broadcasted_iota(jnp.int32, (bt * l, 1), 0)
                is_first = rows == 0
                is_last = rows == l - 1
                for b in range(1, bt):
                    is_first = jnp.logical_or(is_first, rows == b * l)
                    is_last = jnp.logical_or(is_last, rows == b * l + l - 1)
                mask_cache[l] = (is_first, is_last)
            return mask_cache[l]

        def bias_row(idx, cout):
            return bias_ref[idx, :cout]             # (cout,) f32, broadcast add

        def conv3_s1(h, w_ref, b_idx, cout):
            """3-tap stride-1 conv (pad=1) + folded-BN bias; h: (bt*l, cin) f32.

            Shifted taps come from pltpu.roll (XLU) + boundary mask; the three
            per-tap matmuls accumulate into one f32 accumulator (no lane concat).
            """
            l = h.shape[0] // bt
            is_first, is_last = masks(l)
            hb = h.astype(jnp.bfloat16)
            tap_m1 = jnp.where(is_first, 0.0,
                               pltpu.roll(h, 1, 0)).astype(jnp.bfloat16)
            tap_p1 = jnp.where(is_last, 0.0,
                               pltpu.roll(h, bt * l - 1, 0)).astype(jnp.bfloat16)
            acc = jnp.dot(tap_m1, w_ref[0], preferred_element_type=jnp.float32)
            acc = acc + jnp.dot(hb, w_ref[1], preferred_element_type=jnp.float32)
            acc = acc + jnp.dot(tap_p1, w_ref[2], preferred_element_type=jnp.float32)
            return acc + bias_row(b_idx, cout)

        # ---- stem: Conv1d(1->32, K=9, S=1, P=4) + BN + ReLU (pre-im2col'd) ----
        h = jnp.dot(x_ref[...], p["stem_w"][...],
                    preferred_element_type=jnp.float32)
        h = jnp.maximum(h + bias_row(arch["stem_b"], 32), 0.0)

        # ---- residual stages; activations stay stacked (bt*L, C) in VMEM ----
        for blk, meta, (l_in, l_out) in zip(p["blocks"], arch["blocks"], geom):
            cout = meta["cout"]
            if meta["stride"] == 1:
                out1 = jnp.maximum(conv3_s1(h, blk["w1"], meta["b1"], cout), 0.0)
                if meta["down"]:
                    identity = (jnp.dot(h.astype(jnp.bfloat16), blk["wd"][...],
                                        preferred_element_type=jnp.float32)
                                + bias_row(meta["bd"], cout))
                else:
                    identity = h
            else:
                # Stride-2 conv: deinterleave each item into even/odd streams
                # via a host-precomputed 0/1 matrix (MXU gather); the 3 taps are
                # {shift(odd), even, odd}; the even stream is reused by the
                # 1x1 stride-2 downsample conv.
                xb = h.astype(jnp.bfloat16)
                d = blk["deint"][...]
                d_even, d_odd = d[:l_out], d[l_out:]
                evens, odds = [], []
                for b in range(bt):
                    xi = xb[b * l_in:(b + 1) * l_in, :]
                    evens.append(jnp.dot(d_even, xi,
                                         preferred_element_type=jnp.float32))
                    odds.append(jnp.dot(d_odd, xi,
                                        preferred_element_type=jnp.float32))
                x_even = evens[0] if bt == 1 else jnp.concatenate(evens, axis=0)
                x_odd = odds[0] if bt == 1 else jnp.concatenate(odds, axis=0)
                is_first, _ = masks(l_out)
                even_b = x_even.astype(jnp.bfloat16)
                odd_b = x_odd.astype(jnp.bfloat16)
                tap_m1 = jnp.where(is_first, 0.0,
                                   pltpu.roll(x_odd, 1, 0)).astype(jnp.bfloat16)
                acc = jnp.dot(tap_m1, blk["w1"][0],
                              preferred_element_type=jnp.float32)
                acc = acc + jnp.dot(even_b, blk["w1"][1],
                                    preferred_element_type=jnp.float32)
                acc = acc + jnp.dot(odd_b, blk["w1"][2],
                                    preferred_element_type=jnp.float32)
                out1 = jnp.maximum(acc + bias_row(meta["b1"], cout), 0.0)
                identity = (jnp.dot(even_b, blk["wd"][...],
                                    preferred_element_type=jnp.float32)
                            + bias_row(meta["bd"], cout))
            h = jnp.maximum(conv3_s1(out1, blk["w2"], meta["b2"], cout)
                            + identity, 0.0)

        # ---- AdaptiveAvgPool1d(1) + flatten -> (bt, 256) lane-dense store ----
        l_fin = h.shape[0] // bt
        pooled = [jnp.mean(h[b * l_fin:(b + 1) * l_fin, :], axis=0, keepdims=True)
                  for b in range(bt)]
        o_ref[...] = pooled[0] if bt == 1 else jnp.concatenate(pooled, axis=0)

    in_specs = [pl.BlockSpec((bt * length, STEM_K), lambda i: (i, 0))]
    in_specs += [pl.BlockSpec(w.shape, lambda i, nd=w.ndim: (0,) * nd)
                 for w in flat_inputs]

    in_bytes = (cols.size * cols.dtype.itemsize
                + sum(int(w.size) * w.dtype.itemsize for w in flat_inputs))

    out = pl.pallas_call(
        kernel,
        grid=(b_pad // bt,),
        in_specs=in_specs,
        out_specs=pl.BlockSpec((bt, n_out), lambda i: (i, 0)),
        out_shape=jax.ShapeDtypeStruct((b_pad, n_out), jnp.float32),
        compiler_params=pltpu.CompilerParams(
            dimension_semantics=("parallel",),
            vmem_limit_bytes=32 * 1024 * 1024),
        cost_estimate=_cost_estimate(b_pad, length, arch, geom, in_bytes, n_out),
    )(cols, *flat_inputs)
    return out[:batch]


# -------------------------------- parameters --------------------------------

def _conv_weight(key, cout, cin, k):
    # matches m.weight.data.normal_(0, sqrt(2 / (kernel_size * out_channels)))
    std = math.sqrt(2.0 / (k * cout))
    return jax.random.normal(key, (k, cin, cout), dtype=jnp.float32) * std


def make_params(key, layers=(1, 1, 1, 1)):
    """Channels-last (K, Cin, Cout) bf16 conv weights with eval-mode BatchNorm
    (gamma=1, beta=0, mean=0, var=1) folded in; one consolidated f32 bias buffer."""
    scale = 1.0 / math.sqrt(1.0 + EPS)                 # gamma / sqrt(var + eps)
    keys = iter(jax.random.split(key, 64))

    bias_vals = []

    def new_bias(cout):
        idx = len(bias_vals)
        bias_vals.append(np.zeros((cout,), np.float32))   # beta - mean*scale == 0
        return idx

    def folded(w):
        return (w * scale).astype(jnp.bfloat16)

    kparams = {"stem_w": folded(_conv_weight(next(keys), 32, 1, STEM_K))
                         .reshape(STEM_K, 32)}
    stem_b = new_bias(32)

    inplanes = 32
    blocks, metas = [], []
    for planes, nblk, stride in zip((32, 64, 128, 256), layers, (1, 2, 2, 2)):
        for i in range(nblk):
            s = stride if i == 0 else 1
            blk = {"w1": folded(_conv_weight(next(keys), planes, inplanes, 3)),
                   "w2": folded(_conv_weight(next(keys), planes, planes, 3))}
            meta = {"stride": s, "cin": inplanes, "cout": planes,
                    "b1": new_bias(planes), "b2": new_bias(planes),
                    "down": (s != 1) or (inplanes != planes)}
            if meta["down"]:
                blk["wd"] = folded(_conv_weight(next(keys), planes, inplanes, 1)
                                   ).reshape(inplanes, planes)
                meta["bd"] = new_bias(planes)
            blocks.append(blk)
            metas.append(meta)
            inplanes = planes

    width = max(v.shape[0] for v in bias_vals)
    width = ((width + 127) // 128) * 128
    bias = np.zeros((len(bias_vals), width), np.float32)
    for i, v in enumerate(bias_vals):
        bias[i, :v.shape[0]] = v

    kparams["blocks"] = blocks
    kparams["bias"] = jnp.asarray(bias)
    arch = {"stem_b": stem_b, "blocks": metas}
    return kparams, arch


if __name__ == "__main__":
    key = jax.random.PRNGKey(0)
    kx, kp = jax.random.split(key)
    # small MNIST-like input: (batch=2, 16, 16) -> flattened length 256
    x = jax.random.normal(kx, (2, 16, 16), dtype=jnp.float32)
    kparams, arch = make_params(kp, layers=(1, 1, 1, 1))

    fwd = jax.jit(lambda xx, pp: resnet_forward(xx, pp, arch))
    out = jax.block_until_ready(fwd(x, kparams))
    assert out.shape == (2, 256), out.shape
    assert bool(jnp.all(jnp.isfinite(out)))
    print("KERNEL_OK")
</pallas_src>

<mosaic_0001>
module attributes {stable_mosaic.version = 11 : i64} {
  func.func @kernel(%arg0: i32, %arg1: memref<512x9xbf16, #tpu.memory_space<vmem>>, %arg2: memref<12x256xf32, #tpu.memory_space<vmem>>, %arg3: memref<3x32x32xbf16, #tpu.memory_space<vmem>>, %arg4: memref<3x32x32xbf16, #tpu.memory_space<vmem>>, %arg5: memref<256x256xbf16, #tpu.memory_space<vmem>>, %arg6: memref<3x32x64xbf16, #tpu.memory_space<vmem>>, %arg7: memref<3x64x64xbf16, #tpu.memory_space<vmem>>, %arg8: memref<32x64xbf16, #tpu.memory_space<vmem>>, %arg9: memref<128x128xbf16, #tpu.memory_space<vmem>>, %arg10: memref<3x64x128xbf16, #tpu.memory_space<vmem>>, %arg11: memref<3x128x128xbf16, #tpu.memory_space<vmem>>, %arg12: memref<64x128xbf16, #tpu.memory_space<vmem>>, %arg13: memref<64x64xbf16, #tpu.memory_space<vmem>>, %arg14: memref<3x128x256xbf16, #tpu.memory_space<vmem>>, %arg15: memref<3x256x256xbf16, #tpu.memory_space<vmem>>, %arg16: memref<128x256xbf16, #tpu.memory_space<vmem>>, %arg17: memref<9x32xbf16, #tpu.memory_space<vmem>>, %arg18: memref<2x256xf32, #tpu.memory_space<vmem>>) attributes {dimension_semantics = [#tpu.dimension_semantics<parallel>], iteration_bounds = array<i64: 1>, scalar_prefetch = 0 : i64, scratch_operands = 0 : i64, tpu.core_type = #tpu.core_type<tc>, window_params = [{transform_indices = @transform_0, window_bounds = array<i64: 512, 9>}, {pipeline_mode = #tpu.pipeline_mode<synchronous>, transform_indices = @transform_1, window_bounds = array<i64: 12, 256>}, {pipeline_mode = #tpu.pipeline_mode<synchronous>, transform_indices = @transform_2, window_bounds = array<i64: 3, 32, 32>}, {pipeline_mode = #tpu.pipeline_mode<synchronous>, transform_indices = @transform_3, window_bounds = array<i64: 3, 32, 32>}, {pipeline_mode = #tpu.pipeline_mode<synchronous>, transform_indices = @transform_4, window_bounds = array<i64: 256, 256>}, {pipeline_mode = #tpu.pipeline_mode<synchronous>, transform_indices = @transform_5, window_bounds = array<i64: 3, 32, 64>}, {pipeline_mode = #tpu.pipeline_mode<synchronous>, transform_indices = @transform_6, window_bounds = array<i64: 3, 64, 64>}, {pipeline_mode = #tpu.pipeline_mode<synchronous>, transform_indices = @transform_7, window_bounds = array<i64: 32, 64>}, {pipeline_mode = #tpu.pipeline_mode<synchronous>, transform_indices = @transform_8, window_bounds = array<i64: 128, 128>}, {pipeline_mode = #tpu.pipeline_mode<synchronous>, transform_indices = @transform_9, window_bounds = array<i64: 3, 64, 128>}, {pipeline_mode = #tpu.pipeline_mode<synchronous>, transform_indices = @transform_10, window_bounds = array<i64: 3, 128, 128>}, {pipeline_mode = #tpu.pipeline_mode<synchronous>, transform_indices = @transform_11, window_bounds = array<i64: 64, 128>}, {pipeline_mode = #tpu.pipeline_mode<synchronous>, transform_indices = @transform_12, window_bounds = array<i64: 64, 64>}, {pipeline_mode = #tpu.pipeline_mode<synchronous>, transform_indices = @transform_13, window_bounds = array<i64: 3, 128, 256>}, {pipeline_mode = #tpu.pipeline_mode<synchronous>, transform_indices = @transform_14, window_bounds = array<i64: 3, 256, 256>}, {pipeline_mode = #tpu.pipeline_mode<synchronous>, transform_indices = @transform_15, window_bounds = array<i64: 128, 256>}, {pipeline_mode = #tpu.pipeline_mode<synchronous>, transform_indices = @transform_16, window_bounds = array<i64: 9, 32>}, {transform_indices = @transform_17, window_bounds = array<i64: 2, 256>}]} {
    %c0 = arith.constant 0 : index
    %c0_0 = arith.constant 0 : index
    %0 = vector.load %arg1[%c0, %c0_0] : memref<512x9xbf16, #tpu.memory_space<vmem>>, vector<512x9xbf16>
    %c0_1 = arith.constant 0 : index
    %c0_2 = arith.constant 0 : index
    %1 = vector.load %arg17[%c0_1, %c0_2] : memref<9x32xbf16, #tpu.memory_space<vmem>>, vector<9x32xbf16>
    %cst = arith.constant dense<0.000000e+00> : vector<512x32xf32>
    %2 = tpu.matmul %0, %1, %cst {dimension_numbers = #tpu.dot_dimension_numbers<[1], [0], [0], [1], [0, 0, 1, 1], [], []>} : vector<512x9xbf16>, vector<9x32xbf16>, vector<512x32xf32> -> vector<512x32xf32>
    %c0_3 = arith.constant 0 : index
    %c0_4 = arith.constant 0 : index
    %3 = vector.load %arg2[%c0_3, %c0_4] : memref<12x256xf32, #tpu.memory_space<vmem>>, vector<1x32xf32>
    %4 = vector.shape_cast %3 : vector<1x32xf32> to vector<32xf32>
    %5 = vector.shape_cast %4 : vector<32xf32> to vector<1x32xf32>
    %6 = vector.broadcast %5 : vector<1x32xf32> to vector<512x32xf32>
    %7 = arith.addf %2, %6 : vector<512x32xf32>
    %cst_5 = arith.constant 0.000000e+00 : f32
    %8 = vector.broadcast %cst_5 : f32 to vector<512x32xf32>
    %9 = arith.maximumf %7, %8 : vector<512x32xf32>
    %10 = tpu.iota {dimensions = array<i32: 0>} : vector<512x1xi32>
    %c0_i32 = arith.constant 0 : i32
    %11 = vector.broadcast %c0_i32 : i32 to vector<512x1xi32>
    %12 = arith.cmpi eq, %10, %11 : vector<512x1xi32>
    %c255_i32 = arith.constant 255 : i32
    %13 = vector.broadcast %c255_i32 : i32 to vector<512x1xi32>
    %14 = arith.cmpi eq, %10, %13 : vector<512x1xi32>
    %c256_i32 = arith.constant 256 : i32
    %15 = vector.broadcast %c256_i32 : i32 to vector<512x1xi32>
    %16 = arith.cmpi eq, %10, %15 : vector<512x1xi32>
    %17 = arith.ori %12, %16 : vector<512x1xi1>
    %c511_i32 = arith.constant 511 : i32
    %18 = vector.broadcast %c511_i32 : i32 to vector<512x1xi32>
    %19 = arith.cmpi eq, %10, %18 : vector<512x1xi32>
    %20 = arith.ori %14, %19 : vector<512x1xi1>
    %21 = arith.truncf %9 : vector<512x32xf32> to vector<512x32xbf16>
    %c1_i32 = arith.constant 1 : i32
    %22 = tpu.dynamic_rotate %9 by %c1_i32 dim 0 : vector<512x32xf32>, i32 -> vector<512x32xf32>
    %cst_6 = arith.constant 0.000000e+00 : f32
    %23 = vector.shape_cast %17 : vector<512x1xi1> to vector<512x1xi1>
    %24 = vector.broadcast %23 : vector<512x1xi1> to vector<512x32xi1>
    %25 = vector.broadcast %cst_6 : f32 to vector<512x32xf32>
    %26 = arith.select %24, %25, %22 : vector<512x32xi1>, vector<512x32xf32>
    %27 = arith.truncf %26 : vector<512x32xf32> to vector<512x32xbf16>
    %c511_i32_7 = arith.constant 511 : i32
    %28 = tpu.dynamic_rotate %9 by %c511_i32_7 dim 0 : vector<512x32xf32>, i32 -> vector<512x32xf32>
    %cst_8 = arith.constant 0.000000e+00 : f32
    %29 = vector.shape_cast %20 : vector<512x1xi1> to vector<512x1xi1>
    %30 = vector.broadcast %29 : vector<512x1xi1> to vector<512x32xi1>
    %31 = vector.broadcast %cst_8 : f32 to vector<512x32xf32>
    %32 = arith.select %30, %31, %28 : vector<512x32xi1>, vector<512x32xf32>
    %33 = arith.truncf %32 : vector<512x32xf32> to vector<512x32xbf16>
    %c0_9 = arith.constant 0 : index
    %c0_10 = arith.constant 0 : index
    %c0_11 = arith.constant 0 : index
    %34 = vector.load %arg3[%c0_9, %c0_10, %c0_11] : memref<3x32x32xbf16, #tpu.memory_space<vmem>>, vector<1x32x32xbf16>
    %35 = vector.shape_cast %34 : vector<1x32x32xbf16> to vector<32x32xbf16>
    %cst_12 = arith.constant dense<0.000000e+00> : vector<512x32xf32>
    %36 = tpu.matmul %27, %35, %cst_12 {dimension_numbers = #tpu.dot_dimension_numbers<[1], [0], [0], [1], [0, 0, 1, 1], [], []>} : vector<512x32xbf16>, vector<32x32xbf16>, vector<512x32xf32> -> vector<512x32xf32>
    %c1 = arith.constant 1 : index
    %c0_13 = arith.constant 0 : index
    %c0_14 = arith.constant 0 : index
    %37 = vector.load %arg3[%c1, %c0_13, %c0_14] : memref<3x32x32xbf16, #tpu.memory_space<vmem>>, vector<1x32x32xbf16>
    %38 = vector.shape_cast %37 : vector<1x32x32xbf16> to vector<32x32xbf16>
    %cst_15 = arith.constant dense<0.000000e+00> : vector<512x32xf32>
    %39 = tpu.matmul %21, %38, %cst_15 {dimension_numbers = #tpu.dot_dimension_numbers<[1], [0], [0], [1], [0, 0, 1, 1], [], []>} : vector<512x32xbf16>, vector<32x32xbf16>, vector<512x32xf32> -> vector<512x32xf32>
    %40 = arith.addf %36, %39 : vector<512x32xf32>
    %c2 = arith.constant 2 : index
    %c0_16 = arith.constant 0 : index
    %c0_17 = arith.constant 0 : index
    %41 = vector.load %arg3[%c2, %c0_16, %c0_17] : memref<3x32x32xbf16, #tpu.memory_space<vmem>>, vector<1x32x32xbf16>
    %42 = vector.shape_cast %41 : vector<1x32x32xbf16> to vector<32x32xbf16>
    %cst_18 = arith.constant dense<0.000000e+00> : vector<512x32xf32>
    %43 = tpu.matmul %33, %42, %cst_18 {dimension_numbers = #tpu.dot_dimension_numbers<[1], [0], [0], [1], [0, 0, 1, 1], [], []>} : vector<512x32xbf16>, vector<32x32xbf16>, vector<512x32xf32> -> vector<512x32xf32>
    %44 = arith.addf %40, %43 : vector<512x32xf32>
    %c1_19 = arith.constant 1 : index
    %c0_20 = arith.constant 0 : index
    %45 = vector.load %arg2[%c1_19, %c0_20] : memref<12x256xf32, #tpu.memory_space<vmem>>, vector<1x32xf32>
    %46 = vector.shape_cast %45 : vector<1x32xf32> to vector<32xf32>
    %47 = vector.shape_cast %46 : vector<32xf32> to vector<1x32xf32>
    %48 = vector.broadcast %47 : vector<1x32xf32> to vector<512x32xf32>
    %49 = arith.addf %44, %48 : vector<512x32xf32>
    %cst_21 = arith.constant 0.000000e+00 : f32
    %50 = vector.broadcast %cst_21 : f32 to vector<512x32xf32>
    %51 = arith.maximumf %49, %50 : vector<512x32xf32>
    %52 = arith.truncf %51 : vector<512x32xf32> to vector<512x32xbf16>
    %c1_i32_22 = arith.constant 1 : i32
    %53 = tpu.dynamic_rotate %51 by %c1_i32_22 dim 0 : vector<512x32xf32>, i32 -> vector<512x32xf32>
    %cst_23 = arith.constant 0.000000e+00 : f32
    %54 = vector.shape_cast %17 : vector<512x1xi1> to vector<512x1xi1>
    %55 = vector.broadcast %54 : vector<512x1xi1> to vector<512x32xi1>
    %56 = vector.broadcast %cst_23 : f32 to vector<512x32xf32>
    %57 = arith.select %55, %56, %53 : vector<512x32xi1>, vector<512x32xf32>
    %58 = arith.truncf %57 : vector<512x32xf32> to vector<512x32xbf16>
    %c511_i32_24 = arith.constant 511 : i32
    %59 = tpu.dynamic_rotate %51 by %c511_i32_24 dim 0 : vector<512x32xf32>, i32 -> vector<512x32xf32>
    %cst_25 = arith.constant 0.000000e+00 : f32
    %60 = vector.shape_cast %20 : vector<512x1xi1> to vector<512x1xi1>
    %61 = vector.broadcast %60 : vector<512x1xi1> to vector<512x32xi1>
    %62 = vector.broadcast %cst_25 : f32 to vector<512x32xf32>
    %63 = arith.select %61, %62, %59 : vector<512x32xi1>, vector<512x32xf32>
    %64 = arith.truncf %63 : vector<512x32xf32> to vector<512x32xbf16>
    %c0_26 = arith.constant 0 : index
    %c0_27 = arith.constant 0 : index
    %c0_28 = arith.constant 0 : index
    %65 = vector.load %arg4[%c0_26, %c0_27, %c0_28] : memref<3x32x32xbf16, #tpu.memory_space<vmem>>, vector<1x32x32xbf16>
    %66 = vector.shape_cast %65 : vector<1x32x32xbf16> to vector<32x32xbf16>
    %cst_29 = arith.constant dense<0.000000e+00> : vector<512x32xf32>
    %67 = tpu.matmul %58, %66, %cst_29 {dimension_numbers = #tpu.dot_dimension_numbers<[1], [0], [0], [1], [0, 0, 1, 1], [], []>} : vector<512x32xbf16>, vector<32x32xbf16>, vector<512x32xf32> -> vector<512x32xf32>
    %c1_30 = arith.constant 1 : index
    %c0_31 = arith.constant 0 : index
    %c0_32 = arith.constant 0 : index
    %68 = vector.load %arg4[%c1_30, %c0_31, %c0_32] : memref<3x32x32xbf16, #tpu.memory_space<vmem>>, vector<1x32x32xbf16>
    %69 = vector.shape_cast %68 : vector<1x32x32xbf16> to vector<32x32xbf16>
    %cst_33 = arith.constant dense<0.000000e+00> : vector<512x32xf32>
    %70 = tpu.matmul %52, %69, %cst_33 {dimension_numbers = #tpu.dot_dimension_numbers<[1], [0], [0], [1], [0, 0, 1, 1], [], []>} : vector<512x32xbf16>, vector<32x32xbf16>, vector<512x32xf32> -> vector<512x32xf32>
    %71 = arith.addf %67, %70 : vector<512x32xf32>
    %c2_34 = arith.constant 2 : index
    %c0_35 = arith.constant 0 : index
    %c0_36 = arith.constant 0 : index
    %72 = vector.load %arg4[%c2_34, %c0_35, %c0_36] : memref<3x32x32xbf16, #tpu.memory_space<vmem>>, vector<1x32x32xbf16>
    %73 = vector.shape_cast %72 : vector<1x32x32xbf16> to vector<32x32xbf16>
    %cst_37 = arith.constant dense<0.000000e+00> : vector<512x32xf32>
    %74 = tpu.matmul %64, %73, %cst_37 {dimension_numbers = #tpu.dot_dimension_numbers<[1], [0], [0], [1], [0, 0, 1, 1], [], []>} : vector<512x32xbf16>, vector<32x32xbf16>, vector<512x32xf32> -> vector<512x32xf32>
    %75 = arith.addf %71, %74 : vector<512x32xf32>
    %c2_38 = arith.constant 2 : index
    %c0_39 = arith.constant 0 : index
    %76 = vector.load %arg2[%c2_38, %c0_39] : memref<12x256xf32, #tpu.memory_space<vmem>>, vector<1x32xf32>
    %77 = vector.shape_cast %76 : vector<1x32xf32> to vector<32xf32>
    %78 = vector.shape_cast %77 : vector<32xf32> to vector<1x32xf32>
    %79 = vector.broadcast %78 : vector<1x32xf32> to vector<512x32xf32>
    %80 = arith.addf %75, %79 : vector<512x32xf32>
    %81 = arith.addf %80, %9 : vector<512x32xf32>
    %cst_40 = arith.constant 0.000000e+00 : f32
    %82 = vector.broadcast %cst_40 : f32 to vector<512x32xf32>
    %83 = arith.maximumf %81, %82 : vector<512x32xf32>
    %84 = arith.truncf %83 : vector<512x32xf32> to vector<512x32xbf16>
    %c0_41 = arith.constant 0 : index
    %c0_42 = arith.constant 0 : index
    %85 = vector.load %arg5[%c0_41, %c0_42] : memref<256x256xbf16, #tpu.memory_space<vmem>>, vector<256x256xbf16>
    %86 = vector.extract_strided_slice %85 {offsets = [0, 0], sizes = [128, 256], strides = [1, 1]} : vector<256x256xbf16> to vector<128x256xbf16>
    %87 = vector.extract_strided_slice %85 {offsets = [128, 0], sizes = [128, 256], strides = [1, 1]} : vector<256x256xbf16> to vector<128x256xbf16>
    %88 = vector.extract_strided_slice %84 {offsets = [0, 0], sizes = [256, 32], strides = [1, 1]} : vector<512x32xbf16> to vector<256x32xbf16>
    %cst_43 = arith.constant dense<0.000000e+00> : vector<128x32xf32>
    %89 = tpu.matmul %86, %88, %cst_43 {dimension_numbers = #tpu.dot_dimension_numbers<[1], [0], [0], [1], [0, 0, 1, 1], [], []>} : vector<128x256xbf16>, vector<256x32xbf16>, vector<128x32xf32> -> vector<128x32xf32>
    %cst_44 = arith.constant dense<0.000000e+00> : vector<128x32xf32>
    %90 = tpu.matmul %87, %88, %cst_44 {dimension_numbers = #tpu.dot_dimension_numbers<[1], [0], [0], [1], [0, 0, 1, 1], [], []>} : vector<128x256xbf16>, vector<256x32xbf16>, vector<128x32xf32> -> vector<128x32xf32>
    %91 = vector.extract_strided_slice %84 {offsets = [256, 0], sizes = [256, 32], strides = [1, 1]} : vector<512x32xbf16> to vector<256x32xbf16>
    %cst_45 = arith.constant dense<0.000000e+00> : vector<128x32xf32>
    %92 = tpu.matmul %86, %91, %cst_45 {dimension_numbers = #tpu.dot_dimension_numbers<[1], [0], [0], [1], [0, 0, 1, 1], [], []>} : vector<128x256xbf16>, vector<256x32xbf16>, vector<128x32xf32> -> vector<128x32xf32>
    %cst_46 = arith.constant dense<0.000000e+00> : vector<128x32xf32>
    %93 = tpu.matmul %87, %91, %cst_46 {dimension_numbers = #tpu.dot_dimension_numbers<[1], [0], [0], [1], [0, 0, 1, 1], [], []>} : vector<128x256xbf16>, vector<256x32xbf16>, vector<128x32xf32> -> vector<128x32xf32>
    %94 = tpu.concatenate %89, %92 in 0 : vector<128x32xf32>, vector<128x32xf32> -> vector<256x32xf32>
    %95 = tpu.concatenate %90, %93 in 0 : vector<128x32xf32>, vector<128x32xf32> -> vector<256x32xf32>
    %96 = tpu.iota {dimensions = array<i32: 0>} : vector<256x1xi32>
    %c0_i32_47 = arith.constant 0 : i32
    %97 = vector.broadcast %c0_i32_47 : i32 to vector<256x1xi32>
    %98 = arith.cmpi eq, %96, %97 : vector<256x1xi32>
    %c127_i32 = arith.constant 127 : i32
    %99 = vector.broadcast %c127_i32 : i32 to vector<256x1xi32>
    %100 = arith.cmpi eq, %96, %99 : vector<256x1xi32>
    %c128_i32 = arith.constant 128 : i32
    %101 = vector.broadcast %c128_i32 : i32 to vector<256x1xi32>
    %102 = arith.cmpi eq, %96, %101 : vector<256x1xi32>
    %103 = arith.ori %98, %102 : vector<256x1xi1>
    %c255_i32_48 = arith.constant 255 : i32
    %104 = vector.broadcast %c255_i32_48 : i32 to vector<256x1xi32>
    %105 = arith.cmpi eq, %96, %104 : vector<256x1xi32>
    %106 = arith.ori %100, %105 : vector<256x1xi1>
    %107 = arith.truncf %94 : vector<256x32xf32> to vector<256x32xbf16>
    %108 = arith.truncf %95 : vector<256x32xf32> to vector<256x32xbf16>
    %c1_i32_49 = arith.constant 1 : i32
    %109 = tpu.dynamic_rotate %95 by %c1_i32_49 dim 0 : vector<256x32xf32>, i32 -> vector<256x32xf32>
    %cst_50 = arith.constant 0.000000e+00 : f32
    %110 = vector.shape_cast %103 : vector<256x1xi1> to vector<256x1xi1>
    %111 = vector.broadcast %110 : vector<256x1xi1> to vector<256x32xi1>
    %112 = vector.broadcast %cst_50 : f32 to vector<256x32xf32>
    %113 = arith.select %111, %112, %109 : vector<256x32xi1>, vector<256x32xf32>
    %114 = arith.truncf %113 : vector<256x32xf32> to vector<256x32xbf16>
    %c0_51 = arith.constant 0 : index
    %c0_52 = arith.constant 0 : index
    %c0_53 = arith.constant 0 : index
    %115 = vector.load %arg6[%c0_51, %c0_52, %c0_53] : memref<3x32x64xbf16, #tpu.memory_space<vmem>>, vector<1x32x64xbf16>
    %116 = vector.shape_cast %115 : vector<1x32x64xbf16> to vector<32x64xbf16>
    %cst_54 = arith.constant dense<0.000000e+00> : vector<256x64xf32>
    %117 = tpu.matmul %114, %116, %cst_54 {dimension_numbers = #tpu.dot_dimension_numbers<[1], [0], [0], [1], [0, 0, 1, 1], [], []>} : vector<256x32xbf16>, vector<32x64xbf16>, vector<256x64xf32> -> vector<256x64xf32>
    %c1_55 = arith.constant 1 : index
    %c0_56 = arith.constant 0 : index
    %c0_57 = arith.constant 0 : index
    %118 = vector.load %arg6[%c1_55, %c0_56, %c0_57] : memref<3x32x64xbf16, #tpu.memory_space<vmem>>, vector<1x32x64xbf16>
    %119 = vector.shape_cast %118 : vector<1x32x64xbf16> to vector<32x64xbf16>
    %cst_58 = arith.constant dense<0.000000e+00> : vector<256x64xf32>
    %120 = tpu.matmul %107, %119, %cst_58 {dimension_numbers = #tpu.dot_dimension_numbers<[1], [0], [0], [1], [0, 0, 1, 1], [], []>} : vector<256x32xbf16>, vector<32x64xbf16>, vector<256x64xf32> -> vector<256x64xf32>
    %121 = arith.addf %117, %120 : vector<256x64xf32>
    %c2_59 = arith.constant 2 : index
    %c0_60 = arith.constant 0 : index
    %c0_61 = arith.constant 0 : index
    %122 = vector.load %arg6[%c2_59, %c0_60, %c0_61] : memref<3x32x64xbf16, #tpu.memory_space<vmem>>, vector<1x32x64xbf16>
    %123 = vector.shape_cast %122 : vector<1x32x64xbf16> to vector<32x64xbf16>
    %cst_62 = arith.constant dense<0.000000e+00> : vector<256x64xf32>
    %124 = tpu.matmul %108, %123, %cst_62 {dimension_numbers = #tpu.dot_dimension_numbers<[1], [0], [0], [1], [0, 0, 1, 1], [], []>} : vector<256x32xbf16>, vector<32x64xbf16>, vector<256x64xf32> -> vector<256x64xf32>
    %125 = arith.addf %121, %124 : vector<256x64xf32>
    %c3 = arith.constant 3 : index
    %c0_63 = arith.constant 0 : index
    %126 = vector.load %arg2[%c3, %c0_63] : memref<12x256xf32, #tpu.memory_space<vmem>>, vector<1x64xf32>
    %127 = vector.shape_cast %126 : vector<1x64xf32> to vector<64xf32>
    %128 = vector.shape_cast %127 : vector<64xf32> to vector<1x64xf32>
    %129 = vector.broadcast %128 : vector<1x64xf32> to vector<256x64xf32>
    %130 = arith.addf %125, %129 : vector<256x64xf32>
    %cst_64 = arith.constant 0.000000e+00 : f32
    %131 = vector.broadcast %cst_64 : f32 to vector<256x64xf32>
    %132 = arith.maximumf %130, %131 : vector<256x64xf32>
    %c0_65 = arith.constant 0 : index
    %c0_66 = arith.constant 0 : index
    %133 = vector.load %arg8[%c0_65, %c0_66] : memref<32x64xbf16, #tpu.memory_space<vmem>>, vector<32x64xbf16>
    %cst_67 = arith.constant dense<0.000000e+00> : vector<256x64xf32>
    %134 = tpu.matmul %107, %133, %cst_67 {dimension_numbers = #tpu.dot_dimension_numbers<[1], [0], [0], [1], [0, 0, 1, 1], [], []>} : vector<256x32xbf16>, vector<32x64xbf16>, vector<256x64xf32> -> vector<256x64xf32>
    %c5 = arith.constant 5 : index
    %c0_68 = arith.constant 0 : index
    %135 = vector.load %arg2[%c5, %c0_68] : memref<12x256xf32, #tpu.memory_space<vmem>>, vector<1x64xf32>
    %136 = vector.shape_cast %135 : vector<1x64xf32> to vector<64xf32>
    %137 = vector.shape_cast %136 : vector<64xf32> to vector<1x64xf32>
    %138 = vector.broadcast %137 : vector<1x64xf32> to vector<256x64xf32>
    %139 = arith.addf %134, %138 : vector<256x64xf32>
    %140 = arith.truncf %132 : vector<256x64xf32> to vector<256x64xbf16>
    %c1_i32_69 = arith.constant 1 : i32
    %141 = tpu.dynamic_rotate %132 by %c1_i32_69 dim 0 : vector<256x64xf32>, i32 -> vector<256x64xf32>
    %cst_70 = arith.constant 0.000000e+00 : f32
    %142 = vector.shape_cast %103 : vector<256x1xi1> to vector<256x1xi1>
    %143 = vector.broadcast %142 : vector<256x1xi1> to vector<256x64xi1>
    %144 = vector.broadcast %cst_70 : f32 to vector<256x64xf32>
    %145 = arith.select %143, %144, %141 : vector<256x64xi1>, vector<256x64xf32>
    %146 = arith.truncf %145 : vector<256x64xf32> to vector<256x64xbf16>
    %c255_i32_71 = arith.constant 255 : i32
    %147 = tpu.dynamic_rotate %132 by %c255_i32_71 dim 0 : vector<256x64xf32>, i32 -> vector<256x64xf32>
    %cst_72 = arith.constant 0.000000e+00 : f32
    %148 = vector.shape_cast %106 : vector<256x1xi1> to vector<256x1xi1>
    %149 = vector.broadcast %148 : vector<256x1xi1> to vector<256x64xi1>
    %150 = vector.broadcast %cst_72 : f32 to vector<256x64xf32>
    %151 = arith.select %149, %150, %147 : vector<256x64xi1>, vector<256x64xf32>
    %152 = arith.truncf %151 : vector<256x64xf32> to vector<256x64xbf16>
    %c0_73 = arith.constant 0 : index
    %c0_74 = arith.constant 0 : index
    %c0_75 = arith.constant 0 : index
    %153 = vector.load %arg7[%c0_73, %c0_74, %c0_75] : memref<3x64x64xbf16, #tpu.memory_space<vmem>>, vector<1x64x64xbf16>
    %154 = vector.shape_cast %153 : vector<1x64x64xbf16> to vector<64x64xbf16>
    %cst_76 = arith.constant dense<0.000000e+00> : vector<256x64xf32>
    %155 = tpu.matmul %146, %154, %cst_76 {dimension_numbers = #tpu.dot_dimension_numbers<[1], [0], [0], [1], [0, 0, 1, 1], [], []>} : vector<256x64xbf16>, vector<64x64xbf16>, vector<256x64xf32> -> vector<256x64xf32>
    %c1_77 = arith.constant 1 : index
    %c0_78 = arith.constant 0 : index
    %c0_79 = arith.constant 0 : index
    %156 = vector.load %arg7[%c1_77, %c0_78, %c0_79] : memref<3x64x64xbf16, #tpu.memory_space<vmem>>, vector<1x64x64xbf16>
    %157 = vector.shape_cast %156 : vector<1x64x64xbf16> to vector<64x64xbf16>
    %cst_80 = arith.constant dense<0.000000e+00> : vector<256x64xf32>
    %158 = tpu.matmul %140, %157, %cst_80 {dimension_numbers = #tpu.dot_dimension_numbers<[1], [0], [0], [1], [0, 0, 1, 1], [], []>} : vector<256x64xbf16>, vector<64x64xbf16>, vector<256x64xf32> -> vector<256x64xf32>
    %159 = arith.addf %155, %158 : vector<256x64xf32>
    %c2_81 = arith.constant 2 : index
    %c0_82 = arith.constant 0 : index
    %c0_83 = arith.constant 0 : index
    %160 = vector.load %arg7[%c2_81, %c0_82, %c0_83] : memref<3x64x64xbf16, #tpu.memory_space<vmem>>, vector<1x64x64xbf16>
    %161 = vector.shape_cast %160 : vector<1x64x64xbf16> to vector<64x64xbf16>
    %cst_84 = arith.constant dense<0.000000e+00> : vector<256x64xf32>
    %162 = tpu.matmul %152, %161, %cst_84 {dimension_numbers = #tpu.dot_dimension_numbers<[1], [0], [0], [1], [0, 0, 1, 1], [], []>} : vector<256x64xbf16>, vector<64x64xbf16>, vector<256x64xf32> -> vector<256x64xf32>
    %163 = arith.addf %159, %162 : vector<256x64xf32>
    %c4 = arith.constant 4 : index
    %c0_85 = arith.constant 0 : index
    %164 = vector.load %arg2[%c4, %c0_85] : memref<12x256xf32, #tpu.memory_space<vmem>>, vector<1x64xf32>
    %165 = vector.shape_cast %164 : vector<1x64xf32> to vector<64xf32>
    %166 = vector.shape_cast %165 : vector<64xf32> to vector<1x64xf32>
    %167 = vector.broadcast %166 : vector<1x64xf32> to vector<256x64xf32>
    %168 = arith.addf %163, %167 : vector<256x64xf32>
    %169 = arith.addf %168, %139 : vector<256x64xf32>
    %cst_86 = arith.constant 0.000000e+00 : f32
    %170 = vector.broadcast %cst_86 : f32 to vector<256x64xf32>
    %171 = arith.maximumf %169, %170 : vector<256x64xf32>
    %172 = arith.truncf %171 : vector<256x64xf32> to vector<256x64xbf16>
    %c0_87 = arith.constant 0 : index
    %c0_88 = arith.constant 0 : index
    %173 = vector.load %arg9[%c0_87, %c0_88] : memref<128x128xbf16, #tpu.memory_space<vmem>>, vector<128x128xbf16>
    %174 = vector.extract_strided_slice %173 {offsets = [0, 0], sizes = [64, 128], strides = [1, 1]} : vector<128x128xbf16> to vector<64x128xbf16>
    %175 = vector.extract_strided_slice %173 {offsets = [64, 0], sizes = [64, 128], strides = [1, 1]} : vector<128x128xbf16> to vector<64x128xbf16>
    %176 = vector.extract_strided_slice %172 {offsets = [0, 0], sizes = [128, 64], strides = [1, 1]} : vector<256x64xbf16> to vector<128x64xbf16>
    %cst_89 = arith.constant dense<0.000000e+00> : vector<64x64xf32>
    %177 = tpu.matmul %174, %176, %cst_89 {dimension_numbers = #tpu.dot_dimension_numbers<[1], [0], [0], [1], [0, 0, 1, 1], [], []>} : vector<64x128xbf16>, vector<128x64xbf16>, vector<64x64xf32> -> vector<64x64xf32>
    %cst_90 = arith.constant dense<0.000000e+00> : vector<64x64xf32>
    %178 = tpu.matmul %175, %176, %cst_90 {dimension_numbers = #tpu.dot_dimension_numbers<[1], [0], [0], [1], [0, 0, 1, 1], [], []>} : vector<64x128xbf16>, vector<128x64xbf16>, vector<64x64xf32> -> vector<64x64xf32>
    %179 = vector.extract_strided_slice %172 {offsets = [128, 0], sizes = [128, 64], strides = [1, 1]} : vector<256x64xbf16> to vector<128x64xbf16>
    %cst_91 = arith.constant dense<0.000000e+00> : vector<64x64xf32>
    %180 = tpu.matmul %174, %179, %cst_91 {dimension_numbers = #tpu.dot_dimension_numbers<[1], [0], [0], [1], [0, 0, 1, 1], [], []>} : vector<64x128xbf16>, vector<128x64xbf16>, vector<64x64xf32> -> vector<64x64xf32>
    %cst_92 = arith.constant dense<0.000000e+00> : vector<64x64xf32>
    %181 = tpu.matmul %175, %179, %cst_92 {dimension_numbers = #tpu.dot_dimension_numbers<[1], [0], [0], [1], [0, 0, 1, 1], [], []>} : vector<64x128xbf16>, vector<128x64xbf16>, vector<64x64xf32> -> vector<64x64xf32>
    %182 = tpu.concatenate %177, %180 in 0 : vector<64x64xf32>, vector<64x64xf32> -> vector<128x64xf32>
    %183 = tpu.concatenate %178, %181 in 0 : vector<64x64xf32>, vector<64x64xf32> -> vector<128x64xf32>
    %184 = tpu.iota {dimensions = array<i32: 0>} : vector<128x1xi32>
    %c0_i32_93 = arith.constant 0 : i32
    %185 = vector.broadcast %c0_i32_93 : i32 to vector<128x1xi32>
    %186 = arith.cmpi eq, %184, %185 : vector<128x1xi32>
    %c63_i32 = arith.constant 63 : i32
    %187 = vector.broadcast %c63_i32 : i32 to vector<128x1xi32>
    %188 = arith.cmpi eq, %184, %187 : vector<128x1xi32>
    %c64_i32 = arith.constant 64 : i32
    %189 = vector.broadcast %c64_i32 : i32 to vector<128x1xi32>
    %190 = arith.cmpi eq, %184, %189 : vector<128x1xi32>
    %191 = arith.ori %186, %190 : vector<128x1xi1>
    %c127_i32_94 = arith.constant 127 : i32
    %192 = vector.broadcast %c127_i32_94 : i32 to vector<128x1xi32>
    %193 = arith.cmpi eq, %184, %192 : vector<128x1xi32>
    %194 = arith.ori %188, %193 : vector<128x1xi1>
    %195 = arith.truncf %182 : vector<128x64xf32> to vector<128x64xbf16>
    %196 = arith.truncf %183 : vector<128x64xf32> to vector<128x64xbf16>
    %c1_i32_95 = arith.constant 1 : i32
    %197 = tpu.dynamic_rotate %183 by %c1_i32_95 dim 0 : vector<128x64xf32>, i32 -> vector<128x64xf32>
    %cst_96 = arith.constant 0.000000e+00 : f32
    %198 = vector.shape_cast %191 : vector<128x1xi1> to vector<128x1xi1>
    %199 = vector.broadcast %198 : vector<128x1xi1> to vector<128x64xi1>
    %200 = vector.broadcast %cst_96 : f32 to vector<128x64xf32>
    %201 = arith.select %199, %200, %197 : vector<128x64xi1>, vector<128x64xf32>
    %202 = arith.truncf %201 : vector<128x64xf32> to vector<128x64xbf16>
    %c0_97 = arith.constant 0 : index
    %c0_98 = arith.constant 0 : index
    %c0_99 = arith.constant 0 : index
    %203 = vector.load %arg10[%c0_97, %c0_98, %c0_99] : memref<3x64x128xbf16, #tpu.memory_space<vmem>>, vector<1x64x128xbf16>
    %204 = vector.shape_cast %203 : vector<1x64x128xbf16> to vector<64x128xbf16>
    %cst_100 = arith.constant dense<0.000000e+00> : vector<128x128xf32>
    %205 = tpu.matmul %202, %204, %cst_100 {dimension_numbers = #tpu.dot_dimension_numbers<[1], [0], [0], [1], [0, 0, 1, 1], [], []>} : vector<128x64xbf16>, vector<64x128xbf16>, vector<128x128xf32> -> vector<128x128xf32>
    %c1_101 = arith.constant 1 : index
    %c0_102 = arith.constant 0 : index
    %c0_103 = arith.constant 0 : index
    %206 = vector.load %arg10[%c1_101, %c0_102, %c0_103] : memref<3x64x128xbf16, #tpu.memory_space<vmem>>, vector<1x64x128xbf16>
    %207 = vector.shape_cast %206 : vector<1x64x128xbf16> to vector<64x128xbf16>
    %cst_104 = arith.constant dense<0.000000e+00> : vector<128x128xf32>
    %208 = tpu.matmul %195, %207, %cst_104 {dimension_numbers = #tpu.dot_dimension_numbers<[1], [0], [0], [1], [0, 0, 1, 1], [], []>} : vector<128x64xbf16>, vector<64x128xbf16>, vector<128x128xf32> -> vector<128x128xf32>
    %209 = arith.addf %205, %208 : vector<128x128xf32>
    %c2_105 = arith.constant 2 : index
    %c0_106 = arith.constant 0 : index
    %c0_107 = arith.constant 0 : index
    %210 = vector.load %arg10[%c2_105, %c0_106, %c0_107] : memref<3x64x128xbf16, #tpu.memory_space<vmem>>, vector<1x64x128xbf16>
    %211 = vector.shape_cast %210 : vector<1x64x128xbf16> to vector<64x128xbf16>
    %cst_108 = arith.constant dense<0.000000e+00> : vector<128x128xf32>
    %212 = tpu.matmul %196, %211, %cst_108 {dimension_numbers = #tpu.dot_dimension_numbers<[1], [0], [0], [1], [0, 0, 1, 1], [], []>} : vector<128x64xbf16>, vector<64x128xbf16>, vector<128x128xf32> -> vector<128x128xf32>
    %213 = arith.addf %209, %212 : vector<128x128xf32>
    %c6 = arith.constant 6 : index
    %c0_109 = arith.constant 0 : index
    %214 = vector.load %arg2[%c6, %c0_109] : memref<12x256xf32, #tpu.memory_space<vmem>>, vector<1x128xf32>
    %215 = vector.shape_cast %214 : vector<1x128xf32> to vector<128xf32>
    %216 = vector.shape_cast %215 : vector<128xf32> to vector<1x128xf32>
    %217 = vector.broadcast %216 : vector<1x128xf32> to vector<128x128xf32>
    %218 = arith.addf %213, %217 : vector<128x128xf32>
    %cst_110 = arith.constant 0.000000e+00 : f32
    %219 = vector.broadcast %cst_110 : f32 to vector<128x128xf32>
    %220 = arith.maximumf %218, %219 : vector<128x128xf32>
    %c0_111 = arith.constant 0 : index
    %c0_112 = arith.constant 0 : index
    %221 = vector.load %arg12[%c0_111, %c0_112] : memref<64x128xbf16, #tpu.memory_space<vmem>>, vector<64x128xbf16>
    %cst_113 = arith.constant dense<0.000000e+00> : vector<128x128xf32>
    %222 = tpu.matmul %195, %221, %cst_113 {dimension_numbers = #tpu.dot_dimension_numbers<[1], [0], [0], [1], [0, 0, 1, 1], [], []>} : vector<128x64xbf16>, vector<64x128xbf16>, vector<128x128xf32> -> vector<128x128xf32>
    %c8 = arith.constant 8 : index
    %c0_114 = arith.constant 0 : index
    %223 = vector.load %arg2[%c8, %c0_114] : memref<12x256xf32, #tpu.memory_space<vmem>>, vector<1x128xf32>
    %224 = vector.shape_cast %223 : vector<1x128xf32> to vector<128xf32>
    %225 = vector.shape_cast %224 : vector<128xf32> to vector<1x128xf32>
    %226 = vector.broadcast %225 : vector<1x128xf32> to vector<128x128xf32>
    %227 = arith.addf %222, %226 : vector<128x128xf32>
    %228 = arith.truncf %220 : vector<128x128xf32> to vector<128x128xbf16>
    %c1_i32_115 = arith.constant 1 : i32
    %229 = tpu.dynamic_rotate %220 by %c1_i32_115 dim 0 : vector<128x128xf32>, i32 -> vector<128x128xf32>
    %cst_116 = arith.constant 0.000000e+00 : f32
    %230 = vector.shape_cast %191 : vector<128x1xi1> to vector<128x1xi1>
    %231 = vector.broadcast %230 : vector<128x1xi1> to vector<128x128xi1>
    %232 = vector.broadcast %cst_116 : f32 to vector<128x128xf32>
    %233 = arith.select %231, %232, %229 : vector<128x128xi1>, vector<128x128xf32>
    %234 = arith.truncf %233 : vector<128x128xf32> to vector<128x128xbf16>
    %c127_i32_117 = arith.constant 127 : i32
    %235 = tpu.dynamic_rotate %220 by %c127_i32_117 dim 0 : vector<128x128xf32>, i32 -> vector<128x128xf32>
    %cst_118 = arith.constant 0.000000e+00 : f32
    %236 = vector.shape_cast %194 : vector<128x1xi1> to vector<128x1xi1>
    %237 = vector.broadcast %236 : vector<128x1xi1> to vector<128x128xi1>
    %238 = vector.broadcast %cst_118 : f32 to vector<128x128xf32>
    %239 = arith.select %237, %238, %235 : vector<128x128xi1>, vector<128x128xf32>
    %240 = arith.truncf %239 : vector<128x128xf32> to vector<128x128xbf16>
    %c0_119 = arith.constant 0 : index
    %c0_120 = arith.constant 0 : index
    %c0_121 = arith.constant 0 : index
    %241 = vector.load %arg11[%c0_119, %c0_120, %c0_121] : memref<3x128x128xbf16, #tpu.memory_space<vmem>>, vector<1x128x128xbf16>
    %242 = vector.shape_cast %241 : vector<1x128x128xbf16> to vector<128x128xbf16>
    %cst_122 = arith.constant dense<0.000000e+00> : vector<128x128xf32>
    %243 = tpu.matmul %234, %242, %cst_122 {dimension_numbers = #tpu.dot_dimension_numbers<[1], [0], [0], [1], [0, 0, 1, 1], [], []>} : vector<128x128xbf16>, vector<128x128xbf16>, vector<128x128xf32> -> vector<128x128xf32>
    %c1_123 = arith.constant 1 : index
    %c0_124 = arith.constant 0 : index
    %c0_125 = arith.constant 0 : index
    %244 = vector.load %arg11[%c1_123, %c0_124, %c0_125] : memref<3x128x128xbf16, #tpu.memory_space<vmem>>, vector<1x128x128xbf16>
    %245 = vector.shape_cast %244 : vector<1x128x128xbf16> to vector<128x128xbf16>
    %cst_126 = arith.constant dense<0.000000e+00> : vector<128x128xf32>
    %246 = tpu.matmul %228, %245, %cst_126 {dimension_numbers = #tpu.dot_dimension_numbers<[1], [0], [0], [1], [0, 0, 1, 1], [], []>} : vector<128x128xbf16>, vector<128x128xbf16>, vector<128x128xf32> -> vector<128x128xf32>
    %247 = arith.addf %243, %246 : vector<128x128xf32>
    %c2_127 = arith.constant 2 : index
    %c0_128 = arith.constant 0 : index
    %c0_129 = arith.constant 0 : index
    %248 = vector.load %arg11[%c2_127, %c0_128, %c0_129] : memref<3x128x128xbf16, #tpu.memory_space<vmem>>, vector<1x128x128xbf16>
    %249 = vector.shape_cast %248 : vector<1x128x128xbf16> to vector<128x128xbf16>
    %cst_130 = arith.constant dense<0.000000e+00> : vector<128x128xf32>
    %250 = tpu.matmul %240, %249, %cst_130 {dimension_numbers = #tpu.dot_dimension_numbers<[1], [0], [0], [1], [0, 0, 1, 1], [], []>} : vector<128x128xbf16>, vector<128x128xbf16>, vector<128x128xf32> -> vector<128x128xf32>
    %251 = arith.addf %247, %250 : vector<128x128xf32>
    %c7 = arith.constant 7 : index
    %c0_131 = arith.constant 0 : index
    %252 = vector.load %arg2[%c7, %c0_131] : memref<12x256xf32, #tpu.memory_space<vmem>>, vector<1x128xf32>
    %253 = vector.shape_cast %252 : vector<1x128xf32> to vector<128xf32>
    %254 = vector.shape_cast %253 : vector<128xf32> to vector<1x128xf32>
    %255 = vector.broadcast %254 : vector<1x128xf32> to vector<128x128xf32>
    %256 = arith.addf %251, %255 : vector<128x128xf32>
    %257 = arith.addf %256, %227 : vector<128x128xf32>
    %cst_132 = arith.constant 0.000000e+00 : f32
    %258 = vector.broadcast %cst_132 : f32 to vector<128x128xf32>
    %259 = arith.maximumf %257, %258 : vector<128x128xf32>
    %260 = arith.truncf %259 : vector<128x128xf32> to vector<128x128xbf16>
    %c0_133 = arith.constant 0 : index
    %c0_134 = arith.constant 0 : index
    %261 = vector.load %arg13[%c0_133, %c0_134] : memref<64x64xbf16, #tpu.memory_space<vmem>>, vector<64x64xbf16>
    %262 = vector.extract_strided_slice %261 {offsets = [0, 0], sizes = [32, 64], strides = [1, 1]} : vector<64x64xbf16> to vector<32x64xbf16>
    %263 = vector.extract_strided_slice %261 {offsets = [32, 0], sizes = [32, 64], strides = [1, 1]} : vector<64x64xbf16> to vector<32x64xbf16>
    %264 = vector.extract_strided_slice %260 {offsets = [0, 0], sizes = [64, 128], strides = [1, 1]} : vector<128x128xbf16> to vector<64x128xbf16>
    %cst_135 = arith.constant dense<0.000000e+00> : vector<32x128xf32>
    %265 = tpu.matmul %262, %264, %cst_135 {dimension_numbers = #tpu.dot_dimension_numbers<[1], [0], [0], [1], [0, 0, 1, 1], [], []>} : vector<32x64xbf16>, vector<64x128xbf16>, vector<32x128xf32> -> vector<32x128xf32>
    %cst_136 = arith.constant dense<0.000000e+00> : vector<32x128xf32>
    %266 = tpu.matmul %263, %264, %cst_136 {dimension_numbers = #tpu.dot_dimension_numbers<[1], [0], [0], [1], [0, 0, 1, 1], [], []>} : vector<32x64xbf16>, vector<64x128xbf16>, vector<32x128xf32> -> vector<32x128xf32>
    %267 = vector.extract_strided_slice %260 {offsets = [64, 0], sizes = [64, 128], strides = [1, 1]} : vector<128x128xbf16> to vector<64x128xbf16>
    %cst_137 = arith.constant dense<0.000000e+00> : vector<32x128xf32>
    %268 = tpu.matmul %262, %267, %cst_137 {dimension_numbers = #tpu.dot_dimension_numbers<[1], [0], [0], [1], [0, 0, 1, 1], [], []>} : vector<32x64xbf16>, vector<64x128xbf16>, vector<32x128xf32> -> vector<32x128xf32>
    %cst_138 = arith.constant dense<0.000000e+00> : vector<32x128xf32>
    %269 = tpu.matmul %263, %267, %cst_138 {dimension_numbers = #tpu.dot_dimension_numbers<[1], [0], [0], [1], [0, 0, 1, 1], [], []>} : vector<32x64xbf16>, vector<64x128xbf16>, vector<32x128xf32> -> vector<32x128xf32>
    %270 = tpu.concatenate %265, %268 in 0 : vector<32x128xf32>, vector<32x128xf32> -> vector<64x128xf32>
    %271 = tpu.concatenate %266, %269 in 0 : vector<32x128xf32>, vector<32x128xf32> -> vector<64x128xf32>
    %272 = tpu.iota {dimensions = array<i32: 0>} : vector<64x1xi32>
    %c0_i32_139 = arith.constant 0 : i32
    %273 = vector.broadcast %c0_i32_139 : i32 to vector<64x1xi32>
    %274 = arith.cmpi eq, %272, %273 : vector<64x1xi32>
    %c31_i32 = arith.constant 31 : i32
    %275 = vector.broadcast %c31_i32 : i32 to vector<64x1xi32>
    %276 = arith.cmpi eq, %272, %275 : vector<64x1xi32>
    %c32_i32 = arith.constant 32 : i32
    %277 = vector.broadcast %c32_i32 : i32 to vector<64x1xi32>
    %278 = arith.cmpi eq, %272, %277 : vector<64x1xi32>
    %279 = arith.ori %274, %278 : vector<64x1xi1>
    %c63_i32_140 = arith.constant 63 : i32
    %280 = vector.broadcast %c63_i32_140 : i32 to vector<64x1xi32>
    %281 = arith.cmpi eq, %272, %280 : vector<64x1xi32>
    %282 = arith.ori %276, %281 : vector<64x1xi1>
    %283 = arith.truncf %270 : vector<64x128xf32> to vector<64x128xbf16>
    %284 = arith.truncf %271 : vector<64x128xf32> to vector<64x128xbf16>
    %c1_i32_141 = arith.constant 1 : i32
    %285 = tpu.dynamic_rotate %271 by %c1_i32_141 dim 0 : vector<64x128xf32>, i32 -> vector<64x128xf32>
    %cst_142 = arith.constant 0.000000e+00 : f32
    %286 = vector.shape_cast %279 : vector<64x1xi1> to vector<64x1xi1>
    %287 = vector.broadcast %286 : vector<64x1xi1> to vector<64x128xi1>
    %288 = vector.broadcast %cst_142 : f32 to vector<64x128xf32>
    %289 = arith.select %287, %288, %285 : vector<64x128xi1>, vector<64x128xf32>
    %290 = arith.truncf %289 : vector<64x128xf32> to vector<64x128xbf16>
    %c0_143 = arith.constant 0 : index
    %c0_144 = arith.constant 0 : index
    %c0_145 = arith.constant 0 : index
    %291 = vector.load %arg14[%c0_143, %c0_144, %c0_145] : memref<3x128x256xbf16, #tpu.memory_space<vmem>>, vector<1x128x256xbf16>
    %292 = vector.shape_cast %291 : vector<1x128x256xbf16> to vector<128x256xbf16>
    %cst_146 = arith.constant dense<0.000000e+00> : vector<64x256xf32>
    %293 = tpu.matmul %290, %292, %cst_146 {dimension_numbers = #tpu.dot_dimension_numbers<[1], [0], [0], [1], [0, 0, 1, 1], [], []>} : vector<64x128xbf16>, vector<128x256xbf16>, vector<64x256xf32> -> vector<64x256xf32>
    %c1_147 = arith.constant 1 : index
    %c0_148 = arith.constant 0 : index
    %c0_149 = arith.constant 0 : index
    %294 = vector.load %arg14[%c1_147, %c0_148, %c0_149] : memref<3x128x256xbf16, #tpu.memory_space<vmem>>, vector<1x128x256xbf16>
    %295 = vector.shape_cast %294 : vector<1x128x256xbf16> to vector<128x256xbf16>
    %cst_150 = arith.constant dense<0.000000e+00> : vector<64x256xf32>
    %296 = tpu.matmul %283, %295, %cst_150 {dimension_numbers = #tpu.dot_dimension_numbers<[1], [0], [0], [1], [0, 0, 1, 1], [], []>} : vector<64x128xbf16>, vector<128x256xbf16>, vector<64x256xf32> -> vector<64x256xf32>
    %297 = arith.addf %293, %296 : vector<64x256xf32>
    %c2_151 = arith.constant 2 : index
    %c0_152 = arith.constant 0 : index
    %c0_153 = arith.constant 0 : index
    %298 = vector.load %arg14[%c2_151, %c0_152, %c0_153] : memref<3x128x256xbf16, #tpu.memory_space<vmem>>, vector<1x128x256xbf16>
    %299 = vector.shape_cast %298 : vector<1x128x256xbf16> to vector<128x256xbf16>
    %cst_154 = arith.constant dense<0.000000e+00> : vector<64x256xf32>
    %300 = tpu.matmul %284, %299, %cst_154 {dimension_numbers = #tpu.dot_dimension_numbers<[1], [0], [0], [1], [0, 0, 1, 1], [], []>} : vector<64x128xbf16>, vector<128x256xbf16>, vector<64x256xf32> -> vector<64x256xf32>
    %301 = arith.addf %297, %300 : vector<64x256xf32>
    %c9 = arith.constant 9 : index
    %c0_155 = arith.constant 0 : index
    %302 = vector.load %arg2[%c9, %c0_155] : memref<12x256xf32, #tpu.memory_space<vmem>>, vector<1x256xf32>
    %303 = vector.shape_cast %302 : vector<1x256xf32> to vector<256xf32>
    %304 = vector.shape_cast %303 : vector<256xf32> to vector<1x256xf32>
    %305 = vector.broadcast %304 : vector<1x256xf32> to vector<64x256xf32>
    %306 = arith.addf %301, %305 : vector<64x256xf32>
    %cst_156 = arith.constant 0.000000e+00 : f32
    %307 = vector.broadcast %cst_156 : f32 to vector<64x256xf32>
    %308 = arith.maximumf %306, %307 : vector<64x256xf32>
    %c0_157 = arith.constant 0 : index
    %c0_158 = arith.constant 0 : index
    %309 = vector.load %arg16[%c0_157, %c0_158] : memref<128x256xbf16, #tpu.memory_space<vmem>>, vector<128x256xbf16>
    %cst_159 = arith.constant dense<0.000000e+00> : vector<64x256xf32>
    %310 = tpu.matmul %283, %309, %cst_159 {dimension_numbers = #tpu.dot_dimension_numbers<[1], [0], [0], [1], [0, 0, 1, 1], [], []>} : vector<64x128xbf16>, vector<128x256xbf16>, vector<64x256xf32> -> vector<64x256xf32>
    %c11 = arith.constant 11 : index
    %c0_160 = arith.constant 0 : index
    %311 = vector.load %arg2[%c11, %c0_160] : memref<12x256xf32, #tpu.memory_space<vmem>>, vector<1x256xf32>
    %312 = vector.shape_cast %311 : vector<1x256xf32> to vector<256xf32>
    %313 = vector.shape_cast %312 : vector<256xf32> to vector<1x256xf32>
    %314 = vector.broadcast %313 : vector<1x256xf32> to vector<64x256xf32>
    %315 = arith.addf %310, %314 : vector<64x256xf32>
    %316 = arith.truncf %308 : vector<64x256xf32> to vector<64x256xbf16>
    %c1_i32_161 = arith.constant 1 : i32
    %317 = tpu.dynamic_rotate %308 by %c1_i32_161 dim 0 : vector<64x256xf32>, i32 -> vector<64x256xf32>
    %cst_162 = arith.constant 0.000000e+00 : f32
    %318 = vector.shape_cast %279 : vector<64x1xi1> to vector<64x1xi1>
    %319 = vector.broadcast %318 : vector<64x1xi1> to vector<64x256xi1>
    %320 = vector.broadcast %cst_162 : f32 to vector<64x256xf32>
    %321 = arith.select %319, %320, %317 : vector<64x256xi1>, vector<64x256xf32>
    %322 = arith.truncf %321 : vector<64x256xf32> to vector<64x256xbf16>
    %c63_i32_163 = arith.constant 63 : i32
    %323 = tpu.dynamic_rotate %308 by %c63_i32_163 dim 0 : vector<64x256xf32>, i32 -> vector<64x256xf32>
    %cst_164 = arith.constant 0.000000e+00 : f32
    %324 = vector.shape_cast %282 : vector<64x1xi1> to vector<64x1xi1>
    %325 = vector.broadcast %324 : vector<64x1xi1> to vector<64x256xi1>
    %326 = vector.broadcast %cst_164 : f32 to vector<64x256xf32>
    %327 = arith.select %325, %326, %323 : vector<64x256xi1>, vector<64x256xf32>
    %328 = arith.truncf %327 : vector<64x256xf32> to vector<64x256xbf16>
    %c0_165 = arith.constant 0 : index
    %c0_166 = arith.constant 0 : index
    %c0_167 = arith.constant 0 : index
    %329 = vector.load %arg15[%c0_165, %c0_166, %c0_167] : memref<3x256x256xbf16, #tpu.memory_space<vmem>>, vector<1x256x256xbf16>
    %330 = vector.shape_cast %329 : vector<1x256x256xbf16> to vector<256x256xbf16>
    %cst_168 = arith.constant dense<0.000000e+00> : vector<64x256xf32>
    %331 = tpu.matmul %322, %330, %cst_168 {dimension_numbers = #tpu.dot_dimension_numbers<[1], [0], [0], [1], [0, 0, 1, 1], [], []>} : vector<64x256xbf16>, vector<256x256xbf16>, vector<64x256xf32> -> vector<64x256xf32>
    %c1_169 = arith.constant 1 : index
    %c0_170 = arith.constant 0 : index
    %c0_171 = arith.constant 0 : index
    %332 = vector.load %arg15[%c1_169, %c0_170, %c0_171] : memref<3x256x256xbf16, #tpu.memory_space<vmem>>, vector<1x256x256xbf16>
    %333 = vector.shape_cast %332 : vector<1x256x256xbf16> to vector<256x256xbf16>
    %cst_172 = arith.constant dense<0.000000e+00> : vector<64x256xf32>
    %334 = tpu.matmul %316, %333, %cst_172 {dimension_numbers = #tpu.dot_dimension_numbers<[1], [0], [0], [1], [0, 0, 1, 1], [], []>} : vector<64x256xbf16>, vector<256x256xbf16>, vector<64x256xf32> -> vector<64x256xf32>
    %335 = arith.addf %331, %334 : vector<64x256xf32>
    %c2_173 = arith.constant 2 : index
    %c0_174 = arith.constant 0 : index
    %c0_175 = arith.constant 0 : index
    %336 = vector.load %arg15[%c2_173, %c0_174, %c0_175] : memref<3x256x256xbf16, #tpu.memory_space<vmem>>, vector<1x256x256xbf16>
    %337 = vector.shape_cast %336 : vector<1x256x256xbf16> to vector<256x256xbf16>
    %cst_176 = arith.constant dense<0.000000e+00> : vector<64x256xf32>
    %338 = tpu.matmul %328, %337, %cst_176 {dimension_numbers = #tpu.dot_dimension_numbers<[1], [0], [0], [1], [0, 0, 1, 1], [], []>} : vector<64x256xbf16>, vector<256x256xbf16>, vector<64x256xf32> -> vector<64x256xf32>
    %339 = arith.addf %335, %338 : vector<64x256xf32>
    %c10 = arith.constant 10 : index
    %c0_177 = arith.constant 0 : index
    %340 = vector.load %arg2[%c10, %c0_177] : memref<12x256xf32, #tpu.memory_space<vmem>>, vector<1x256xf32>
    %341 = vector.shape_cast %340 : vector<1x256xf32> to vector<256xf32>
    %342 = vector.shape_cast %341 : vector<256xf32> to vector<1x256xf32>
    %343 = vector.broadcast %342 : vector<1x256xf32> to vector<64x256xf32>
    %344 = arith.addf %339, %343 : vector<64x256xf32>
    %345 = arith.addf %344, %315 : vector<64x256xf32>
    %cst_178 = arith.constant 0.000000e+00 : f32
    %346 = vector.broadcast %cst_178 : f32 to vector<64x256xf32>
    %347 = arith.maximumf %345, %346 : vector<64x256xf32>
    %348 = vector.extract_strided_slice %347 {offsets = [0, 0], sizes = [32, 256], strides = [1, 1]} : vector<64x256xf32> to vector<32x256xf32>
    %cst_179 = arith.constant dense<0.000000e+00> : vector<256xf32>
    %349 = vector.multi_reduction <add>, %348, %cst_179 [0] : vector<32x256xf32> to vector<256xf32>
    %350 = vector.shape_cast %349 : vector<256xf32> to vector<1x256xf32>
    %cst_180 = arith.constant 3.200000e+01 : f32
    %351 = vector.broadcast %cst_180 : f32 to vector<1x256xf32>
    %352 = arith.divf %350, %351 : vector<1x256xf32>
    %353 = vector.extract_strided_slice %347 {offsets = [32, 0], sizes = [32, 256], strides = [1, 1]} : vector<64x256xf32> to vector<32x256xf32>
    %cst_181 = arith.constant dense<0.000000e+00> : vector<256xf32>
    %354 = vector.multi_reduction <add>, %353, %cst_181 [0] : vector<32x256xf32> to vector<256xf32>
    %355 = vector.shape_cast %354 : vector<256xf32> to vector<1x256xf32>
    %cst_182 = arith.constant 3.200000e+01 : f32
    %356 = vector.broadcast %cst_182 : f32 to vector<1x256xf32>
    %357 = arith.divf %355, %356 : vector<1x256xf32>
    %358 = tpu.concatenate %352, %357 in 0 : vector<1x256xf32>, vector<1x256xf32> -> vector<2x256xf32>
    %c0_183 = arith.constant 0 : index
    %c0_184 = arith.constant 0 : index
    %359 = vector.load %arg18[%c0_183, %c0_184] : memref<2x256xf32, #tpu.memory_space<vmem>>, vector<2x256xf32>
    tpu.vector_store %arg18[%c0_183, %c0_184], %358 {strides = array<i32>} : memref<2x256xf32, #tpu.memory_space<vmem>>, vector<2x256xf32>,
    return
  }
  func.func @transform_0(%arg0: i32) -> (i32, i32) {
    %c0_i32 = arith.constant 0 : i32
    %c0_i32_0 = arith.constant 0 : i32
    return %arg0, %c0_i32 : i32, i32
  }
  func.func @transform_1(%arg0: i32) -> (i32, i32) {
    %c0_i32 = arith.constant 0 : i32
    %c0_i32_0 = arith.constant 0 : i32
    %c0_i32_1 = arith.constant 0 : i32
    return %c0_i32, %c0_i32_0 : i32, i32
  }
  func.func @transform_2(%arg0: i32) -> (i32, i32, i32) {
    %c0_i32 = arith.constant 0 : i32
    %c0_i32_0 = arith.constant 0 : i32
    %c0_i32_1 = arith.constant 0 : i32
    %c0_i32_2 = arith.constant 0 : i32
    return %c0_i32, %c0_i32_0, %c0_i32_1 : i32, i32, i32
  }
  func.func @transform_3(%arg0: i32) -> (i32, i32, i32) {
    %c0_i32 = arith.constant 0 : i32
    %c0_i32_0 = arith.constant 0 : i32
    %c0_i32_1 = arith.constant 0 : i32
    %c0_i32_2 = arith.constant 0 : i32
    return %c0_i32, %c0_i32_0, %c0_i32_1 : i32, i32, i32
  }
  func.func @transform_4(%arg0: i32) -> (i32, i32) {
    %c0_i32 = arith.constant 0 : i32
    %c0_i32_0 = arith.constant 0 : i32
    %c0_i32_1 = arith.constant 0 : i32
    return %c0_i32, %c0_i32_0 : i32, i32
  }
  func.func @transform_5(%arg0: i32) -> (i32, i32, i32) {
    %c0_i32 = arith.constant 0 : i32
    %c0_i32_0 = arith.constant 0 : i32
    %c0_i32_1 = arith.constant 0 : i32
    %c0_i32_2 = arith.constant 0 : i32
    return %c0_i32, %c0_i32_0, %c0_i32_1 : i32, i32, i32
  }
  func.func @transform_6(%arg0: i32) -> (i32, i32, i32) {
    %c0_i32 = arith.constant 0 : i32
    %c0_i32_0 = arith.constant 0 : i32
    %c0_i32_1 = arith.constant 0 : i32
    %c0_i32_2 = arith.constant 0 : i32
    return %c0_i32, %c0_i32_0, %c0_i32_1 : i32, i32, i32
  }
  func.func @transform_7(%arg0: i32) -> (i32, i32) {
    %c0_i32 = arith.constant 0 : i32
    %c0_i32_0 = arith.constant 0 : i32
    %c0_i32_1 = arith.constant 0 : i32
    return %c0_i32, %c0_i32_0 : i32, i32
  }
  func.func @transform_8(%arg0: i32) -> (i32, i32) {
    %c0_i32 = arith.constant 0 : i32
    %c0_i32_0 = arith.constant 0 : i32
    %c0_i32_1 = arith.constant 0 : i32
    return %c0_i32, %c0_i32_0 : i32, i32
  }
  func.func @transform_9(%arg0: i32) -> (i32, i32, i32) {
    %c0_i32 = arith.constant 0 : i32
    %c0_i32_0 = arith.constant 0 : i32
    %c0_i32_1 = arith.constant 0 : i32
    %c0_i32_2 = arith.constant 0 : i32
    return %c0_i32, %c0_i32_0, %c0_i32_1 : i32, i32, i32
  }
  func.func @transform_10(%arg0: i32) -> (i32, i32, i32) {
    %c0_i32 = arith.constant 0 : i32
    %c0_i32_0 = arith.constant 0 : i32
    %c0_i32_1 = arith.constant 0 : i32
    %c0_i32_2 = arith.constant 0 : i32
    return %c0_i32, %c0_i32_0, %c0_i32_1 : i32, i32, i32
  }
  func.func @transform_11(%arg0: i32) -> (i32, i32) {
    %c0_i32 = arith.constant 0 : i32
    %c0_i32_0 = arith.constant 0 : i32
    %c0_i32_1 = arith.constant 0 : i32
    return %c0_i32, %c0_i32_0 : i32, i32
  }
  func.func @transform_12(%arg0: i32) -> (i32, i32) {
    %c0_i32 = arith.constant 0 : i32
    %c0_i32_0 = arith.constant 0 : i32
    %c0_i32_1 = arith.constant 0 : i32
    return %c0_i32, %c0_i32_0 : i32, i32
  }
  func.func @transform_13(%arg0: i32) -> (i32, i32, i32) {
    %c0_i32 = arith.constant 0 : i32
    %c0_i32_0 = arith.constant 0 : i32
    %c0_i32_1 = arith.constant 0 : i32
    %c0_i32_2 = arith.constant 0 : i32
    return %c0_i32, %c0_i32_0, %c0_i32_1 : i32, i32, i32
  }
  func.func @transform_14(%arg0: i32) -> (i32, i32, i32) {
    %c0_i32 = arith.constant 0 : i32
    %c0_i32_0 = arith.constant 0 : i32
    %c0_i32_1 = arith.constant 0 : i32
    %c0_i32_2 = arith.constant 0 : i32
    return %c0_i32, %c0_i32_0, %c0_i32_1 : i32, i32, i32
  }
  func.func @transform_15(%arg0: i32) -> (i32, i32) {
    %c0_i32 = arith.constant 0 : i32
    %c0_i32_0 = arith.constant 0 : i32
    %c0_i32_1 = arith.constant 0 : i32
    return %c0_i32, %c0_i32_0 : i32, i32
  }
  func.func @transform_16(%arg0: i32) -> (i32, i32) {
    %c0_i32 = arith.constant 0 : i32
    %c0_i32_0 = arith.constant 0 : i32
    %c0_i32_1 = arith.constant 0 : i32
    return %c0_i32, %c0_i32_0 : i32, i32
  }
  func.func @transform_17(%arg0: i32) -> (i32, i32) {
    %c0_i32 = arith.constant 0 : i32
    %c0_i32_0 = arith.constant 0 : i32
    return %arg0, %c0_i32 : i32, i32
  }
}

</mosaic_0001>

<bundles_post_ra>
// kernel: _lambda_.1
= control target key start
LH: loop header
LB: loop body
LE: loop exit
PB: predicated region body
PF: predicated region fallthrough
CT: control target
= control target key end

     0   :  { %s22512_s0 = inlined_call_operand.vmem [shape: bf16[512,9], index: 0, kind: input, shape index: {}]   ;;  %s22513_s1 = inlined_call_operand.hbm [shape: f32[12,256], index: 1, kind: input, shape index: {}]   ;;  %s22514_s2 = inlined_call_operand.hbm [shape: bf16[3,32,32], index: 2, kind: input, shape index: {}]   ;;  %s22515_s3 = inlined_call_operand.hbm [shape: bf16[3,32,32], index: 3, kind: input, shape index: {}]   ;;  %s22516_s4 = inlined_call_operand.hbm [shape: bf16[256,256], index: 4, kind: input, shape index: {}]   ;;  %s22517_s5 = inlined_call_operand.hbm [shape: bf16[3,32,64], index: 5, kind: input, shape index: {}]   ;;  %s22518_s6 = inlined_call_operand.hbm [shape: bf16[3,64,64], index: 6, kind: input, shape index: {}]   ;;  %s22519_s7 = inlined_call_operand.hbm [shape: bf16[32,64], index: 7, kind: input, shape index: {}]   ;;  %s22520_s8 = inlined_call_operand.hbm [shape: bf16[128,128], index: 8, kind: input, shape index: {}]   ;;  %s22521_s9 = inlined_call_operand.hbm [shape: bf16[3,64,128], index: 9, kind: input, shape index: {}]   ;;  %s22522_s10 = inlined_call_operand.vmem [shape: bf16[3,128,128], index: 10, kind: input, shape index: {}]   ;;  %s22523_s11 = inlined_call_operand.hbm [shape: bf16[64,128], index: 11, kind: input, shape index: {}]   ;;  %s22524_s12 = inlined_call_operand.hbm [shape: bf16[64,64], index: 12, kind: input, shape index: {}]   ;;  %s22525_s13 = inlined_call_operand.vmem [shape: bf16[3,128,256], index: 13, kind: input, shape index: {}]   ;;  %s22526_s14 = inlined_call_operand.hbm [shape: bf16[3,256,256], index: 14, kind: input, shape index: {}]   ;;  %s22527_s15 = inlined_call_operand.hbm [shape: bf16[128,256], index: 15, kind: input, shape index: {}]   ;;  %s22528_s16 = inlined_call_operand.vmem [shape: bf16[9,32], index: 16, kind: input, shape index: {}]   ;;  %s22529_s17 = inlined_call_operand.hbm [shape: f32[2,256], index: 17, kind: output, shape index: {}]  }
   0x1   :  { %22745 = sst [smem:[#allocation175_spill]] %s22512_s0 }
   0x2   :  { %22746 = sst [smem:[#allocation176_spill]] %s22513_s1 }
   0x3   :  { %22 = vsyncpa [#allocation3], 0 }
   0x4   :  { %23 = vsyncpa [#allocation6], 0 }
   0x5   :  { %24 = vsyncpa [#allocation9], 0 }
   0x6   :  { %25 = vsyncpa [#allocation12], 0 }
   0x7   :  { %26 = vsyncpa [#allocation15], 0 }
   0x8   :  { %27 = vsyncpa [#allocation18], 0 }
   0x9   :  { %28 = vsyncpa [#allocation21], 0 }
   0xa   :  { %29 = vsyncpa [#allocation4], 0  ;;  %s15931_s24 = smov [#allocation5]  }
   0xb   :  { %s49_s25 = sshll.u32 %s15931_s24, 4  ;;  %s50_s25 = int_to_ptr.vmem [resolvable:$true] %s49_s25 }
   0xc   :  { %s15643_s26 = scalar_lea.vmem %s50_s25, 768  ;;  %p15648_p1 = scmp.lt.s32.totalorder %s50_s25, %s50_s25 }
   0xd   :  { %p15644_p0 = scmp.ne.s32.totalorder %s50_s25, %s15643_s26  ;;  %p15649_p2 = scmp.lt.s32.totalorder %s15643_s26, %s15643_s26 }
   0xf   :  { %p15650_p3 = por %p15649_p2, %p15648_p1 }
  0x11   :  { %p15651_p4 = pnand %p15650_p3, %p15644_p0 }
  0x13   :  { %15654 = shalt.err (!%p15651_p4)
}
  0x14   :  { %s15932_s27 = smov 64   ;;  %s15933_s28 = smov 4  }
  0x15   :  { %55 = dma.hbm_to_vmem [thread:$0]  %s22514_s2, 768, %s50_s25, [#allocation6], %s15932_s27, %s15932_s27, %s15933_s28  }
  0x16   :  { %s15934_s30 = smov [#allocation8]  }
  0x17   :  { %s73_s18 = sshll.u32 %s15934_s30, 4  ;;  %s74_s18 = int_to_ptr.vmem [resolvable:$true] %s73_s18 }
  0x18   :  { %s15663_s19 = scalar_lea.vmem %s74_s18, 4096  ;;  %p15668_p6 = scmp.lt.s32.totalorder %s74_s18, %s74_s18 }
  0x19   :  { %p15664_p5 = scmp.ne.s32.totalorder %s74_s18, %s15663_s19  ;;  %p15669_p7 = scmp.lt.s32.totalorder %s15663_s19, %s15663_s19 }
  0x1b   :  { %p15670_p8 = por %p15669_p7, %p15668_p6 }
  0x1d   :  { %p15671_p9 = pnand %p15670_p8, %p15664_p5 }
  0x1f   :  { %15674 = shalt.err (!%p15671_p9)
}
  0x20   :  { %s15935_s1 = smov 128   ;;  %s15936_s20 = smov 8  }
  0x21   :  { %79 = dma.hbm_to_vmem [thread:$0]  %s22516_s4, 4096, %s74_s18, [#allocation9], %s15935_s1, %s15935_s1, %s15936_s20  }
  0x22   :  { %s15937_s2 = smov [#allocation11]   ;;  %s15938_s24 = smov [#allocation14]  }
  0x23   :  { %s97_s23 = sshll.u32 %s15937_s2, 4  ;;  %s121_s25 = sshll.u32 %s15938_s24, 4  ;;  %s98_s23 = int_to_ptr.vmem [resolvable:$true] %s97_s23  ;;  %s122_s25 = int_to_ptr.vmem [resolvable:$true] %s121_s25 }
  0x24   :  { %s15683_s26 = scalar_lea.vmem %s98_s23, 1536  ;;  %p15688_p11 = scmp.lt.s32.totalorder %s98_s23, %s98_s23 }
  0x25   :  { %p15684_p10 = scmp.ne.s32.totalorder %s98_s23, %s15683_s26  ;;  %p15689_p12 = scmp.lt.s32.totalorder %s15683_s26, %s15683_s26 }
  0x27   :  { %p15690_p13 = por %p15689_p12, %p15688_p11 }
  0x29   :  { %p15691_p0 = pnand %p15690_p13, %p15684_p10 }
  0x2b   :  { %15694 = shalt.err (!%p15691_p0)
}
  0x2c   :  { %103 = dma.hbm_to_vmem [thread:$0]  %s22518_s6, 1536, %s98_s23, [#allocation12], %s15932_s27, %s15932_s27, %s15933_s28  }
  0x2d   :  { %s15703_s4 = scalar_lea.vmem %s122_s25, 1024  ;;  %p15708_p2 = scmp.lt.s32.totalorder %s122_s25, %s122_s25 }
  0x2e   :  { %p15704_p1 = scmp.ne.s32.totalorder %s122_s25, %s15703_s4  ;;  %p15709_p3 = scmp.lt.s32.totalorder %s15703_s4, %s15703_s4 }
  0x30   :  { %p15710_p4 = por %p15709_p3, %p15708_p2 }
  0x32   :  { %p15711_p5 = pnand %p15710_p4, %p15704_p1 }
  0x34   :  { %15714 = shalt.err (!%p15711_p5)
}
  0x35   :  { %127 = dma.hbm_to_vmem [thread:$0]  %s22520_s8, 1024, %s122_s25, [#allocation15], %s15932_s27, %s15932_s27, %s15933_s28  }
  0x36   :  { %s15939_s19 = smov [#allocation17]   ;;  %s15940_s22 = smov [#allocation20]  }
  0x37   :  { %s147_s21 = sshll.u32 %s15939_s19, 4  ;;  %s173_s2 = sshll.u32 %s15940_s22, 4  ;;  %s148_s21 = int_to_ptr.vmem [resolvable:$true] %s147_s21  ;;  %s174_s2 = int_to_ptr.vmem [resolvable:$true] %s173_s2 }
  0x38   :  { %s15723_s6 = scalar_lea.vmem %s148_s21, 512  ;;  %p15728_p7 = scmp.lt.s32.totalorder %s148_s21, %s148_s21 }
  0x39   :  { %p15724_p6 = scmp.ne.s32.totalorder %s148_s21, %s15723_s6  ;;  %p15729_p8 = scmp.lt.s32.totalorder %s15723_s6, %s15723_s6 }
  0x3b   :  { %p15730_p9 = por %p15729_p8, %p15728_p7 }
  0x3d   :  { %p15731_p10 = pnand %p15730_p9, %p15724_p6 }
  0x3f   :  { %15734 = shalt.err (!%p15731_p10)
}
  0x40   :  { %153 = dma.hbm_to_vmem [thread:$0]  %s22523_s11, 512, %s148_s21, [#allocation18], %s15932_s27, %s15932_s27, %s15933_s28  }
  0x41   :  { %s15743_s8 = scalar_lea.vmem %s174_s2, 12288  ;;  %p15748_p12 = scmp.lt.s32.totalorder %s174_s2, %s174_s2 }
  0x42   :  { %p15744_p11 = scmp.ne.s32.totalorder %s174_s2, %s15743_s8  ;;  %p15749_p13 = scmp.lt.s32.totalorder %s15743_s8, %s15743_s8 }
  0x44   :  { %p15750_p0 = por %p15749_p13, %p15748_p12 }
  0x46   :  { %p15751_p1 = pnand %p15750_p0, %p15744_p11 }
  0x48   :  { %15754 = shalt.err (!%p15751_p1)
}
  0x49   :  { %179 = dma.hbm_to_vmem [thread:$0]  %s22526_s14, 12288, %s174_s2, [#allocation21], %s15935_s1, %s15935_s1, %s15936_s20  }
  0x4a   :  { %s15941_s29 = smov [#allocation2]  }
  0x4b   :  { %s37_s0 = sshll.u32 %s15941_s29, 4  ;;  %s38_s0 = int_to_ptr.vmem [resolvable:$true] %s37_s0 }
  0x4c   :  { %s15763_s4 = scalar_lea.vmem %s38_s0, 512  ;;  %p15768_p3 = scmp.lt.s32.totalorder %s38_s0, %s38_s0 }
  0x4d   :  { %p15764_p2 = scmp.ne.s32.totalorder %s38_s0, %s15763_s4  ;;  %p15769_p4 = scmp.lt.s32.totalorder %s15763_s4, %s15763_s4 }
  0x4f   :  { %p15770_p5 = por %p15769_p4, %p15768_p3 }
  0x51   :  { %p15771_p6 = pnand %p15770_p5, %p15764_p2 }
  0x53   :  { %15774 = shalt.err (!%p15771_p6)
}
  0x54   :  { %s15942_s11 = smov 256   ;;  %s15943_s30 = smov 16  }
  0x55   :  { %s22747_s21 = sld [smem:[#allocation176_spill]]  ;;  %s15944_s22 = smov [#allocation7]  }
  0x56   :  { %s61_s6 = sshll.u32 %s15944_s22, 4  ;;  %s15945_s14 = smov [#allocation10]   ;;  %s62_s6 = int_to_ptr.vmem [resolvable:$true] %s61_s6 }
  0x57   :  { %s85_s2 = sshll.u32 %s15945_s14, 4  ;;  %s15783_s23 = scalar_lea.vmem %s62_s6, 768  ;;  %s86_s2 = int_to_ptr.vmem [resolvable:$true] %s85_s2 }
  0x58   :  { %p15784_p7 = scmp.ne.s32.totalorder %s62_s6, %s15783_s23  ;;  %p15788_p8 = scmp.lt.s32.totalorder %s62_s6, %s62_s6 }
  0x59   :  { %p15789_p9 = scmp.lt.s32.totalorder %s15783_s23, %s15783_s23 }
  0x5b   :  { %43 = dma.hbm_to_vmem [thread:$0]  %s22747_s21, 512, %s38_s0, [#allocation3], %s15942_s11, %s15942_s11, %s15943_s30  }
  0x5c   :  { %p15790_p10 = por %p15789_p9, %p15788_p8 }
  0x5e   :  { %p15791_p11 = pnand %p15790_p10, %p15784_p7 }
  0x60   :  { %15794 = shalt.err (!%p15791_p11)
}
  0x61   :  { %67 = dma.hbm_to_vmem [thread:$0]  %s22515_s3, 768, %s62_s6, [#allocation6], %s15932_s27, %s15932_s27, %s15933_s28  }
  0x62   :  { %s15803_s25 = scalar_lea.vmem %s86_s2, 768  ;;  %p15808_p13 = scmp.lt.s32.totalorder %s86_s2, %s86_s2 }
  0x63   :  { %p15804_p12 = scmp.ne.s32.totalorder %s86_s2, %s15803_s25  ;;  %p15809_p0 = scmp.lt.s32.totalorder %s15803_s25, %s15803_s25 }
  0x65   :  { %p15810_p1 = por %p15809_p0, %p15808_p13 }
  0x67   :  { %p15811_p2 = pnand %p15810_p1, %p15804_p12 }
  0x69   :  { %15814 = shalt.err (!%p15811_p2)
}
  0x6a   :  { %91 = dma.hbm_to_vmem [thread:$0]  %s22517_s5, 768, %s86_s2, [#allocation9], %s15932_s27, %s15932_s27, %s15933_s28  }
  0x6b   :  { %s15946_s0 = smov [#allocation13]   ;;  %s15947_s11 = smov [#allocation16]  }
  0x6c   :  { %s109_s4 = sshll.u32 %s15946_s0, 4  ;;  %s133_s3 = sshll.u32 %s15947_s11, 4  ;;  %s110_s4 = int_to_ptr.vmem [resolvable:$true] %s109_s4  ;;  %s134_s3 = int_to_ptr.vmem [resolvable:$true] %s133_s3 }
  0x6d   :  { %s15823_s30 = scalar_lea.vmem %s110_s4, 256  ;;  %p15828_p4 = scmp.lt.s32.totalorder %s110_s4, %s110_s4 }
  0x6e   :  { %p15824_p3 = scmp.ne.s32.totalorder %s110_s4, %s15823_s30  ;;  %p15829_p5 = scmp.lt.s32.totalorder %s15823_s30, %s15823_s30 }
  0x70   :  { %p15830_p6 = por %p15829_p5, %p15828_p4 }
  0x72   :  { %p15831_p7 = pnand %p15830_p6, %p15824_p3 }
  0x74   :  { %15834 = shalt.err (!%p15831_p7)
}
  0x75   :  { %115 = dma.hbm_to_vmem [thread:$0]  %s22519_s7, 256, %s110_s4, [#allocation12], %s15932_s27, %s15932_s27, %s15933_s28  }
  0x76   :  { %s15843_s5 = scalar_lea.vmem %s134_s3, 1536  ;;  %p15848_p9 = scmp.lt.s32.totalorder %s134_s3, %s134_s3 }
  0x77   :  { %p15844_p8 = scmp.ne.s32.totalorder %s134_s3, %s15843_s5  ;;  %p15849_p10 = scmp.lt.s32.totalorder %s15843_s5, %s15843_s5 }
  0x79   :  { %p15850_p11 = por %p15849_p10, %p15848_p9 }
  0x7b   :  { %p15851_p12 = pnand %p15850_p11, %p15844_p8 }
  0x7d   :  { %15854 = shalt.err (!%p15851_p12)
}
  0x7e   :  { %139 = dma.hbm_to_vmem [thread:$0]  %s22521_s9, 1536, %s134_s3, [#allocation15], %s15932_s27, %s15932_s27, %s15933_s28  }
  0x7f   :  { %s15948_s6 = smov [#allocation19]   ;;  %s15949_s2 = smov [#allocation22]  }
  0x80   :  { %s159_s14 = sshll.u32 %s15948_s6, 4  ;;  %s185_s7 = sshll.u32 %s15949_s2, 4  ;;  %s160_s14 = int_to_ptr.vmem [resolvable:$true] %s159_s14  ;;  %s186_s7 = int_to_ptr.vmem [resolvable:$true] %s185_s7 }
  0x81   :  { %s15863_s23 = scalar_lea.vmem %s160_s14, 512  ;;  %p15868_p0 = scmp.lt.s32.totalorder %s160_s14, %s160_s14 }
  0x82   :  { %p15864_p13 = scmp.ne.s32.totalorder %s160_s14, %s15863_s23  ;;  %p15869_p1 = scmp.lt.s32.totalorder %s15863_s23, %s15863_s23 }
  0x84   :  { %p15870_p2 = por %p15869_p1, %p15868_p0 }
  0x86   :  { %p15871_p3 = pnand %p15870_p2, %p15864_p13 }
  0x88   :  { %15874 = shalt.err (!%p15871_p3)
}
  0x89   :  { %165 = dma.hbm_to_vmem [thread:$0]  %s22524_s12, 512, %s160_s14, [#allocation18], %s15932_s27, %s15932_s27, %s15933_s28  }
  0x8a   :  { %s15883_s9 = scalar_lea.vmem %s186_s7, 2048  ;;  %p15888_p5 = scmp.lt.s32.totalorder %s186_s7, %s186_s7 }
  0x8b   :  { %p15884_p4 = scmp.ne.s32.totalorder %s186_s7, %s15883_s9  ;;  %p15889_p6 = scmp.lt.s32.totalorder %s15883_s9, %s15883_s9 }
  0x8d   :  { %p15890_p7 = por %p15889_p6, %p15888_p5 }
  0x8f   :  { %p15891_p8 = pnand %p15890_p7, %p15884_p4 }
  0x91   :  { %15894 = shalt.err (!%p15891_p8)
}
  0x92   :  { %191 = dma.hbm_to_vmem [thread:$0]  %s22527_s15, 2048, %s186_s7, [#allocation21], %s15935_s1, %s15935_s1, %s15936_s20  }
  0x93   :  { %15915 = dma.done.wait [#allocation3], 512  }
  0x94   :  { %15916 = vsyncadd [#allocation3], 4294966784 }
  0x95   :  { %15917 = dma.done.wait [#allocation6], 1536  }
  0x96   :  { %15918 = vsyncadd [#allocation6], 4294965760 }
  0x97   :  { %15919 = dma.done.wait [#allocation9], 4864  }
  0x98   :  { %15920 = vsyncadd [#allocation9], 4294962432 }
  0x99   :  { %15921 = dma.done.wait [#allocation12], 1792  }
  0x9a   :  { %15922 = vsyncadd [#allocation12], 4294965504 }
  0x9b   :  { %15923 = dma.done.wait [#allocation15], 2560  }
  0x9c   :  { %15924 = vsyncadd [#allocation15], 4294964736 }
  0x9d   :  { %15925 = dma.done.wait [#allocation18], 1024  }
  0x9e   :  { %15926 = vsyncadd [#allocation18], 4294966272 }
  0x9f   :  { %15927 = dma.done.wait [#allocation21], 14336  }
  0xa0   :  { %15928 = vsyncadd [#allocation21], 4294952960  ;;  %vm563_vm0 = vcmask 1043456   ;;  %vm564_vm1 = vcmask 1044480   ;;  %v15950_v0 = vmov 65535   ;;  %vm466_vm2 = vcmask 72704  }
  0xa1   :  { %v565_v1 = vsel %vm563_vm0, 4294967295, %v15950_v0  ;;  %v15228_v3 = vld [vmem:[%s22528_s16] sm:$0x1f]   ;;  %s22748_s1 = sld [smem:[#allocation175_spill]]  ;;  %v15261_v34 = vld [vmem:[#allocation5 + $0x18] sm:$0xff]   ;;  %v15262_v36 = vld [vmem:[#allocation5 + $0x10] sm:$0xff]  }
  0xa2   :  { %v566_v2 = vsel %vm564_vm1, %v565_v1, 0  ;;  %v15263_v39 = vld [vmem:[#allocation5 + $0x8] sm:$0xff]   ;;  %v15264_v40 = vld [vmem:[#allocation5] sm:$0xff]   ;;  %vm2131_vm3 = vcmask 261120   ;;  %vm7696_vm11 = vcmask 523264   ;;  %vm15951_vm15 = vmmov 1  }
  0xa3   :  { %v568_v5 = vand.u32 %v15228_v3, %v566_v2  ;;  %v15265_v41 = vld [vmem:[#allocation5 + $0x28] sm:$0xff]   ;;  %v16258_v50 = vld [vmem:[#allocation2] ss:$0 sm:$0xff] }
  0xa5   :  { %14129 = vmatprep.subr.bf16.mxu0 %v568_v5  ;;  %15203 = vmatprep.subr.bf16.mxu1 %v568_v5 }
  0xa6   :  { %14130 = vmatpush3.bf16.msra.mxu0 %v568_v5  ;;  %15204 = vmatpush3.bf16.msra.mxu1 %v568_v5 }
  0xa7   :  { %v15229_v4 = vld [vmem:[%s22748_s1] sm:$0xff]   ;;  %v15231_v7 = vld [vmem:[%s22748_s1 + $0x8] sm:$0xff]   ;;  %v15233_v9 = vld [vmem:[%s22748_s1 + $0x10] sm:$0xff]   ;;  %14195 = vmatprep.subr.bf16.mxu1 %v15261_v34  ;;  %14263 = vmatprep.subr.bf16.mxu0 %v15263_v39 }
  0xa8   :  { %v15230_v6 = vld [vmem:[%s22748_s1 + $0xc0] sm:$0xff]   ;;  %14131 = vmatprep.mubr.msk.bf16.mxu0 %vm466_vm2, %v15229_v4  ;;  %v15232_v8 = vld [vmem:[%s22748_s1 + $0xc8] sm:$0xff]   ;;  %v15234_v10 = vld [vmem:[%s22748_s1 + $0xd0] sm:$0xff]  }
  0xa9   :  { %14179 = vmatprep.mubr.msk.bf16.mxu1 %vm466_vm2, %v15230_v6  ;;  %14132 = vmatmul.mubr.msk.bf16.vlgmr.msra.gmra.mxu0 %vm466_vm2, %v15231_v7  ;;  %v15235_v11 = vld [vmem:[%s22748_s1 + $0x18] sm:$0xff]   ;;  %v15237_v13 = vld [vmem:[%s22748_s1 + $0x20] sm:$0xff]   ;;  %v15239_v15 = vld [vmem:[%s22748_s1 + $0x28] sm:$0xff]  }
  0xaa   :  { %14180 = vmatmul.mubr.msk.bf16.vlgmr.msra.gmra.mxu1 %vm466_vm2, %v15232_v8  ;;  %14135 = vmatprep.mubr.msk.bf16.mxu0 %vm466_vm2, %v15233_v9  ;;  %v15236_v12 = vld [vmem:[%s22748_s1 + $0xd8] sm:$0xff]   ;;  %v15238_v14 = vld [vmem:[%s22748_s1 + $0xe0] sm:$0xff]   ;;  %v15240_v16 = vld [vmem:[%s22748_s1 + $0xe8] sm:$0xff]  }
  0xab   :  { %14183 = vmatprep.mubr.msk.bf16.mxu1 %vm466_vm2, %v15234_v10  ;;  %v15241_v17 = vld [vmem:[%s22748_s1 + $0x30] sm:$0xff]   ;;  %v15243_v19 = vld [vmem:[%s22748_s1 + $0x38] sm:$0xff]   ;;  %v15245_v21 = vld [vmem:[%s22748_s1 + $0x40] sm:$0xff]   ;;  %14196 = vmatpush3.bf16.msra.mxu1 %v15261_v34 }
  0xac   :  { %v15242_v18 = vld [vmem:[%s22748_s1 + $0xf0] sm:$0xff]   ;;  %v15244_v20 = vld [vmem:[%s22748_s1 + $0xf8] sm:$0xff]   ;;  %v15246_v22 = vld [vmem:[%s22748_s1 + $0x48] sm:$0xff]   ;;  %14197 = vmatprep.subr.bf16.mxu1 %v15262_v36  ;;  %14264 = vmatpush3.bf16.msra.mxu0 %v15263_v39 }
  0xad   :  { %v15247_v23 = vld [vmem:[%s22748_s1 + $0x50] sm:$0xff]   ;;  %v15248_v24 = vld [vmem:[%s22748_s1 + $0x58] sm:$0xff]   ;;  %v15249_v25 = vld [vmem:[%s22748_s1 + $0x60] sm:$0xff]   ;;  %14265 = vmatprep.subr.bf16.mxu0 %v15264_v40 }
  0xae   :  { %v15250_v26 = vld [vmem:[%s22748_s1 + $0x68] sm:$0xff]   ;;  %v15251_v27 = vld [vmem:[%s22748_s1 + $0x70] sm:$0xff]   ;;  %v15252_v28 = vld [vmem:[%s22748_s1 + $0x78] sm:$0xff]  }
  0xaf   :  { %v15253_v29 = vld [vmem:[%s22748_s1 + $0x80] sm:$0xff]   ;;  %v15254_v30 = vld [vmem:[%s22748_s1 + $0x88] sm:$0xff]   ;;  %v15255_v31 = vld [vmem:[%s22748_s1 + $0x90] sm:$0xff]   ;;  %14198 = vmatpush3.bf16.msra.mxu1 %v15262_v36  ;;  %v923_v36 = vlaneseq }
  0xb0   :  { %v15256_v32 = vld [vmem:[%s22748_s1 + $0x98] sm:$0xff]   ;;  %v15257_v33 = vld [vmem:[%s22748_s1 + $0xa0] sm:$0xff]   ;;  %v15258_v35 = vld [vmem:[%s22748_s1 + $0xa8] sm:$0xff]   ;;  %14266 = vmatpush3.bf16.msra.mxu0 %v15264_v40  ;;  %14331 = vmatprep.subr.bf16.mxu1 %v15265_v41 }
  0xb1   :  { %14136 = vmatmul.mubr.msk.bf16.gmra.mxu0 %vm466_vm2, %v15235_v11  ;;  %v15259_v37 = vld [vmem:[%s22748_s1 + $0xb0] sm:$0xff]   ;;  %v15260_v38 = vld [vmem:[%s22748_s1 + $0xb8] sm:$0xff]   ;;  %v15266_v10 = vld [vmem:[#allocation5 + $0x20] sm:$0xff]  }
  0xb2   :  { %14184 = vmatmul.mubr.msk.bf16.gmra.mxu1 %vm466_vm2, %v15236_v12  ;;  %14139 = vmatprep.mubr.msk.bf16.mxu0 %vm466_vm2, %v15237_v13 }
  0xb3   :  { %14187 = vmatprep.mubr.msk.bf16.mxu1 %vm466_vm2, %v15238_v14 }
  0xb9   :  { %14140 = vmatmul.mubr.msk.bf16.gmra.mxu0 %vm466_vm2, %v15239_v15 }
  0xba   :  { %14188 = vmatmul.mubr.msk.bf16.gmra.mxu1 %vm466_vm2, %v15240_v16  ;;  %14143 = vmatprep.mubr.msk.bf16.mxu0 %vm466_vm2, %v15241_v17 }
  0xbb   :  { %14191 = vmatprep.mubr.msk.bf16.mxu1 %vm466_vm2, %v15242_v18 }
  0xc1   :  { %14144 = vmatmul.mubr.msk.bf16.gmra.mxu0 %vm466_vm2, %v15243_v19 }
  0xc2   :  { %14192 = vmatmul.mubr.msk.bf16.gmra.mxu1 %vm466_vm2, %v15244_v20  ;;  %14147 = vmatprep.mubr.msk.bf16.mxu0 %vm466_vm2, %v15245_v21 }
  0xc9   :  { %14148 = vmatmul.mubr.msk.bf16.gmra.mxu0 %vm466_vm2, %v15246_v22 }
  0xca   :  { %14151 = vmatprep.mubr.msk.bf16.mxu0 %vm466_vm2, %v15247_v23 }
  0xd1   :  { %14152 = vmatmul.mubr.msk.bf16.gmra.mxu0 %vm466_vm2, %v15248_v24 }
  0xd2   :  { %14155 = vmatprep.mubr.msk.bf16.mxu0 %vm466_vm2, %v15249_v25 }
  0xd9   :  { %14156 = vmatmul.mubr.msk.bf16.gmra.mxu0 %vm466_vm2, %v15250_v26 }
  0xda   :  { %14159 = vmatprep.mubr.msk.bf16.mxu0 %vm466_vm2, %v15251_v27 }
  0xe1   :  { %14160 = vmatmul.mubr.msk.bf16.gmra.mxu0 %vm466_vm2, %v15252_v28 }
  0xe2   :  { %14163 = vmatprep.mubr.msk.bf16.mxu0 %vm466_vm2, %v15253_v29 }
  0xe9   :  { %14164 = vmatmul.mubr.msk.bf16.gmra.mxu0 %vm466_vm2, %v15254_v30 }
  0xea   :  { %14167 = vmatprep.mubr.msk.bf16.mxu0 %vm466_vm2, %v15255_v31 }
  0xf1   :  { %14168 = vmatmul.mubr.msk.bf16.gmra.mxu0 %vm466_vm2, %v15256_v32 }
  0xf2   :  { %14171 = vmatprep.mubr.msk.bf16.mxu0 %vm466_vm2, %v15257_v33 }
  0xf9   :  { %14172 = vmatmul.mubr.msk.bf16.gmra.mxu0 %vm466_vm2, %v15258_v35 }
  0xfa   :  { %14175 = vmatprep.mubr.msk.bf16.mxu0 %vm466_vm2, %v15259_v37 }
 0x101   :  { %14176 = vmatmul.mubr.msk.bf16.gmra.mxu0 %vm466_vm2, %v15260_v38 }
 0x169   :  { %v14133_v42 = vpop.f32.mrf.mxu0 }
 0x16a   :  { %v16250_v43 = vpop.f32.mrf.mxu1  ;;  %v613_v58 = vadd.f32 %v14133_v42, %v16258_v50 }
 0x16b   :  { %v604_v44 = vpop.f32.mrf.mxu0 }
 0x16c   :  { %v16252_v45 = vpop.f32.mrf.mxu1  ;;  %v605_v57 = vadd.f32 %v604_v44, %v16258_v50  ;;  %v16278_v2 = vmax.f32 %v613_v58, 0.0 }
 0x16d   :  { %v14134_v46 = vpop.f32.mrf.mxu0 }
 0x16e   :  { %v16254_v47 = vpop.f32.mrf.mxu1  ;;  %v616_v54 = vadd.f32 %v14134_v46, %v16258_v50  ;;  %v16276_v1 = vmax.f32 %v605_v57, 0.0  ;;  %22752 = vst [vmem:[#allocation35_spill] sm:$0xff] %v16278_v2 }
 0x16f   :  { %v607_v48 = vpop.f32.mrf.mxu0 }
 0x170   :  { %v16256_v49 = vpop.f32.mrf.mxu1  ;;  %v608_v53 = vadd.f32 %v607_v48, %v16258_v50  ;;  %v16272_v62 = vmax.f32 %v616_v54, 0.0  ;;  %22751 = vst [vmem:[#allocation34_spill] sm:$0xff] %v16276_v1 }
 0x171   :  { %v14137_v51 = vpop.f32.mrf.mxu0 }
 0x172   :  { %v16260_v52 = vpop.f32.mrf.mxu1  ;;  %v16270_v61 = vmax.f32 %v608_v53, 0.0  ;;  %22750 = vst [vmem:[#allocation33_spill] sm:$0xff] %v16272_v62  ;;  %v1373_v6 = vpack.c.bf16 %v16272_v62, %v16278_v2  ;;  %v629_v18 = vadd.f32 %v14137_v51, %v16258_v50  ;;  %v16333_v53 = vshrl.u32 %v923_v36, 7 }
 0x173   :  { %v620_v55 = vpop.f32.mrf.mxu0 }
 0x174   :  { %v16264_v56 = vpop.f32.mrf.mxu1  ;;  %22749 = vst [vmem:[#allocation32_spill] sm:$0xff] %v16270_v61  ;;  %v1372_v5 = vpack.c.bf16 %v16270_v61, %v16276_v1  ;;  %v621_v11 = vadd.f32 %v620_v55, %v16258_v50  ;;  %v16308_v25 = vmax.f32 %v629_v18, 0.0  ;;  %22761 = vst [vmem:[#allocation44_spill] sm:$0xff] %v16333_v53  ;;  %vm988_vm4 = vcmp.eq.s32.totalorder %v16333_v53, 0 }
 0x175   :  { %v14138_v59 = vpop.f32.mrf.mxu0  ;;  %vm1468_vm5 = vcmp.lt.s32.totalorder %v16333_v53, 1  ;;  %vm1821_vm7 = vcmp.lt.s32.totalorder %v16333_v53, 7  ;;  %vm13048_vm14 = vmneg %vm988_vm4 }
 0x176   :  { %v16268_v60 = vpop.f32.mrf.mxu1  ;;  %14199 = vmatprep.mubr.msk.bf16.mxu1 %vm2131_vm3, %v1372_v5  ;;  %v632_v14 = vadd.f32 %v14138_v59, %v16258_v50  ;;  %v16300_v19 = vmax.f32 %v621_v11, 0.0  ;;  %22756 = vst [vmem:[#allocation39_spill] sm:$0xff] %v16308_v25  ;;  %vm21683_vm0 = vmpackc.low %vm15951_vm15, %vm13048_vm14 }
 0x177   :  { %v623_v63 = vpop.f32.mrf.mxu0  ;;  %14200 = vmatmul.mubr.msk.bf16.vlgmr.msra.gmra.mxu1 %vm2131_vm3, %v1373_v6 }
 0x178   :  { %v16274_v0 = vpop.f32.mrf.mxu1  ;;  %v624_v7 = vadd.f32 %v623_v63, %v16258_v50  ;;  %14332 = vmatpush3.bf16.msra.mxu1 %v15265_v41  ;;  %22754 = vst [vmem:[#allocation37_spill] sm:$0xff] %v16300_v19  ;;  %v16302_v21 = vmax.f32 %v632_v14, 0.0  ;;  %v1405_v63 = vrot.slane %v16270_v61, 7  ;;  %v1404_v14 = vrot.slane %v16276_v1, 7 }
 0x179   :  { %v14141_v3 = vpop.f32.mrf.mxu0  ;;  %14333 = vmatprep.subr.bf16.mxu1 %v15266_v10 }
 0x17a   :  { %v16280_v4 = vpop.f32.mrf.mxu1  ;;  %v16295_v15 = vmax.f32 %v624_v7, 0.0  ;;  %22755 = vst [vmem:[#allocation38_spill] sm:$0xff] %v16302_v21  ;;  %v1375_v29 = vpack.c.bf16 %v16302_v21, %v16308_v25  ;;  %v645_v33 = vadd.f32 %v14141_v3, %v16258_v50 }
 0x17b   :  { %v636_v8 = vpop.f32.mrf.mxu0 }
 0x17c   :  { %v16287_v9 = vpop.f32.mrf.mxu1  ;;  %22753 = vst [vmem:[#allocation36_spill] sm:$0xff] %v16295_v15  ;;  %14334 = vmatpush3.bf16.msra.mxu1 %v15266_v10  ;;  %v1374_v23 = vpack.c.bf16 %v16295_v15, %v16300_v19  ;;  %v637_v31 = vadd.f32 %v636_v8, %v16258_v50  ;;  %v16326_v41 = vmax.f32 %v645_v33, 0.0  ;;  %v1409_v6 = vrot.slane %v16295_v15, 7 }
 0x17d   :  { %v14142_v12 = vpop.f32.mrf.mxu0 }
 0x17e   :  { %v16292_v13 = vpop.f32.mrf.mxu1  ;;  %14203 = vmatprep.mubr.msk.bf16.mxu1 %vm2131_vm3, %v1374_v23  ;;  %v648_v28 = vadd.f32 %v14142_v12, %v16258_v50  ;;  %v16324_v39 = vmax.f32 %v637_v31, 0.0  ;;  %22760 = vst [vmem:[#allocation43_spill] sm:$0xff] %v16326_v41  ;;  %v1406_v12 = vrot.slane %v16278_v2, 7 }
 0x17f   :  { %v639_v16 = vpop.f32.mrf.mxu0  ;;  %14204 = vmatmul.mubr.msk.bf16.gmra.mxu1 %vm2131_vm3, %v1375_v29 }
 0x180   :  { %v16297_v17 = vpop.f32.mrf.mxu1  ;;  %v640_v26 = vadd.f32 %v639_v16, %v16258_v50  ;;  %v16322_v37 = vmax.f32 %v648_v28, 0.0  ;;  %22759 = vst [vmem:[#allocation42_spill] sm:$0xff] %v16324_v39  ;;  %v1407_v16 = vrot.slane %v16272_v62, 7 }
 0x181   :  { %v14145_v20 = vpop.f32.mrf.mxu0 }
 0x182   :  { %v16304_v22 = vpop.f32.mrf.mxu1  ;;  %v16320_v34 = vmax.f32 %v640_v26, 0.0  ;;  %22758 = vst [vmem:[#allocation41_spill] sm:$0xff] %v16322_v37  ;;  %v1377_v55 = vpack.c.bf16 %v16322_v37, %v16326_v41  ;;  %v661_v3 = vadd.f32 %v14145_v20, %v16258_v50  ;;  %v1408_v20 = vrot.slane %v16300_v19, 7 }
 0x183   :  { %v652_v24 = vpop.f32.mrf.mxu0  ;;  %v1530_v26 = vsel %vm1468_vm5, %v1405_v63, %v1406_v12 }
 0x184   :  { %v16315_v30 = vpop.f32.mrf.mxu1  ;;  %22757 = vst [vmem:[#allocation40_spill] sm:$0xff] %v16320_v34  ;;  %v653_v42 = vadd.f32 %v652_v24, %v16258_v50  ;;  %v1376_v46 = vpack.c.bf16 %v16320_v34, %v16324_v39  ;;  %v1527_v36 = vsel %vm1468_vm5, %v1408_v20, %v1409_v6 }
 0x185   :  { %v14146_v27 = vpop.f32.mrf.mxu0 }
 0x186   :  { %v14194_v38 = vpop.f32.mrf.mxu1  ;;  %v664_v54 = vadd.f32 %v14146_v27, %v16258_v50  ;;  %14207 = vmatprep.mubr.msk.bf16.mxu1 %vm2131_vm3, %v1376_v46  ;;  %v16349_v7 = vmax.f32 %v653_v42, 0.0  ;;  %v16364_v27 = vmax.f32 %v661_v3, 0.0 }
 0x187   :  { %v655_v32 = vpop.f32.mrf.mxu0  ;;  %v856_v44 = vadd.f32 %v14194_v38, %v16258_v50  ;;  %14208 = vmatmul.mubr.msk.bf16.gmra.mxu1 %vm2131_vm3, %v1377_v55 }
 0x188   :  { %v656_v48 = vadd.f32 %v655_v32, %v16258_v50  ;;  %22764 = vst [vmem:[#allocation47_spill] sm:$0xff] %v16349_v7  ;;  %v16356_v18 = vmax.f32 %v664_v54, 0.0  ;;  %22766 = vst [vmem:[#allocation49_spill] sm:$0xff] %v16364_v27  ;;  %v1531_v32 = vsel %vm1468_vm5, %v1404_v14, %v1405_v63  ;;  %v1528_v54 = vsel %vm1468_vm5, %v1407_v16, %v1408_v20 }
 0x189   :  { %v14149_v35 = vpop.f32.mrf.mxu0  ;;  %v16338_v57 = vmax.f32 %v856_v44, 0.0 }
 0x18a   :  { %v16341_v58 = vmax.f32 %v656_v48, 0.0  ;;  %22765 = vst [vmem:[#allocation48_spill] sm:$0xff] %v16356_v18  ;;  %v1379_v44 = vpack.c.bf16 %v16356_v18, %v16364_v27  ;;  %v677_v3 = vadd.f32 %v14149_v35, %v16258_v50 }
 0x18b   :  { %v668_v40 = vpop.f32.mrf.mxu0  ;;  %22762 = vst [vmem:[#allocation45_spill] sm:$0xff] %v16338_v57  ;;  %v22531_v8 = vrot.slane %v16338_v57, 7 }
 0x18c   :  { %22763 = vst [vmem:[#allocation46_spill] sm:$0xff] %v16341_v58  ;;  %v669_v10 = vadd.f32 %v668_v40, %v16258_v50  ;;  %v1378_v23 = vpack.c.bf16 %v16341_v58, %v16349_v7  ;;  %v1529_v40 = vsel %vm1468_vm5, %v1406_v12, %v1407_v16  ;;  %v1411_v16 = vrot.slane %v16302_v21, 7 }
 0x18d   :  { %v14150_v51 = vpop.f32.mrf.mxu0  ;;  %v1532_v29 = vsel %vm1468_vm5, %v22531_v8, %v1404_v14  ;;  %v1726_v48 = vpack.c.bf16 %v1529_v40, %v1530_v26  ;;  %v1410_v14 = vrot.slane %v16308_v25, 7 }
 0x18e   :  { %v16372_v31 = vmax.f32 %v669_v10, 0.0  ;;  %14211 = vmatprep.mubr.msk.bf16.mxu1 %vm2131_vm3, %v1378_v23  ;;  %v1661_v33 = vsel %vm988_vm4, 0.0, %v1532_v29  ;;  %v680_v42 = vadd.f32 %v14150_v51, %v16258_v50  ;;  %v1727_v51 = vpack.c.bf16 %v1527_v36, %v1528_v54 }
 0x18f   :  { %v671_v59 = vpop.f32.mrf.mxu0  ;;  %v1725_v46 = vpack.c.bf16 %v1531_v32, %v1661_v33  ;;  %14212 = vmatmul.mubr.msk.bf16.gmra.mxu1 %vm2131_vm3, %v1379_v44  ;;  %v1413_v10 = vrot.slane %v16320_v34, 7  ;;  %v1412_v23 = vrot.slane %v16324_v39, 7  ;;  %v16408_v29 = vmax.f32 %v677_v3, 0.0 }
 0x190   :  { %v672_v5 = vadd.f32 %v671_v59, %v16258_v50  ;;  %22768 = vst [vmem:[#allocation51_spill] sm:$0xff] %v16372_v31  ;;  %v16400_v20 = vmax.f32 %v680_v42, 0.0  ;;  %v1526_v32 = vsel %vm1468_vm5, %v1409_v6, %v1410_v14  ;;  %v1417_v3 = vrot.slane %v16341_v58, 7 }
 0x191   :  { %v14153_v11 = vpop.f32.mrf.mxu0  ;;  %14267 = vmatprep.mubr.msk.bf16.mxu0 %vm2131_vm3, %v1725_v46  ;;  %22772 = vst [vmem:[#allocation55_spill] sm:$0xff] %v16408_v29  ;;  %v1523_v33 = vsel %vm1468_vm5, %v1412_v23, %v1413_v10  ;;  %v1525_v46 = vsel %vm1468_vm5, %v1410_v14, %v1411_v16  ;;  %v1524_v54 = vsel %vm1468_vm5, %v1411_v16, %v1412_v23  ;;  %v1415_v14 = vrot.slane %v16322_v37, 7 }
 0x192   :  { %v16366_v28 = vmax.f32 %v672_v5, 0.0  ;;  %14268 = vmatmul.mubr.msk.bf16.vlgmr.msra.gmra.mxu0 %vm2131_vm3, %v1726_v48  ;;  %22769 = vst [vmem:[#allocation52_spill] sm:$0xff] %v16400_v20  ;;  %v1381_v44 = vpack.c.bf16 %v16400_v20, %v16408_v29  ;;  %v1728_v48 = vpack.c.bf16 %v1525_v46, %v1526_v32  ;;  %v1416_v23 = vrot.slane %v16349_v7, 7 }
 0x193   :  { %v684_v24 = vpop.f32.mrf.mxu0  ;;  %14271 = vmatprep.mubr.msk.bf16.mxu0 %vm2131_vm3, %v1727_v51 }
 0x194   :  { %22767 = vst [vmem:[#allocation50_spill] sm:$0xff] %v16366_v28  ;;  %v685_v55 = vadd.f32 %v684_v24, %v16258_v50  ;;  %v1380_v59 = vpack.c.bf16 %v16366_v28, %v16372_v31  ;;  %v1421_v37 = vrot.slane %v16366_v28, 7 }
 0x195   :  { %v14154_v38 = vpop.f32.mrf.mxu0 }
 0x196   :  { %14215 = vmatprep.mubr.msk.bf16.mxu1 %vm2131_vm3, %v1380_v59  ;;  %v16406_v24 = vmax.f32 %v685_v55, 0.0  ;;  %v696_v42 = vadd.f32 %v14154_v38, %v16258_v50  ;;  %v693_v59 = vadd.f32 %v14153_v11, %v16258_v50 }
 0x197   :  { %v687_v63 = vpop.f32.mrf.mxu0  ;;  %14216 = vmatmul.mubr.msk.bf16.gmra.mxu1 %vm2131_vm3, %v1381_v44  ;;  %v1519_v44 = vsel %vm1468_vm5, %v1416_v23, %v1417_v3 }
 0x198   :  { %v688_v5 = vadd.f32 %v687_v63, %v16258_v50  ;;  %22771 = vst [vmem:[#allocation54_spill] sm:$0xff] %v16406_v24  ;;  %v1729_v63 = vpack.c.bf16 %v1523_v33, %v1524_v54  ;;  %v16432_v16 = vmax.f32 %v696_v42, 0.0  ;;  %v16440_v33 = vmax.f32 %v693_v59, 0.0 }
 0x199   :  { %v14157_v12 = vpop.f32.mrf.mxu0  ;;  %v1520_v59 = vsel %vm1468_vm5, %v1415_v14, %v1416_v23 }
 0x19a   :  { %v16403_v35 = vmax.f32 %v688_v5, 0.0  ;;  %14272 = vmatmul.mubr.msk.bf16.gmra.mxu0 %vm2131_vm3, %v1728_v48  ;;  %v1414_v5 = vrot.slane %v16326_v41, 7  ;;  %22773 = vst [vmem:[#allocation56_spill] sm:$0xff] %v16432_v16  ;;  %22776 = vst [vmem:[#allocation59_spill] sm:$0xff] %v16440_v33  ;;  %v1383_v54 = vpack.c.bf16 %v16432_v16, %v16440_v33  ;;  %v1731_v8 = vpack.c.bf16 %v1519_v44, %v1520_v59 }
 0x19b   :  { %v700_v26 = vpop.f32.mrf.mxu0  ;;  %14275 = vmatprep.mubr.msk.bf16.mxu0 %vm2131_vm3, %v1729_v63 }
 0x19c   :  { %22770 = vst [vmem:[#allocation53_spill] sm:$0xff] %v16403_v35  ;;  %v1382_v40 = vpack.c.bf16 %v16403_v35, %v16406_v24  ;;  %v701_v6 = vadd.f32 %v700_v26, %v16258_v50 }
 0x19d   :  { %v14158_v36 = vpop.f32.mrf.mxu0 }
 0x19e   :  { %14219 = vmatprep.mubr.msk.bf16.mxu1 %vm2131_vm3, %v1382_v40  ;;  %v16438_v26 = vmax.f32 %v701_v6, 0.0  ;;  %v1522_v40 = vsel %vm1468_vm5, %v1413_v10, %v1414_v5  ;;  %v712_v48 = vadd.f32 %v14158_v36, %v16258_v50  ;;  %v1521_v6 = vsel %vm1468_vm5, %v1414_v5, %v1415_v14 }
 0x19f   :  { %v703_v55 = vpop.f32.mrf.mxu0  ;;  %14220 = vmatmul.mubr.msk.bf16.gmra.mxu1 %vm2131_vm3, %v1383_v54  ;;  %v1419_v14 = vrot.slane %v16356_v18, 7 }
 0x1a0   :  { %v704_v38 = vadd.f32 %v703_v55, %v16258_v50  ;;  %22775 = vst [vmem:[#allocation58_spill] sm:$0xff] %v16438_v26  ;;  %v1730_v55 = vpack.c.bf16 %v1521_v6, %v1522_v40  ;;  %v1418_v40 = vrot.slane %v16364_v27, 7  ;;  %v16464_v23 = vmax.f32 %v712_v48, 0.0 }
 0x1a1   :  { %v14161_v51 = vpop.f32.mrf.mxu0  ;;  %v1425_v27 = vrot.slane %v16403_v35, 7 }
 0x1a2   :  { %v16435_v11 = vmax.f32 %v704_v38, 0.0  ;;  %v709_v38 = vadd.f32 %v14157_v12, %v16258_v50  ;;  %14276 = vmatmul.mubr.msk.bf16.gmra.mxu0 %vm2131_vm3, %v1730_v55  ;;  %22777 = vst [vmem:[#allocation60_spill] sm:$0xff] %v16464_v23  ;;  %v725_v28 = vadd.f32 %v14161_v51, %v16258_v50 }
 0x1a3   :  { %v716_v32 = vpop.f32.mrf.mxu0  ;;  %14279 = vmatprep.mubr.msk.bf16.mxu0 %vm2131_vm3, %v1731_v8 }
 0x1a4   :  { %22774 = vst [vmem:[#allocation57_spill] sm:$0xff] %v16435_v11  ;;  %v1384_v42 = vpack.c.bf16 %v16435_v11, %v16438_v26  ;;  %v717_v10 = vadd.f32 %v716_v32, %v16258_v50  ;;  %v1420_v32 = vrot.slane %v16372_v31, 7  ;;  %v16472_v6 = vmax.f32 %v709_v38, 0.0 }
 0x1a5   :  { %v14162_v46 = vpop.f32.mrf.mxu0 }
 0x1a6   :  { %14223 = vmatprep.mubr.msk.bf16.mxu1 %vm2131_vm3, %v1384_v42  ;;  %v16470_v44 = vmax.f32 %v717_v10, 0.0  ;;  %22780 = vst [vmem:[#allocation63_spill] sm:$0xff] %v16472_v6  ;;  %v1518_v42 = vsel %vm1468_vm5, %v1417_v3, %v1418_v40  ;;  %v1515_v55 = vsel %vm1468_vm5, %v1420_v32, %v1421_v37  ;;  %v728_v8 = vadd.f32 %v14162_v46, %v16258_v50 }
 0x1a7   :  { %v719_v63 = vpop.f32.mrf.mxu0  ;;  %v1517_v10 = vsel %vm1468_vm5, %v1418_v40, %v1419_v14 }
 0x1a8   :  { %v720_v36 = vadd.f32 %v719_v63, %v16258_v50  ;;  %22779 = vst [vmem:[#allocation62_spill] sm:$0xff] %v16470_v44  ;;  %v1385_v63 = vpack.c.bf16 %v16464_v23, %v16472_v6  ;;  %v1732_v38 = vpack.c.bf16 %v1517_v10, %v1518_v42  ;;  %v1422_v42 = vrot.slane %v16408_v29, 7 }
 0x1a9   :  { %v14165_v5 = vpop.f32.mrf.mxu0  ;;  %v1429_v29 = vrot.slane %v16435_v11, 7 }
 0x1aa   :  { %v16467_v12 = vmax.f32 %v720_v36, 0.0  ;;  %v1516_v36 = vsel %vm1468_vm5, %v1419_v14, %v1420_v32  ;;  %14224 = vmatmul.mubr.msk.bf16.gmra.mxu1 %vm2131_vm3, %v1385_v63  ;;  %14280 = vmatmul.mubr.msk.bf16.gmra.mxu0 %vm2131_vm3, %v1732_v38  ;;  %v1423_v14 = vrot.slane %v16400_v20, 7  ;;  %v16496_v32 = vmax.f32 %v728_v8, 0.0 }
 0x1ab   :  { %v732_v54 = vpop.f32.mrf.mxu0  ;;  %v1733_v31 = vpack.c.bf16 %v1515_v55, %v1516_v36  ;;  %v16504_v63 = vmax.f32 %v725_v28, 0.0  ;;  %v741_v35 = vadd.f32 %v14165_v5, %v16258_v50 }
 0x1ac   :  { %22778 = vst [vmem:[#allocation61_spill] sm:$0xff] %v16467_v12  ;;  %v1386_v48 = vpack.c.bf16 %v16467_v12, %v16470_v44  ;;  %v733_v3 = vadd.f32 %v732_v54, %v16258_v50  ;;  %22781 = vst [vmem:[#allocation64_spill] sm:$0xff] %v16496_v32  ;;  %v1424_v54 = vrot.slane %v16406_v24, 7 }
 0x1ad   :  { %v14166_v59 = vpop.f32.mrf.mxu0  ;;  %14283 = vmatprep.mubr.msk.bf16.mxu0 %vm2131_vm3, %v1733_v31  ;;  %22784 = vst [vmem:[#allocation67_spill] sm:$0xff] %v16504_v63  ;;  %v1387_v36 = vpack.c.bf16 %v16496_v32, %v16504_v63 }
 0x1ae   :  { %14227 = vmatprep.mubr.msk.bf16.mxu1 %vm2131_vm3, %v1386_v48  ;;  %v1514_v48 = vsel %vm1468_vm5, %v1421_v37, %v1422_v42  ;;  %v1511_v10 = vsel %vm1468_vm5, %v1424_v54, %v1425_v27  ;;  %v744_v31 = vadd.f32 %v14166_v59, %v16258_v50 }
 0x1af   :  { %v735_v18 = vpop.f32.mrf.mxu0 }
 0x1b0   :  { %v736_v46 = vadd.f32 %v735_v18, %v16258_v50  ;;  %v16502_v18 = vmax.f32 %v733_v3, 0.0  ;;  %v1513_v3 = vsel %vm1468_vm5, %v1422_v42, %v1423_v14 }
 0x1b1   :  { %v14169_v40 = vpop.f32.mrf.mxu0  ;;  %v1734_v28 = vpack.c.bf16 %v1513_v3, %v1514_v48  ;;  %v1426_v48 = vrot.slane %v16440_v33, 7  ;;  %v1433_v33 = vrot.slane %v16467_v12, 7  ;;  %v16585_v12 = vadd.s32 256, %v16333_v53 }
 0x1b2   :  { %v16499_v51 = vmax.f32 %v736_v46, 0.0  ;;  %22783 = vst [vmem:[#allocation66_spill] sm:$0xff] %v16502_v18  ;;  %v1512_v46 = vsel %vm1468_vm5, %v1423_v14, %v1424_v54  ;;  %14228 = vmatmul.mubr.msk.bf16.gmra.mxu1 %vm2131_vm3, %v1387_v36  ;;  %v1427_v14 = vrot.slane %v16432_v16, 7  ;;  %v16528_v54 = vmax.f32 %v744_v31, 0.0 }
 0x1b3   :  { %v748_v55 = vpop.f32.mrf.mxu0  ;;  %v1735_v24 = vpack.c.bf16 %v1511_v10, %v1512_v46  ;;  %14284 = vmatmul.mubr.msk.bf16.gmra.mxu0 %vm2131_vm3, %v1734_v28  ;;  %v16536_v36 = vmax.f32 %v741_v35, 0.0  ;;  %v757_v11 = vadd.f32 %v14169_v40, %v16258_v50  ;;  %22793 = vst [vmem:[#allocation76_spill] sm:$0xff] %v16585_v12  ;;  %vm1148_vm6 = vcmp.eq.s32.totalorder %v16585_v12, 256 }
 0x1b4   :  { %22782 = vst [vmem:[#allocation65_spill] sm:$0xff] %v16499_v51  ;;  %v1388_v8 = vpack.c.bf16 %v16499_v51, %v16502_v18  ;;  %v749_v37 = vadd.f32 %v748_v55, %v16258_v50  ;;  %22785 = vst [vmem:[#allocation68_spill] sm:$0xff] %v16528_v54  ;;  %v1428_v55 = vrot.slane %v16438_v26, 7 }
 0x1b5   :  { %v14170_v38 = vpop.f32.mrf.mxu0  ;;  %14287 = vmatprep.mubr.msk.bf16.mxu0 %vm2131_vm3, %v1735_v24  ;;  %22788 = vst [vmem:[#allocation71_spill] sm:$0xff] %v16536_v36  ;;  %v1389_v46 = vpack.c.bf16 %v16528_v54, %v16536_v36 }
 0x1b6   :  { %14231 = vmatprep.mubr.msk.bf16.mxu1 %vm2131_vm3, %v1388_v8  ;;  %v1510_v8 = vsel %vm1468_vm5, %v1425_v27, %v1426_v48  ;;  %v1507_v3 = vsel %vm1468_vm5, %v1428_v55, %v1429_v29  ;;  %v760_v24 = vadd.f32 %v14170_v38, %v16258_v50 }
 0x1b7   :  { %v751_v20 = vpop.f32.mrf.mxu0 }
 0x1b8   :  { %v752_v59 = vadd.f32 %v751_v20, %v16258_v50  ;;  %v16534_v20 = vmax.f32 %v749_v37, 0.0  ;;  %v1509_v37 = vsel %vm1468_vm5, %v1426_v48, %v1427_v14 }
 0x1b9   :  { %v14173_v42 = vpop.f32.mrf.mxu0  ;;  %v1736_v35 = vpack.c.bf16 %v1509_v37, %v1510_v8  ;;  %v1430_v8 = vrot.slane %v16472_v6, 7 }
 0x1ba   :  { %v16531_v5 = vmax.f32 %v752_v59, 0.0  ;;  %22787 = vst [vmem:[#allocation70_spill] sm:$0xff] %v16534_v20  ;;  %v1508_v59 = vsel %vm1468_vm5, %v1427_v14, %v1428_v55  ;;  %14232 = vmatmul.mubr.msk.bf16.gmra.mxu1 %vm2131_vm3, %v1389_v46  ;;  %v1431_v14 = vrot.slane %v16464_v23, 7  ;;  %v16560_v55 = vmax.f32 %v760_v24, 0.0 }
 0x1bb   :  { %v764_v10 = vpop.f32.mrf.mxu0  ;;  %v1737_v26 = vpack.c.bf16 %v1507_v3, %v1508_v59  ;;  %14288 = vmatmul.mubr.msk.bf16.gmra.mxu0 %vm2131_vm3, %v1736_v35  ;;  %v16568_v46 = vmax.f32 %v757_v11, 0.0 }
 0x1bc   :  { %22786 = vst [vmem:[#allocation69_spill] sm:$0xff] %v16531_v5  ;;  %v1390_v31 = vpack.c.bf16 %v16531_v5, %v16534_v20  ;;  %v765_v27 = vadd.f32 %v764_v10, %v16258_v50  ;;  %22789 = vst [vmem:[#allocation72_spill] sm:$0xff] %v16560_v55  ;;  %v1432_v10 = vrot.slane %v16470_v44, 7  ;;  %v1436_v44 = vrot.slane %v16502_v18, 7 }
 0x1bd   :  { %v14174_v28 = vpop.f32.mrf.mxu0  ;;  %14291 = vmatprep.mubr.msk.bf16.mxu0 %vm2131_vm3, %v1737_v26  ;;  %22792 = vst [vmem:[#allocation75_spill] sm:$0xff] %v16568_v46  ;;  %v1391_v59 = vpack.c.bf16 %v16560_v55, %v16568_v46 }
 0x1be   :  { %14235 = vmatprep.mubr.msk.bf16.mxu1 %vm2131_vm3, %v1390_v31  ;;  %v1506_v31 = vsel %vm1468_vm5, %v1429_v29, %v1430_v8  ;;  %v1503_v37 = vsel %vm1468_vm5, %v1432_v10, %v1433_v33  ;;  %v776_v26 = vadd.f32 %v14174_v28, %v16258_v50  ;;  %v773_v28 = vadd.f32 %v14173_v42, %v16258_v50 }
 0x1bf   :  { %v767_v16 = vpop.f32.mrf.mxu0 }
 0x1c0   :  { %v768_v38 = vadd.f32 %v767_v16, %v16258_v50  ;;  %v16566_v16 = vmax.f32 %v765_v27, 0.0  ;;  %v1505_v27 = vsel %vm1468_vm5, %v1430_v8, %v1431_v14  ;;  %v1437_v8 = vrot.slane %v16499_v51, 7 }
 0x1c1   :  { %v14177_v48 = vpop.f32.mrf.mxu0  ;;  %v1738_v11 = vpack.c.bf16 %v1505_v27, %v1506_v31 }
 0x1c2   :  { %v16563_v40 = vmax.f32 %v768_v38, 0.0  ;;  %22791 = vst [vmem:[#allocation74_spill] sm:$0xff] %v16566_v16  ;;  %v1504_v38 = vsel %vm1468_vm5, %v1431_v14, %v1432_v10  ;;  %14236 = vmatmul.mubr.msk.bf16.gmra.mxu1 %vm2131_vm3, %v1391_v59  ;;  %v1434_v14 = vrot.slane %v16504_v63, 7  ;;  %v1435_v10 = vrot.slane %v16496_v32, 7 }
 0x1c3   :  { %v780_v3 = vpop.f32.mrf.mxu0  ;;  %v1739_v6 = vpack.c.bf16 %v1503_v37, %v1504_v38  ;;  %14292 = vmatmul.mubr.msk.bf16.gmra.mxu0 %vm2131_vm3, %v1738_v11  ;;  %v16603_v37 = vmax.f32 %v773_v28, 0.0  ;;  %v800_v11 = vadd.f32 %v16256_v49, %v16258_v50  ;;  %v1441_v28 = vrot.slane %v16531_v5, 7 }
 0x1c4   :  { %22790 = vst [vmem:[#allocation73_spill] sm:$0xff] %v16563_v40  ;;  %v1392_v24 = vpack.c.bf16 %v16563_v40, %v16566_v16  ;;  %v781_v29 = vadd.f32 %v780_v3, %v16258_v50  ;;  %v16596_v3 = vmax.f32 %v776_v26, 0.0  ;;  %v1499_v26 = vsel %vm1468_vm5, %v1436_v44, %v1437_v8 }
 0x1c5   :  { %v14178_v35 = vpop.f32.mrf.mxu0  ;;  %14295 = vmatprep.mubr.msk.bf16.mxu0 %vm2131_vm3, %v1739_v6  ;;  %22797 = vst [vmem:[#allocation80_spill] sm:$0xff] %v16603_v37  ;;  %v1501_v27 = vsel %vm1468_vm5, %v1434_v14, %v1435_v10 }
 0x1c6   :  { %14239 = vmatprep.mubr.msk.bf16.mxu1 %vm2131_vm3, %v1392_v24  ;;  %22794 = vst [vmem:[#allocation77_spill] sm:$0xff] %v16596_v3  ;;  %v16601_v31 = vmax.f32 %v781_v29, 0.0  ;;  %v1500_v24 = vsel %vm1468_vm5, %v1435_v10, %v1436_v44  ;;  %v1393_v59 = vpack.c.bf16 %v16596_v3, %v16603_v37  ;;  %v789_v29 = vadd.f32 %v14177_v48, %v16258_v50 }
 0x1c7   :  { %v783_v23 = vpop.f32.mrf.mxu0  ;;  %v1693_v44 = vsel %vm1148_vm6, 0.0, %v1500_v24  ;;  %v16637_v48 = vmax.f32 %v800_v11, 0.0 }
 0x1c8   :  { %v784_v58 = vadd.f32 %v783_v23, %v16258_v50  ;;  %22796 = vst [vmem:[#allocation79_spill] sm:$0xff] %v16601_v31  ;;  %v1502_v23 = vsel %vm1468_vm5, %v1433_v33, %v1434_v14  ;;  %v797_v33 = vadd.f32 %v16252_v45, %v16258_v50  ;;  %v1438_v45 = vrot.slane %v16536_v36, 7 }
 0x1c9   :  { %v1740_v38 = vpack.c.bf16 %v1501_v27, %v1502_v23  ;;  %v1439_v14 = vrot.slane %v16528_v54, 7  ;;  %22800 = vst [vmem:[#allocation83_spill] sm:$0xff] %v16637_v48  ;;  %v1440_v23 = vrot.slane %v16534_v20, 7  ;;  %v16640_v24 = vmax.f32 %v789_v29, 0.0 }
 0x1ca   :  { %v16599_v42 = vmax.f32 %v784_v58, 0.0  ;;  %v792_v58 = vadd.f32 %v14178_v35, %v16258_v50  ;;  %14240 = vmatmul.mubr.msk.bf16.gmra.mxu1 %vm2131_vm3, %v1393_v59  ;;  %v1741_v35 = vpack.c.bf16 %v1499_v26, %v1693_v44  ;;  %v16635_v10 = vmax.f32 %v797_v33, 0.0 }
 0x1cb   :  { %14296 = vmatmul.mubr.msk.bf16.gmra.mxu0 %vm2131_vm3, %v1740_v38  ;;  %22801 = vst [vmem:[#allocation84_spill] sm:$0xff] %v16640_v24  ;;  %v1498_v26 = vsel %vm1468_vm5, %v1437_v8, %v1438_v45  ;;  %v805_v59 = vadd.f32 %v16250_v43, %v16258_v50  ;;  %v808_v27 = vadd.f32 %v16254_v47, %v16258_v50  ;;  %v1445_v47 = vrot.slane %v16563_v40, 7 }
 0x1cc   :  { %22795 = vst [vmem:[#allocation78_spill] sm:$0xff] %v16599_v42  ;;  %v1394_v6 = vpack.c.bf16 %v16599_v42, %v16601_v31  ;;  %v16632_v49 = vmax.f32 %v792_v58, 0.0  ;;  %14299 = vmatprep.mubr.msk.bf16.mxu0 %vm2131_vm3, %v1741_v35  ;;  %22799 = vst [vmem:[#allocation82_spill] sm:$0xff] %v16635_v10  ;;  %v1495_v58 = vsel %vm1468_vm5, %v1440_v23, %v1441_v28  ;;  %v1453_v12 = vrot.slane %v16637_v48, 7 }
 0x1cd   :  { %v1497_v11 = vsel %vm1468_vm5, %v1438_v45, %v1439_v14  ;;  %v813_v8 = vadd.f32 %v16264_v56, %v16258_v50  ;;  %v816_v38 = vadd.f32 %v16274_v0, %v16258_v50  ;;  %v1496_v29 = vsel %vm1468_vm5, %v1439_v14, %v1440_v23 }
 0x1ce   :  { %14243 = vmatprep.mubr.msk.bf16.mxu1 %vm2131_vm3, %v1394_v6  ;;  %22798 = vst [vmem:[#allocation81_spill] sm:$0xff] %v16632_v49  ;;  %v1396_v6 = vpack.c.bf16 %v16637_v48, %v16635_v10  ;;  %v1395_v33 = vpack.c.bf16 %v16632_v49, %v16640_v24  ;;  %v1742_v44 = vpack.c.bf16 %v1497_v11, %v1498_v26  ;;  %v16666_v35 = vmax.f32 %v805_v59, 0.0 }
 0x1cf   :  { %v1743_v43 = vpack.c.bf16 %v1495_v58, %v1496_v29  ;;  %v16668_v45 = vmax.f32 %v808_v27, 0.0  ;;  %v1442_v56 = vrot.slane %v16568_v46, 7  ;;  %v1443_v0 = vrot.slane %v16560_v55, 7 }
 0x1d0   :  { %22802 = vst [vmem:[#allocation85_spill] sm:$0xff] %v16666_v35  ;;  %v16673_v14 = vmax.f32 %v813_v8, 0.0  ;;  %v16675_v23 = vmax.f32 %v816_v38, 0.0  ;;  %v1444_v26 = vrot.slane %v16566_v16, 7  ;;  %v821_v27 = vadd.f32 %v16260_v52, %v16258_v50 }
 0x1d1   :  { %22803 = vst [vmem:[#allocation86_spill] sm:$0xff] %v16668_v45  ;;  %v1397_v11 = vpack.c.bf16 %v16668_v45, %v16666_v35  ;;  %v1493_v8 = vsel %vm1468_vm5, %v1442_v56, %v1443_v0  ;;  %v832_v38 = vadd.f32 %v16297_v17, %v16258_v50  ;;  %v1447_v17 = vrot.slane %v16596_v3, 7 }
 0x1d2   :  { %14244 = vmatmul.mubr.msk.bf16.gmra.mxu1 %vm2131_vm3, %v1395_v33  ;;  %22804 = vst [vmem:[#allocation87_spill] sm:$0xff] %v16673_v14  ;;  %22805 = vst [vmem:[#allocation88_spill] sm:$0xff] %v16675_v23  ;;  %v1398_v58 = vpack.c.bf16 %v16675_v23, %v16673_v14  ;;  %v1491_v59 = vsel %vm1468_vm5, %v1444_v26, %v1445_v47  ;;  %v824_v33 = vadd.f32 %v16268_v60, %v16258_v50 }
 0x1d3   :  { %14247 = vmatprep.mubr.msk.bf16.mxu1 %vm2131_vm3, %v1396_v6  ;;  %14300 = vmatmul.mubr.msk.bf16.gmra.mxu0 %vm2131_vm3, %v1742_v44  ;;  %v1494_v6 = vsel %vm1468_vm5, %v1441_v28, %v1442_v56  ;;  %v829_v28 = vadd.f32 %v16287_v9, %v16258_v50  ;;  %v1492_v29 = vsel %vm1468_vm5, %v1443_v0, %v1444_v26  ;;  %v1449_v60 = vrot.slane %v16599_v42, 7 }
 0x1d4   :  { %14303 = vmatprep.mubr.msk.bf16.mxu0 %vm2131_vm3, %v1743_v43  ;;  %v1744_v44 = vpack.c.bf16 %v1493_v8, %v1494_v6  ;;  %v1745_v52 = vpack.c.bf16 %v1491_v59, %v1492_v29  ;;  %v16702_v43 = vmax.f32 %v821_v27, 0.0  ;;  %v16704_v56 = vmax.f32 %v824_v33, 0.0  ;;  %v847_v59 = vpop.f32.mrf.mxu1 }
 0x1d5   :  { %v1446_v9 = vrot.slane %v16603_v37, 7  ;;  %v16709_v0 = vmax.f32 %v829_v28, 0.0  ;;  %v16711_v26 = vmax.f32 %v832_v38, 0.0  ;;  %v1448_v6 = vrot.slane %v16601_v31, 7 }
 0x1d6   :  { %22806 = vst [vmem:[#allocation89_spill] sm:$0xff] %v16702_v43  ;;  %22807 = vst [vmem:[#allocation90_spill] sm:$0xff] %v16704_v56  ;;  %v840_v8 = vadd.f32 %v16292_v13, %v16258_v50  ;;  %v1399_v28 = vpack.c.bf16 %v16704_v56, %v16702_v43  ;;  %v1452_v13 = vrot.slane %v16635_v10, 7  ;;  %v1451_v3 = vrot.slane %v16632_v49, 7 }
 0x1d7   :  { %22808 = vst [vmem:[#allocation91_spill] sm:$0xff] %v16709_v0  ;;  %22809 = vst [vmem:[#allocation92_spill] sm:$0xff] %v16711_v26  ;;  %v1400_v27 = vpack.c.bf16 %v16711_v26, %v16709_v0  ;;  %v1487_v33 = vsel %vm1468_vm5, %v1448_v6, %v1449_v60  ;;  %v1489_v38 = vsel %vm1468_vm5, %v1446_v9, %v1447_v17 }
 0x1da   :  { %14248 = vmatmul.mubr.msk.bf16.gmra.mxu1 %vm2131_vm3, %v1397_v11  ;;  %v837_v11 = vadd.f32 %v16280_v4, %v16258_v50 }
 0x1db   :  { %14251 = vmatprep.mubr.msk.bf16.mxu1 %vm2131_vm3, %v1398_v58  ;;  %14304 = vmatmul.mubr.msk.bf16.gmra.mxu0 %vm2131_vm3, %v1744_v44  ;;  %v1490_v58 = vsel %vm1468_vm5, %v1445_v47, %v1446_v9  ;;  %v845_v47 = vadd.f32 %v16315_v30, %v16258_v50  ;;  %v848_v44 = vadd.f32 %v847_v59, %v16258_v50  ;;  %v16741_v9 = vmax.f32 %v840_v8, 0.0 }
 0x1dc   :  { %14307 = vmatprep.mubr.msk.bf16.mxu0 %vm2131_vm3, %v1745_v52  ;;  %v1746_v29 = vpack.c.bf16 %v1489_v38, %v1490_v58  ;;  %v1488_v52 = vsel %vm1468_vm5, %v1447_v17, %v1448_v6  ;;  %v16739_v30 = vmax.f32 %v837_v11, 0.0  ;;  %v1450_v59 = vrot.slane %v16640_v24, 7 }
 0x1dd   :  { %v1747_v4 = vpack.c.bf16 %v1487_v33, %v1488_v52  ;;  %22811 = vst [vmem:[#allocation94_spill] sm:$0xff] %v16741_v9  ;;  %v16745_v17 = vmax.f32 %v845_v47, 0.0  ;;  %v16747_v6 = vmax.f32 %v848_v44, 0.0  ;;  %v1483_v33 = vsel %vm1468_vm5, %v1452_v13, %v1453_v12 }
 0x1de   :  { %22810 = vst [vmem:[#allocation93_spill] sm:$0xff] %v16739_v30  ;;  %v1486_v58 = vsel %vm1468_vm5, %v1449_v60, %v1450_v59  ;;  %v1484_v11 = vsel %vm1468_vm5, %v1451_v3, %v1452_v13  ;;  %v1401_v8 = vpack.c.bf16 %v16741_v9, %v16739_v30  ;;  %v853_v38 = vadd.f32 %v16304_v22, %v16258_v50 }
 0x1df   :  { %22812 = vst [vmem:[#allocation95_spill] sm:$0xff] %v16745_v17  ;;  %22813 = vst [vmem:[#allocation96_spill] sm:$0xff] %v16747_v6  ;;  %v1454_v60 = vrot.slane %v16666_v35, 7  ;;  %v1455_v44 = vrot.slane %v16668_v45, 7  ;;  %v1749_v52 = vpack.c.bf16 %v1483_v33, %v1484_v11  ;;  %v1457_v13 = vrot.slane %v16675_v23, 7 }
 0x1e0   :  { %v1759_v50 = vrot.slane %v16278_v2, 1  ;;  %v22571_v22 = vrot.slane %v16276_v1, 1 }
 0x1e1   :  { %v1482_v33 = vsel %vm1468_vm5, %v1453_v12, %v1454_v60 }
 0x1e2   :  { %14252 = vmatmul.mubr.msk.bf16.gmra.mxu1 %vm2131_vm3, %v1399_v28  ;;  %v1485_v28 = vsel %vm1468_vm5, %v1450_v59, %v1451_v3  ;;  %v16775_v3 = vmax.f32 %v853_v38, 0.0  ;;  %v1761_v38 = vrot.slane %v16300_v19, 1  ;;  %v1765_v19 = vrot.slane %v16324_v39, 1 }
 0x1e3   :  { %14255 = vmatprep.mubr.msk.bf16.mxu1 %vm2131_vm3, %v1400_v27  ;;  %14308 = vmatmul.mubr.msk.bf16.gmra.mxu0 %vm2131_vm3, %v1746_v29  ;;  %v1402_v27 = vpack.c.bf16 %v16747_v6, %v16745_v17  ;;  %v1748_v47 = vpack.c.bf16 %v1485_v28, %v1486_v58  ;;  %v1758_v29 = vrot.slane %v16270_v61, 1  ;;  %v1762_v61 = vrot.slane %v16295_v15, 1 }
 0x1e4   :  { %14311 = vmatprep.mubr.msk.bf16.mxu0 %vm2131_vm3, %v1747_v4  ;;  %v1456_v4 = vrot.slane %v16673_v14, 7  ;;  %22814 = vst [vmem:[#allocation97_spill] sm:$0xff] %v16775_v3  ;;  %v1403_v28 = vpack.c.bf16 %v16338_v57, %v16775_v3 }
 0x1e5   :  { %v1883_v59 = vsel %vm1821_vm7, %v1758_v29, %v1759_v50  ;;  %v1884_v58 = vsel %vm1821_vm7, %v22571_v22, %v1758_v29  ;;  %v1458_v29 = vrot.slane %v16702_v43, 7  ;;  %v1459_v22 = vrot.slane %v16704_v56, 7 }
 0x1e6   :  { %v1479_v11 = vsel %vm1468_vm5, %v1456_v4, %v1457_v13 }
 0x1ea   :  { %14256 = vmatmul.mubr.msk.bf16.gmra.mxu1 %vm2131_vm3, %v1401_v8  ;;  %v1480_v8 = vsel %vm1468_vm5, %v1455_v44, %v1456_v4  ;;  %v1461_v4 = vrot.slane %v16711_v26, 7 }
 0x1eb   :  { %14259 = vmatprep.mubr.msk.bf16.mxu1 %vm2131_vm3, %v1402_v27  ;;  %14312 = vmatmul.mubr.msk.bf16.gmra.mxu0 %vm2131_vm3, %v1748_v47  ;;  %v1481_v27 = vsel %vm1468_vm5, %v1454_v60, %v1455_v44  ;;  %v2078_v47 = vpack.c.bf16 %v1883_v59, %v1884_v58  ;;  %v1751_v12 = vpack.c.bf16 %v1479_v11, %v1480_v8  ;;  %v1760_v60 = vrot.slane %v16272_v62, 1 }
 0x1ec   :  { %14315 = vmatprep.mubr.msk.bf16.mxu0 %vm2131_vm3, %v1749_v52  ;;  %v1750_v52 = vpack.c.bf16 %v1481_v27, %v1482_v33  ;;  %v1460_v44 = vrot.slane %v16709_v0, 7  ;;  %v1763_v59 = vrot.slane %v16308_v25, 1  ;;  %v1880_v33 = vsel %vm1821_vm7, %v1761_v38, %v1762_v61 }
 0x1ed   :  { %v1881_v58 = vsel %vm1821_vm7, %v1760_v60, %v1761_v38  ;;  %v1477_v11 = vsel %vm1468_vm5, %v1458_v29, %v1459_v22  ;;  %v1478_v8 = vsel %vm1468_vm5, %v1457_v13, %v1458_v29  ;;  %v1462_v38 = vrot.slane %v16739_v30, 7 }
 0x1ee   :  { %v1879_v27 = vsel %vm1821_vm7, %v1762_v61, %v1763_v59  ;;  %v1752_v61 = vpack.c.bf16 %v1477_v11, %v1478_v8  ;;  %v1463_v25 = vrot.slane %v16741_v9, 7  ;;  %v1766_v13 = vrot.slane %v16320_v34, 1 }
 0x1ef   :  { %v2080_v15 = vpack.c.bf16 %v1879_v27, %v1880_v33  ;;  %v1764_v29 = vrot.slane %v16302_v21, 1 }
 0x1f0   :  { %v1876_v33 = vsel %vm1821_vm7, %v1765_v19, %v1766_v13  ;;  %v1473_v11 = vsel %vm1468_vm5, %v1462_v38, %v1463_v25 }
 0x1f1   :  { %v1878_v8 = vsel %vm1821_vm7, %v1763_v59, %v1764_v29 }
 0x1f2   :  { %14260 = vmatmul.mubr.msk.bf16.gmra.mxu1 %vm2131_vm3, %v1403_v28  ;;  %v1882_v28 = vsel %vm1821_vm7, %v1759_v50, %v1760_v60  ;;  %v1464_v60 = vrot.slane %v16745_v17, 7 }
 0x1f3   :  { %14335 = vmatprep.mubr.msk.bf16.mxu1 %vm2131_vm3, %v2078_v47  ;;  %14316 = vmatmul.mubr.msk.bf16.gmra.mxu0 %vm2131_vm3, %v1750_v52  ;;  %v1475_v47 = vsel %vm1468_vm5, %v1460_v44, %v1461_v4  ;;  %v1476_v52 = vsel %vm1468_vm5, %v1459_v22, %v1460_v44  ;;  %v1465_v22 = vrot.slane %v16747_v6, 7  ;;  %v1767_v44 = vrot.slane %v16326_v41, 1 }
 0x1f4   :  { %14319 = vmatprep.mubr.msk.bf16.mxu0 %vm2131_vm3, %v1751_v12  ;;  %v2079_v12 = vpack.c.bf16 %v1881_v58, %v1882_v28  ;;  %v1753_v50 = vpack.c.bf16 %v1475_v47, %v1476_v52  ;;  %v1877_v58 = vsel %vm1821_vm7, %v1764_v29, %v1765_v19  ;;  %v1472_v47 = vsel %vm1468_vm5, %v1463_v25, %v1464_v60  ;;  %v22817_v29 = vld [vmem:[#allocation49_spill] sm:$0xff] }
 0x1f5   :  { %v1875_v27 = vsel %vm1821_vm7, %v1766_v13, %v1767_v44  ;;  %v1471_v28 = vsel %vm1468_vm5, %v1464_v60, %v1465_v22  ;;  %v2081_v52 = vpack.c.bf16 %v1877_v58, %v1878_v8  ;;  %v1466_v13 = vrot.slane %v16775_v3, 7 }
 0x1f6   :  { %v1771_v25 = vrot.slane %v22817_v29, 1 }
 0x1fa   :  { %14336 = vmatmul.mubr.msk.bf16.vlgmr.msra.gmra.mxu1 %vm2131_vm3, %v2079_v12  ;;  %v1769_v12 = vrot.slane %v16349_v7, 1 }
 0x1fb   :  { %14339 = vmatprep.mubr.msk.bf16.mxu1 %vm2131_vm3, %v2080_v15  ;;  %14320 = vmatmul.mubr.msk.bf16.gmra.mxu0 %vm2131_vm3, %v1752_v61  ;;  %v1474_v15 = vsel %vm1468_vm5, %v1461_v4, %v1462_v38  ;;  %v2082_v61 = vpack.c.bf16 %v1875_v27, %v1876_v33  ;;  %v1755_v4 = vpack.c.bf16 %v1471_v28, %v1472_v47  ;;  %v22816_v38 = vld [vmem:[#allocation41_spill] sm:$0xff]  ;;  %v22818_v33 = vrot.slane %v16338_v57, 7  ;;  %v22819_v47 = vld [vmem:[#allocation51_spill] sm:$0xff] }
 0x1fc   :  { %14323 = vmatprep.mubr.msk.bf16.mxu0 %vm2131_vm3, %v1753_v50  ;;  %v1754_v19 = vpack.c.bf16 %v1473_v11, %v1474_v15  ;;  %v22815_v50 = vld [vmem:[#allocation46_spill] sm:$0xff]  ;;  %v1768_v59 = vrot.slane %v22816_v38, 1  ;;  %v1470_v15 = vsel %vm1468_vm5, %v1465_v22, %v1466_v13 }
 0x1fd   :  { %v1770_v34 = vrot.slane %v22815_v50, 1  ;;  %v1469_v11 = vsel %vm1468_vm5, %v1466_v13, %v22818_v33  ;;  %v22822_v33 = vld [vmem:[#allocation55_spill] sm:$0xff] }
 0x1fe   :  { %v1873_v60 = vsel %vm1821_vm7, %v1768_v59, %v1769_v12  ;;  %v1874_v8 = vsel %vm1821_vm7, %v1767_v44, %v1768_v59  ;;  %v1775_v22 = vrot.slane %v22822_v33, 1  ;;  %v22829_v33 = vld [vmem:[#allocation56_spill] sm:$0xff] }
 0x1ff   :  { %v1871_v58 = vsel %vm1821_vm7, %v1770_v34, %v1771_v25  ;;  %v1872_v27 = vsel %vm1821_vm7, %v1769_v12, %v1770_v34  ;;  %v2083_v28 = vpack.c.bf16 %v1873_v60, %v1874_v8  ;;  %v22821_v34 = vld [vmem:[#allocation48_spill] sm:$0xff]  ;;  %v22824_v8 = vld [vmem:[#allocation53_spill] sm:$0xff] }
 0x200   :  { %v1772_v12 = vrot.slane %v22821_v34, 1 }
 0x202   :  { %14340 = vmatmul.mubr.msk.bf16.gmra.mxu1 %vm2131_vm3, %v2081_v52  ;;  %v1773_v52 = vrot.slane %v22819_v47, 1  ;;  %v1870_v60 = vsel %vm1821_vm7, %v1771_v25, %v1772_v12  ;;  %v22826_v47 = vld [vmem:[#allocation59_spill] sm:$0xff] }
 0x203   :  { %14343 = vmatprep.mubr.msk.bf16.mxu1 %vm2131_vm3, %v2082_v61  ;;  %14324 = vmatmul.mubr.msk.bf16.gmra.mxu0 %vm2131_vm3, %v1754_v19  ;;  %v2084_v61 = vpack.c.bf16 %v1871_v58, %v1872_v27  ;;  %v1756_v19 = vpack.c.bf16 %v1469_v11, %v1470_v15  ;;  %v22823_v27 = vld [vmem:[#allocation54_spill] sm:$0xff] }
 0x204   :  { %14327 = vmatprep.mubr.msk.bf16.mxu0 %vm2131_vm3, %v1755_v4  ;;  %v22820_v4 = vld [vmem:[#allocation50_spill] sm:$0xff]  ;;  %v1869_v44 = vsel %vm1821_vm7, %v1772_v12, %v1773_v52  ;;  %v1777_v11 = vrot.slane %v22823_v27, 1  ;;  %v22830_v27 = vld [vmem:[#allocation63_spill] sm:$0xff] }
 0x205   :  { %v1774_v50 = vrot.slane %v22820_v4, 1  ;;  %v2085_v58 = vpack.c.bf16 %v1869_v44, %v1870_v60  ;;  %v1779_v4 = vrot.slane %v22826_v47, 1  ;;  %v22833_v47 = vld [vmem:[#allocation60_spill] sm:$0xff] }
 0x207   :  { %v1867_v13 = vsel %vm1821_vm7, %v1774_v50, %v1775_v22  ;;  %v1868_v59 = vsel %vm1821_vm7, %v1773_v52, %v1774_v50 }
 0x208   :  { %v2086_v15 = vpack.c.bf16 %v1867_v13, %v1868_v59  ;;  %v22827_v13 = vld [vmem:[#allocation58_spill] sm:$0xff] }
 0x209   :  { %v1781_v59 = vrot.slane %v22827_v13, 1  ;;  %v1784_v13 = vrot.slane %v22833_v47, 1 }
 0x20a   :  { %14344 = vmatmul.mubr.msk.bf16.gmra.mxu1 %vm2131_vm3, %v2083_v28  ;;  %v1778_v28 = vrot.slane %v22824_v8, 1  ;;  %v1783_v8 = vrot.slane %v22830_v27, 1 }
 0x20b   :  { %14347 = vmatprep.mubr.msk.bf16.mxu1 %vm2131_vm3, %v2084_v61  ;;  %14328 = vmatmul.mubr.msk.bf16.gmra.mxu0 %vm2131_vm3, %v1756_v19  ;;  %v22825_v61 = vld [vmem:[#allocation52_spill] sm:$0xff] }
 0x20c   :  { %v1776_v19 = vrot.slane %v22825_v61, 1  ;;  %v1863_v25 = vsel %vm1821_vm7, %v1778_v28, %v1779_v4  ;;  %v1864_v52 = vsel %vm1821_vm7, %v1777_v11, %v1778_v28  ;;  %v1780_v61 = vrot.slane %v22829_v33, 1 }
 0x20d   :  { %v2088_v60 = vpack.c.bf16 %v1863_v25, %v1864_v52  ;;  %v22831_v25 = vld [vmem:[#allocation62_spill] sm:$0xff]  ;;  %v1787_v33 = vrot.slane %v16504_v63, 1 }
 0x20e   :  { %v1865_v50 = vsel %vm1821_vm7, %v1776_v19, %v1777_v11  ;;  %v1866_v12 = vsel %vm1821_vm7, %v1775_v22, %v1776_v19  ;;  %v1861_v11 = vsel %vm1821_vm7, %v1780_v61, %v1781_v59  ;;  %v1862_v19 = vsel %vm1821_vm7, %v1779_v4, %v1780_v61 }
 0x20f   :  { %v2087_v44 = vpack.c.bf16 %v1865_v50, %v1866_v12  ;;  %v2089_v50 = vpack.c.bf16 %v1861_v11, %v1862_v19  ;;  %v1785_v52 = vrot.slane %v22831_v25, 1  ;;  %v16929_v11 = vadd.s32 248, %v16333_v53 }
 0x211   :  { %22834 = vst [vmem:[#allocation98_spill] sm:$0xff] %v16929_v11  ;;  %vm1083_vm8 = vcmp.eq.s32.totalorder %v16929_v11, 255 }
 0x212   :  { %14348 = vmatmul.mubr.msk.bf16.gmra.mxu1 %vm2131_vm3, %v2085_v58  ;;  %v22828_v58 = vld [vmem:[#allocation57_spill] sm:$0xff] }
 0x213   :  { %14351 = vmatprep.mubr.msk.bf16.mxu1 %vm2131_vm3, %v2086_v15  ;;  %v1782_v15 = vrot.slane %v22828_v58, 1 }
 0x215   :  { %v1859_v22 = vsel %vm1821_vm7, %v1782_v15, %v1783_v8  ;;  %v1860_v28 = vsel %vm1821_vm7, %v1781_v59, %v1782_v15  ;;  %v1857_v59 = vsel %vm1821_vm7, %v1784_v13, %v1785_v52  ;;  %v1789_v15 = vrot.slane %v16502_v18, 1 }
 0x216   :  { %v2090_v12 = vpack.c.bf16 %v1859_v22, %v1860_v28  ;;  %v1858_v22 = vsel %vm1821_vm7, %v1783_v8, %v1784_v13  ;;  %v1788_v28 = vrot.slane %v16496_v32, 1 }
 0x217   :  { %v2091_v19 = vpack.c.bf16 %v1857_v59, %v1858_v22  ;;  %v1793_v22 = vrot.slane %v16534_v20, 1  ;;  %v1802_v20 = vrot.slane %v16599_v42, 1  ;;  %v1807_v42 = vrot.slane %v16666_v35, 1 }
 0x218   :  { %v1853_v18 = vsel %vm1821_vm7, %v1788_v28, %v1789_v15 }
 0x219   :  { %v2045_v8 = vsel %vm1083_vm8, 0.0, %v1853_v18  ;;  %v1792_v18 = vrot.slane %v16528_v54, 1  ;;  %v1817_v54 = vrot.slane %v16745_v17, 1  ;;  %v17115_v17 = vadd.s32 504, %v16333_v53 }
 0x21a   :  { %14352 = vmatmul.mubr.msk.bf16.gmra.mxu1 %vm2131_vm3, %v2087_v44  ;;  %v22832_v44 = vld [vmem:[#allocation61_spill] sm:$0xff] }
 0x21b   :  { %14355 = vmatprep.mubr.msk.bf16.mxu1 %vm2131_vm3, %v2088_v60  ;;  %v1786_v60 = vrot.slane %v22832_v44, 1  ;;  %22836 = vst [vmem:[#allocation99_spill] sm:$0xff] %v17115_v17  ;;  %vm1307_vm9 = vcmp.eq.s32.totalorder %v17115_v17, 511 }
 0x21d   :  { %v1855_v4 = vsel %vm1821_vm7, %v1786_v60, %v1787_v33  ;;  %v1856_v61 = vsel %vm1821_vm7, %v1785_v52, %v1786_v60  ;;  %v15267_v52 = vld [vmem:[#allocation7 + $0x18] sm:$0xff]   ;;  %v1791_v60 = vrot.slane %v16536_v36, 1 }
 0x21e   :  { %14399 = vmatprep.subr.bf16.mxu0 %v15267_v52 }
 0x21f   :  { %14400 = vmatpush3.bf16.msra.mxu0 %v15267_v52  ;;  %v1795_v52 = vrot.slane %v16568_v46, 1 }
 0x222   :  { %14356 = vmatmul.mubr.msk.bf16.gmra.mxu1 %vm2131_vm3, %v2089_v50  ;;  %v2092_v50 = vpack.c.bf16 %v1855_v4, %v1856_v61  ;;  %v1854_v4 = vsel %vm1821_vm7, %v1787_v33, %v1788_v28 }
 0x223   :  { %14359 = vmatprep.mubr.msk.bf16.mxu1 %vm2131_vm3, %v2090_v12  ;;  %v1790_v12 = vrot.slane %v16499_v51, 1  ;;  %v2093_v61 = vpack.c.bf16 %v2045_v8, %v1854_v4  ;;  %v1850_v8 = vsel %vm1821_vm7, %v1791_v60, %v1792_v18  ;;  %v1796_v51 = vrot.slane %v16560_v55, 1 }
 0x224   :  { %v1814_v55 = vrot.slane %v16711_v26, 1 }
 0x225   :  { %v1851_v13 = vsel %vm1821_vm7, %v1790_v12, %v1791_v60  ;;  %v1852_v59 = vsel %vm1821_vm7, %v1789_v15, %v1790_v12  ;;  %v1849_v15 = vsel %vm1821_vm7, %v1792_v18, %v1793_v22 }
 0x22a   :  { %14360 = vmatmul.mubr.msk.bf16.gmra.mxu1 %vm2131_vm3, %v2091_v19  ;;  %v2094_v19 = vpack.c.bf16 %v1851_v13, %v1852_v59  ;;  %v2095_v13 = vpack.c.bf16 %v1849_v15, %v1850_v8  ;;  %v1797_v59 = vrot.slane %v16566_v16, 1  ;;  %v22835_v16 = vld [vmem:[#allocation77_spill] sm:$0xff] }
 0x22b   :  { %14363 = vmatprep.mubr.msk.bf16.mxu1 %vm2131_vm3, %v2092_v50  ;;  %v1794_v50 = vrot.slane %v16531_v5, 1 }
 0x22c   :  { %v1845_v60 = vsel %vm1821_vm7, %v1796_v51, %v1797_v59 }
 0x22d   :  { %v1847_v33 = vsel %vm1821_vm7, %v1794_v50, %v1795_v52  ;;  %v1848_v28 = vsel %vm1821_vm7, %v1793_v22, %v1794_v50  ;;  %v1799_v50 = vrot.slane %v16603_v37, 1  ;;  %v1803_v37 = vrot.slane %v16640_v24, 1 }
 0x22e   :  { %v2096_v4 = vpack.c.bf16 %v1847_v33, %v1848_v28  ;;  %v1846_v28 = vsel %vm1821_vm7, %v1795_v52, %v1796_v51  ;;  %v1806_v24 = vrot.slane %v16637_v48, 1 }
 0x22f   :  { %v2097_v8 = vpack.c.bf16 %v1845_v60, %v1846_v28 }
 0x232   :  { %14364 = vmatmul.mubr.msk.bf16.gmra.mxu1 %vm2131_vm3, %v2093_v61 }
 0x233   :  { %14367 = vmatprep.mubr.msk.bf16.mxu1 %vm2131_vm3, %v2094_v19  ;;  %v1798_v19 = vrot.slane %v16563_v40, 1  ;;  %v1800_v40 = vrot.slane %v22835_v16, 1 }
 0x235   :  { %v1843_v15 = vsel %vm1821_vm7, %v1798_v19, %v1799_v50  ;;  %v1844_v33 = vsel %vm1821_vm7, %v1797_v59, %v1798_v19  ;;  %v1839_v19 = vsel %vm1821_vm7, %v1802_v20, %v1803_v37 }
 0x237   :  { %v16961_v12 = vpop.f32.mrf.mxu1 }
 0x239   :  { %v16966_v61 = vpop.f32.mrf.mxu1 }
 0x23a   :  { %14368 = vmatmul.mubr.msk.bf16.gmra.mxu1 %vm2131_vm3, %v2095_v13  ;;  %v1801_v13 = vrot.slane %v16601_v31, 1 }
 0x23b   :  { %14371 = vmatprep.mubr.msk.bf16.mxu1 %vm2131_vm3, %v2096_v4  ;;  %v16972_v22 = vpop.f32.mrf.mxu1  ;;  %v2098_v4 = vpack.c.bf16 %v1843_v15, %v1844_v33  ;;  %v1842_v15 = vsel %vm1821_vm7, %v1799_v50, %v1800_v40 }
 0x23c   :  { %v1841_v51 = vsel %vm1821_vm7, %v1800_v40, %v1801_v13  ;;  %v1840_v60 = vsel %vm1821_vm7, %v1801_v13, %v1802_v20 }
 0x23d   :  { %v16977_v18 = vpop.f32.mrf.mxu1  ;;  %v2099_v28 = vpack.c.bf16 %v1841_v51, %v1842_v15  ;;  %v2100_v31 = vpack.c.bf16 %v1839_v19, %v1840_v60  ;;  %v1835_v51 = vsel %vm1821_vm7, %v1806_v24, %v1807_v42  ;;  %v15268_v60 = vld [vmem:[#allocation7 + $0x10] sm:$0xff]  }
 0x23e   :  { %14401 = vmatprep.subr.bf16.mxu0 %v15268_v60 }
 0x23f   :  { %v16987_v5 = vpop.f32.mrf.mxu1  ;;  %14402 = vmatpush3.bf16.msra.mxu0 %v15268_v60 }
 0x241   :  { %v16993_v59 = vpop.f32.mrf.mxu1 }
 0x242   :  { %14372 = vmatmul.mubr.msk.bf16.gmra.mxu1 %vm2131_vm3, %v2097_v8  ;;  %v1805_v8 = vrot.slane %v16635_v10, 1  ;;  %v1809_v10 = vrot.slane %v16673_v14, 1 }
 0x243   :  { %14375 = vmatprep.mubr.msk.bf16.mxu1 %vm2131_vm3, %v2098_v4  ;;  %v16997_v52 = vpop.f32.mrf.mxu1  ;;  %v1804_v4 = vrot.slane %v16632_v49, 1 }
 0x244   :  { %v1836_v19 = vsel %vm1821_vm7, %v1805_v8, %v1806_v24 }
 0x245   :  { %v17005_v33 = vpop.f32.mrf.mxu1  ;;  %v1837_v40 = vsel %vm1821_vm7, %v1804_v4, %v1805_v8  ;;  %v1838_v50 = vsel %vm1821_vm7, %v1803_v37, %v1804_v4  ;;  %v2102_v48 = vpack.c.bf16 %v1835_v51, %v1836_v19  ;;  %v1811_v37 = vrot.slane %v16702_v43, 1 }
 0x246   :  { %v1810_v4 = vrot.slane %v16675_v23, 1  ;;  %v1812_v23 = vrot.slane %v16704_v56, 1  ;;  %v1813_v43 = vrot.slane %v16709_v0, 1 }
 0x247   :  { %v17011_v16 = vpop.f32.mrf.mxu1 }
 0x249   :  { %v17015_v20 = vpop.f32.mrf.mxu1 }
 0x24a   :  { %14376 = vmatmul.mubr.msk.bf16.gmra.mxu1 %vm2131_vm3, %v2099_v28  ;;  %v1808_v28 = vrot.slane %v16668_v45, 1 }
 0x24b   :  { %14379 = vmatprep.mubr.msk.bf16.mxu1 %vm2131_vm3, %v2100_v31  ;;  %v17021_v13 = vpop.f32.mrf.mxu1  ;;  %v2101_v31 = vpack.c.bf16 %v1837_v40, %v1838_v50 }
 0x24c   :  { %v1833_v50 = vsel %vm1821_vm7, %v1808_v28, %v1809_v10  ;;  %v1834_v51 = vsel %vm1821_vm7, %v1807_v42, %v1808_v28  ;;  %v1815_v28 = vrot.slane %v16739_v30, 1  ;;  %v1816_v30 = vrot.slane %v16741_v9, 1 }
 0x24d   :  { %v17027_v15 = vpop.f32.mrf.mxu1  ;;  %v2103_v14 = vpack.c.bf16 %v1833_v50, %v1834_v51  ;;  %v1829_v51 = vsel %vm1821_vm7, %v1812_v23, %v1813_v43 }
 0x24e   :  { %v1827_v56 = vsel %vm1821_vm7, %v1814_v55, %v1815_v28  ;;  %v1825_v9 = vsel %vm1821_vm7, %v1816_v30, %v1817_v54 }
 0x24f   :  { %v17033_v35 = vpop.f32.mrf.mxu1 }
 0x251   :  { %v17039_v8 = vpop.f32.mrf.mxu1 }
 0x252   :  { %14380 = vmatmul.mubr.msk.bf16.gmra.mxu1 %vm2131_vm3, %v2101_v31  ;;  %v17037_v24 = vpop.f32.mrf.mxu0  ;;  %v1831_v31 = vsel %vm1821_vm7, %v1810_v4, %v1811_v37 }
 0x253   :  { %14383 = vmatprep.mubr.msk.bf16.mxu1 %vm2131_vm3, %v2102_v48  ;;  %v17047_v19 = vpop.f32.mrf.mxu1  ;;  %v1832_v48 = vsel %vm1821_vm7, %v1809_v10, %v1810_v4 }
 0x254   :  { %v17041_v40 = vpop.f32.mrf.mxu0  ;;  %v2104_v42 = vpack.c.bf16 %v1831_v31, %v1832_v48  ;;  %v1830_v31 = vsel %vm1821_vm7, %v1811_v37, %v1812_v23  ;;  %v1818_v37 = vrot.slane %v16747_v6, 1 }
 0x255   :  { %v17055_v45 = vpop.f32.mrf.mxu1  ;;  %v2105_v26 = vpack.c.bf16 %v1829_v51, %v1830_v31 }
 0x256   :  { %v17053_v60 = vpop.f32.mrf.mxu0 }
 0x257   :  { %v17063_v46 = vpop.f32.mrf.mxu1 }
 0x258   :  { %v17059_v49 = vpop.f32.mrf.mxu0 }
 0x259   :  { %v17069_v4 = vpop.f32.mrf.mxu1 }
 0x25a   :  { %14384 = vmatmul.mubr.msk.bf16.gmra.mxu1 %vm2131_vm3, %v2103_v14  ;;  %v17067_v10 = vpop.f32.mrf.mxu0  ;;  %v1828_v14 = vsel %vm1821_vm7, %v1813_v43, %v1814_v55  ;;  %v1819_v43 = vrot.slane %v16775_v3, 1 }
 0x25b   :  { %14387 = vmatprep.mubr.msk.bf16.mxu1 %vm2131_vm3, %v2104_v42  ;;  %v17077_v48 = vpop.f32.mrf.mxu1  ;;  %v2106_v23 = vpack.c.bf16 %v1827_v56, %v1828_v14  ;;  %v1826_v56 = vsel %vm1821_vm7, %v1815_v28, %v1816_v30  ;;  %v1820_v14 = vrot.slane %v16338_v57, 1  ;;  %v22837_v28 = vrot.slane %v16276_v1, 1 }
 0x25c   :  { %v17071_v50 = vpop.f32.mrf.mxu0  ;;  %v2107_v47 = vpack.c.bf16 %v1825_v9, %v1826_v56 }
 0x25d   :  { %v17085_v0 = vpop.f32.mrf.mxu1  ;;  %v1885_v57 = vsel %vm1821_vm7, %v1820_v14, %v22837_v28  ;;  %v1822_v56 = vsel %vm1821_vm7, %v1819_v43, %v1820_v14 }
 0x25e   :  { %v17083_v42 = vpop.f32.mrf.mxu0 }
 0x25f   :  { %v17092_v36 = vpop.f32.mrf.mxu1 }
 0x260   :  { %v17089_v58 = vpop.f32.mrf.mxu0 }
 0x261   :  { %v17099_v51 = vpop.f32.mrf.mxu1 }
 0x262   :  { %14388 = vmatmul.mubr.msk.bf16.gmra.mxu1 %vm2131_vm3, %v2105_v26  ;;  %v17096_v55 = vpop.f32.mrf.mxu0  ;;  %v1823_v26 = vsel %vm1821_vm7, %v1818_v37, %v1819_v43 }
 0x263   :  { %14391 = vmatprep.mubr.msk.bf16.mxu1 %vm2131_vm3, %v2106_v23  ;;  %v17108_v6 = vpop.f32.mrf.mxu1  ;;  %v1824_v23 = vsel %vm1821_vm7, %v1817_v54, %v1818_v37 }
 0x264   :  { %v17101_v31 = vpop.f32.mrf.mxu0  ;;  %v2108_v30 = vpack.c.bf16 %v1823_v26, %v1824_v23  ;;  %v2077_v26 = vsel %vm1307_vm9, 0.0, %v1885_v57 }
 0x265   :  { %v17119_v27 = vpop.f32.mrf.mxu1  ;;  %v2109_v1 = vpack.c.bf16 %v2077_v26, %v1822_v56 }
 0x266   :  { %v17117_v3 = vpop.f32.mrf.mxu0 }
 0x268   :  { %v17121_v44 = vpop.f32.mrf.mxu0 }
 0x26a   :  { %v17127_v25 = vpop.f32.mrf.mxu1  ;;  %14392 = vmatmul.mubr.msk.bf16.gmra.mxu1 %vm2131_vm3, %v2107_v47  ;;  %v17132_v54 = vpop.f32.mrf.mxu0 }
 0x26b   :  { %14395 = vmatprep.mubr.msk.bf16.mxu1 %vm2131_vm3, %v2108_v30 }
 0x26c   :  { %v17134_v37 = vpop.f32.mrf.mxu1  ;;  %v17136_v9 = vpop.f32.mrf.mxu0 }
 0x26e   :  { %v17142_v23 = vpop.f32.mrf.mxu1  ;;  %v17144_v28 = vpop.f32.mrf.mxu0 }
 0x270   :  { %v17146_v47 = vpop.f32.mrf.mxu1  ;;  %v17148_v30 = vpop.f32.mrf.mxu0 }
 0x271   :  { %22838 = vst [vmem:[#allocation100_spill] sm:$0xff] %v17146_v47 }
 0x272   :  { %v17150_v32 = vpop.f32.mrf.mxu1  ;;  %14396 = vmatmul.mubr.msk.bf16.gmra.mxu1 %vm2131_vm3, %v2109_v1 }
 0x273   :  { %22839 = vst [vmem:[#allocation101_spill] sm:$0xff] %v17150_v32  ;;  %v17153_v63 = vpop.f32.mrf.mxu0 }
 0x274   :  { %v17155_v34 = vpop.f32.mrf.mxu1 }
 0x275   :  { %22840 = vst [vmem:[#allocation102_spill] sm:$0xff] %v17155_v34  ;;  %v17157_v43 = vpop.f32.mrf.mxu0 }
 0x276   :  { %v17159_v57 = vpop.f32.mrf.mxu1 }
 0x277   :  { %22841 = vst [vmem:[#allocation103_spill] sm:$0xff] %v17159_v57  ;;  %v17161_v14 = vpop.f32.mrf.mxu0 }
 0x278   :  { %v17163_v39 = vpop.f32.mrf.mxu1 }
 0x279   :  { %22842 = vst [vmem:[#allocation104_spill] sm:$0xff] %v17163_v39  ;;  %v17165_v7 = vpop.f32.mrf.mxu0 }
 0x27a   :  { %v17167_v56 = vpop.f32.mrf.mxu1 }
 0x27b   :  { %22843 = vst [vmem:[#allocation105_spill] sm:$0xff] %v17167_v56  ;;  %v17169_v26 = vpop.f32.mrf.mxu0 }
 0x27c   :  { %v17171_v29 = vpop.f32.mrf.mxu1 }
 0x27d   :  { %22844 = vst [vmem:[#allocation106_spill] sm:$0xff] %v17171_v29  ;;  %v17173_v1 = vpop.f32.mrf.mxu0 }
 0x27e   :  { %v17175_v38 = vpop.f32.mrf.mxu1 }
 0x27f   :  { %22845 = vst [vmem:[#allocation107_spill] sm:$0xff] %v17175_v38  ;;  %v17177_v41 = vpop.f32.mrf.mxu0 }
 0x280   :  { %v17179_v21 = vpop.f32.mrf.mxu1 }
 0x281   :  { %22846 = vst [vmem:[#allocation108_spill] sm:$0xff] %v17179_v21  ;;  %v17181_v62 = vpop.f32.mrf.mxu0 }
 0x282   :  { %v17183_v2 = vpop.f32.mrf.mxu1 }
 0x283   :  { %22847 = vst [vmem:[#allocation109_spill] sm:$0xff] %v17183_v2  ;;  %v17185_v17 = vpop.f32.mrf.mxu0 }
 0x284   :  { %v17187_v11 = vpop.f32.mrf.mxu1 }
 0x285   :  { %22848 = vst [vmem:[#allocation110_spill] sm:$0xff] %v17187_v11  ;;  %v17189_v53 = vpop.f32.mrf.mxu0 }
 0x286   :  { %v17191_v56 = vpop.f32.mrf.mxu1 }
 0x287   :  { %22849 = vst [vmem:[#allocation111_spill] sm:$0xff] %v17191_v56  ;;  %v17193_v29 = vpop.f32.mrf.mxu0 }
 0x288   :  { %22850 = vst [vmem:[#allocation112_spill] sm:$0xff] %v17193_v29  ;;  %v17195_v39 = vpop.f32.mrf.mxu1 }
 0x289   :  { %22851 = vst [vmem:[#allocation113_spill] sm:$0xff] %v17195_v39  ;;  %v17197_v38 = vpop.f32.mrf.mxu0 }
 0x28a   :  { %22852 = vst [vmem:[#allocation114_spill] sm:$0xff] %v17197_v38  ;;  %v17199_v57 = vpop.f32.mrf.mxu1 }
 0x28b   :  { %22853 = vst [vmem:[#allocation115_spill] sm:$0xff] %v17199_v57  ;;  %v17201_v21 = vpop.f32.mrf.mxu0 }
 0x28c   :  { %22854 = vst [vmem:[#allocation116_spill] sm:$0xff] %v17201_v21  ;;  %v17203_v34 = vpop.f32.mrf.mxu1 }
 0x28d   :  { %22855 = vst [vmem:[#allocation117_spill] sm:$0xff] %v17203_v34  ;;  %v17205_v2 = vpop.f32.mrf.mxu0 }
 0x28e   :  { %22856 = vst [vmem:[#allocation118_spill] sm:$0xff] %v17205_v2  ;;  %v17207_v32 = vpop.f32.mrf.mxu1 }
 0x28f   :  { %22857 = vst [vmem:[#allocation119_spill] sm:$0xff] %v17207_v32  ;;  %v17209_v11 = vpop.f32.mrf.mxu0 }
 0x290   :  { %22858 = vst [vmem:[#allocation120_spill] sm:$0xff] %v17209_v11  ;;  %v17211_v47 = vpop.f32.mrf.mxu1 }
 0x291   :  { %22859 = vst [vmem:[#allocation121_spill] sm:$0xff] %v17211_v47  ;;  %v17213_v56 = vpop.f32.mrf.mxu0 }
 0x292   :  { %22860 = vst [vmem:[#allocation122_spill] sm:$0xff] %v17213_v56  ;;  %v17215_v29 = vpop.f32.mrf.mxu1 }
 0x293   :  { %22861 = vst [vmem:[#allocation123_spill] sm:$0xff] %v17215_v29  ;;  %v17217_v39 = vpop.f32.mrf.mxu0 }
 0x294   :  { %22862 = vst [vmem:[#allocation124_spill] sm:$0xff] %v17217_v39  ;;  %v17219_v38 = vpop.f32.mrf.mxu1 }
 0x295   :  { %22863 = vst [vmem:[#allocation125_spill] sm:$0xff] %v17219_v38  ;;  %v17221_v57 = vpop.f32.mrf.mxu0 }
 0x296   :  { %22864 = vst [vmem:[#allocation126_spill] sm:$0xff] %v17221_v57  ;;  %v17223_v21 = vpop.f32.mrf.mxu1 }
 0x297   :  { %22865 = vst [vmem:[#allocation127_spill] sm:$0xff] %v17223_v21  ;;  %v17225_v34 = vpop.f32.mrf.mxu0 }
 0x298   :  { %22866 = vst [vmem:[#allocation128_spill] sm:$0xff] %v17225_v34  ;;  %v17227_v2 = vpop.f32.mrf.mxu1 }
 0x299   :  { %22867 = vst [vmem:[#allocation129_spill] sm:$0xff] %v17227_v2  ;;  %v17229_v32 = vpop.f32.mrf.mxu0 }
 0x29a   :  { %22868 = vst [vmem:[#allocation130_spill] sm:$0xff] %v17229_v32  ;;  %v17231_v11 = vpop.f32.mrf.mxu1 }
 0x29b   :  { %22869 = vst [vmem:[#allocation131_spill] sm:$0xff] %v17231_v11  ;;  %v17233_v47 = vpop.f32.mrf.mxu0 }
 0x29c   :  { %22870 = vst [vmem:[#allocation132_spill] sm:$0xff] %v17233_v47  ;;  %v17235_v56 = vpop.f32.mrf.mxu1 }
 0x29d   :  { %22871 = vst [vmem:[#allocation133_spill] sm:$0xff] %v17235_v56  ;;  %v17237_v29 = vpop.f32.mrf.mxu0 }
 0x29e   :  { %22872 = vst [vmem:[#allocation134_spill] sm:$0xff] %v17237_v29  ;;  %v17239_v39 = vpop.f32.mrf.mxu1 }
 0x29f   :  { %22873 = vst [vmem:[#allocation135_spill] sm:$0xff] %v17239_v39  ;;  %v17241_v38 = vpop.f32.mrf.mxu0 }
 0x2a0   :  { %22874 = vst [vmem:[#allocation136_spill] sm:$0xff] %v17241_v38  ;;  %v17243_v57 = vpop.f32.mrf.mxu1 }
 0x2a1   :  { %22875 = vst [vmem:[#allocation137_spill] sm:$0xff] %v17243_v57  ;;  %v17245_v21 = vpop.f32.mrf.mxu0 }
 0x2a2   :  { %22876 = vst [vmem:[#allocation138_spill] sm:$0xff] %v17245_v21  ;;  %v17247_v34 = vpop.f32.mrf.mxu1 }
 0x2a3   :  { %22877 = vst [vmem:[#allocation139_spill] sm:$0xff] %v17247_v34  ;;  %v17249_v2 = vpop.f32.mrf.mxu0 }
 0x2a4   :  { %22878 = vst [vmem:[#allocation140_spill] sm:$0xff] %v17249_v2  ;;  %v17251_v32 = vpop.f32.mrf.mxu1 }
 0x2a5   :  { %22879 = vst [vmem:[#allocation141_spill] sm:$0xff] %v17251_v32  ;;  %v17253_v11 = vpop.f32.mrf.mxu0 }
 0x2a6   :  { %22880 = vst [vmem:[#allocation142_spill] sm:$0xff] %v17253_v11  ;;  %v17255_v47 = vpop.f32.mrf.mxu1 }
 0x2a7   :  { %22881 = vst [vmem:[#allocation143_spill] sm:$0xff] %v17255_v47  ;;  %v17257_v56 = vpop.f32.mrf.mxu0  ;;  %v15269_v47 = vld [vmem:[#allocation7 + $0x8] sm:$0xff]  }
 0x2a8   :  { %22882 = vst [vmem:[#allocation144_spill] sm:$0xff] %v17257_v56  ;;  %v17259_v29 = vpop.f32.mrf.mxu1  ;;  %14467 = vmatprep.subr.bf16.mxu1 %v15269_v47 }
 0x2a9   :  { %22883 = vst [vmem:[#allocation145_spill] sm:$0xff] %v17259_v29  ;;  %v17261_v39 = vpop.f32.mrf.mxu0  ;;  %v17279_v29 = vld [vmem:[#allocation7 + $0x28] sm:$0xff]   ;;  %14468 = vmatpush3.bf16.msra.mxu1 %v15269_v47 }
 0x2aa   :  { %22884 = vst [vmem:[#allocation146_spill] sm:$0xff] %v17261_v39  ;;  %v17263_v38 = vpop.f32.mrf.mxu1  ;;  %14535 = vmatprep.subr.bf16.mxu0 %v17279_v29 }
 0x2ab   :  { %22885 = vst [vmem:[#allocation147_spill] sm:$0xff] %v17263_v38  ;;  %v17265_v57 = vpop.f32.mrf.mxu0  ;;  %v2668_v38 = vadd.f32 %v17037_v24, %v16961_v12  ;;  %v17304_v12 = vadd.f32 %v17071_v50, %v16993_v59  ;;  %v17314_v24 = vadd.f32 %v17089_v58, %v17005_v33  ;;  %v17334_v58 = vadd.f32 %v17132_v54, %v17033_v35  ;;  %v22894_v50 = vld [vmem:[#allocation101_spill] sm:$0xff]  ;;  %v22900_v54 = vld [vmem:[#allocation104_spill] sm:$0xff] }
 0x2ac   :  { %v17267_v21 = vpop.f32.mrf.mxu1  ;;  %v17342_v33 = vadd.f32 %v17144_v28, %v17047_v19  ;;  %v17356_v35 = vadd.f32 %v17157_v43, %v17069_v4  ;;  %v17382_v19 = vadd.f32 %v17181_v62, %v17119_v27  ;;  %v22895_v62 = vld [vmem:[#allocation116_spill] sm:$0xff]  ;;  %v22905_v43 = vld [vmem:[#allocation126_spill] sm:$0xff] }
 0x2ad   :  { %22886 = vst [vmem:[#allocation148_spill] sm:$0xff] %v17267_v21  ;;  %v17269_v34 = vpop.f32.mrf.mxu0  ;;  %v2660_v21 = vadd.f32 %v17041_v40, %v16966_v61  ;;  %v17308_v61 = vadd.f32 %v17083_v42, %v16997_v52  ;;  %v17330_v52 = vadd.f32 %v17121_v44, %v17027_v15  ;;  %v17352_v44 = vadd.f32 %v17153_v63, %v17063_v46  ;;  %v22898_v42 = vld [vmem:[#allocation103_spill] sm:$0xff]  ;;  %v22903_v28 = vld [vmem:[#allocation124_spill] sm:$0xff] }
 0x2ae   :  { %v17271_v2 = vpop.f32.mrf.mxu1  ;;  %v17372_v63 = vadd.f32 %v17173_v1, %v17099_v51  ;;  %v17376_v46 = vadd.f32 %v17177_v41, %v17108_v6  ;;  %v22892_v6 = vld [vmem:[#allocation100_spill] sm:$0xff]  ;;  %v17402_v27 = vadd.f32 %v22895_v62, %v22894_v50  ;;  %v22911_v62 = vld [vmem:[#allocation130_spill] sm:$0xff] }
 0x2af   :  { %22887 = vst [vmem:[#allocation149_spill] sm:$0xff] %v17271_v2  ;;  %v17273_v32 = vpop.f32.mrf.mxu0  ;;  %v17289_v2 = vadd.f32 %v17053_v60, %v16972_v22  ;;  %v22910_v50 = vld [vmem:[#allocation108_spill] sm:$0xff] }
 0x2b0   :  { %22888 = vst [vmem:[#allocation150_spill] sm:$0xff] %v17273_v32  ;;  %v17275_v11 = vpop.f32.mrf.mxu1 }
 0x2b1   :  { %22889 = vst [vmem:[#allocation151_spill] sm:$0xff] %v17275_v11  ;;  %v17277_v56 = vpop.f32.mrf.mxu0  ;;  %v17296_v11 = vadd.f32 %v17059_v49, %v16977_v18  ;;  %v17318_v49 = vadd.f32 %v17096_v55, %v17011_v16  ;;  %v17326_v18 = vadd.f32 %v17117_v3, %v17021_v13  ;;  %v17338_v16 = vadd.f32 %v17136_v9, %v17039_v8 }
 0x2b2   :  { %v17281_v39 = vpop.f32.mrf.mxu1  ;;  %v17348_v3 = vadd.f32 %v17148_v30, %v17055_v45  ;;  %v17360_v13 = vadd.f32 %v17161_v14, %v17077_v48  ;;  %v17364_v8 = vadd.f32 %v17165_v7, %v17085_v0  ;;  %v17368_v45 = vadd.f32 %v17169_v26, %v17092_v36  ;;  %v22891_v0 = vld [vmem:[#allocation112_spill] sm:$0xff]  ;;  %v22896_v48 = vld [vmem:[#allocation102_spill] sm:$0xff] }
 0x2b3   :  { %22890 = vst [vmem:[#allocation152_spill] sm:$0xff] %v17281_v39  ;;  %v17291_v32 = vpop.f32.mrf.mxu0  ;;  %v17300_v39 = vadd.f32 %v17067_v10, %v16987_v5  ;;  %v17322_v5 = vadd.f32 %v17101_v31, %v17015_v20  ;;  %v17386_v7 = vadd.f32 %v17185_v17, %v17127_v25  ;;  %v17390_v36 = vadd.f32 %v17189_v53, %v17134_v37  ;;  %v22893_v10 = vld [vmem:[#allocation114_spill] sm:$0xff]  ;;  %v22899_v53 = vld [vmem:[#allocation120_spill] sm:$0xff]  ;;  %v17412_v31 = vld [vmem:[#allocation2 + $0x1] ss:$0 sm:$0xff] }
 0x2b4   :  { %v17310_v22 = vpop.f32.mrf.mxu1  ;;  %v17394_v60 = vadd.f32 %v22891_v0, %v17142_v23  ;;  %v17398_v4 = vadd.f32 %v22893_v10, %v22892_v6  ;;  %v22897_v17 = vld [vmem:[#allocation118_spill] sm:$0xff]  ;;  %v17410_v55 = vadd.f32 %v22899_v53, %v22898_v42  ;;  %v22902_v23 = vld [vmem:[#allocation105_spill] sm:$0xff]  ;;  %v22907_v0 = vld [vmem:[#allocation107_spill] sm:$0xff] }
 0x2b5   :  { %v2851_v59 = vpop.f32.mrf.mxu0  ;;  %v17406_v25 = vadd.f32 %v22897_v17, %v22896_v48  ;;  %v22901_v37 = vld [vmem:[#allocation122_spill] sm:$0xff]  ;;  %v17420_v47 = vadd.f32 %v22903_v28, %v22902_v23  ;;  %v22908_v6 = vld [vmem:[#allocation128_spill] sm:$0xff]  ;;  %v17432_v48 = vadd.f32 %v22911_v62, %v22910_v50  ;;  %v22913_v17 = vld [vmem:[#allocation109_spill] sm:$0xff] }
 0x2b6   :  { %v17344_v20 = vpop.f32.mrf.mxu1  ;;  %v17416_v9 = vadd.f32 %v22901_v37, %v22900_v54  ;;  %v22904_v30 = vld [vmem:[#allocation106_spill] sm:$0xff]  ;;  %v17428_v10 = vadd.f32 %v22908_v6, %v22907_v0  ;;  %v22914_v42 = vld [vmem:[#allocation132_spill] sm:$0xff] }
 0x2b7   :  { %v14318_v15 = vpop.f32.mrf.mxu0  ;;  %v17424_v14 = vadd.f32 %v22905_v43, %v22904_v30  ;;  %22912 = vst [vmem:[#allocation114_spill] sm:$0xff] %v17432_v48  ;;  %v17436_v53 = vadd.f32 %v22914_v42, %v22913_v17  ;;  %v22916_v54 = vld [vmem:[#allocation110_spill] sm:$0xff]  ;;  %v22919_v30 = vld [vmem:[#allocation111_spill] sm:$0xff]  ;;  %v22922_v43 = vld [vmem:[#allocation113_spill] sm:$0xff] }
 0x2b8   :  { %v17378_v40 = vpop.f32.mrf.mxu1  ;;  %22909 = vst [vmem:[#allocation100_spill] sm:$0xff] %v17428_v10  ;;  %v22917_v37 = vld [vmem:[#allocation134_spill] sm:$0xff]  ;;  %v22924_v10 = vld [vmem:[#allocation115_spill] sm:$0xff]  ;;  %v22925_v17 = vld [vmem:[#allocation140_spill] sm:$0xff] }
 0x2b9   :  { %v2854_v41 = vpop.f32.mrf.mxu0  ;;  %22906 = vst [vmem:[#allocation112_spill] sm:$0xff] %v17424_v14  ;;  %22915 = vst [vmem:[#allocation101_spill] sm:$0xff] %v17436_v53  ;;  %v17440_v23 = vadd.f32 %v22917_v37, %v22916_v54  ;;  %v22923_v0 = vld [vmem:[#allocation138_spill] sm:$0xff]  ;;  %v17453_v42 = vadd.f32 %v22925_v17, %v22924_v10  ;;  %v22926_v53 = vld [vmem:[#allocation117_spill] sm:$0xff] }
 0x2ba   :  { %v14337_v51 = vpop.f32.mrf.mxu1  ;;  %v17448_v6 = vadd.f32 %v22923_v0, %v22922_v43  ;;  %v22927_v54 = vld [vmem:[#allocation142_spill] sm:$0xff]  ;;  %v22929_v14 = vld [vmem:[#allocation144_spill] sm:$0xff] }
 0x2bb   :  { %v3318_v26 = vadd.f32 %v14337_v51, %v2668_v38  ;;  %v14321_v1 = vpop.f32.mrf.mxu0  ;;  %22918 = vst [vmem:[#allocation116_spill] sm:$0xff] %v17440_v23  ;;  %v22920_v38 = vld [vmem:[#allocation136_spill] sm:$0xff]  ;;  %v17457_v37 = vadd.f32 %v22927_v54, %v22926_v53  ;;  %v22928_v23 = vld [vmem:[#allocation119_spill] sm:$0xff]  ;;  %v22936_v54 = vld [vmem:[#allocation125_spill] sm:$0xff] }
 0x2bc   :  { %v3061_v28 = vpop.f32.mrf.mxu1  ;;  %v17444_v51 = vadd.f32 %v22920_v38, %v22919_v30  ;;  %v17461_v30 = vadd.f32 %v22929_v14, %v22928_v23  ;;  %v22931_v38 = vld [vmem:[#allocation121_spill] sm:$0xff]  ;;  %v17477_v14 = vadd.f32 %v17269_v34, %v22936_v54  ;;  %v22937_v23 = vld [vmem:[#allocation127_spill] sm:$0xff] }
 0x2bd   :  { %v3383_v50 = vadd.f32 %v17412_v31, %v3318_v26  ;;  %v3316_v62 = vadd.f32 %v3061_v28, %v2660_v21  ;;  %v2867_v48 = vpop.f32.mrf.mxu0  ;;  %v22934_v26 = vld [vmem:[#allocation123_spill] sm:$0xff] }
 0x2be   :  { %22921 = vst [vmem:[#allocation102_spill] sm:$0xff] %v17444_v51  ;;  %22930 = vst [vmem:[#allocation118_spill] sm:$0xff] %v17461_v30  ;;  %v22932_v51 = vld [vmem:[#allocation146_spill] sm:$0xff]  ;;  %v14338_v0 = vpop.f32.mrf.mxu1  ;;  %v17469_v21 = vadd.f32 %v17265_v57, %v22934_v26  ;;  %v22942_v57 = vld [vmem:[#allocation131_spill] sm:$0xff] }
 0x2bf   :  { %v17465_v43 = vadd.f32 %v22932_v51, %v22931_v38  ;;  %v17471_v28 = vmax.f32 %v3383_v50, 0.0  ;;  %v3381_v10 = vadd.f32 %v17412_v31, %v3316_v62  ;;  %v3319_v53 = vadd.f32 %v14338_v0, %v17289_v2  ;;  %v14322_v17 = vpop.f32.mrf.mxu0  ;;  %v22938_v30 = vld [vmem:[#allocation150_spill] sm:$0xff]  ;;  %v22940_v38 = vld [vmem:[#allocation129_spill] sm:$0xff] }
 0x2c0   :  { %22935 = vst [vmem:[#allocation120_spill] sm:$0xff] %v17469_v21  ;;  %v17481_v51 = vadd.f32 %v22938_v30, %v22937_v23  ;;  %v17489_v50 = vadd.f32 %v17291_v32, %v22942_v57  ;;  %v3064_v62 = vpop.f32.mrf.mxu1  ;;  %v15271_v26 = vld [vmem:[#allocation7] sm:$0xff]   ;;  %v22945_v21 = vld [vmem:[#allocation135_spill] sm:$0xff] }
 0x2c1   :  { %22933 = vst [vmem:[#allocation103_spill] sm:$0xff] %v17465_v43  ;;  %v17485_v43 = vadd.f32 %v17277_v56, %v22940_v38  ;;  %v22943_v2 = vld [vmem:[#allocation133_spill] sm:$0xff]  ;;  %v17495_v34 = vadd.f32 %v14318_v15, %v22945_v21  ;;  %v17497_v54 = vmax.f32 %v3381_v10, 0.0  ;;  %v3384_v30 = vadd.f32 %v17412_v31, %v3319_v53  ;;  %v2870_v23 = vpop.f32.mrf.mxu0  ;;  %v22950_v38 = vld [vmem:[#allocation139_spill] sm:$0xff]  ;;  %14469 = vmatprep.subr.bf16.mxu1 %v15271_v26 }
 0x2c2   :  { %22939 = vst [vmem:[#allocation104_spill] sm:$0xff] %v17481_v51  ;;  %v17492_v0 = vadd.f32 %v2851_v59, %v22943_v2  ;;  %v22948_v51 = vld [vmem:[#allocation137_spill] sm:$0xff]  ;;  %v3317_v59 = vadd.f32 %v3064_v62, %v17296_v11  ;;  %v14341_v2 = vpop.f32.mrf.mxu1  ;;  %v3543_v15 = vrot.slane %v17471_v28, 7  ;;  %v22954_v10 = vld [vmem:[#allocation143_spill] sm:$0xff]  ;;  %14470 = vmatpush3.bf16.msra.mxu1 %v15271_v26 }
 0x2c3   :  { %22941 = vst [vmem:[#allocation122_spill] sm:$0xff] %v17485_v43  ;;  %22946 = vst [vmem:[#allocation124_spill] sm:$0xff] %v17495_v34  ;;  %v17501_v56 = vadd.f32 %v2854_v41, %v22948_v51  ;;  %v17504_v43 = vadd.f32 %v14321_v1, %v22950_v38  ;;  %v22952_v32 = vld [vmem:[#allocation141_spill] sm:$0xff]  ;;  %v17511_v21 = vmax.f32 %v3384_v30, 0.0  ;;  %v17514_v53 = vadd.f32 %v14322_v17, %v22954_v10  ;;  %v14325_v51 = vpop.f32.mrf.mxu0 }
 0x2c4   :  { %22944 = vst [vmem:[#allocation105_spill] sm:$0xff] %v17492_v0  ;;  %22947 = vst [vmem:[#allocation106_spill] sm:$0xff] %v17497_v54  ;;  %v17507_v57 = vadd.f32 %v2867_v48, %v22952_v32  ;;  %v3322_v41 = vadd.f32 %v14341_v2, %v17300_v39  ;;  %v3382_v38 = vadd.f32 %v17412_v31, %v3317_v59  ;;  %v22956_v11 = vld [vmem:[#allocation145_spill] sm:$0xff]  ;;  %v3077_v32 = vpop.f32.mrf.mxu1  ;;  %v22958_v48 = vld [vmem:[#allocation147_spill] sm:$0xff] }
 0x2c5   :  { %22949 = vst [vmem:[#allocation126_spill] sm:$0xff] %v17501_v56  ;;  %22951 = vst [vmem:[#allocation107_spill] sm:$0xff] %v17504_v43  ;;  %v17521_v62 = vadd.f32 %v2870_v23, %v22956_v11  ;;  %v3510_v30 = vpack.c.bf16 %v17511_v21, %v17471_v28  ;;  %v22622_v17 = vrot.slane %v17511_v21, 7  ;;  %v3768_v10 = vrot.slane %v17511_v21, 1  ;;  %v2883_v26 = vpop.f32.mrf.mxu0  ;;  %v22966_v34 = vld [vmem:[#allocation149_spill] sm:$0xff] }
 0x2c6   :  { %22953 = vst [vmem:[#allocation128_spill] sm:$0xff] %v17507_v57  ;;  %22955 = vst [vmem:[#allocation108_spill] sm:$0xff] %v17514_v53  ;;  %v3387_v39 = vadd.f32 %v17412_v31, %v3322_v41  ;;  %v17529_v1 = vmax.f32 %v3382_v38, 0.0  ;;  %v17532_v59 = vadd.f32 %v14325_v51, %v22958_v48  ;;  %v3320_v23 = vadd.f32 %v3077_v32, %v17304_v12  ;;  %v14342_v11 = vpop.f32.mrf.mxu1 }
 0x2c7   :  { %22957 = vst [vmem:[#allocation130_spill] sm:$0xff] %v17521_v62  ;;  %v17539_v53 = vsel %vm1468_vm5, %v3543_v15, %v22622_v17  ;;  %v22962_v57 = vrot.slane %v17471_v28, 1  ;;  %v3323_v51 = vadd.f32 %v14342_v11, %v17308_v61  ;;  %v14326_v48 = vpop.f32.mrf.mxu0 }
 0x2c8   :  { %22959 = vst [vmem:[#allocation109_spill] sm:$0xff] %v17532_v59  ;;  %22961 = vst [vmem:[#allocation132_spill] sm:$0xff] %v17539_v53  ;;  %v17547_v38 = vmax.f32 %v3387_v39, 0.0  ;;  %v3542_v12 = vrot.slane %v17529_v1, 7  ;;  %v3385_v2 = vadd.f32 %v17412_v31, %v3320_v23  ;;  %v22964_v59 = vld [vmem:[#allocation148_spill] sm:$0xff]  ;;  %v3080_v43 = vpop.f32.mrf.mxu1  ;;  %v17559_v39 = vadd.f32 %v14326_v48, %v22966_v34  ;;  %v22969_v23 = vld [vmem:[#allocation151_spill] sm:$0xff] }
 0x2c9   :  { %v17545_v41 = vsel %vm1821_vm7, %v22962_v57, %v3768_v10  ;;  %v17554_v17 = vadd.f32 %v2883_v26, %v22964_v59  ;;  %v3388_v57 = vadd.f32 %v17412_v31, %v3323_v51  ;;  %v3321_v61 = vadd.f32 %v3080_v43, %v17314_v24  ;;  %v2886_v11 = vpop.f32.mrf.mxu0 }
 0x2ca   :  { %22963 = vst [vmem:[#allocation110_spill] sm:$0xff] %v17545_v41  ;;  %22967 = vst [vmem:[#allocation111_spill] sm:$0xff] %v17559_v39  ;;  %v17564_v0 = vsel %vm1468_vm5, %v3542_v12, %v3543_v15  ;;  %v17567_v32 = vmax.f32 %v3385_v2, 0.0  ;;  %v3509_v26 = vpack.c.bf16 %v17529_v1, %v17497_v54  ;;  %v14345_v59 = vpop.f32.mrf.mxu1  ;;  %v15272_v15 = vld [vmem:[#allocation7 + $0x20] sm:$0xff]   ;;  %v17581_v39 = vadd.f32 %v2886_v11, %v22969_v23 }
 0x2cb   :  { %22965 = vst [vmem:[#allocation134_spill] sm:$0xff] %v17554_v17  ;;  %22968 = vst [vmem:[#allocation136_spill] sm:$0xff] %v17564_v0  ;;  %v17573_v34 = vmax.f32 %v3388_v57, 0.0  ;;  %v3386_v24 = vadd.f32 %v17412_v31, %v3321_v61  ;;  %v3326_v43 = vadd.f32 %v14345_v59, %v17318_v49  ;;  %v14329_v48 = vpop.f32.mrf.mxu0  ;;  %v22970_v51 = vrot.slane %v17497_v54, 7 }
 0x2cc   :  { %v22625_v2 = vrot.slane %v17567_v32, 1  ;;  %14403 = vmatprep.mubr.msk.bf16.mxu0 %vm2131_vm3, %v3509_v26  ;;  %v3093_v17 = vpop.f32.mrf.mxu1  ;;  %v22973_v26 = vld [vmem:[#allocation152_spill] sm:$0xff]  ;;  %v22975_v53 = vrot.slane %v17547_v38, 7 }
 0x2cd   :  { %v17587_v57 = vsel %vm1468_vm5, %v22970_v51, %v3542_v12  ;;  %v3512_v49 = vpack.c.bf16 %v17573_v34, %v17547_v38  ;;  %v3772_v59 = vrot.slane %v17573_v34, 1  ;;  %v17593_v56 = vmax.f32 %v3386_v24, 0.0  ;;  %14404 = vmatmul.mubr.msk.bf16.vlgmr.msra.gmra.mxu0 %vm2131_vm3, %v3510_v30  ;;  %v2899_v11 = vpop.f32.mrf.mxu0 }
 0x2ce   :  { %22971 = vst [vmem:[#allocation113_spill] sm:$0xff] %v17587_v57  ;;  %v17600_v23 = vsel %vm1821_vm7, %v3768_v10, %v22625_v2  ;;  %v3391_v12 = vadd.f32 %v17412_v31, %v3326_v43  ;;  %v17604_v51 = vadd.f32 %v14329_v48, %v22973_v26  ;;  %v3324_v61 = vadd.f32 %v3093_v17, %v17322_v5  ;;  %v14346_v0 = vpop.f32.mrf.mxu1 }
 0x2cf   :  { %22972 = vst [vmem:[#allocation138_spill] sm:$0xff] %v17600_v23  ;;  %14536 = vmatpush3.bf16.msra.mxu0 %v17279_v29  ;;  %v22974_v24 = vrot.slane %v17573_v34, 7  ;;  %v22976_v43 = vrot.slane %v17547_v38, 1  ;;  %v17625_v5 = vadd.f32 %v2899_v11, %v17310_v22  ;;  %v14330_v29 = vpop.f32.mrf.mxu0  ;;  %v3770_v2 = vrot.slane %v17593_v56, 1 }
 0x2d0   :  { %14537 = vmatprep.subr.bf16.mxu0 %v15272_v15  ;;  %v17628_v26 = vmax.f32 %v3391_v12, 0.0  ;;  %v3389_v30 = vadd.f32 %v17412_v31, %v3324_v61  ;;  %v22978_v11 = vrot.slane %v17471_v28, 1  ;;  %v22979_v23 = vrot.slane %v17529_v1, 1 }
 0x2d1   :  { %v17616_v10 = vsel %vm1468_vm5, %v22975_v53, %v22974_v24  ;;  %v17622_v48 = vsel %vm1821_vm7, %v22976_v43, %v3772_v59  ;;  %v3327_v53 = vadd.f32 %v14346_v0, %v17326_v18  ;;  %v3096_v24 = vpop.f32.mrf.mxu1  ;;  %v3511_v43 = vpack.c.bf16 %v17593_v56, %v17567_v32  ;;  %v2902_v22 = vpop.f32.mrf.mxu0 }
 0x2d2   :  { %22977 = vst [vmem:[#allocation115_spill] sm:$0xff] %v17622_v48  ;;  %v3325_v41 = vadd.f32 %v3096_v24, %v17330_v52  ;;  %v17642_v12 = vsel %vm1821_vm7, %v22979_v23, %v22978_v11  ;;  %v22632_v61 = vrot.slane %v17628_v26, 7  ;;  %v17645_v18 = vmax.f32 %v3389_v30, 0.0 }
 0x2d3   :  { %22980 = vst [vmem:[#allocation140_spill] sm:$0xff] %v17642_v12  ;;  %v3392_v0 = vadd.f32 %v17412_v31, %v3327_v53  ;;  %v17649_v52 = vadd.f32 %v14330_v29, %v17344_v20  ;;  %v14349_v24 = vpop.f32.mrf.mxu1  ;;  %14538 = vmatpush3.bf16.msra.mxu0 %v15272_v15  ;;  %v22633_v17 = vrot.slane %v17628_v26, 1  ;;  %14407 = vmatprep.mubr.msk.bf16.mxu0 %vm2131_vm3, %v3511_v43  ;;  %v22981_v11 = vrot.slane %v17529_v1, 1 }
 0x2d4   :  { %v3390_v28 = vadd.f32 %v17412_v31, %v3325_v41  ;;  %v3330_v23 = vadd.f32 %v14349_v24, %v17334_v58  ;;  %v22982_v30 = vrot.slane %v17497_v54, 1  ;;  %v22628_v20 = vrot.slane %v17645_v18, 1 }
 0x2d5   :  { %v17664_v29 = vmax.f32 %v3392_v0, 0.0  ;;  %v17667_v15 = vadd.f32 %v2902_v22, %v17378_v40  ;;  %v3109_v41 = vpop.f32.mrf.mxu1  ;;  %14408 = vmatmul.mubr.msk.bf16.gmra.mxu0 %vm2131_vm3, %v3512_v49  ;;  %v22985_v0 = vrot.slane %v17567_v32, 7  ;;  %v22988_v57 = vrot.slane %v17567_v32, 7 }
 0x2d6   :  { %v17661_v53 = vsel %vm1821_vm7, %v22982_v30, %v22981_v11  ;;  %v17671_v58 = vmax.f32 %v3390_v28, 0.0  ;;  %v3395_v1 = vadd.f32 %v17412_v31, %v3330_v23  ;;  %v3328_v24 = vadd.f32 %v3109_v41, %v17338_v16 }
 0x2d7   :  { %22983 = vst [vmem:[#allocation117_spill] sm:$0xff] %v17661_v53  ;;  %v22984_v11 = vrot.slane %v17593_v56, 7  ;;  %v17688_v22 = vsel %vm1821_vm7, %v3772_v59, %v22628_v20  ;;  %v3514_v28 = vpack.c.bf16 %v17664_v29, %v17628_v26  ;;  %v22631_v49 = vrot.slane %v17664_v29, 7  ;;  %v14350_v23 = vpop.f32.mrf.mxu1 }
 0x2d8   :  { %v3776_v16 = vrot.slane %v17664_v29, 1  ;;  %v3549_v30 = vrot.slane %v17645_v18, 7  ;;  %v3331_v20 = vadd.f32 %v14350_v23, %v17342_v33  ;;  %v3774_v41 = vrot.slane %v17671_v58, 1 }
 0x2d9   :  { %v17682_v40 = vsel %vm1468_vm5, %v22985_v0, %v22984_v11  ;;  %v17696_v11 = vmax.f32 %v3395_v1, 0.0  ;;  %v3393_v0 = vadd.f32 %v17412_v31, %v3328_v24  ;;  %v17705_v59 = vsel %vm1468_vm5, %v22632_v61, %v22631_v49  ;;  %v3112_v1 = vpop.f32.mrf.mxu1 }
 0x2da   :  { %22986 = vst [vmem:[#allocation142_spill] sm:$0xff] %v17705_v59  ;;  %v17711_v43 = vsel %vm1821_vm7, %v22633_v17, %v3776_v16  ;;  %v3513_v24 = vpack.c.bf16 %v17671_v58, %v17645_v18  ;;  %v3329_v49 = vadd.f32 %v3112_v1, %v17348_v3  ;;  %v3396_v61 = vadd.f32 %v17412_v31, %v3331_v20 }
 0x2db   :  { %22987 = vst [vmem:[#allocation119_spill] sm:$0xff] %v17711_v43  ;;  %v17718_v12 = vmax.f32 %v3393_v0, 0.0  ;;  %v14353_v17 = vpop.f32.mrf.mxu1  ;;  %v22989_v33 = vrot.slane %v17511_v21, 7  ;;  %v22990_v54 = vrot.slane %v17547_v38, 1  ;;  %v22992_v3 = vrot.slane %v17567_v32, 1 }
 0x2dc   :  { %14411 = vmatprep.mubr.msk.bf16.mxu0 %vm2131_vm3, %v3513_v24  ;;  %v3394_v24 = vadd.f32 %v17412_v31, %v3329_v49  ;;  %v23013_v48 = vrot.slane %v17628_v26, 7 }
 0x2dd   :  { %v17729_v23 = vsel %vm1468_vm5, %v22989_v33, %v22988_v57  ;;  %v17735_v0 = vsel %vm1821_vm7, %v3770_v2, %v22990_v54  ;;  %v17741_v20 = vsel %vm1821_vm7, %v22992_v3, %v3770_v2  ;;  %v22636_v21 = vrot.slane %v17718_v12, 1  ;;  %v3125_v53 = vpop.f32.mrf.mxu1  ;;  %14412 = vmatmul.mubr.msk.bf16.gmra.mxu0 %vm2131_vm3, %v3514_v28 }
 0x2de   :  { %22991 = vst [vmem:[#allocation144_spill] sm:$0xff] %v17735_v0  ;;  %22993 = vst [vmem:[#allocation121_spill] sm:$0xff] %v17741_v20  ;;  %v3334_v57 = vadd.f32 %v14353_v17, %v17352_v44  ;;  %v17747_v33 = vmax.f32 %v3396_v61, 0.0  ;;  %v22994_v2 = vrot.slane %v17547_v38, 7  ;;  %v22995_v3 = vrot.slane %v17593_v56, 7 }
 0x2df   :  { %v17765_v44 = vsel %vm1821_vm7, %v3776_v16, %v22636_v21  ;;  %v17767_v17 = vmax.f32 %v3394_v24, 0.0  ;;  %v3332_v38 = vadd.f32 %v3125_v53, %v17356_v35  ;;  %v3553_v24 = vrot.slane %v17718_v12, 7 }
 0x2e0   :  { %v17759_v1 = vsel %vm1468_vm5, %v22995_v3, %v22994_v2  ;;  %22997 = vst [vmem:[#allocation123_spill] sm:$0xff] %v17765_v44  ;;  %v3399_v61 = vadd.f32 %v17412_v31, %v3334_v57  ;;  %v3516_v56 = vpack.c.bf16 %v17747_v33, %v17696_v11  ;;  %v22639_v49 = vrot.slane %v17747_v33, 7  ;;  %v14354_v3 = vpop.f32.mrf.mxu1 }
 0x2e1   :  { %22996 = vst [vmem:[#allocation146_spill] sm:$0xff] %v17759_v1  ;;  %v3780_v2 = vrot.slane %v17747_v33, 1  ;;  %v3397_v28 = vadd.f32 %v17412_v31, %v3332_v38  ;;  %v22998_v35 = vrot.slane %v17696_v11, 7  ;;  %v23000_v54 = vrot.slane %v17696_v11, 1 }
 0x2e2   :  { %v17780_v57 = vmax.f32 %v3399_v61, 0.0  ;;  %v3335_v21 = vadd.f32 %v14354_v3, %v17360_v13  ;;  %v3128_v61 = vpop.f32.mrf.mxu1  ;;  %v3515_v38 = vpack.c.bf16 %v17767_v17, %v17718_v12  ;;  %v23002_v1 = vrot.slane %v17671_v58, 7 }
 0x2e3   :  { %v17789_v53 = vsel %vm1468_vm5, %v22998_v35, %v22639_v49  ;;  %v17795_v16 = vsel %vm1821_vm7, %v23000_v54, %v3780_v2  ;;  %v17802_v0 = vmax.f32 %v3397_v28, 0.0  ;;  %v3333_v35 = vadd.f32 %v3128_v61, %v17364_v8 }
 0x2e4   :  { %22999 = vst [vmem:[#allocation125_spill] sm:$0xff] %v17789_v53  ;;  %23001 = vst [vmem:[#allocation127_spill] sm:$0xff] %v17795_v16  ;;  %v3400_v49 = vadd.f32 %v17412_v31, %v3335_v21  ;;  %14415 = vmatprep.mubr.msk.bf16.mxu0 %vm2131_vm3, %v3515_v38  ;;  %v14357_v54 = vpop.f32.mrf.mxu1  ;;  %v17811_v13 = vsel %vm1468_vm5, %v3549_v30, %v23002_v1  ;;  %v23003_v3 = vrot.slane %v17573_v34, 7  ;;  %v23006_v8 = vrot.slane %v17645_v18, 1 }
 0x2e5   :  { %v22641_v28 = vrot.slane %v17802_v0, 1  ;;  %v3398_v61 = vadd.f32 %v17412_v31, %v3333_v35  ;;  %v3338_v38 = vadd.f32 %v14357_v54, %v17368_v45  ;;  %14416 = vmatmul.mubr.msk.bf16.gmra.mxu0 %vm2131_vm3, %v3516_v56  ;;  %v23016_v34 = vrot.slane %v17767_v17, 7 }
 0x2e6   :  { %v17817_v32 = vsel %vm1468_vm5, %v23003_v3, %v3549_v30  ;;  %v17825_v20 = vmax.f32 %v3400_v49, 0.0  ;;  %v3141_v1 = vpop.f32.mrf.mxu1  ;;  %v23004_v30 = vrot.slane %v17628_v26, 1  ;;  %v17839_v21 = vsel %vm1821_vm7, %v23006_v8, %v3774_v41 }
 0x2e7   :  { %23007 = vst [vmem:[#allocation129_spill] sm:$0xff] %v17839_v21  ;;  %v17845_v45 = vsel %vm1821_vm7, %v3780_v2, %v22641_v28  ;;  %v17847_v49 = vmax.f32 %v3398_v61, 0.0  ;;  %v3403_v35 = vadd.f32 %v17412_v31, %v3338_v38  ;;  %v3336_v54 = vadd.f32 %v3141_v1, %v17372_v63 }
 0x2e8   :  { %v17833_v3 = vsel %vm1821_vm7, %v3774_v41, %v23004_v30  ;;  %23008 = vst [vmem:[#allocation131_spill] sm:$0xff] %v17845_v45  ;;  %v3518_v18 = vpack.c.bf16 %v17825_v20, %v17780_v57  ;;  %v22644_v41 = vrot.slane %v17825_v20, 7  ;;  %v3784_v8 = vrot.slane %v17825_v20, 1  ;;  %v14358_v30 = vpop.f32.mrf.mxu1 }
 0x2e9   :  { %23005 = vst [vmem:[#allocation150_spill] sm:$0xff] %v17833_v3  ;;  %v17860_v38 = vmax.f32 %v3403_v35, 0.0  ;;  %v3401_v56 = vadd.f32 %v17412_v31, %v3336_v54  ;;  %v23009_v63 = vrot.slane %v17780_v57, 7  ;;  %v23011_v28 = vrot.slane %v17780_v57, 1 }
 0x2ea   :  { %v3339_v61 = vadd.f32 %v14358_v30, %v17376_v46  ;;  %v3144_v35 = vpop.f32.mrf.mxu1  ;;  %v3517_v54 = vpack.c.bf16 %v17847_v49, %v17802_v0  ;;  %v23014_v46 = vrot.slane %v17671_v58, 7  ;;  %v23021_v26 = vrot.slane %v17696_v11, 1 }
 0x2eb   :  { %v17869_v1 = vsel %vm1468_vm5, %v23009_v63, %v22644_v41  ;;  %v17875_v2 = vsel %vm1821_vm7, %v23011_v28, %v3784_v8  ;;  %v22650_v21 = vrot.slane %v17860_v38, 7  ;;  %v17882_v3 = vmax.f32 %v3401_v56, 0.0 }
 0x2ec   :  { %23010 = vst [vmem:[#allocation133_spill] sm:$0xff] %v17869_v1  ;;  %23012 = vst [vmem:[#allocation135_spill] sm:$0xff] %v17875_v2  ;;  %v3337_v63 = vadd.f32 %v3144_v35, %v17382_v19  ;;  %v3404_v41 = vadd.f32 %v17412_v31, %v3339_v61  ;;  %14419 = vmatprep.mubr.msk.bf16.mxu0 %vm2131_vm3, %v3517_v54  ;;  %v14361_v28 = vpop.f32.mrf.mxu1  ;;  %v17893_v30 = vsel %vm1468_vm5, %v23014_v46, %v23013_v48 }
 0x2ed   :  { %23015 = vst [vmem:[#allocation137_spill] sm:$0xff] %v17893_v30  ;;  %v17899_v56 = vsel %vm1468_vm5, %v3553_v24, %v23016_v34  ;;  %v23018_v19 = vrot.slane %v17664_v29, 7  ;;  %v22646_v58 = vrot.slane %v17882_v3, 1  ;;  %v3342_v48 = vadd.f32 %v14361_v28, %v17386_v7  ;;  %14420 = vmatmul.mubr.msk.bf16.gmra.mxu0 %vm2131_vm3, %v3518_v18 }
 0x2ee   :  { %23017 = vst [vmem:[#allocation139_spill] sm:$0xff] %v17899_v56  ;;  %v3402_v35 = vadd.f32 %v17412_v31, %v3337_v63  ;;  %v17911_v54 = vmax.f32 %v3404_v41, 0.0  ;;  %v3157_v46 = vpop.f32.mrf.mxu1  ;;  %v23025_v43 = vrot.slane %v17860_v38, 1  ;;  %v23030_v18 = vrot.slane %v17696_v11, 7 }
 0x2ef   :  { %v17905_v61 = vsel %vm1468_vm5, %v23018_v19, %v3553_v24  ;;  %v17923_v19 = vsel %vm1821_vm7, %v3784_v8, %v22646_v58  ;;  %v3407_v7 = vadd.f32 %v17412_v31, %v3342_v48  ;;  %v3340_v41 = vadd.f32 %v3157_v46, %v17390_v36 }
 0x2f0   :  { %23019 = vst [vmem:[#allocation141_spill] sm:$0xff] %v17905_v61  ;;  %23020 = vst [vmem:[#allocation143_spill] sm:$0xff] %v17923_v19  ;;  %v17925_v63 = vmax.f32 %v3402_v35, 0.0  ;;  %v3520_v28 = vpack.c.bf16 %v17911_v54, %v17860_v38  ;;  %v22649_v29 = vrot.slane %v17911_v54, 7  ;;  %v3788_v24 = vrot.slane %v17911_v54, 1  ;;  %v14362_v34 = vpop.f32.mrf.mxu1 }
 0x2f1   :  { %v23022_v8 = vrot.slane %v17767_v17, 1  ;;  %v17944_v48 = vmax.f32 %v3407_v7, 0.0  ;;  %v3405_v46 = vadd.f32 %v17412_v31, %v3340_v41  ;;  %v23027_v61 = vrot.slane %v17767_v17, 1 }
 0x2f2   :  { %v17953_v58 = vsel %vm1468_vm5, %v22650_v21, %v22649_v29  ;;  %v3160_v7 = vpop.f32.mrf.mxu1  ;;  %v3519_v41 = vpack.c.bf16 %v17925_v63, %v17882_v3  ;;  %v23051_v45 = vrot.slane %v17847_v49, 7  ;;  %v23071_v19 = vrot.slane %v17882_v3, 1 }
 0x2f3   :  { %v17940_v35 = vsel %vm1821_vm7, %v23022_v8, %v23021_v26  ;;  %23024 = vst [vmem:[#allocation147_spill] sm:$0xff] %v17953_v58  ;;  %v17959_v26 = vsel %vm1821_vm7, %v23025_v43, %v3788_v24  ;;  %v3343_v8 = vadd.f32 %v14362_v34, %v17394_v60  ;;  %v17966_v44 = vmax.f32 %v3405_v46, 0.0 }
 0x2f4   :  { %23023 = vst [vmem:[#allocation145_spill] sm:$0xff] %v17940_v35  ;;  %23026 = vst [vmem:[#allocation148_spill] sm:$0xff] %v17959_v26  ;;  %v3341_v29 = vadd.f32 %v3160_v7, %v17398_v4  ;;  %14423 = vmatprep.mubr.msk.bf16.mxu0 %vm2131_vm3, %v3519_v41  ;;  %v14365_v43 = vpop.f32.mrf.mxu1  ;;  %v23028_v60 = vrot.slane %v17718_v12, 1  ;;  %v23031_v46 = vrot.slane %v17767_v17, 7  ;;  %v23034_v7 = vrot.slane %v17802_v0, 7 }
 0x2f5   :  { %v3408_v21 = vadd.f32 %v17412_v31, %v3343_v8  ;;  %v23033_v8 = vrot.slane %v17847_v49, 7  ;;  %v3346_v17 = vadd.f32 %v14365_v43, %v17402_v27  ;;  %14424 = vmatmul.mubr.msk.bf16.gmra.mxu0 %vm2131_vm3, %v3520_v28  ;;  %v23063_v35 = vrot.slane %v17882_v3, 7 }
 0x2f6   :  { %v17977_v34 = vsel %vm1821_vm7, %v23028_v60, %v23027_v61  ;;  %v17985_v4 = vsel %vm1468_vm5, %v23031_v46, %v23030_v18  ;;  %v22652_v61 = vrot.slane %v17966_v44, 1  ;;  %v3406_v11 = vadd.f32 %v17412_v31, %v3341_v29  ;;  %v3173_v18 = vpop.f32.mrf.mxu1 }
 0x2f7   :  { %23029 = vst [vmem:[#allocation149_spill] sm:$0xff] %v17977_v34  ;;  %23032 = vst [vmem:[#allocation151_spill] sm:$0xff] %v17985_v4  ;;  %v17993_v41 = vsel %vm1468_vm5, %v23034_v7, %v23033_v8  ;;  %v17999_v60 = vmax.f32 %v3408_v21, 0.0  ;;  %v23036_v8 = vmov %v23034_v7  ;;  %v23037_v7 = vrot.slane %v17747_v33, 7 }
 0x2f8   :  { %23035 = vst [vmem:[#allocation152_spill] sm:$0xff] %v17993_v41  ;;  %v18017_v27 = vsel %vm1821_vm7, %v3788_v24, %v22652_v61  ;;  %v18019_v21 = vmax.f32 %v3406_v11, 0.0  ;;  %v3411_v29 = vadd.f32 %v17412_v31, %v3346_v17  ;;  %v3344_v43 = vadd.f32 %v3173_v18, %v17406_v25  ;;  %v14366_v46 = vpop.f32.mrf.mxu1 }
 0x2f9   :  { %v18011_v12 = vsel %vm1468_vm5, %v23037_v7, %v23036_v8  ;;  %23039 = vst [vmem:[#allocation154_spill] sm:$0xff] %v18017_v27  ;;  %v3522_v33 = vpack.c.bf16 %v17999_v60, %v17944_v48  ;;  %v22655_v8 = vrot.slane %v17999_v60, 7  ;;  %v3792_v7 = vrot.slane %v17999_v60, 1 }
 0x2fa   :  { %23038 = vst [vmem:[#allocation153_spill] sm:$0xff] %v18011_v12  ;;  %v18032_v17 = vmax.f32 %v3411_v29, 0.0  ;;  %v3409_v28 = vadd.f32 %v17412_v31, %v3344_v43  ;;  %v23040_v25 = vrot.slane %v17944_v48, 7  ;;  %v23042_v61 = vrot.slane %v17944_v48, 1  ;;  %v3176_v29 = vpop.f32.mrf.mxu1 }
 0x2fb   :  { %v3347_v11 = vadd.f32 %v14366_v46, %v17410_v55  ;;  %v3521_v43 = vpack.c.bf16 %v18019_v21, %v17966_v44  ;;  %v23044_v46 = vrot.slane %v17780_v57, 1  ;;  %v23045_v34 = vrot.slane %v17847_v49, 1 }
 0x2fc   :  { %v18041_v18 = vsel %vm1468_vm5, %v23040_v25, %v22655_v8  ;;  %v18047_v24 = vsel %vm1821_vm7, %v23042_v61, %v3792_v7  ;;  %v18054_v41 = vmax.f32 %v3409_v28, 0.0  ;;  %v3345_v25 = vadd.f32 %v3176_v29, %v17416_v9  ;;  %v14369_v61 = vpop.f32.mrf.mxu1 }
 0x2fd   :  { %23041 = vst [vmem:[#allocation155_spill] sm:$0xff] %v18041_v18  ;;  %23043 = vst [vmem:[#allocation156_spill] sm:$0xff] %v18047_v24  ;;  %v3412_v8 = vadd.f32 %v17412_v31, %v3347_v11  ;;  %14427 = vmatprep.mubr.msk.bf16.mxu0 %vm2131_vm3, %v3521_v43  ;;  %v18067_v36 = vsel %vm1821_vm7, %v23045_v34, %v23044_v46  ;;  %v23047_v28 = vmov %v23045_v34  ;;  %v23048_v9 = vrot.slane %v17802_v0, 1 }
 0x2fe   :  { %23046 = vst [vmem:[#allocation157_spill] sm:$0xff] %v18067_v36  ;;  %v22665_v29 = vrot.slane %v18032_v17, 1  ;;  %v22659_v43 = vrot.slane %v18054_v41, 1  ;;  %v3410_v55 = vadd.f32 %v17412_v31, %v3345_v25  ;;  %v3350_v12 = vadd.f32 %v14369_v61, %v17420_v47  ;;  %v3189_v34 = vpop.f32.mrf.mxu1  ;;  %14428 = vmatmul.mubr.msk.bf16.gmra.mxu0 %vm2131_vm3, %v3522_v33  ;;  %v23069_v36 = vld [vmem:[#allocation101_spill] sm:$0xff] }
 0x2ff   :  { %v18075_v11 = vsel %vm1821_vm7, %v23048_v9, %v23047_v28  ;;  %v18081_v16 = vmax.f32 %v3412_v8, 0.0  ;;  %v23050_v0 = vrot.slane %v17780_v57, 7  ;;  %v23053_v9 = vrot.slane %v17925_v63, 7 }
 0x300   :  { %23049 = vst [vmem:[#allocation158_spill] sm:$0xff] %v18075_v11  ;;  %v23054_v25 = vrot.slane %v17882_v3, 7  ;;  %v18105_v8 = vsel %vm1821_vm7, %v3792_v7, %v22659_v43  ;;  %v18107_v57 = vmax.f32 %v3410_v55, 0.0  ;;  %v3415_v49 = vadd.f32 %v17412_v31, %v3350_v12  ;;  %v14370_v46 = vpop.f32.mrf.mxu1  ;;  %v23061_v55 = vld [vmem:[#allocation100_spill] sm:$0xff] }
 0x301   :  { %v18091_v28 = vsel %vm1468_vm5, %v23051_v45, %v23050_v0  ;;  %23056 = vst [vmem:[#allocation161_spill] sm:$0xff] %v18105_v8  ;;  %v23057_v45 = vld [vmem:[#allocation112_spill] sm:$0xff]  ;;  %v3524_v0 = vpack.c.bf16 %v18081_v16, %v18032_v17  ;;  %v3351_v43 = vadd.f32 %v14370_v46, %v23061_v55  ;;  %v23064_v46 = vrot.slane %v17825_v20, 7 }
 0x302   :  { %23052 = vst [vmem:[#allocation159_spill] sm:$0xff] %v18091_v28  ;;  %v18099_v47 = vsel %vm1468_vm5, %v23054_v25, %v23053_v9  ;;  %v3348_v61 = vadd.f32 %v3189_v34, %v23057_v45  ;;  %v22663_v9 = vrot.slane %v18081_v16, 7  ;;  %v3796_v25 = vrot.slane %v18081_v16, 1 }
 0x303   :  { %23055 = vst [vmem:[#allocation160_spill] sm:$0xff] %v18099_v47  ;;  %v18120_v12 = vmax.f32 %v3415_v49, 0.0  ;;  %v23058_v34 = vrot.slane %v18032_v17, 7  ;;  %v3192_v49 = vpop.f32.mrf.mxu1  ;;  %v3416_v1 = vadd.f32 %v17412_v31, %v3351_v43  ;;  %v18153_v55 = vsel %vm1468_vm5, %v23064_v46, %v23063_v35 }
 0x304   :  { %v3413_v33 = vadd.f32 %v17412_v31, %v3348_v61  ;;  %v18135_v7 = vsel %vm1821_vm7, %v22665_v29, %v3796_v25  ;;  %v3523_v61 = vpack.c.bf16 %v18107_v57, %v18054_v41  ;;  %23065 = vst [vmem:[#allocation100_spill] sm:$0xff] %v18153_v55  ;;  %v23082_v55 = vrot.slane %v17966_v44, 7 }
 0x305   :  { %v18129_v45 = vsel %vm1468_vm5, %v23058_v34, %v22663_v9  ;;  %23060 = vst [vmem:[#allocation162_spill] sm:$0xff] %v18135_v7  ;;  %v23062_v34 = vld [vmem:[#allocation114_spill] sm:$0xff]  ;;  %v14373_v29 = vpop.f32.mrf.mxu1  ;;  %v18169_v46 = vmax.f32 %v3416_v1, 0.0  ;;  %v23091_v26 = vrot.slane %v18019_v21, 1  ;;  %v23100_v47 = vrot.slane %v18019_v21, 7 }
 0x306   :  { %23059 = vst [vmem:[#allocation112_spill] sm:$0xff] %v18129_v45  ;;  %v18142_v28 = vmax.f32 %v3413_v33, 0.0  ;;  %v3349_v9 = vadd.f32 %v3192_v49, %v23062_v34  ;;  %14431 = vmatprep.mubr.msk.bf16.mxu0 %vm2131_vm3, %v3523_v61  ;;  %v23066_v33 = vrot.slane %v17860_v38, 1  ;;  %v23067_v49 = vrot.slane %v17925_v63, 1 }
 0x307   :  { %v22674_v61 = vrot.slane %v18120_v12, 1  ;;  %v3354_v35 = vadd.f32 %v14373_v29, %v23069_v36  ;;  %v3205_v4 = vpop.f32.mrf.mxu1  ;;  %14432 = vmatmul.mubr.msk.bf16.gmra.mxu0 %vm2131_vm3, %v3524_v0 }
 0x308   :  { %v18163_v43 = vsel %vm1821_vm7, %v23067_v49, %v23066_v33  ;;  %v22670_v34 = vrot.slane %v18142_v28, 1  ;;  %v3414_v20 = vadd.f32 %v17412_v31, %v3349_v9  ;;  %v23070_v2 = vmov %v23067_v49 }
 0x309   :  { %23068 = vst [vmem:[#allocation114_spill] sm:$0xff] %v18163_v43  ;;  %v18179_v33 = vsel %vm1821_vm7, %v23071_v19, %v23070_v2  ;;  %v23073_v49 = vrot.slane %v17860_v38, 7  ;;  %v23074_v9 = vrot.slane %v17925_v63, 7  ;;  %v3419_v3 = vadd.f32 %v17412_v31, %v3354_v35  ;;  %v23076_v2 = vld [vmem:[#allocation116_spill] sm:$0xff] }
 0x30a   :  { %23072 = vst [vmem:[#allocation101_spill] sm:$0xff] %v18179_v33  ;;  %v18193_v36 = vsel %vm1821_vm7, %v3796_v25, %v22670_v34  ;;  %v18195_v29 = vmax.f32 %v3414_v20, 0.0  ;;  %v3352_v38 = vadd.f32 %v3205_v4, %v23076_v2  ;;  %v3526_v19 = vpack.c.bf16 %v18169_v46, %v18120_v12  ;;  %v23080_v34 = vld [vmem:[#allocation102_spill] sm:$0xff] }
 0x30b   :  { %v18187_v1 = vsel %vm1468_vm5, %v23074_v9, %v23073_v49  ;;  %v22673_v63 = vrot.slane %v18169_v46, 7  ;;  %v3800_v49 = vrot.slane %v18169_v46, 1  ;;  %v14374_v9 = vpop.f32.mrf.mxu1  ;;  %v18208_v35 = vmax.f32 %v3419_v3, 0.0 }
 0x30c   :  { %23075 = vst [vmem:[#allocation163_spill] sm:$0xff] %v18187_v1  ;;  %v3417_v0 = vadd.f32 %v17412_v31, %v3352_v38  ;;  %v23077_v4 = vrot.slane %v18120_v12, 7  ;;  %v3355_v20 = vadd.f32 %v14374_v9, %v23080_v34  ;;  %v3525_v38 = vpack.c.bf16 %v18195_v29, %v18142_v28 }
 0x30d   :  { %v18223_v25 = vsel %vm1821_vm7, %v22674_v61, %v3800_v49  ;;  %v3208_v3 = vpop.f32.mrf.mxu1  ;;  %v23081_v9 = vrot.slane %v18019_v21, 7 }
 0x30e   :  { %v18217_v2 = vsel %vm1468_vm5, %v23077_v4, %v22673_v63  ;;  %23079 = vst [vmem:[#allocation164_spill] sm:$0xff] %v18223_v25  ;;  %v18230_v43 = vmax.f32 %v3417_v0, 0.0  ;;  %v3353_v4 = vadd.f32 %v3208_v3, %v17448_v6  ;;  %v3420_v63 = vadd.f32 %v17412_v31, %v3355_v20  ;;  %14435 = vmatprep.mubr.msk.bf16.mxu0 %vm2131_vm3, %v3525_v38 }
 0x30f   :  { %23078 = vst [vmem:[#allocation116_spill] sm:$0xff] %v18217_v2  ;;  %v14377_v61 = vpop.f32.mrf.mxu1  ;;  %v18243_v11 = vsel %vm1468_vm5, %v23082_v55, %v23081_v9  ;;  %v23084_v0 = vmov %v23082_v55  ;;  %v23085_v6 = vrot.slane %v17911_v54, 7  ;;  %14436 = vmatmul.mubr.msk.bf16.gmra.mxu0 %vm2131_vm3, %v3526_v19  ;;  %v23161_v25 = vrot.slane %v18208_v35, 1 }
 0x310   :  { %23083 = vst [vmem:[#allocation102_spill] sm:$0xff] %v18243_v11  ;;  %v22678_v38 = vrot.slane %v18230_v43, 1  ;;  %v3418_v34 = vadd.f32 %v17412_v31, %v3353_v4  ;;  %v3358_v33 = vadd.f32 %v14377_v61, %v17453_v42  ;;  %v18257_v1 = vmax.f32 %v3420_v63, 0.0 }
 0x311   :  { %v18251_v20 = vsel %vm1468_vm5, %v23085_v6, %v23084_v0  ;;  %v3221_v55 = vpop.f32.mrf.mxu1  ;;  %v23087_v0 = vrot.slane %v17944_v48, 1  ;;  %v23088_v6 = vrot.slane %v18019_v21, 1 }
 0x312   :  { %23086 = vst [vmem:[#allocation165_spill] sm:$0xff] %v18251_v20  ;;  %v18275_v42 = vsel %vm1821_vm7, %v3800_v49, %v22678_v38  ;;  %v18277_v61 = vmax.f32 %v3418_v34, 0.0  ;;  %v3423_v63 = vadd.f32 %v17412_v31, %v3358_v33  ;;  %v3356_v4 = vadd.f32 %v3221_v55, %v17457_v37 }
 0x313   :  { %v18269_v3 = vsel %vm1821_vm7, %v23088_v6, %v23087_v0  ;;  %23090 = vst [vmem:[#allocation167_spill] sm:$0xff] %v18275_v42  ;;  %v3528_v54 = vpack.c.bf16 %v18257_v1, %v18208_v35  ;;  %v22682_v0 = vrot.slane %v18257_v1, 7  ;;  %v3804_v6 = vrot.slane %v18257_v1, 1  ;;  %v14378_v9 = vpop.f32.mrf.mxu1 }
 0x314   :  { %23089 = vst [vmem:[#allocation166_spill] sm:$0xff] %v18269_v3  ;;  %v23092_v49 = vrot.slane %v17966_v44, 1  ;;  %v18296_v19 = vmax.f32 %v3423_v63, 0.0  ;;  %v3421_v55 = vadd.f32 %v17412_v31, %v3356_v4  ;;  %v23094_v38 = vrot.slane %v18208_v35, 7 }
 0x315   :  { %v23095_v44 = vrot.slane %v18208_v35, 1  ;;  %v3224_v63 = vpop.f32.mrf.mxu1  ;;  %v3527_v4 = vpack.c.bf16 %v18277_v61, %v18230_v43  ;;  %v23107_v3 = vrot.slane %v17999_v60, 7  ;;  %v23166_v2 = vrot.slane %v18277_v61, 1 }
 0x316   :  { %v18292_v34 = vsel %vm1821_vm7, %v23092_v49, %v23091_v26  ;;  %v18305_v27 = vsel %vm1468_vm5, %v23094_v38, %v22682_v0  ;;  %v23097_v49 = vld [vmem:[#allocation118_spill] sm:$0xff]  ;;  %v18318_v11 = vmax.f32 %v3421_v55, 0.0  ;;  %v23098_v38 = vld [vmem:[#allocation103_spill] sm:$0xff]  ;;  %v23102_v55 = vrot.slane %v18107_v57, 7 }
 0x317   :  { %23093 = vst [vmem:[#allocation168_spill] sm:$0xff] %v18292_v34  ;;  %v18311_v26 = vsel %vm1821_vm7, %v23095_v44, %v3804_v6  ;;  %v3359_v33 = vadd.f32 %v14378_v9, %v23097_v49  ;;  %v3357_v0 = vadd.f32 %v3224_v63, %v23098_v38  ;;  %14439 = vmatprep.mubr.msk.bf16.mxu0 %vm2131_vm3, %v3527_v4  ;;  %v14381_v44 = vpop.f32.mrf.mxu1  ;;  %v23099_v49 = vrot.slane %v17944_v48, 7  ;;  %v23105_v9 = vld [vmem:[#allocation120_spill] sm:$0xff] }
 0x318   :  { %23096 = vst [vmem:[#allocation169_spill] sm:$0xff] %v18311_v26  ;;  %v23103_v63 = vrot.slane %v18054_v41, 7  ;;  %v22692_v4 = vrot.slane %v18296_v19, 1  ;;  %v22687_v38 = vrot.slane %v18318_v11, 1  ;;  %v3362_v21 = vadd.f32 %v14381_v44, %v23105_v9  ;;  %14440 = vmatmul.mubr.msk.bf16.gmra.mxu0 %vm2131_vm3, %v3528_v54 }
 0x319   :  { %v3424_v58 = vadd.f32 %v17412_v31, %v3359_v33  ;;  %v18331_v37 = vsel %vm1468_vm5, %v23100_v47, %v23099_v49  ;;  %v3422_v48 = vadd.f32 %v17412_v31, %v3357_v0  ;;  %v3237_v47 = vpop.f32.mrf.mxu1 }
 0x31a   :  { %23101 = vst [vmem:[#allocation118_spill] sm:$0xff] %v18331_v37  ;;  %v18339_v33 = vsel %vm1468_vm5, %v23103_v63, %v23102_v55  ;;  %v23106_v34 = vmov %v23103_v63  ;;  %v3427_v44 = vadd.f32 %v17412_v31, %v3362_v21  ;;  %v3360_v60 = vadd.f32 %v3237_v47, %v17477_v14 }
 0x31b   :  { %23104 = vst [vmem:[#allocation103_spill] sm:$0xff] %v18339_v33  ;;  %v18345_v20 = vmax.f32 %v3424_v58, 0.0  ;;  %v18355_v55 = vsel %vm1468_vm5, %v23107_v3, %v23106_v34  ;;  %v18363_v58 = vsel %vm1821_vm7, %v3804_v6, %v22687_v38  ;;  %v18365_v0 = vmax.f32 %v3422_v48, 0.0  ;;  %v14382_v63 = vpop.f32.mrf.mxu1  ;;  %v23111_v38 = vld [vmem:[#allocation104_spill] sm:$0xff] }
 0x31c   :  { %23108 = vst [vmem:[#allocation120_spill] sm:$0xff] %v18355_v55  ;;  %v18378_v21 = vmax.f32 %v3427_v44, 0.0  ;;  %v3425_v54 = vadd.f32 %v17412_v31, %v3360_v60  ;;  %v23109_v14 = vrot.slane %v18296_v19, 7  ;;  %v3363_v48 = vadd.f32 %v14382_v63, %v23111_v38 }
 0x31d   :  { %v3530_v3 = vpack.c.bf16 %v18345_v20, %v18296_v19  ;;  %v22690_v34 = vrot.slane %v18345_v20, 7  ;;  %v3808_v9 = vrot.slane %v18345_v20, 1  ;;  %v3240_v44 = vpop.f32.mrf.mxu1  ;;  %v3529_v60 = vpack.c.bf16 %v18365_v0, %v18318_v11 }
 0x31e   :  { %v18400_v8 = vmax.f32 %v3425_v54, 0.0  ;;  %v3428_v55 = vadd.f32 %v17412_v31, %v3363_v48  ;;  %v23113_v33 = vrot.slane %v18032_v17, 1  ;;  %v23114_v38 = vrot.slane %v18107_v57, 1 }
 0x31f   :  { %v18387_v47 = vsel %vm1468_vm5, %v23109_v14, %v22690_v34  ;;  %v18393_v6 = vsel %vm1821_vm7, %v22692_v4, %v3808_v9  ;;  %v23112_v14 = vld [vmem:[#allocation122_spill] sm:$0xff]  ;;  %14443 = vmatprep.mubr.msk.bf16.mxu0 %vm2131_vm3, %v3529_v60  ;;  %v14385_v4 = vpop.f32.mrf.mxu1  ;;  %v23117_v54 = vrot.slane %v18054_v41, 1  ;;  %v23119_v48 = vrot.slane %v18032_v17, 7 }
 0x320   :  { %23110 = vst [vmem:[#allocation170_spill] sm:$0xff] %v18393_v6  ;;  %v3361_v34 = vadd.f32 %v3240_v44, %v23112_v14  ;;  %v18411_v63 = vsel %vm1821_vm7, %v23114_v38, %v23113_v33  ;;  %v23116_v49 = vmov %v23114_v38  ;;  %v23120_v60 = vrot.slane %v18107_v57, 7  ;;  %14444 = vmatmul.mubr.msk.bf16.gmra.mxu0 %vm2131_vm3, %v3530_v3  ;;  %v23195_v6 = vld [vmem:[#allocation106_spill] sm:$0xff] }
 0x321   :  { %23115 = vst [vmem:[#allocation104_spill] sm:$0xff] %v18411_v63  ;;  %v18419_v44 = vsel %vm1821_vm7, %v23117_v54, %v23116_v49  ;;  %v22696_v33 = vrot.slane %v18400_v8, 1  ;;  %v3366_v41 = vadd.f32 %v14385_v4, %v17489_v50  ;;  %v18433_v37 = vmax.f32 %v3428_v55, 0.0  ;;  %v3253_v49 = vpop.f32.mrf.mxu1 }
 0x322   :  { %23118 = vst [vmem:[#allocation122_spill] sm:$0xff] %v18419_v44  ;;  %v18427_v14 = vsel %vm1468_vm5, %v23120_v60, %v23119_v48  ;;  %v3426_v38 = vadd.f32 %v17412_v31, %v3361_v34  ;;  %v23122_v54 = vrot.slane %v18195_v29, 7  ;;  %v23123_v48 = vrot.slane %v18142_v28, 7  ;;  %v23126_v34 = vld [vmem:[#allocation105_spill] sm:$0xff] }
 0x323   :  { %23121 = vst [vmem:[#allocation171_spill] sm:$0xff] %v18427_v14  ;;  %v18451_v50 = vsel %vm1821_vm7, %v3808_v9, %v22696_v33  ;;  %v3431_v55 = vadd.f32 %v17412_v31, %v3366_v41  ;;  %v3364_v17 = vadd.f32 %v3253_v49, %v23126_v34  ;;  %v3532_v57 = vpack.c.bf16 %v18433_v37, %v18378_v21  ;;  %v14386_v24 = vpop.f32.mrf.mxu1 }
 0x324   :  { %v18445_v60 = vsel %vm1468_vm5, %v23123_v48, %v23122_v54  ;;  %23125 = vst [vmem:[#allocation173_spill] sm:$0xff] %v18451_v50  ;;  %v18453_v4 = vmax.f32 %v3426_v38, 0.0  ;;  %v22700_v54 = vrot.slane %v18433_v37, 7  ;;  %v3812_v48 = vrot.slane %v18433_v37, 1 }
 0x325   :  { %23124 = vst [vmem:[#allocation172_spill] sm:$0xff] %v18445_v60  ;;  %v23127_v44 = vrot.slane %v18142_v28, 7  ;;  %v23128_v9 = vrot.slane %v18081_v16, 7  ;;  %v18470_v49 = vmax.f32 %v3431_v55, 0.0  ;;  %v3429_v34 = vadd.f32 %v17412_v31, %v3364_v17  ;;  %v3256_v55 = vpop.f32.mrf.mxu1 }
 0x326   :  { %v23129_v33 = vrot.slane %v18378_v21, 7  ;;  %v23130_v16 = vrot.slane %v18378_v21, 1  ;;  %v3531_v17 = vpack.c.bf16 %v18453_v4, %v18400_v8  ;;  %v23135_v3 = vrot.slane %v18120_v12, 1 }
 0x327   :  { %v3636_v38 = vsel %vm1468_vm5, %v23128_v9, %v23127_v44  ;;  %v23131_v9 = vld [vmem:[#allocation124_spill] sm:$0xff]  ;;  %v18492_v45 = vmax.f32 %v3429_v34, 0.0  ;;  %v23136_v14 = vrot.slane %v18195_v29, 1  ;;  %v23147_v7 = vrot.slane %v18470_v49, 1 }
 0x328   :  { %v18479_v63 = vsel %vm1468_vm5, %v23129_v33, %v22700_v54  ;;  %v18485_v44 = vsel %vm1821_vm7, %v23130_v16, %v3812_v48  ;;  %v3367_v41 = vadd.f32 %v14386_v24, %v23131_v9  ;;  %v23132_v33 = vld [vmem:[#allocation126_spill] sm:$0xff]  ;;  %14447 = vmatprep.mubr.msk.bf16.mxu0 %vm2131_vm3, %v3531_v17  ;;  %v14389_v16 = vpop.f32.mrf.mxu1  ;;  %v18501_v9 = vsel %vm1083_vm8, 0.0, %v18193_v36 }
 0x329   :  { %v3365_v54 = vadd.f32 %v3256_v55, %v23132_v33  ;;  %23134 = vst [vmem:[#allocation105_spill] sm:$0xff] %v18501_v9  ;;  %v18509_v34 = vsel %vm1821_vm7, %v23136_v14, %v23135_v3  ;;  %v18512_v33 = vld [vmem:[#allocation2 + $0x1] ss:$0 sm:$0xff]  ;;  %v18518_v36 = vsel %vm1148_vm6, 0.0, %v3636_v38  ;;  %v23141_v3 = vmov %v23136_v14  ;;  %14448 = vmatmul.mubr.msk.bf16.gmra.mxu0 %vm2131_vm3, %v3532_v57 }
 0x32a   :  { %v3432_v53 = vadd.f32 %v17412_v31, %v3367_v41  ;;  %23137 = vst [vmem:[#allocation124_spill] sm:$0xff] %v18509_v34  ;;  %v23138_v41 = vld [vmem:[#allocation107_spill] sm:$0xff]  ;;  %23140 = vst [vmem:[#allocation126_spill] sm:$0xff] %v18518_v36  ;;  %v3269_v56 = vpop.f32.mrf.mxu1  ;;  %v23142_v55 = vrot.slane %v18142_v28, 1  ;;  %v23144_v18 = vrot.slane %v18492_v45, 1  ;;  %v23150_v60 = vrot.slane %v18120_v12, 7 }
 0x32b   :  { %v3430_v31 = vadd.f32 %v18512_v33, %v3365_v54  ;;  %v3370_v17 = vadd.f32 %v14389_v16, %v23138_v41  ;;  %v23145_v41 = vld [vmem:[#allocation128_spill] sm:$0xff]  ;;  %v23196_v50 = vrot.slane %v23195_v6, 1 }
 0x32c   :  { %v18520_v24 = vmax.f32 %v3432_v53, 0.0  ;;  %v18532_v54 = vsel %vm1821_vm7, %v23142_v55, %v23141_v3  ;;  %v18538_v53 = vsel %vm1821_vm7, %v3812_v48, %v23144_v18  ;;  %v3368_v14 = vadd.f32 %v3269_v56, %v23145_v41  ;;  %v14390_v30 = vpop.f32.mrf.mxu1 }
 0x32d   :  { %23143 = vst [vmem:[#allocation107_spill] sm:$0xff] %v18532_v54  ;;  %v18540_v38 = vmax.f32 %v3430_v31, 0.0  ;;  %v3435_v16 = vadd.f32 %v18512_v33, %v3370_v17  ;;  %v23146_v56 = vrot.slane %v18470_v49, 7  ;;  %v23148_v31 = vld [vmem:[#allocation108_spill] sm:$0xff]  ;;  %v23153_v54 = vrot.slane %v18277_v61, 7 }
 0x32e   :  { %v3534_v28 = vpack.c.bf16 %v18520_v24, %v18470_v49  ;;  %v22709_v55 = vrot.slane %v18520_v24, 7  ;;  %v3816_v3 = vrot.slane %v18520_v24, 1  ;;  %v3433_v57 = vadd.f32 %v18512_v33, %v3368_v14 }
 0x32f   :  { %v18553_v17 = vmax.f32 %v3435_v16, 0.0  ;;  %v3371_v18 = vadd.f32 %v14390_v30, %v23148_v31  ;;  %v3272_v16 = vpop.f32.mrf.mxu1  ;;  %v3533_v14 = vpack.c.bf16 %v18540_v38, %v18492_v45  ;;  %v23151_v30 = vrot.slane %v18195_v29, 7 }
 0x330   :  { %v18562_v41 = vsel %vm1468_vm5, %v23146_v56, %v22709_v55  ;;  %v18568_v48 = vsel %vm1821_vm7, %v23147_v7, %v3816_v3  ;;  %v18575_v9 = vmax.f32 %v3433_v57, 0.0  ;;  %v23149_v56 = vld [vmem:[#allocation130_spill] sm:$0xff]  ;;  %v23154_v57 = vrot.slane %v18230_v43, 7 }
 0x331   :  { %v3369_v55 = vadd.f32 %v3272_v16, %v23149_v56  ;;  %v3436_v36 = vadd.f32 %v18512_v33, %v3371_v18  ;;  %14451 = vmatprep.mubr.msk.bf16.mxu0 %vm2131_vm3, %v3533_v14  ;;  %v14393_v7 = vpop.f32.mrf.mxu1  ;;  %v18586_v31 = vsel %vm1468_vm5, %v23151_v30, %v23150_v60  ;;  %v23157_v14 = vrot.slane %v18169_v46, 7  ;;  %v23159_v30 = vld [vmem:[#allocation109_spill] sm:$0xff] }
 0x332   :  { %23152 = vst [vmem:[#allocation76_spill] sm:$0xff] %v18586_v31  ;;  %v18594_v16 = vsel %vm1468_vm5, %v23154_v57, %v23153_v54  ;;  %v23156_v18 = vmov %v23154_v57  ;;  %v22714_v60 = vrot.slane %v18575_v9, 1  ;;  %v3374_v34 = vadd.f32 %v14393_v7, %v23159_v30  ;;  %14452 = vmatmul.mubr.msk.bf16.gmra.mxu0 %vm2131_vm3, %v3534_v28  ;;  %v23160_v7 = vld [vmem:[#allocation134_spill] sm:$0xff] }
 0x333   :  { %23155 = vst [vmem:[#allocation128_spill] sm:$0xff] %v18594_v16  ;;  %v18602_v12 = vsel %vm1468_vm5, %v23157_v14, %v23156_v18  ;;  %v3434_v56 = vadd.f32 %v18512_v33, %v3369_v55  ;;  %v18608_v59 = vmax.f32 %v3436_v36, 0.0  ;;  %v3285_v54 = vpop.f32.mrf.mxu1  ;;  %v23168_v28 = vrot.slane %v18208_v35, 7 }
 0x334   :  { %23158 = vst [vmem:[#allocation108_spill] sm:$0xff] %v18602_v12  ;;  %v18620_v14 = vsel %vm1821_vm7, %v3816_v3, %v22714_v60  ;;  %v3439_v36 = vadd.f32 %v18512_v33, %v3374_v34  ;;  %v3372_v30 = vadd.f32 %v3285_v54, %v23160_v7  ;;  %v23162_v3 = vrot.slane %v18277_v61, 1 }
 0x335   :  { %v18622_v55 = vmax.f32 %v3434_v56, 0.0  ;;  %v3536_v46 = vpack.c.bf16 %v18608_v59, %v18553_v17  ;;  %v22719_v57 = vrot.slane %v18608_v59, 7  ;;  %v3820_v18 = vrot.slane %v18608_v59, 1  ;;  %v14394_v29 = vpop.f32.mrf.mxu1 }
 0x336   :  { %v18637_v56 = vsel %vm1821_vm7, %v23162_v3, %v23161_v25  ;;  %v18641_v54 = vmax.f32 %v3439_v36, 0.0  ;;  %v3437_v7 = vadd.f32 %v18512_v33, %v3372_v30  ;;  %v23163_v60 = vrot.slane %v18553_v17, 7  ;;  %v23165_v3 = vld [vmem:[#allocation111_spill] sm:$0xff] }
 0x337   :  { %v23164_v12 = vrot.slane %v18553_v17, 1  ;;  %v3375_v34 = vadd.f32 %v14394_v29, %v23165_v3  ;;  %v3288_v36 = vpop.f32.mrf.mxu1  ;;  %v3535_v30 = vpack.c.bf16 %v18622_v55, %v18575_v9  ;;  %v23167_v29 = vrot.slane %v18230_v43, 1 }
 0x338   :  { %v18650_v42 = vsel %vm1468_vm5, %v23163_v60, %v22719_v57  ;;  %v18663_v31 = vmax.f32 %v3437_v7, 0.0  ;;  %v3373_v60 = vadd.f32 %v3288_v36, %v17581_v39  ;;  %v23169_v7 = vrot.slane %v18277_v61, 7 }
 0x339   :  { %v18656_v25 = vsel %vm1821_vm7, %v23164_v12, %v3820_v18  ;;  %v3440_v57 = vadd.f32 %v18512_v33, %v3375_v34  ;;  %14455 = vmatprep.mubr.msk.bf16.mxu0 %vm2131_vm3, %v3535_v30  ;;  %v14397_v12 = vpop.f32.mrf.mxu1  ;;  %v18674_v3 = vsel %vm1821_vm7, %v23167_v29, %v23166_v2  ;;  %v23170_v34 = vrot.slane %v18365_v0, 7 }
 0x33a   :  { %v18682_v39 = vsel %vm1468_vm5, %v23169_v7, %v23168_v28  ;;  %v23171_v36 = vrot.slane %v18318_v11, 7  ;;  %v22721_v2 = vrot.slane %v18663_v31, 1  ;;  %v3438_v35 = vadd.f32 %v18512_v33, %v3373_v60  ;;  %14456 = vmatmul.mubr.msk.bf16.gmra.mxu0 %vm2131_vm3, %v3536_v46 }
 0x33b   :  { %v3378_v61 = vadd.f32 %v14397_v12, %v17604_v51  ;;  %v18696_v29 = vmax.f32 %v3440_v57, 0.0  ;;  %v3301_v28 = vpop.f32.mrf.mxu1 }
 0x33c   :  { %v18690_v30 = vsel %vm1468_vm5, %v23171_v36, %v23170_v34  ;;  %v23173_v34 = vmov %v23171_v36  ;;  %v23174_v36 = vrot.slane %v18257_v1, 7  ;;  %v18714_v51 = vsel %vm1821_vm7, %v3820_v18, %v22721_v2 }
 0x33d   :  { %23172 = vst [vmem:[#allocation130_spill] sm:$0xff] %v18690_v30  ;;  %v18716_v57 = vmax.f32 %v3438_v35, 0.0  ;;  %v3443_v60 = vadd.f32 %v18512_v33, %v3378_v61  ;;  %v3376_v12 = vadd.f32 %v3301_v28, %v17625_v5  ;;  %v3538_v1 = vpack.c.bf16 %v18696_v29, %v18641_v54  ;;  %v14398_v7 = vpop.f32.mrf.mxu1 }
 0x33e   :  { %v18708_v43 = vsel %vm1468_vm5, %v23174_v36, %v23173_v34  ;;  %v22724_v34 = vrot.slane %v18696_v29, 7  ;;  %v3824_v36 = vrot.slane %v18696_v29, 1  ;;  %v23176_v5 = vrot.slane %v18641_v54, 7 }
 0x33f   :  { %23175 = vst [vmem:[#allocation109_spill] sm:$0xff] %v18708_v43  ;;  %v18729_v61 = vmax.f32 %v3443_v60, 0.0  ;;  %v3441_v46 = vadd.f32 %v18512_v33, %v3376_v12  ;;  %v23177_v2 = vrot.slane %v18641_v54, 1  ;;  %v3379_v35 = vadd.f32 %v14398_v7, %v17649_v52  ;;  %v3304_v60 = vpop.f32.mrf.mxu1 }
 0x340   :  { %v18738_v28 = vsel %vm1468_vm5, %v23176_v5, %v22724_v34  ;;  %v3537_v12 = vpack.c.bf16 %v18716_v57, %v18663_v31  ;;  %v3377_v5 = vadd.f32 %v3304_v60, %v17667_v15  ;;  %v23178_v52 = vrot.slane %v18296_v19, 1 }
 0x341   :  { %v18744_v18 = vsel %vm1821_vm7, %v23177_v2, %v3824_v36  ;;  %v18751_v30 = vmax.f32 %v3441_v46, 0.0  ;;  %v3444_v34 = vadd.f32 %v18512_v33, %v3379_v35  ;;  %v23179_v7 = vrot.slane %v18365_v0, 1 }
 0x342   :  { %14459 = vmatprep.mubr.msk.bf16.mxu0 %vm2131_vm3, %v3537_v12  ;;  %v23181_v43 = vrot.slane %v18318_v11, 1  ;;  %v3442_v12 = vadd.f32 %v18512_v33, %v3377_v5  ;;  %v23192_v2 = vrot.slane %v18453_v4, 1 }
 0x343   :  { %v18764_v16 = vsel %vm1821_vm7, %v23179_v7, %v23178_v52  ;;  %v23180_v46 = vmov %v23179_v7  ;;  %v22726_v60 = vrot.slane %v18751_v30, 1  ;;  %v3508_v26 = vmax.f32 %v3444_v34, 0.0  ;;  %14460 = vmatmul.mubr.msk.bf16.gmra.mxu0 %vm2131_vm3, %v3538_v1 }
 0x344   :  { %v18772_v15 = vsel %vm1821_vm7, %v23181_v43, %v23180_v46  ;;  %v23183_v52 = vrot.slane %v18296_v19, 7  ;;  %v23184_v7 = vrot.slane %v18365_v0, 7  ;;  %v23185_v43 = vrot.slane %v18453_v4, 7 }
 0x345   :  { %23182 = vst [vmem:[#allocation134_spill] sm:$0xff] %v18772_v15  ;;  %v23186_v46 = vrot.slane %v18400_v8, 7  ;;  %v23189_v34 = vrot.slane %v18345_v20, 7  ;;  %v18807_v0 = vsel %vm1821_vm7, %v3824_v36, %v22726_v60  ;;  %v18809_v5 = vmax.f32 %v3442_v12, 0.0 }
 0x346   :  { %v18785_v11 = vsel %vm1468_vm5, %v23184_v7, %v23183_v52  ;;  %v3540_v7 = vpack.c.bf16 %v3508_v26, %v18729_v61  ;;  %v3601_v36 = vrot.slane %v18751_v30, 7  ;;  %v23194_v52 = vrot.slane %v18729_v61, 1 }
 0x347   :  { %v18793_v35 = vsel %vm1468_vm5, %v23186_v46, %v23185_v43  ;;  %v23188_v33 = vmov %v23186_v46  ;;  %v3604_v43 = vrot.slane %v3508_v26, 7  ;;  %v3828_v46 = vrot.slane %v3508_v26, 1 }
 0x348   :  { %23187 = vst [vmem:[#allocation111_spill] sm:$0xff] %v18793_v35  ;;  %v18801_v19 = vsel %vm1468_vm5, %v23189_v34, %v23188_v33  ;;  %v3602_v12 = vrot.slane %v18809_v5, 7  ;;  %v3539_v1 = vpack.c.bf16 %v18809_v5, %v18751_v30  ;;  %v23191_v34 = vrot.slane %v18378_v21, 1 }
 0x349   :  { %23190 = vst [vmem:[#allocation174_spill] sm:$0xff] %v18801_v19  ;;  %v23193_v26 = vrot.slane %v18729_v61, 7  ;;  %v18841_v60 = vsel %vm1821_vm7, %v23194_v52, %v3828_v46  ;;  %v3892_v19 = vsel %vm1821_vm7, %v3828_v46, %v23196_v50  ;;  %v23198_v35 = vrot.slane %v18453_v4, 1 }
 0x34a   :  { %v18829_v20 = vsel %vm1821_vm7, %v23192_v2, %v23191_v34  ;;  %v23197_v2 = vrot.slane %v23195_v6, 7  ;;  %14463 = vmatprep.mubr.msk.bf16.mxu0 %vm2131_vm3, %v3539_v1  ;;  %v23199_v52 = vrot.slane %v18400_v8, 1  ;;  %v23200_v50 = vrot.slane %v18378_v21, 7  ;;  %v23204_v8 = vld [vmem:[#allocation113_spill] sm:$0xff] }
 0x34b   :  { %v18835_v33 = vsel %vm1468_vm5, %v23193_v26, %v3604_v43  ;;  %v23201_v6 = vrot.slane %v18453_v4, 7  ;;  %v23202_v46 = vrot.slane %v18540_v38, 7  ;;  %v23203_v1 = vrot.slane %v18492_v45, 7  ;;  %14464 = vmatmul.mubr.msk.bf16.gmra.mxu0 %vm2131_vm3, %v3540_v7 }
 0x34c   :  { %v3668_v34 = vsel %vm1468_vm5, %v3604_v43, %v23197_v2  ;;  %v18860_v15 = vsel %vm1821_vm7, %v23199_v52, %v23198_v35  ;;  %v23206_v52 = vrot.slane %v18433_v37, 7  ;;  %v23210_v35 = vrot.slane %v18492_v45, 1 }
 0x34d   :  { %v3669_v26 = vsel %vm988_vm4, 0.0, %v3668_v34  ;;  %v18868_v43 = vsel %vm1468_vm5, %v23201_v6, %v23200_v50  ;;  %v18876_v2 = vsel %vm1468_vm5, %v23203_v1, %v23202_v46  ;;  %v23205_v4 = vmov %v23203_v1 }
 0x34e   :  { %v3733_v34 = vpack.c.bf16 %v23204_v8, %v3669_v26  ;;  %v18889_v50 = vsel %vm1468_vm5, %v23206_v52, %v23205_v4  ;;  %v23207_v46 = vrot.slane %v18470_v49, 1  ;;  %v23208_v1 = vrot.slane %v18540_v38, 1 }
 0x34f   :  { %v23211_v26 = vrot.slane %v18470_v49, 7  ;;  %v23212_v6 = vrot.slane %v18540_v38, 7  ;;  %v23214_v45 = vrot.slane %v18575_v9, 7  ;;  %v3826_v38 = vrot.slane %v18809_v5, 1 }
 0x350   :  { %v18901_v8 = vsel %vm1821_vm7, %v23208_v1, %v23207_v46  ;;  %v23209_v37 = vmov %v23208_v1  ;;  %14471 = vmatprep.mubr.msk.bf16.mxu1 %vm2131_vm3, %v3733_v34  ;;  %v23213_v1 = vrot.slane %v18622_v55, 7  ;;  %v23223_v5 = vpack.c.bf16 %v17682_v40, %v17729_v23 }
 0x351   :  { %v18909_v4 = vsel %vm1821_vm7, %v23210_v35, %v23209_v37  ;;  %v18920_v46 = vsel %vm1468_vm5, %v23212_v6, %v23211_v26  ;;  %v23215_v34 = vmov %v23214_v45  ;;  %v23216_v37 = vrot.slane %v18520_v24, 7  ;;  %v23217_v6 = vld [vmem:[#allocation132_spill] sm:$0xff] }
 0x352   :  { %v18928_v35 = vsel %vm1468_vm5, %v23214_v45, %v23213_v1  ;;  %v23218_v26 = vld [vmem:[#allocation136_spill] sm:$0xff]  ;;  %v3758_v1 = vpack.c.bf16 %v18562_v41, %v18920_v46  ;;  %v23224_v7 = vrot.slane %v18553_v17, 1  ;;  %v23227_v24 = vrot.slane %v18575_v9, 1 }
 0x353   :  { %v18936_v49 = vsel %vm1468_vm5, %v23216_v37, %v23215_v34  ;;  %v23219_v52 = vpack.c.bf16 %v23217_v6, %v23218_v26  ;;  %v23220_v34 = vld [vmem:[#allocation140_spill] sm:$0xff]  ;;  %v23221_v37 = vld [vmem:[#allocation117_spill] sm:$0xff]  ;;  %v23228_v40 = vrot.slane %v18553_v17, 7  ;;  %v23229_v23 = vrot.slane %v18622_v55, 7 }
 0x354   :  { %v3759_v45 = vpack.c.bf16 %v18928_v35, %v18936_v49  ;;  %v23222_v21 = vpack.c.bf16 %v23220_v34, %v23221_v37  ;;  %v23232_v17 = vrot.slane %v18663_v31, 7  ;;  %v23235_v37 = vrot.slane %v18641_v54, 1 }
 0x355   :  { %14472 = vmatmul.mubr.msk.bf16.vlgmr.msra.gmra.mxu1 %vm2131_vm3, %v23219_v52  ;;  %v23225_v52 = vrot.slane %v18622_v55, 1  ;;  %v18980_v34 = vsel %vm1468_vm5, %v23229_v23, %v23228_v40  ;;  %v23239_v23 = vrot.slane %v18641_v54, 7  ;;  %v23240_v40 = vrot.slane %v18716_v57, 7  ;;  %v23254_v54 = vld [vmem:[#allocation115_spill] sm:$0xff] }
 0x356   :  { %14539 = vmatprep.mubr.msk.bf16.mxu0 %vm2131_vm3, %v23222_v21  ;;  %14475 = vmatprep.mubr.msk.bf16.mxu1 %vm2131_vm3, %v23223_v5  ;;  %v18984_v5 = vsel %vm1307_vm9, 0.0, %v3892_v19  ;;  %v23361_v41 = vpack.c.bf16 %v18620_v14, %v18568_v48 }
 0x357   :  { %v18964_v6 = vsel %vm1821_vm7, %v23225_v52, %v23224_v7  ;;  %v23226_v26 = vmov %v23225_v52  ;;  %v23233_v52 = vmov %v23232_v17  ;;  %v23236_v7 = vrot.slane %v18716_v57, 1 }
 0x358   :  { %v18972_v21 = vsel %vm1821_vm7, %v23227_v24, %v23226_v26  ;;  %v23231_v24 = vrot.slane %v18716_v57, 7  ;;  %v23234_v26 = vrot.slane %v18608_v59, 7  ;;  %v19034_v9 = vsel %vm1468_vm5, %v23240_v40, %v23239_v23 }
 0x359   :  { %v23237_v59 = vmov %v23236_v7  ;;  %v23242_v40 = vrot.slane %v18729_v61, 1  ;;  %v23253_v57 = vpack.c.bf16 %v17811_v13, %v17817_v32  ;;  %v23265_v13 = vld [vmem:[#allocation123_spill] sm:$0xff]  ;;  %v23367_v35 = vpack.c.bf16 %v18738_v28, %v19034_v9 }
 0x35a   :  { %v18996_v55 = vsel %vm1468_vm5, %v23232_v17, %v23231_v24  ;;  %v19004_v19 = vsel %vm1468_vm5, %v23234_v26, %v23233_v52  ;;  %v19016_v24 = vsel %vm1821_vm7, %v23236_v7, %v23235_v37  ;;  %v23238_v17 = vrot.slane %v18663_v31, 1  ;;  %v23246_v26 = vld [vmem:[#allocation110_spill] sm:$0xff] }
 0x35b   :  { %v19038_v7 = vsel %vm1468_vm5, %v3601_v36, %v3602_v12  ;;  %v23241_v31 = vrot.slane %v18696_v29, 7  ;;  %v19056_v23 = vsel %vm1821_vm7, %v3826_v38, %v23242_v40  ;;  %v23243_v29 = vrot.slane %v18751_v30, 1  ;;  %v23245_v30 = vld [vmem:[#allocation138_spill] sm:$0xff] }
 0x35c   :  { %v19024_v52 = vsel %vm1821_vm7, %v23238_v17, %v23237_v59  ;;  %v23244_v17 = vrot.slane %v18729_v61, 7  ;;  %v23247_v59 = vpack.c.bf16 %v23245_v30, %v23246_v26  ;;  %v23248_v61 = vld [vmem:[#allocation146_spill] sm:$0xff]  ;;  %v23255_v26 = vpack.c.bf16 %v17688_v22, %v23254_v54  ;;  %v23257_v30 = vld [vmem:[#allocation137_spill] sm:$0xff] }
 0x35d   :  { %v19044_v37 = vsel %vm1468_vm5, %v23241_v31, %v3601_v36  ;;  %v19062_v36 = vsel %vm1821_vm7, %v23243_v29, %v3826_v38  ;;  %v23249_v38 = vpack.c.bf16 %v17616_v10, %v23248_v61  ;;  %v23251_v29 = vld [vmem:[#allocation121_spill] sm:$0xff]  ;;  %v23259_v61 = vld [vmem:[#allocation150_spill] sm:$0xff]  ;;  %v23368_v49 = vpack.c.bf16 %v19016_v24, %v19024_v52 }
 0x35e   :  { %v19068_v31 = vsel %vm1468_vm5, %v3602_v12, %v23244_v17  ;;  %14540 = vmatmul.mubr.msk.bf16.vlgmr.msra.gmra.mxu0 %vm2131_vm3, %v23247_v59  ;;  %v23250_v12 = vld [vmem:[#allocation144_spill] sm:$0xff]  ;;  %v23256_v59 = vld [vmem:[#allocation142_spill] sm:$0xff]  ;;  %v23268_v54 = vld [vmem:[#allocation125_spill] sm:$0xff]  ;;  %v23371_v28 = vpack.c.bf16 %v18807_v0, %v18744_v18  ;;  %v23373_v18 = vpack.c.bf16 %v18984_v5, %v18841_v60 }
 0x35f   :  { %v3764_v40 = vpack.c.bf16 %v18835_v33, %v19068_v31  ;;  %14476 = vmatmul.mubr.msk.bf16.gmra.mxu1 %vm2131_vm3, %v23249_v38  ;;  %v23252_v17 = vpack.c.bf16 %v23250_v12, %v23251_v29  ;;  %v23258_v10 = vpack.c.bf16 %v23256_v59, %v23257_v30  ;;  %v23260_v38 = vld [vmem:[#allocation129_spill] sm:$0xff]  ;;  %v23262_v29 = vld [vmem:[#allocation139_spill] sm:$0xff] }
 0x360   :  { %14479 = vmatprep.mubr.msk.bf16.mxu1 %vm2131_vm3, %v23253_v57  ;;  %v23261_v12 = vpack.c.bf16 %v23259_v61, %v23260_v38  ;;  %v23266_v57 = vld [vmem:[#allocation119_spill] sm:$0xff]  ;;  %v23271_v30 = vld [vmem:[#allocation145_spill] sm:$0xff]  ;;  %v23274_v38 = vld [vmem:[#allocation152_spill] sm:$0xff] }
 0x361   :  { %14543 = vmatprep.mubr.msk.bf16.mxu0 %vm2131_vm3, %v23252_v17  ;;  %v23263_v17 = vld [vmem:[#allocation141_spill] sm:$0xff]  ;;  %v23267_v22 = vpack.c.bf16 %v23265_v13, %v23266_v57 }
 0x362   :  { %v23264_v32 = vpack.c.bf16 %v23262_v29, %v23263_v17  ;;  %v23277_v17 = vld [vmem:[#allocation131_spill] sm:$0xff]  ;;  %v23280_v57 = vld [vmem:[#allocation133_spill] sm:$0xff] }
 0x366   :  { %14544 = vmatmul.mubr.msk.bf16.gmra.mxu0 %vm2131_vm3, %v23255_v26  ;;  %v23269_v26 = vld [vmem:[#allocation151_spill] sm:$0xff] }
 0x367   :  { %14480 = vmatmul.mubr.msk.bf16.gmra.mxu1 %vm2131_vm3, %v23258_v10  ;;  %14547 = vmatprep.mubr.msk.bf16.mxu0 %vm2131_vm3, %v23261_v12  ;;  %v23270_v59 = vpack.c.bf16 %v23268_v54, %v23269_v26  ;;  %v23272_v10 = vld [vmem:[#allocation149_spill] sm:$0xff] }
 0x368   :  { %14483 = vmatprep.mubr.msk.bf16.mxu1 %vm2131_vm3, %v23264_v32  ;;  %v23273_v61 = vpack.c.bf16 %v23271_v30, %v23272_v10  ;;  %v23275_v12 = vld [vmem:[#allocation153_spill] sm:$0xff]  ;;  %v23278_v32 = vld [vmem:[#allocation127_spill] sm:$0xff]  ;;  %v23286_v10 = vld [vmem:[#allocation160_spill] sm:$0xff] }
 0x369   :  { %v23276_v29 = vpack.c.bf16 %v23274_v38, %v23275_v12  ;;  %v23279_v13 = vpack.c.bf16 %v23277_v17, %v23278_v32  ;;  %v23283_v26 = vld [vmem:[#allocation157_spill] sm:$0xff]  ;;  %v23289_v12 = vld [vmem:[#allocation143_spill] sm:$0xff] }
 0x36a   :  { %v23292_v32 = vld [vmem:[#allocation147_spill] sm:$0xff] }
 0x36e   :  { %14548 = vmatmul.mubr.msk.bf16.gmra.mxu0 %vm2131_vm3, %v23267_v22  ;;  %v23281_v22 = vld [vmem:[#allocation159_spill] sm:$0xff] }
 0x36f   :  { %14484 = vmatmul.mubr.msk.bf16.gmra.mxu1 %vm2131_vm3, %v23270_v59  ;;  %14551 = vmatprep.mubr.msk.bf16.mxu0 %vm2131_vm3, %v23273_v61  ;;  %v23282_v54 = vpack.c.bf16 %v23280_v57, %v23281_v22  ;;  %v23284_v59 = vld [vmem:[#allocation158_spill] sm:$0xff]  ;;  %v23287_v61 = vld [vmem:[#allocation100_spill] sm:$0xff] }
 0x370   :  { %14487 = vmatprep.mubr.msk.bf16.mxu1 %vm2131_vm3, %v23276_v29  ;;  %v23285_v30 = vpack.c.bf16 %v23283_v26, %v23284_v59  ;;  %v23288_v38 = vpack.c.bf16 %v23286_v10, %v23287_v61  ;;  %v23290_v29 = vld [vmem:[#allocation135_spill] sm:$0xff]  ;;  %v23295_v22 = vld [vmem:[#allocation114_spill] sm:$0xff] }
 0x371   :  { %v23291_v17 = vpack.c.bf16 %v23289_v12, %v23290_v29  ;;  %v23298_v59 = vld [vmem:[#allocation102_spill] sm:$0xff]  ;;  %v23304_v29 = vld [vmem:[#allocation155_spill] sm:$0xff] }
 0x372   :  { %v23301_v61 = vld [vmem:[#allocation154_spill] sm:$0xff] }
 0x376   :  { %14552 = vmatmul.mubr.msk.bf16.gmra.mxu0 %vm2131_vm3, %v23279_v13  ;;  %v23293_v13 = vld [vmem:[#allocation163_spill] sm:$0xff] }
 0x377   :  { %14488 = vmatmul.mubr.msk.bf16.gmra.mxu1 %vm2131_vm3, %v23282_v54  ;;  %14555 = vmatprep.mubr.msk.bf16.mxu0 %vm2131_vm3, %v23285_v30  ;;  %v23294_v57 = vpack.c.bf16 %v23292_v32, %v23293_v13  ;;  %v23296_v54 = vld [vmem:[#allocation101_spill] sm:$0xff]  ;;  %v23307_v13 = vld [vmem:[#allocation166_spill] sm:$0xff] }
 0x378   :  { %14491 = vmatprep.mubr.msk.bf16.mxu1 %vm2131_vm3, %v23288_v38  ;;  %v23297_v26 = vpack.c.bf16 %v23295_v22, %v23296_v54  ;;  %v23299_v30 = vld [vmem:[#allocation165_spill] sm:$0xff]  ;;  %v23302_v38 = vld [vmem:[#allocation148_spill] sm:$0xff]  ;;  %v23310_v54 = vld [vmem:[#allocation103_spill] sm:$0xff] }
 0x379   :  { %v23300_v10 = vpack.c.bf16 %v23298_v59, %v23299_v30  ;;  %v23303_v12 = vpack.c.bf16 %v23301_v61, %v23302_v38  ;;  %v23313_v30 = vld [vmem:[#allocation161_spill] sm:$0xff]  ;;  %v23316_v38 = vld [vmem:[#allocation112_spill] sm:$0xff] }
 0x37e   :  { %14556 = vmatmul.mubr.msk.bf16.gmra.mxu0 %vm2131_vm3, %v23291_v17  ;;  %v23305_v17 = vld [vmem:[#allocation118_spill] sm:$0xff] }
 0x37f   :  { %14492 = vmatmul.mubr.msk.bf16.gmra.mxu1 %vm2131_vm3, %v23294_v57  ;;  %14559 = vmatprep.mubr.msk.bf16.mxu0 %vm2131_vm3, %v23297_v26  ;;  %v23306_v32 = vpack.c.bf16 %v23304_v29, %v23305_v17  ;;  %v23308_v57 = vld [vmem:[#allocation168_spill] sm:$0xff] }
 0x380   :  { %14495 = vmatprep.mubr.msk.bf16.mxu1 %vm2131_vm3, %v23300_v10  ;;  %v23309_v22 = vpack.c.bf16 %v23307_v13, %v23308_v57  ;;  %v23311_v26 = vld [vmem:[#allocation120_spill] sm:$0xff] }
 0x381   :  { %v23312_v59 = vpack.c.bf16 %v23310_v54, %v23311_v26  ;;  %v23314_v10 = vld [vmem:[#allocation156_spill] sm:$0xff]  ;;  %v23325_v26 = vld [vmem:[#allocation105_spill] sm:$0xff] }
 0x382   :  { %v23315_v61 = vpack.c.bf16 %v23313_v30, %v23314_v10  ;;  %v23319_v17 = vld [vmem:[#allocation104_spill] sm:$0xff] }
 0x383   :  { %v23322_v57 = vld [vmem:[#allocation172_spill] sm:$0xff] }
 0x384   :  { %v23328_v10 = vld [vmem:[#allocation116_spill] sm:$0xff] }
 0x386   :  { %14560 = vmatmul.mubr.msk.bf16.gmra.mxu0 %vm2131_vm3, %v23303_v12  ;;  %v23317_v12 = vld [vmem:[#allocation171_spill] sm:$0xff] }
 0x387   :  { %14496 = vmatmul.mubr.msk.bf16.gmra.mxu1 %vm2131_vm3, %v23306_v32  ;;  %14563 = vmatprep.mubr.msk.bf16.mxu0 %vm2131_vm3, %v23309_v22  ;;  %v23318_v29 = vpack.c.bf16 %v23316_v38, %v23317_v12  ;;  %v23320_v32 = vld [vmem:[#allocation122_spill] sm:$0xff]  ;;  %v23331_v12 = vld [vmem:[#allocation124_spill] sm:$0xff] }
 0x388   :  { %14499 = vmatprep.mubr.msk.bf16.mxu1 %vm2131_vm3, %v23312_v59  ;;  %v23321_v13 = vpack.c.bf16 %v23319_v17, %v23320_v32  ;;  %v23323_v22 = vld [vmem:[#allocation126_spill] sm:$0xff]  ;;  %v23334_v32 = vld [vmem:[#allocation128_spill] sm:$0xff] }
 0x389   :  { %v23324_v54 = vpack.c.bf16 %v23322_v57, %v23323_v22  ;;  %v23326_v59 = vld [vmem:[#allocation162_spill] sm:$0xff] }
 0x38a   :  { %v23327_v30 = vpack.c.bf16 %v23325_v26, %v23326_v59  ;;  %v23338_v26 = vld [vmem:[#allocation164_spill] sm:$0xff] }
 0x38d   :  { %v19204_v22 = vpop.f32.mrf.mxu0 }
 0x38e   :  { %14564 = vmatmul.mubr.msk.bf16.gmra.mxu0 %vm2131_vm3, %v23315_v61  ;;  %v23329_v61 = vld [vmem:[#allocation76_spill] sm:$0xff] }
 0x38f   :  { %14500 = vmatmul.mubr.msk.bf16.gmra.mxu1 %vm2131_vm3, %v23318_v29  ;;  %14567 = vmatprep.mubr.msk.bf16.mxu0 %vm2131_vm3, %v23321_v13  ;;  %v23330_v38 = vpack.c.bf16 %v23328_v10, %v23329_v61  ;;  %v23332_v29 = vld [vmem:[#allocation107_spill] sm:$0xff]  ;;  %v23335_v13 = vld [vmem:[#allocation108_spill] sm:$0xff]  ;;  %v23341_v10 = vpack.c.bf16 %v18637_v56, %v18674_v3  ;;  %v23342_v61 = vld [vmem:[#allocation130_spill] sm:$0xff]  ;;  %v23347_v56 = vpack.c.bf16 %v18387_v47, %v18785_v11 }
 0x390   :  { %14503 = vmatprep.mubr.msk.bf16.mxu1 %vm2131_vm3, %v23324_v54  ;;  %v23333_v17 = vpack.c.bf16 %v23331_v12, %v23332_v29  ;;  %v23336_v57 = vpack.c.bf16 %v23334_v32, %v23335_v13  ;;  %v23337_v54 = vld [vmem:[#allocation167_spill] sm:$0xff]  ;;  %v19222_v29 = vpop.f32.mrf.mxu0  ;;  %v23348_v3 = vld [vmem:[#allocation134_spill] sm:$0xff]  ;;  %v23353_v47 = vld [vmem:[#allocation173_spill] sm:$0xff] }
 0x391   :  { %v23339_v59 = vpack.c.bf16 %v23337_v54, %v23338_v26  ;;  %v23350_v54 = vld [vmem:[#allocation111_spill] sm:$0xff]  ;;  %v23351_v26 = vld [vmem:[#allocation174_spill] sm:$0xff] }
 0x392   :  { %v23354_v11 = vld [vmem:[#allocation170_spill] sm:$0xff] }
 0x396   :  { %14568 = vmatmul.mubr.msk.bf16.gmra.mxu0 %vm2131_vm3, %v23327_v30  ;;  %v23340_v30 = vpack.c.bf16 %v18305_v27, %v18682_v39  ;;  %v23345_v27 = vld [vmem:[#allocation169_spill] sm:$0xff] }
 0x397   :  { %14504 = vmatmul.mubr.msk.bf16.gmra.mxu1 %vm2131_vm3, %v23330_v38  ;;  %14571 = vmatprep.mubr.msk.bf16.mxu0 %vm2131_vm3, %v23333_v17  ;;  %v23343_v38 = vld [vmem:[#allocation109_spill] sm:$0xff]  ;;  %v19224_v17 = vpop.f32.mrf.mxu0  ;;  %v23346_v39 = vpack.c.bf16 %v18363_v58, %v23345_v27  ;;  %v23358_v27 = vpack.c.bf16 %v18876_v2, %v18889_v50  ;;  %v23362_v2 = vpack.c.bf16 %v18650_v42, %v18980_v34 }
 0x398   :  { %14507 = vmatprep.mubr.msk.bf16.mxu1 %vm2131_vm3, %v23336_v57  ;;  %v23344_v12 = vpack.c.bf16 %v23342_v61, %v23343_v38  ;;  %v23349_v57 = vpack.c.bf16 %v18764_v16, %v23348_v3  ;;  %v23355_v38 = vpack.c.bf16 %v23353_v47, %v23354_v11  ;;  %v23356_v16 = vpack.c.bf16 %v18479_v63, %v18868_v43 }
 0x399   :  { %v19226_v32 = vpop.f32.mrf.mxu0  ;;  %v23359_v63 = vpack.c.bf16 %v18538_v53, %v18485_v44  ;;  %v23363_v50 = vpack.c.bf16 %v18964_v6, %v18972_v21  ;;  %v23366_v42 = vpack.c.bf16 %v18714_v51, %v18656_v25  ;;  %v23372_v21 = vpack.c.bf16 %v19056_v23, %v19062_v36 }
 0x39b   :  { %v19228_v13 = vpop.f32.mrf.mxu0 }
 0x39e   :  { %14572 = vmatmul.mubr.msk.bf16.gmra.mxu0 %vm2131_vm3, %v23339_v59  ;;  %v23352_v59 = vpack.c.bf16 %v23350_v54, %v23351_v26 }
 0x39f   :  { %14508 = vmatmul.mubr.msk.bf16.gmra.mxu1 %vm2131_vm3, %v23340_v30  ;;  %14575 = vmatprep.mubr.msk.bf16.mxu0 %vm2131_vm3, %v23341_v10  ;;  %v19246_v30 = vpop.f32.mrf.mxu0 }
 0x3a0   :  { %14511 = vmatprep.mubr.msk.bf16.mxu1 %vm2131_vm3, %v23344_v12  ;;  %v23357_v12 = vpack.c.bf16 %v18829_v20, %v18860_v15  ;;  %v23360_v15 = vpack.c.bf16 %v18901_v8, %v18909_v4  ;;  %v23364_v8 = vpack.c.bf16 %v18996_v55, %v19004_v19 }
 0x3a1   :  { %v19248_v58 = vpop.f32.mrf.mxu0 }
 0x3a3   :  { %v19250_v10 = vpop.f32.mrf.mxu0 }
 0x3a5   :  { %v19252_v61 = vpop.f32.mrf.mxu0 }
 0x3a6   :  { %14576 = vmatmul.mubr.msk.bf16.gmra.mxu0 %vm2131_vm3, %v23346_v39 }
 0x3a7   :  { %14512 = vmatmul.mubr.msk.bf16.gmra.mxu1 %vm2131_vm3, %v23347_v56  ;;  %14579 = vmatprep.mubr.msk.bf16.mxu0 %vm2131_vm3, %v23349_v57  ;;  %v19270_v39 = vpop.f32.mrf.mxu0 }
 0x3a8   :  { %14515 = vmatprep.mubr.msk.bf16.mxu1 %vm2131_vm3, %v23352_v59 }
 0x3a9   :  { %v19272_v56 = vpop.f32.mrf.mxu0 }
 0x3ab   :  { %v19274_v3 = vpop.f32.mrf.mxu0 }
 0x3ad   :  { %v19276_v57 = vpop.f32.mrf.mxu0 }
 0x3ae   :  { %14580 = vmatmul.mubr.msk.bf16.gmra.mxu0 %vm2131_vm3, %v23355_v38 }
 0x3af   :  { %14516 = vmatmul.mubr.msk.bf16.gmra.mxu1 %vm2131_vm3, %v23356_v16  ;;  %14583 = vmatprep.mubr.msk.bf16.mxu0 %vm2131_vm3, %v23357_v12  ;;  %v19294_v20 = vpop.f32.mrf.mxu0 }
 0x3b0   :  { %14519 = vmatprep.mubr.msk.bf16.mxu1 %vm2131_vm3, %v23358_v27 }
 0x3b1   :  { %v19296_v44 = vpop.f32.mrf.mxu0 }
 0x3b3   :  { %v19298_v53 = vpop.f32.mrf.mxu0 }
 0x3b5   :  { %v19300_v43 = vpop.f32.mrf.mxu0 }
 0x3b6   :  { %14584 = vmatmul.mubr.msk.bf16.gmra.mxu0 %vm2131_vm3, %v23359_v63 }
 0x3b7   :  { %14520 = vmatmul.mubr.msk.bf16.gmra.mxu1 %vm2131_vm3, %v3758_v1  ;;  %14587 = vmatprep.mubr.msk.bf16.mxu0 %vm2131_vm3, %v23360_v15  ;;  %v19318_v4 = vpop.f32.mrf.mxu0  ;;  %v23369_v1 = vpack.c.bf16 %v19038_v7, %v19044_v37 }
 0x3b8   :  { %14523 = vmatprep.mubr.msk.bf16.mxu1 %vm2131_vm3, %v3759_v45 }
 0x3b9   :  { %v19320_v48 = vpop.f32.mrf.mxu0 }
 0x3bb   :  { %v19322_v14 = vpop.f32.mrf.mxu0 }
 0x3bc   :  { %23365 = vst [vmem:[#allocation106_spill] sm:$0xff] %v19322_v14 }
 0x3bd   :  { %v19324_v46 = vpop.f32.mrf.mxu0 }
 0x3be   :  { %14588 = vmatmul.mubr.msk.bf16.gmra.mxu0 %vm2131_vm3, %v23361_v41 }
 0x3bf   :  { %14524 = vmatmul.mubr.msk.bf16.gmra.mxu1 %vm2131_vm3, %v23362_v2  ;;  %14591 = vmatprep.mubr.msk.bf16.mxu0 %vm2131_vm3, %v23363_v50  ;;  %v19342_v45 = vpop.f32.mrf.mxu0  ;;  %v15275_v50 = vld [vmem:[#allocation8 + $0x4] ss:$8 sps:$4 sm:$0xff]  }
 0x3c0   :  { %14527 = vmatprep.mubr.msk.bf16.mxu1 %vm2131_vm3, %v23364_v8 }
 0x3c1   :  { %v19344_v25 = vpop.f32.mrf.mxu0 }
 0x3c3   :  { %v19346_v51 = vpop.f32.mrf.mxu0 }
 0x3c4   :  { %23370 = vst [vmem:[#allocation113_spill] sm:$0xff] %v19346_v51 }
 0x3c5   :  { %v19348_v6 = vpop.f32.mrf.mxu0 }
 0x3c6   :  { %14592 = vmatmul.mubr.msk.bf16.gmra.mxu0 %vm2131_vm3, %v23366_v42 }
 0x3c7   :  { %14528 = vmatmul.mubr.msk.bf16.gmra.mxu1 %vm2131_vm3, %v23367_v35  ;;  %14595 = vmatprep.mubr.msk.bf16.mxu0 %vm2131_vm3, %v23368_v49  ;;  %v19362_v34 = vpop.f32.mrf.mxu0 }
 0x3c8   :  { %14531 = vmatprep.mubr.msk.bf16.mxu1 %vm2131_vm3, %v23369_v1 }
 0x3c9   :  { %v19364_v9 = vpop.f32.mrf.mxu0 }
 0x3cb   :  { %v19366_v55 = vpop.f32.mrf.mxu0 }
 0x3cd   :  { %v19368_v19 = vpop.f32.mrf.mxu0 }
 0x3ce   :  { %14596 = vmatmul.mubr.msk.bf16.gmra.mxu0 %vm2131_vm3, %v23371_v28 }
 0x3cf   :  { %14532 = vmatmul.mubr.msk.bf16.gmra.mxu1 %vm2131_vm3, %v3764_v40  ;;  %14599 = vmatprep.mubr.msk.bf16.mxu0 %vm2131_vm3, %v23372_v21  ;;  %v19374_v0 = vpop.f32.mrf.mxu0 }
 0x3d0   :  { %5627 = vmatprep.mubr.bf16.mxu1 %v15275_v50 }
 0x3d1   :  { %v19376_v33 = vpop.f32.mrf.mxu0 }
 0x3d3   :  { %v19378_v24 = vpop.f32.mrf.mxu0 }
 0x3d5   :  { %v19380_v52 = vpop.f32.mrf.mxu0 }
 0x3d6   :  { %14600 = vmatmul.mubr.msk.bf16.gmra.mxu0 %vm2131_vm3, %v23373_v18  ;;  %23374 = vst [vmem:[#allocation132_spill] sm:$0xff] %v19380_v52 }
 0x3d7   :  { %v19382_v7 = vpop.f32.mrf.mxu0  ;;  %5901 = vmatprep.mubr.bf16.mxu0 %v15275_v50 }
 0x3d8   :  { %23375 = vst [vmem:[#allocation136_spill] sm:$0xff] %v19382_v7 }
 0x3d9   :  { %v19384_v37 = vpop.f32.mrf.mxu0 }
 0x3da   :  { %23376 = vst [vmem:[#allocation140_spill] sm:$0xff] %v19384_v37 }
 0x3db   :  { %v19386_v23 = vpop.f32.mrf.mxu0 }
 0x3dc   :  { %23377 = vst [vmem:[#allocation117_spill] sm:$0xff] %v19386_v23 }
 0x3dd   :  { %v19388_v36 = vpop.f32.mrf.mxu0 }
 0x3de   :  { %23378 = vst [vmem:[#allocation99_spill] sm:$0xff] %v19388_v36 }
 0x3df   :  { %v19390_v31 = vpop.f32.mrf.mxu0 }
 0x3e0   :  { %23379 = vst [vmem:[#allocation138_spill] sm:$0xff] %v19390_v31 }
 0x3e1   :  { %v19392_v60 = vpop.f32.mrf.mxu0 }
 0x3e2   :  { %23380 = vst [vmem:[#allocation110_spill] sm:$0xff] %v19392_v60 }
 0x3e3   :  { %v19394_v5 = vpop.f32.mrf.mxu0 }
 0x3e4   :  { %23381 = vst [vmem:[#allocation146_spill] sm:$0xff] %v19394_v5 }
 0x3e5   :  { %v19396_v40 = vpop.f32.mrf.mxu0 }
 0x3e6   :  { %23382 = vst [vmem:[#allocation144_spill] sm:$0xff] %v19396_v40 }
 0x3e7   :  { %v19398_v54 = vpop.f32.mrf.mxu0 }
 0x3e8   :  { %23383 = vst [vmem:[#allocation121_spill] sm:$0xff] %v19398_v54 }
 0x3e9   :  { %v19400_v26 = vpop.f32.mrf.mxu0 }
 0x3ea   :  { %23384 = vst [vmem:[#allocation115_spill] sm:$0xff] %v19400_v26 }
 0x3eb   :  { %v19402_v59 = vpop.f32.mrf.mxu0 }
 0x3ec   :  { %23385 = vst [vmem:[#allocation142_spill] sm:$0xff] %v19402_v59 }
 0x3ed   :  { %v19404_v47 = vpop.f32.mrf.mxu0 }
 0x3ee   :  { %23386 = vst [vmem:[#allocation137_spill] sm:$0xff] %v19404_v47 }
 0x3ef   :  { %v19406_v11 = vpop.f32.mrf.mxu0 }
 0x3f0   :  { %23387 = vst [vmem:[#allocation150_spill] sm:$0xff] %v19406_v11 }
 0x3f1   :  { %v19408_v38 = vpop.f32.mrf.mxu0 }
 0x3f2   :  { %23388 = vst [vmem:[#allocation129_spill] sm:$0xff] %v19408_v38 }
 0x3f3   :  { %v19410_v16 = vpop.f32.mrf.mxu0 }
 0x3f4   :  { %23389 = vst [vmem:[#allocation139_spill] sm:$0xff] %v19410_v16 }
 0x3f5   :  { %v19412_v12 = vpop.f32.mrf.mxu0 }
 0x3f6   :  { %23390 = vst [vmem:[#allocation141_spill] sm:$0xff] %v19412_v12 }
 0x3f7   :  { %v19414_v27 = vpop.f32.mrf.mxu0 }
 0x3f8   :  { %23391 = vst [vmem:[#allocation123_spill] sm:$0xff] %v19414_v27 }
 0x3f9   :  { %v19416_v63 = vpop.f32.mrf.mxu0 }
 0x3fa   :  { %23392 = vst [vmem:[#allocation119_spill] sm:$0xff] %v19416_v63 }
 0x3fb   :  { %v19418_v15 = vpop.f32.mrf.mxu0 }
 0x3fc   :  { %23393 = vst [vmem:[#allocation125_spill] sm:$0xff] %v19418_v15 }
 0x3fd   :  { %v19420_v41 = vpop.f32.mrf.mxu0 }
 0x3fe   :  { %23394 = vst [vmem:[#allocation151_spill] sm:$0xff] %v19420_v41 }
 0x3ff   :  { %v19422_v2 = vpop.f32.mrf.mxu0 }
 0x400   :  { %23395 = vst [vmem:[#allocation145_spill] sm:$0xff] %v19422_v2 }
 0x401   :  { %v19424_v8 = vpop.f32.mrf.mxu0 }
 0x402   :  { %23396 = vst [vmem:[#allocation149_spill] sm:$0xff] %v19424_v8 }
 0x403   :  { %v19426_v42 = vpop.f32.mrf.mxu0 }
 0x404   :  { %23397 = vst [vmem:[#allocation152_spill] sm:$0xff] %v19426_v42  ;;  %v19447_v42 = vld [vmem:[#allocation2 + $0x2] ss:$0 sm:$0xff] }
 0x405   :  { %v19428_v35 = vpop.f32.mrf.mxu0 }
 0x406   :  { %23398 = vst [vmem:[#allocation153_spill] sm:$0xff] %v19428_v35 }
 0x407   :  { %v19430_v49 = vpop.f32.mrf.mxu0 }
 0x408   :  { %23399 = vst [vmem:[#allocation131_spill] sm:$0xff] %v19430_v49 }
 0x409   :  { %v19432_v1 = vpop.f32.mrf.mxu0 }
 0x40a   :  { %23400 = vst [vmem:[#allocation127_spill] sm:$0xff] %v19432_v1 }
 0x40b   :  { %v19434_v28 = vpop.f32.mrf.mxu0 }
 0x40c   :  { %23401 = vst [vmem:[#allocation133_spill] sm:$0xff] %v19434_v28 }
 0x40d   :  { %v19436_v21 = vpop.f32.mrf.mxu0 }
 0x40e   :  { %23402 = vst [vmem:[#allocation159_spill] sm:$0xff] %v19436_v21 }
 0x40f   :  { %v19438_v62 = vpop.f32.mrf.mxu0 }
 0x410   :  { %23403 = vst [vmem:[#allocation157_spill] sm:$0xff] %v19438_v62 }
 0x411   :  { %v19440_v27 = vpop.f32.mrf.mxu0 }
 0x412   :  { %23404 = vst [vmem:[#allocation158_spill] sm:$0xff] %v19440_v27 }
 0x413   :  { %v19442_v50 = vpop.f32.mrf.mxu0 }
 0x414   :  { %23405 = vst [vmem:[#allocation160_spill] sm:$0xff] %v19442_v50 }
 0x415   :  { %v14473_v18 = vpop.f32.mrf.mxu1 }
 0x416   :  { %v4546_v12 = vadd.f32 %v14473_v18, %v19204_v22  ;;  %v23408_v18 = vld [vmem:[#allocation35_spill] sm:$0xff] }
 0x417   :  { %v4537_v23 = vpop.f32.mrf.mxu1 }
 0x418   :  { %v4538_v41 = vadd.f32 %v4537_v23, %v19222_v29 }
 0x419   :  { %v14474_v15 = vpop.f32.mrf.mxu1 }
 0x41a   :  { %v4549_v62 = vadd.f32 %v14474_v15, %v19224_v17  ;;  %v23409_v15 = vld [vmem:[#allocation33_spill] sm:$0xff] }
 0x41b   :  { %v19444_v63 = vpop.f32.mrf.mxu1 }
 0x41e   :  { %v14541_v2 = vpop.f32.mrf.mxu0 }
 0x41f   :  { %v14477_v8 = vpop.f32.mrf.mxu1  ;;  %v5196_v49 = vadd.f32 %v14541_v2, %v4546_v12 }
 0x420   :  { %v4939_v28 = vpop.f32.mrf.mxu0  ;;  %v4562_v29 = vadd.f32 %v14477_v8, %v19228_v13 }
 0x421   :  { %v4553_v35 = vpop.f32.mrf.mxu1  ;;  %v5261_v27 = vadd.f32 %v19447_v42, %v5196_v49  ;;  %v19452_v1 = vadd.f32 %v4939_v28, %v4538_v41 }
 0x422   :  { %v14542_v50 = vpop.f32.mrf.mxu0  ;;  %v4554_v17 = vadd.f32 %v4553_v35, %v19246_v30  ;;  %v23412_v35 = vld [vmem:[#allocation39_spill] sm:$0xff] }
 0x423   :  { %23406 = vst [vmem:[#allocation100_spill] sm:$0xff] %v19452_v1  ;;  %v14478_v16 = vpop.f32.mrf.mxu1  ;;  %v5197_v21 = vadd.f32 %v14542_v50, %v4549_v62  ;;  %v5325_v59 = vadd.f32 %v5261_v27, %v23408_v18 }
 0x424   :  { %v19454_v11 = vpop.f32.mrf.mxu0  ;;  %v4565_v5 = vadd.f32 %v14478_v16, %v19248_v58 }
 0x425   :  { %23407 = vst [vmem:[#allocation143_spill] sm:$0xff] %v19454_v11  ;;  %v19456_v22 = vpop.f32.mrf.mxu1  ;;  %v5262_v23 = vadd.f32 %v19447_v42, %v5197_v21  ;;  %v5389_v62 = vmax.f32 %v5325_v59, 0.0 }
 0x426   :  { %v14545_v12 = vpop.f32.mrf.mxu0 }
 0x427   :  { %v14481_v2 = vpop.f32.mrf.mxu1  ;;  %v5326_v41 = vadd.f32 %v5262_v23, %v23409_v15  ;;  %v5200_v49 = vadd.f32 %v14545_v12, %v4562_v29  ;;  %v23413_v15 = vld [vmem:[#allocation38_spill] sm:$0xff] }
 0x428   :  { %v4955_v28 = vpop.f32.mrf.mxu0 }
 0x429   :  { %v4569_v54 = vpop.f32.mrf.mxu1  ;;  %v5390_v50 = vmax.f32 %v5326_v41, 0.0  ;;  %v19463_v38 = vadd.f32 %v4955_v28, %v4554_v17  ;;  %v5265_v27 = vadd.f32 %v19447_v42, %v5200_v49 }
 0x42a   :  { %v14546_v13 = vpop.f32.mrf.mxu0 }
 0x42b   :  { %23410 = vst [vmem:[#allocation135_spill] sm:$0xff] %v19463_v38  ;;  %v14482_v8 = vpop.f32.mrf.mxu1  ;;  %v19467_v21 = vpack.c.bf16 %v5390_v50, %v5389_v62  ;;  %v5201_v18 = vadd.f32 %v14546_v13, %v4565_v5  ;;  %v5329_v23 = vadd.f32 %v5265_v27, %v23412_v35 }
 0x42c   :  { %v4958_v47 = vpop.f32.mrf.mxu0 }
 0x42d   :  { %23411 = vst [vmem:[#allocation147_spill] sm:$0xff] %v19467_v21  ;;  %v4572_v30 = vpop.f32.mrf.mxu1  ;;  %v5266_v29 = vadd.f32 %v19447_v42, %v5201_v18  ;;  %v5393_v58 = vmax.f32 %v5329_v23, 0.0 }
 0x42e   :  { %v14549_v12 = vpop.f32.mrf.mxu0  ;;  %v4573_v52 = vadd.f32 %v4572_v30, %v19274_v3 }
 0x42f   :  { %v14485_v59 = vpop.f32.mrf.mxu1  ;;  %v5330_v17 = vadd.f32 %v5266_v29, %v23413_v15 }
 0x430   :  { %v4971_v41 = vpop.f32.mrf.mxu0  ;;  %v4594_v51 = vadd.f32 %v14485_v59, %v19276_v57  ;;  %v4557_v59 = vadd.f32 %v19456_v22, %v19250_v10  ;;  %v23423_v22 = vld [vmem:[#allocation41_spill] sm:$0xff] }
 0x431   :  { %v4585_v28 = vpop.f32.mrf.mxu1  ;;  %v5394_v16 = vmax.f32 %v5330_v17, 0.0 }
 0x432   :  { %v14550_v49 = vpop.f32.mrf.mxu0  ;;  %v4586_v37 = vadd.f32 %v4585_v28, %v19294_v20 }
 0x433   :  { %v14486_v26 = vpop.f32.mrf.mxu1  ;;  %v19472_v40 = vpack.c.bf16 %v5394_v16, %v5393_v58 }
 0x434   :  { %v4974_v62 = vpop.f32.mrf.mxu0 }
 0x435   :  { %23414 = vst [vmem:[#allocation163_spill] sm:$0xff] %v19472_v40  ;;  %v4588_v5 = vpop.f32.mrf.mxu1 }
 0x436   :  { %v14553_v50 = vpop.f32.mrf.mxu0  ;;  %v4589_v20 = vadd.f32 %v4588_v5, %v19298_v53 }
 0x437   :  { %v19474_v13 = vpop.f32.mrf.mxu1 }
 0x438   :  { %v4987_v27 = vpop.f32.mrf.mxu0 }
 0x439   :  { %v19476_v35 = vpop.f32.mrf.mxu1 }
 0x43a   :  { %v14554_v18 = vpop.f32.mrf.mxu0 }
 0x43b   :  { %v19478_v21 = vpop.f32.mrf.mxu1 }
 0x43c   :  { %v4990_v29 = vpop.f32.mrf.mxu0 }
 0x43d   :  { %v19480_v15 = vpop.f32.mrf.mxu1 }
 0x43e   :  { %23415 = vst [vmem:[#allocation114_spill] sm:$0xff] %v19480_v15  ;;  %v19482_v23 = vpop.f32.mrf.mxu0  ;;  %v4581_v15 = vadd.f32 %v14482_v8, %v19272_v56  ;;  %v5208_v56 = vadd.f32 %v14553_v50, %v4594_v51  ;;  %v5207_v51 = vadd.f32 %v4990_v29, %v4589_v20  ;;  %v19540_v50 = vadd.f32 %v19444_v63, %v19226_v32 }
 0x43f   :  { %23416 = vst [vmem:[#allocation101_spill] sm:$0xff] %v19482_v23  ;;  %v19484_v17 = vpop.f32.mrf.mxu1  ;;  %v4578_v23 = vadd.f32 %v14481_v2, %v19252_v61  ;;  %v4597_v61 = vadd.f32 %v14486_v26, %v19296_v44  ;;  %v5206_v2 = vadd.f32 %v4987_v27, %v4586_v37  ;;  %v5199_v37 = vadd.f32 %v4958_v47, %v4557_v59  ;;  %v23427_v59 = vld [vmem:[#allocation40_spill] sm:$0xff] }
 0x440   :  { %v19486_v58 = vpop.f32.mrf.mxu0  ;;  %v5273_v26 = vadd.f32 %v19447_v42, %v5208_v56  ;;  %v5272_v5 = vadd.f32 %v19447_v42, %v5207_v51  ;;  %v19555_v20 = vadd.f32 %v19474_v13, %v19300_v43  ;;  %v23429_v43 = vld [vmem:[#allocation46_spill] sm:$0xff] }
 0x441   :  { %23417 = vst [vmem:[#allocation102_spill] sm:$0xff] %v19486_v58  ;;  %v19488_v16 = vpop.f32.mrf.mxu1  ;;  %v5204_v36 = vadd.f32 %v14549_v12, %v4578_v23  ;;  %v5209_v3 = vadd.f32 %v14554_v18, %v4597_v61  ;;  %v5271_v28 = vadd.f32 %v19447_v42, %v5206_v2  ;;  %v19543_v27 = vadd.f32 %v19447_v42, %v5199_v37  ;;  %v23424_v18 = vld [vmem:[#allocation49_spill] sm:$0xff] }
 0x442   :  { %v19490_v40 = vpop.f32.mrf.mxu0  ;;  %v5337_v29 = vadd.f32 %v5273_v26, %v23424_v18  ;;  %v19570_v13 = vadd.f32 %v5272_v5, %v23429_v43 }
 0x443   :  { %v19492_v1 = vpop.f32.mrf.mxu1  ;;  %v5269_v57 = vadd.f32 %v19447_v42, %v5204_v36  ;;  %v23422_v36 = vld [vmem:[#allocation43_spill] sm:$0xff] }
 0x444   :  { %v19494_v38 = vpop.f32.mrf.mxu0 }
 0x445   :  { %23418 = vst [vmem:[#allocation165_spill] sm:$0xff] %v19494_v38  ;;  %v19496_v11 = vpop.f32.mrf.mxu1  ;;  %v5205_v38 = vadd.f32 %v14550_v49, %v4581_v15  ;;  %v19529_v53 = vadd.f32 %v5269_v57, %v23422_v36  ;;  %v23425_v15 = vld [vmem:[#allocation47_spill] sm:$0xff]  ;;  %v23426_v57 = vld [vmem:[#allocation42_spill] sm:$0xff]  ;;  %v5401_v36 = vmax.f32 %v5337_v29, 0.0 }
 0x446   :  { %23419 = vst [vmem:[#allocation154_spill] sm:$0xff] %v19496_v11  ;;  %v19498_v14 = vpop.f32.mrf.mxu0  ;;  %v19547_v23 = vadd.f32 %v5271_v28, %v23425_v15  ;;  %v4613_v28 = vadd.f32 %v19478_v21, %v19320_v48  ;;  %v19581_v48 = vadd.f32 %v19488_v16, %v19342_v45 }
 0x447   :  { %23420 = vst [vmem:[#allocation148_spill] sm:$0xff] %v19498_v14  ;;  %v19500_v60 = vpop.f32.mrf.mxu1  ;;  %v4570_v14 = vadd.f32 %v4569_v54, %v19270_v39  ;;  %v5270_v39 = vadd.f32 %v19447_v42, %v5205_v38  ;;  %v5203_v54 = vadd.f32 %v4974_v62, %v4573_v52  ;;  %v5397_v2 = vmax.f32 %v19529_v53, 0.0 }
 0x448   :  { %v19504_v31 = vpop.f32.mrf.mxu0  ;;  %v19590_v45 = vadd.f32 %v19490_v40, %v4613_v28 }
 0x449   :  { %23421 = vst [vmem:[#allocation155_spill] sm:$0xff] %v19504_v31  ;;  %v19506_v58 = vpop.f32.mrf.mxu1  ;;  %v5202_v12 = vadd.f32 %v4971_v41, %v4570_v14  ;;  %v19533_v38 = vadd.f32 %v5270_v39, %v23423_v22  ;;  %v5268_v52 = vadd.f32 %v19447_v42, %v5203_v54  ;;  %v5274_v41 = vadd.f32 %v19447_v42, %v5209_v3  ;;  %v23428_v3 = vld [vmem:[#allocation48_spill] sm:$0xff] }
 0x44a   :  { %v19510_v7 = vpop.f32.mrf.mxu0  ;;  %v19564_v54 = vadd.f32 %v19476_v35, %v19318_v4  ;;  %v4642_v4 = vadd.f32 %v19500_v60, %v19348_v6 }
 0x44b   :  { %v14498_v11 = vpop.f32.mrf.mxu1  ;;  %v5267_v10 = vadd.f32 %v19447_v42, %v5202_v12  ;;  %v5398_v63 = vmax.f32 %v19533_v38, 0.0  ;;  %v19560_v39 = vadd.f32 %v5268_v52, %v23427_v59  ;;  %v5338_v51 = vadd.f32 %v5274_v41, %v23428_v3  ;;  %v23432_v59 = vld [vmem:[#allocation136_spill] sm:$0xff] }
 0x44c   :  { %v19515_v8 = vpop.f32.mrf.mxu0  ;;  %v4645_v35 = vadd.f32 %v14498_v11, %v19364_v9  ;;  %v4626_v41 = vadd.f32 %v19484_v17, %v19324_v46  ;;  %v5400_v9 = vmax.f32 %v19570_v13, 0.0  ;;  %v4629_v11 = vadd.f32 %v19492_v1, %v19344_v25  ;;  %v23430_v25 = vld [vmem:[#allocation132_spill] sm:$0xff]  ;;  %v23434_v13 = vld [vmem:[#allocation62_spill] sm:$0xff] }
 0x44d   :  { %v19517_v31 = vpop.f32.mrf.mxu1  ;;  %v19551_v12 = vadd.f32 %v5267_v10, %v23426_v57  ;;  %v5399_v10 = vmax.f32 %v19547_v23, 0.0 }
 0x44e   :  { %v14565_v30 = vpop.f32.mrf.mxu0  ;;  %v4637_v16 = vadd.f32 %v19517_v31, %v19366_v55  ;;  %v5217_v15 = vadd.f32 %v19510_v7, %v4629_v11 }
 0x44f   :  { %v14501_v44 = vpop.f32.mrf.mxu1  ;;  %v5220_v5 = vadd.f32 %v14565_v30, %v4642_v4 }
 0x450   :  { %v19526_v49 = vpop.f32.mrf.mxu0  ;;  %v4658_v32 = vadd.f32 %v14501_v44, %v19368_v19 }
 0x451   :  { %v4649_v14 = vpop.f32.mrf.mxu1  ;;  %v5285_v40 = vadd.f32 %v19447_v42, %v5220_v5 }
 0x452   :  { %v14566_v47 = vpop.f32.mrf.mxu0  ;;  %v4650_v19 = vadd.f32 %v4649_v14, %v19374_v0  ;;  %v5402_v14 = vmax.f32 %v5338_v51, 0.0  ;;  %v23433_v51 = vld [vmem:[#allocation64_spill] sm:$0xff] }
 0x453   :  { %v14502_v62 = vpop.f32.mrf.mxu1  ;;  %v5221_v18 = vadd.f32 %v14566_v47, %v4645_v35 }
 0x454   :  { %v5038_v61 = vpop.f32.mrf.mxu0  ;;  %v4661_v0 = vadd.f32 %v14502_v62, %v19376_v33  ;;  %v4634_v33 = vadd.f32 %v19506_v58, %v19362_v34  ;;  %v23431_v58 = vld [vmem:[#allocation67_spill] sm:$0xff] }
 0x455   :  { %v4652_v56 = vpop.f32.mrf.mxu1  ;;  %v5286_v57 = vadd.f32 %v19447_v42, %v5221_v18  ;;  %v5219_v34 = vadd.f32 %v5038_v61, %v4637_v16  ;;  %v23438_v18 = vld [vmem:[#allocation113_spill] sm:$0xff]  ;;  %v5282_v16 = vadd.f32 %v19447_v42, %v5217_v15 }
 0x456   :  { %v14569_v37 = vpop.f32.mrf.mxu0  ;;  %v4653_v46 = vadd.f32 %v4652_v56, %v19378_v24  ;;  %v5218_v43 = vadd.f32 %v19526_v49, %v4634_v33 }
 0x457   :  { %v14505_v26 = vpop.f32.mrf.mxu1  ;;  %v5224_v44 = vadd.f32 %v14569_v37, %v4658_v32  ;;  %v5284_v49 = vadd.f32 %v19447_v42, %v5219_v34 }
 0x458   :  { %v5051_v22 = vpop.f32.mrf.mxu0  ;;  %v4674_v1 = vadd.f32 %v14505_v26, %v23430_v25  ;;  %v19608_v26 = vpack.c.bf16 %v5402_v14, %v5401_v36  ;;  %v23440_v36 = vld [vmem:[#allocation60_spill] sm:$0xff] }
 0x459   :  { %v4665_v52 = vpop.f32.mrf.mxu1  ;;  %v5222_v21 = vadd.f32 %v5051_v22, %v4650_v19  ;;  %v5289_v29 = vadd.f32 %v19447_v42, %v5224_v44  ;;  %v23435_v44 = vld [vmem:[#allocation140_spill] sm:$0xff]  ;;  %v5350_v14 = vadd.f32 %v5286_v57, %v23440_v36 }
 0x45a   :  { %v14570_v6 = vpop.f32.mrf.mxu0  ;;  %v4666_v3 = vadd.f32 %v4665_v52, %v23432_v59 }
 0x45b   :  { %v14506_v60 = vpop.f32.mrf.mxu1  ;;  %v5225_v17 = vadd.f32 %v14570_v6, %v4661_v0  ;;  %v5287_v30 = vadd.f32 %v19447_v42, %v5222_v21  ;;  %v5353_v32 = vadd.f32 %v5289_v29, %v23431_v58  ;;  %v23436_v0 = vld [vmem:[#allocation61_spill] sm:$0xff]  ;;  %v23439_v29 = vld [vmem:[#allocation154_spill] sm:$0xff] }
 0x45c   :  { %v5054_v47 = vpop.f32.mrf.mxu0  ;;  %v4677_v4 = vadd.f32 %v14506_v60, %v23435_v44  ;;  %v4621_v6 = vadd.f32 %v23439_v29, %v23438_v18  ;;  %v23441_v60 = vld [vmem:[#allocation148_spill] sm:$0xff]  ;;  %v23451_v29 = vld [vmem:[#allocation58_spill] sm:$0xff] }
 0x45d   :  { %v19597_v62 = vpop.f32.mrf.mxu1  ;;  %v5290_v24 = vadd.f32 %v19447_v42, %v5225_v17  ;;  %v5223_v56 = vadd.f32 %v5054_v47, %v4653_v46  ;;  %v5351_v19 = vadd.f32 %v5287_v30, %v23434_v13  ;;  %v5417_v11 = vmax.f32 %v5353_v32, 0.0  ;;  %v23442_v30 = vld [vmem:[#allocation63_spill] sm:$0xff]  ;;  %v23448_v44 = vld [vmem:[#allocation68_spill] sm:$0xff] }
 0x45e   :  { %v14573_v55 = vpop.f32.mrf.mxu0  ;;  %v5216_v33 = vadd.f32 %v23441_v60, %v4626_v41  ;;  %v5349_v47 = vadd.f32 %v5285_v40, %v23442_v30  ;;  %v5215_v32 = vadd.f32 %v19515_v8, %v4621_v6  ;;  %v23445_v41 = vld [vmem:[#allocation99_spill] sm:$0xff]  ;;  %v5414_v40 = vmax.f32 %v5350_v14, 0.0 }
 0x45f   :  { %v14509_v31 = vpop.f32.mrf.mxu1  ;;  %v5354_v37 = vadd.f32 %v5290_v24, %v23433_v51  ;;  %v5288_v7 = vadd.f32 %v19447_v42, %v5223_v56  ;;  %v5228_v28 = vadd.f32 %v14573_v55, %v4674_v1  ;;  %v5283_v1 = vadd.f32 %v19447_v42, %v5218_v43  ;;  %v23444_v55 = vld [vmem:[#allocation71_spill] sm:$0xff]  ;;  %v23446_v51 = vld [vmem:[#allocation57_spill] sm:$0xff] }
 0x460   :  { %v5067_v61 = vpop.f32.mrf.mxu0  ;;  %v5415_v24 = vmax.f32 %v5351_v19, 0.0  ;;  %v19643_v13 = vpack.c.bf16 %v5400_v9, %v5399_v10  ;;  %v5281_v8 = vadd.f32 %v19447_v42, %v5216_v33  ;;  %v23447_v19 = vld [vmem:[#allocation138_spill] sm:$0xff]  ;;  %v5413_v18 = vmax.f32 %v5349_v47, 0.0 }
 0x461   :  { %v4681_v35 = vpop.f32.mrf.mxu1  ;;  %v5418_v22 = vmax.f32 %v5354_v37, 0.0  ;;  %v5352_v21 = vadd.f32 %v5288_v7, %v23436_v0  ;;  %v5293_v52 = vadd.f32 %v19447_v42, %v5228_v28  ;;  %v19615_v5 = vadd.f32 %v5067_v61, %v4666_v3  ;;  %v23454_v47 = vld [vmem:[#allocation106_spill] sm:$0xff] }
 0x462   :  { %v14574_v46 = vpop.f32.mrf.mxu0  ;;  %v4690_v3 = vadd.f32 %v14509_v31, %v23445_v41  ;;  %v5348_v37 = vadd.f32 %v5284_v49, %v23446_v51  ;;  %v4682_v31 = vadd.f32 %v4681_v35, %v23447_v19  ;;  %v5347_v6 = vadd.f32 %v5283_v1, %v23451_v29  ;;  %v23453_v49 = vld [vmem:[#allocation110_spill] sm:$0xff]  ;;  %v23460_v51 = vld [vmem:[#allocation53_spill] sm:$0xff] }
 0x463   :  { %23437 = vst [vmem:[#allocation118_spill] sm:$0xff] %v19615_v5  ;;  %v14510_v17 = vpop.f32.mrf.mxu1  ;;  %v5229_v25 = vadd.f32 %v14574_v46, %v4677_v4  ;;  %v19627_v58 = vpack.c.bf16 %v5418_v22, %v5417_v11  ;;  %v5416_v34 = vmax.f32 %v5352_v21, 0.0  ;;  %v5357_v59 = vadd.f32 %v5293_v52, %v23444_v55  ;;  %v23449_v22 = vld [vmem:[#allocation155_spill] sm:$0xff]  ;;  %v23450_v21 = vld [vmem:[#allocation56_spill] sm:$0xff] }
 0x464   :  { %v19625_v56 = vpop.f32.mrf.mxu0  ;;  %v5214_v0 = vadd.f32 %v23449_v22, %v19581_v48  ;;  %v5346_v52 = vadd.f32 %v5282_v16, %v23450_v21  ;;  %v5280_v9 = vadd.f32 %v19447_v42, %v5215_v32  ;;  %v4693_v11 = vadd.f32 %v14510_v17, %v23453_v49  ;;  %v23458_v32 = vld [vmem:[#allocation59_spill] sm:$0xff]  ;;  %v23467_v49 = vld [vmem:[#allocation36_spill] sm:$0xff] }
 0x465   :  { %23443 = vst [vmem:[#allocation166_spill] sm:$0xff] %v19625_v56  ;;  %v19629_v57 = vpop.f32.mrf.mxu1  ;;  %v5294_v15 = vadd.f32 %v19447_v42, %v5229_v25  ;;  %13573 = vmatprep.subr.bf16.mxu1 %v19627_v58  ;;  %v19637_v28 = vpack.c.bf16 %v5416_v34, %v5415_v24  ;;  %v5421_v35 = vmax.f32 %v5357_v59, 0.0  ;;  %v19661_v60 = vpack.c.bf16 %v5414_v40, %v5413_v18  ;;  %v23455_v25 = vld [vmem:[#allocation114_spill] sm:$0xff]  ;;  %v23456_v24 = vld [vmem:[#allocation101_spill] sm:$0xff]  ;;  %v23463_v22 = vld [vmem:[#allocation135_spill] sm:$0xff] }
 0x466   :  { %v14577_v7 = vpop.f32.mrf.mxu0  ;;  %13574 = vmatpush3.bf16.msra.mxu1 %v19608_v26  ;;  %v5412_v16 = vmax.f32 %v5348_v37, 0.0  ;;  %v19669_v30 = vpack.c.bf16 %v5398_v63, %v5397_v2  ;;  %v4605_v1 = vadd.f32 %v23455_v25, %v23454_v47  ;;  %v5212_v17 = vadd.f32 %v23456_v24, %v19555_v20 }
 0x467   :  { %v19639_v43 = vpop.f32.mrf.mxu1  ;;  %v5358_v4 = vadd.f32 %v5294_v15, %v23448_v44  ;;  %v5232_v61 = vadd.f32 %v14577_v7, %v4690_v3  ;;  %13575 = vmatprep.subr.bf16.mxu1 %v19637_v28  ;;  %v5345_v55 = vadd.f32 %v5281_v8, %v23458_v32  ;;  %v5279_v59 = vadd.f32 %v19447_v42, %v5214_v0  ;;  %v23459_v3 = vld [vmem:[#allocation165_spill] sm:$0xff]  ;;  %v23461_v7 = vld [vmem:[#allocation75_spill] sm:$0xff] }
 0x468   :  { %v5083_v23 = vpop.f32.mrf.mxu0  ;;  %v5411_v41 = vmax.f32 %v5347_v6, 0.0  ;;  %v5396_v63 = vmax.f32 %v19560_v39, 0.0  ;;  %v5278_v20 = vadd.f32 %v19447_v42, %v19590_v45  ;;  %v5211_v15 = vadd.f32 %v23459_v3, %v4605_v1  ;;  %v23462_v39 = vld [vmem:[#allocation143_spill] sm:$0xff]  ;;  %v23465_v6 = vld [vmem:[#allocation54_spill] sm:$0xff]  ;;  %v23469_v32 = vld [vmem:[#allocation37_spill] sm:$0xff] }
 0x469   :  { %v19654_v10 = vpop.f32.mrf.mxu1  ;;  %v5422_v36 = vmax.f32 %v5358_v4, 0.0  ;;  %v19657_v14 = vadd.f32 %v5083_v23, %v4682_v31  ;;  %v5297_v48 = vadd.f32 %v19447_v42, %v5232_v61  ;;  %v5410_v40 = vmax.f32 %v5346_v52, 0.0  ;;  %v23464_v52 = vld [vmem:[#allocation102_spill] sm:$0xff] }
 0x46a   :  { %v14578_v46 = vpop.f32.mrf.mxu0  ;;  %13576 = vmatpush3.bf16.msra.mxu1 %v19643_v13  ;;  %v5344_v37 = vadd.f32 %v5280_v9, %v23460_v51  ;;  %v19694_v44 = vpack.c.bf16 %v5412_v16, %v5411_v41  ;;  %v5195_v61 = vadd.f32 %v23462_v39, %v19540_v50  ;;  %v5263_v45 = vadd.f32 %v19447_v42, %v23463_v22  ;;  %v23466_v9 = vld [vmem:[#allocation72_spill] sm:$0xff] }
 0x46b   :  { %23452 = vst [vmem:[#allocation168_spill] sm:$0xff] %v19657_v14  ;;  %v19663_v33 = vpop.f32.mrf.mxu1  ;;  %v19675_v34 = vpack.c.bf16 %v5422_v36, %v5421_v35  ;;  %v5233_v53 = vadd.f32 %v14578_v46, %v4693_v11  ;;  %13577 = vmatprep.subr.bf16.mxu1 %v19661_v60  ;;  %v5361_v8 = vadd.f32 %v5297_v48, %v23461_v7  ;;  %v5395_v0 = vmax.f32 %v19551_v12, 0.0  ;;  %v23468_v11 = vld [vmem:[#allocation52_spill] sm:$0xff] }
 0x46c   :  { %v19681_v38 = vpop.f32.mrf.mxu0  ;;  %v5277_v21 = vadd.f32 %v19447_v42, %v5212_v17  ;;  %v5210_v18 = vadd.f32 %v23464_v52, %v19564_v54  ;;  %v5409_v29 = vmax.f32 %v5345_v55, 0.0  ;;  %v5343_v23 = vadd.f32 %v5279_v59, %v23465_v6  ;;  %v23473_v22 = vld [vmem:[#allocation100_spill] sm:$0xff] }
 0x46d   :  { %23457 = vst [vmem:[#allocation103_spill] sm:$0xff] %v19675_v34  ;;  %v19683_v2 = vpop.f32.mrf.mxu1  ;;  %v5298_v19 = vadd.f32 %v19447_v42, %v5233_v53  ;;  %v5328_v12 = vadd.f32 %v19543_v27, %v23467_v49  ;;  %v5342_v48 = vadd.f32 %v5278_v20, %v23468_v11  ;;  %v5276_v46 = vadd.f32 %v19447_v42, %v5211_v15  ;;  %v23470_v27 = vld [vmem:[#allocation55_spill] sm:$0xff] }
 0x46e   :  { %v19692_v31 = vpop.f32.mrf.mxu0  ;;  %13578 = vmatpush3.bf16.msra.mxu1 %v19669_v30  ;;  %v19718_v16 = vpack.c.bf16 %v5396_v63, %v5395_v0  ;;  %v5425_v54 = vmax.f32 %v5361_v8, 0.0  ;;  %v19722_v1 = vpack.c.bf16 %v5410_v40, %v5409_v29  ;;  %v5408_v17 = vmax.f32 %v5344_v37, 0.0  ;;  %v23472_v37 = vld [vmem:[#allocation50_spill] sm:$0xff]  ;;  %v23485_v34 = vld [vmem:[#allocation115_spill] sm:$0xff] }
 0x46f   :  { %v19696_v4 = vpop.f32.mrf.mxu1  ;;  %v5362_v35 = vadd.f32 %v5298_v19, %v23466_v9  ;;  %13579 = vmatprep.subr.bf16.mxu1 %v19694_v44  ;;  %v5327_v55 = vadd.f32 %v5263_v45, %v23469_v32  ;;  %v5341_v59 = vadd.f32 %v5277_v21, %v23470_v27  ;;  %v5275_v41 = vadd.f32 %v19447_v42, %v5210_v18  ;;  %v23474_v21 = vld [vmem:[#allocation163_spill] sm:$0xff] }
 0x470   :  { %v19710_v50 = vpop.f32.mrf.mxu0  ;;  %v5407_v53 = vmax.f32 %v5343_v23, 0.0  ;;  %v5260_v15 = vadd.f32 %v19447_v42, %v5195_v61  ;;  %v5392_v40 = vmax.f32 %v5328_v12, 0.0  ;;  %v5406_v51 = vmax.f32 %v5342_v48, 0.0  ;;  %v23475_v18 = vld [vmem:[#allocation51_spill] sm:$0xff]  ;;  %v23476_v23 = vld [vmem:[#allocation32_spill] sm:$0xff] }
 0x471   :  { %v19712_v36 = vpop.f32.mrf.mxu1  ;;  %v5426_v47 = vmax.f32 %v5362_v35, 0.0  ;;  %v5340_v7 = vadd.f32 %v5276_v46, %v23472_v37  ;;  %v5259_v45 = vadd.f32 %v19447_v42, %v23473_v22  ;;  %v5391_v0 = vmax.f32 %v5327_v55, 0.0  ;;  %v23477_v46 = vld [vmem:[#allocation34_spill] sm:$0xff] }
 0x472   :  { %v19720_v25 = vpop.f32.mrf.mxu0  ;;  %13580 = vmatpush3.bf16.msra.mxu1 %v19718_v16  ;;  %v19741_v19 = vpack.c.bf16 %v5408_v17, %v5407_v53  ;;  %v5405_v52 = vmax.f32 %v5341_v59, 0.0  ;;  %v5339_v29 = vadd.f32 %v5275_v41, %v23475_v18  ;;  %v5324_v9 = vadd.f32 %v5260_v15, %v23476_v23  ;;  %v23478_v15 = vld [vmem:[#allocation147_spill] sm:$0xff] }
 0x473   :  { %v19724_v24 = vpop.f32.mrf.mxu1  ;;  %v19730_v63 = vpack.c.bf16 %v5426_v47, %v5425_v54  ;;  %13581 = vmatprep.subr.bf16.mxu1 %v19722_v1  ;;  %v19755_v35 = vpack.c.bf16 %v5392_v40, %v5391_v0  ;;  %v5404_v48 = vmax.f32 %v5340_v7, 0.0  ;;  %v5323_v54 = vadd.f32 %v5259_v45, %v23477_v46  ;;  %v19788_v45 = vld [vmem:[#allocation8] ss:$8 sps:$4 sm:$0xff]   ;;  %v19791_v0 = vld [vmem:[#allocation8 + $0x14] ss:$8 sps:$4 sm:$0xff]  }
 0x474   :  { %v19733_v20 = vpop.f32.mrf.mxu0  ;;  %v19759_v12 = vpack.c.bf16 %v5406_v51, %v5405_v52  ;;  %v5403_v47 = vmax.f32 %v5339_v29, 0.0  ;;  %v5388_v55 = vmax.f32 %v5324_v9, 0.0  ;;  %23480 = vst [vmem:[#allocation156_spill] sm:$0xff] %v19788_v45  ;;  %23481 = vst [vmem:[#allocation112_spill] sm:$0xff] %v19791_v0 }
 0x475   :  { %23471 = vst [vmem:[#allocation120_spill] sm:$0xff] %v19730_v63  ;;  %v19735_v3 = vpop.f32.mrf.mxu1  ;;  %v5387_v53 = vmax.f32 %v5323_v54, 0.0  ;;  %v19810_v54 = vld [vmem:[#allocation8 + $0x10] ss:$8 sps:$4 sm:$0xff]   ;;  %v4709_v63 = vadd.f32 %v19663_v33, %v23485_v34 }
 0x476   :  { %v19739_v8 = vpop.f32.mrf.mxu0  ;;  %13582 = vmatpush3.bf16.msra.mxu1 %v23474_v21  ;;  %v19772_v59 = vpack.c.bf16 %v5404_v48, %v5403_v47  ;;  %23482 = vst [vmem:[#allocation171_spill] sm:$0xff] %v19810_v54  ;;  %v19813_v47 = vld [vmem:[#allocation8 + $0x24] ss:$8 sps:$4 sm:$0xff]  }
 0x477   :  { %v19743_v39 = vpop.f32.mrf.mxu1  ;;  %13583 = vmatprep.subr.bf16.mxu1 %v19741_v19  ;;  %v19782_v37 = vpack.c.bf16 %v5388_v55, %v5387_v53  ;;  %23483 = vst [vmem:[#allocation104_spill] sm:$0xff] %v19813_v47  ;;  %v23484_v53 = vld [vmem:[#allocation144_spill] sm:$0xff]  ;;  %v23488_v33 = vld [vmem:[#allocation129_spill] sm:$0xff] }
 0x478   :  { %v19750_v61 = vpop.f32.mrf.mxu0  ;;  %v4725_v34 = vadd.f32 %v19724_v24, %v23488_v33  ;;  %v23491_v24 = vld [vmem:[#allocation150_spill] sm:$0xff]  ;;  %v23494_v33 = vld [vmem:[#allocation127_spill] sm:$0xff] }
 0x479   :  { %v19752_v6 = vpop.f32.mrf.mxu1 }
 0x47a   :  { %v19757_v49 = vpop.f32.mrf.mxu0  ;;  %13584 = vmatpush3.bf16.msra.mxu1 %v19755_v35 }
 0x47b   :  { %v19761_v11 = vpop.f32.mrf.mxu1  ;;  %13585 = vmatprep.subr.bf16.mxu1 %v19759_v12 }
 0x47c   :  { %v19766_v17 = vpop.f32.mrf.mxu0 }
 0x47d   :  { %v19768_v32 = vpop.f32.mrf.mxu1 }
 0x47e   :  { %v19770_v27 = vpop.f32.mrf.mxu0  ;;  %13586 = vmatpush3.bf16.msra.mxu1 %v23478_v15 }
 0x47f   :  { %v19774_v41 = vpop.f32.mrf.mxu1  ;;  %13587 = vmatprep.subr.bf16.mxu1 %v19772_v59 }
 0x480   :  { %v19778_v40 = vpop.f32.mrf.mxu0 }
 0x481   :  { %23479 = vst [vmem:[#allocation161_spill] sm:$0xff] %v19778_v40  ;;  %v19780_v51 = vpop.f32.mrf.mxu1 }
 0x482   :  { %v19784_v7 = vpop.f32.mrf.mxu0  ;;  %13588 = vmatpush3.bf16.msra.mxu1 %v19782_v37 }
 0x483   :  { %v19786_v22 = vpop.f32.mrf.mxu1  ;;  %13637 = vmatprep.subr.bf16.mxu1 %v19627_v58 }
 0x484   :  { %v19794_v52 = vpop.f32.mrf.mxu0 }
 0x485   :  { %v19796_v18 = vpop.f32.mrf.mxu1  ;;  %5628 = vmatmul.mubr.bf16.vlgmr.msra.gmra.mxu1 %v19788_v45 }
 0x486   :  { %v19799_v29 = vpop.f32.mrf.mxu0  ;;  %13638 = vmatpush3.bf16.msra.mxu1 %v19608_v26  ;;  %5635 = vmatprep.mubr.bf16.mxu1 %v19791_v0 }
 0x487   :  { %v14529_v23 = vpop.f32.mrf.mxu1  ;;  %13639 = vmatprep.subr.bf16.mxu1 %v19637_v28  ;;  %v4706_v28 = vadd.f32 %v19639_v43, %v23484_v53  ;;  %v5237_v53 = vadd.f32 %v19720_v25, %v4709_v63  ;;  %v19845_v25 = vld [vmem:[#allocation8 + $0x34] ss:$8 sps:$4 sm:$0xff]   ;;  %v4714_v63 = vadd.f32 %v19712_v36, %v23491_v24 }
 0x488   :  { %v19804_v9 = vpop.f32.mrf.mxu0 }
 0x489   :  { %v19806_v48 = vpop.f32.mrf.mxu1  ;;  %v5236_v5 = vadd.f32 %v19692_v31, %v4706_v28  ;;  %v19837_v28 = vld [vmem:[#allocation8 + $0x20] ss:$8 sps:$4 sm:$0xff]  }
 0x48a   :  { %v19808_v58 = vpop.f32.mrf.mxu0  ;;  %13640 = vmatpush3.bf16.msra.mxu1 %v19643_v13  ;;  %v23486_v13 = vld [vmem:[#allocation137_spill] sm:$0xff] }
 0x48b   :  { %v14530_v46 = vpop.f32.mrf.mxu1  ;;  %13641 = vmatprep.subr.bf16.mxu1 %v19661_v60  ;;  %v4722_v60 = vadd.f32 %v19696_v4, %v23486_v13  ;;  %v5301_v14 = vadd.f32 %v19447_v42, %v5236_v5  ;;  %v5302_v5 = vadd.f32 %v19447_v42, %v5237_v53  ;;  %v23496_v53 = vld [vmem:[#allocation157_spill] sm:$0xff] }
 0x48c   :  { %v19816_v26 = vpop.f32.mrf.mxu0 }
 0x48d   :  { %v4764_v55 = vpop.f32.mrf.mxu1  ;;  %5636 = vmatmul.mubr.bf16.gmra.mxu1 %v19810_v54  ;;  %v23487_v54 = vld [vmem:[#allocation146_spill] sm:$0xff] }
 0x48e   :  { %v14597_v0 = vpop.f32.mrf.mxu0  ;;  %13642 = vmatpush3.bf16.msra.mxu1 %v19669_v30  ;;  %5643 = vmatprep.mubr.bf16.mxu1 %v19813_v47  ;;  %v4685_v40 = vadd.f32 %v19629_v57, %v23487_v54  ;;  %v5240_v30 = vadd.f32 %v19739_v8, %v4722_v60  ;;  %v23489_v47 = vld [vmem:[#allocation121_spill] sm:$0xff]  ;;  %v5241_v8 = vadd.f32 %v19757_v49, %v4725_v34 }
 0x48f   :  { %v14533_v45 = vpop.f32.mrf.mxu1  ;;  %13643 = vmatprep.subr.bf16.mxu1 %v19694_v44  ;;  %v4698_v4 = vadd.f32 %v19654_v10, %v23489_v47  ;;  %v23490_v44 = vld [vmem:[#allocation142_spill] sm:$0xff]  ;;  %v23492_v47 = vld [vmem:[#allocation159_spill] sm:$0xff]  ;;  %v5238_v49 = vadd.f32 %v19750_v61, %v4714_v63  ;;  %v23497_v61 = vld [vmem:[#allocation153_spill] sm:$0xff] }
 0x490   :  { %v19829_v56 = vpop.f32.mrf.mxu0  ;;  %v4701_v13 = vadd.f32 %v19683_v2, %v23490_v44  ;;  %v19848_v57 = vadd.f32 %v19681_v38, %v4685_v40  ;;  %v4786_v60 = vadd.f32 %v14533_v45, %v23492_v47  ;;  %v23493_v38 = vld [vmem:[#allocation139_spill] sm:$0xff]  ;;  %v5305_v36 = vadd.f32 %v19447_v42, %v5240_v30 }
 0x491   :  { %v4777_v43 = vpop.f32.mrf.mxu1  ;;  %v19855_v2 = vadd.f32 %v19710_v50, %v4698_v4  ;;  %v4717_v40 = vadd.f32 %v19735_v3, %v23493_v38  ;;  %v23495_v50 = vld [vmem:[#allocation80_spill] sm:$0xff]  ;;  %v5306_v3 = vadd.f32 %v19447_v42, %v5241_v8  ;;  %v4770_v30 = vadd.f32 %v14529_v23, %v23497_v61 }
 0x492   :  { %v14598_v31 = vpop.f32.mrf.mxu0  ;;  %13644 = vmatpush3.bf16.msra.mxu1 %v19718_v16  ;;  %v5235_v16 = vadd.f32 %v19733_v20, %v4701_v13  ;;  %v19867_v4 = vadd.f32 %v5301_v14, %v23495_v50  ;;  %v4778_v44 = vadd.f32 %v4777_v43, %v23496_v53  ;;  %v23498_v14 = vld [vmem:[#allocation77_spill] sm:$0xff]  ;;  %v23499_v43 = vld [vmem:[#allocation158_spill] sm:$0xff]  ;;  %v23500_v8 = vld [vmem:[#allocation84_spill] sm:$0xff]  ;;  %v5303_v23 = vadd.f32 %v19447_v42, %v5238_v49 }
 0x493   :  { %13645 = vmatprep.subr.bf16.mxu1 %v19722_v1  ;;  %v14534_v10 = vpop.f32.mrf.mxu1  ;;  %v4773_v1 = vadd.f32 %v14530_v46, %v23494_v33  ;;  %v5239_v45 = vadd.f32 %v19766_v17, %v4717_v40  ;;  %v19877_v63 = vadd.f32 %v5302_v5, %v23498_v14  ;;  %v5369_v17 = vadd.f32 %v5305_v36, %v23500_v8  ;;  %v19886_v33 = vld [vmem:[#allocation8 + $0x30] ss:$8 sps:$4 sm:$0xff]   ;;  %v23502_v5 = vld [vmem:[#allocation160_spill] sm:$0xff]  ;;  %v23504_v49 = vld [vmem:[#allocation131_spill] sm:$0xff] }
 0x494   :  { %v5166_v54 = vpop.f32.mrf.mxu0  ;;  %v4789_v47 = vadd.f32 %v14534_v10, %v23499_v43  ;;  %v19882_v38 = vadd.f32 %v19447_v42, %v5235_v16  ;;  %v19892_v53 = vld [vmem:[#allocation8 + $0x44] ss:$8 sps:$4 sm:$0xff]   ;;  %v23506_v14 = vld [vmem:[#allocation151_spill] sm:$0xff] }
 0x495   :  { %5644 = vmatmul.mubr.bf16.gmra.mxu1 %v19837_v28  ;;  %v5253_v46 = vadd.f32 %v14598_v31, %v4773_v1  ;;  %v4780_v13 = vpop.f32.mrf.mxu1  ;;  %v5252_v31 = vadd.f32 %v14597_v0, %v4770_v30  ;;  %v23503_v16 = vld [vmem:[#allocation81_spill] sm:$0xff]  ;;  %v5304_v36 = vadd.f32 %v19447_v42, %v5239_v45  ;;  %v4762_v0 = vadd.f32 %v19806_v48, %v23504_v49 }
 0x496   :  { %v14601_v34 = vpop.f32.mrf.mxu0  ;;  %13646 = vmatpush3.bf16.msra.mxu1 %v23474_v21  ;;  %5651 = vmatprep.mubr.bf16.mxu1 %v19845_v25  ;;  %v23505_v30 = vld [vmem:[#allocation97_spill] sm:$0xff]  ;;  %v4754_v43 = vadd.f32 %v19774_v41, %v23506_v14 }
 0x497   :  { %v5256_v20 = vadd.f32 %v14601_v34, %v4786_v60  ;;  %13647 = vmatprep.subr.bf16.mxu1 %v19741_v19  ;;  %v23501_v19 = vld [vmem:[#allocation133_spill] sm:$0xff]  ;;  %v4781_v34 = vadd.f32 %v4780_v13, %v23502_v5  ;;  %v5250_v48 = vadd.f32 %v19829_v56, %v4762_v0 }
 0x498   :  { %v5179_v24 = vpop.f32.mrf.mxu0  ;;  %v4765_v1 = vadd.f32 %v4764_v55, %v23501_v19  ;;  %v23511_v19 = vld [vmem:[#allocation94_spill] sm:$0xff] }
 0x499   :  { %v5321_v21 = vadd.f32 %v19447_v42, %v5256_v20  ;;  %v5254_v60 = vadd.f32 %v5179_v24, %v4778_v44  ;;  %v5370_v44 = vadd.f32 %v5306_v3, %v23503_v16  ;;  %v5318_v20 = vadd.f32 %v19447_v42, %v5253_v46  ;;  %v23507_v3 = vld [vmem:[#allocation149_spill] sm:$0xff]  ;;  %v23508_v46 = vld [vmem:[#allocation95_spill] sm:$0xff] }
 0x49a   :  { %v14602_v40 = vpop.f32.mrf.mxu0  ;;  %13648 = vmatpush3.bf16.msra.mxu1 %v19755_v35  ;;  %v5251_v61 = vadd.f32 %v5166_v54, %v4765_v1  ;;  %v4757_v45 = vadd.f32 %v19786_v22, %v23507_v3 }
 0x49b   :  { %v5319_v10 = vadd.f32 %v19447_v42, %v5254_v60  ;;  %v5257_v50 = vadd.f32 %v14602_v40, %v4789_v47  ;;  %13649 = vmatprep.subr.bf16.mxu1 %v19759_v12  ;;  %v5385_v13 = vadd.f32 %v5321_v21, %v23505_v30  ;;  %v5317_v47 = vadd.f32 %v19447_v42, %v5252_v31  ;;  %v23509_v60 = vld [vmem:[#allocation45_spill] sm:$0xff]  ;;  %v23510_v40 = vld [vmem:[#allocation78_spill] sm:$0xff] }
 0x49c   :  { %v5182_v55 = vpop.f32.mrf.mxu0  ;;  %v5433_v12 = vmax.f32 %v5369_v17, 0.0  ;;  %v5434_v41 = vmax.f32 %v5370_v44, 0.0  ;;  %v5368_v22 = vadd.f32 %v5304_v36, %v23510_v40  ;;  %v5249_v31 = vadd.f32 %v19808_v58, %v4757_v45  ;;  %v23515_v36 = vld [vmem:[#allocation93_spill] sm:$0xff]  ;;  %v19925_v58 = vld [vmem:[#allocation8 + $0x40] ss:$8 sps:$4 sm:$0xff]  }
 0x49d   :  { %v5322_v24 = vadd.f32 %v19447_v42, %v5257_v50  ;;  %v5255_v35 = vadd.f32 %v5182_v55, %v4781_v34  ;;  %5652 = vmatmul.mubr.bf16.gmra.mxu1 %v19886_v33  ;;  %v5383_v54 = vadd.f32 %v5319_v10, %v23508_v46  ;;  %v5382_v56 = vadd.f32 %v5318_v20, %v23511_v19  ;;  %v23512_v34 = vld [vmem:[#allocation96_spill] sm:$0xff]  ;;  %v23513_v50 = vld [vmem:[#allocation79_spill] sm:$0xff] }
 0x49e   :  { %13650 = vmatpush3.bf16.msra.mxu1 %v23478_v15  ;;  %5659 = vmatprep.mubr.bf16.mxu1 %v19892_v53  ;;  %v5316_v17 = vadd.f32 %v19447_v42, %v5251_v61  ;;  %v5449_v1 = vmax.f32 %v5385_v13, 0.0  ;;  %v5367_v16 = vadd.f32 %v5303_v23, %v23513_v50  ;;  %v23514_v15 = vld [vmem:[#allocation152_spill] sm:$0xff]  ;;  %v5248_v44 = vadd.f32 %v19799_v29, %v4754_v43  ;;  %v19929_v30 = vld [vmem:[#allocation8 + $0x54] ss:$8 sps:$4 sm:$0xff]   ;;  %v23525_v50 = vld [vmem:[#allocation89_spill] sm:$0xff] }
 0x49f   :  { %v5386_v21 = vadd.f32 %v5322_v24, %v23509_v60  ;;  %v5320_v8 = vadd.f32 %v19447_v42, %v5255_v35  ;;  %13651 = vmatprep.subr.bf16.mxu1 %v19772_v59  ;;  %v4749_v49 = vadd.f32 %v19796_v18, %v23514_v15  ;;  %v5381_v0 = vadd.f32 %v5317_v47, %v23515_v36  ;;  %v23516_v24 = vld [vmem:[#allocation145_spill] sm:$0xff]  ;;  %v23517_v43 = vld [vmem:[#allocation92_spill] sm:$0xff]  ;;  %v23519_v46 = vld [vmem:[#allocation119_spill] sm:$0xff] }
 0x4a0   :  { %v5315_v20 = vadd.f32 %v19447_v42, %v5250_v48  ;;  %v5447_v59 = vmax.f32 %v5383_v54, 0.0  ;;  %v19931_v13 = vpack.c.bf16 %v5434_v41, %v5433_v12  ;;  %v5432_v23 = vmax.f32 %v5368_v22, 0.0  ;;  %v23518_v47 = vld [vmem:[#allocation141_spill] sm:$0xff]  ;;  %v23522_v22 = vld [vmem:[#allocation90_spill] sm:$0xff]  ;;  %v23526_v36 = vld [vmem:[#allocation123_spill] sm:$0xff] }
 0x4a1   :  { %v5450_v5 = vmax.f32 %v5386_v21, 0.0  ;;  %v5384_v10 = vadd.f32 %v5320_v8, %v23512_v34  ;;  %v4746_v18 = vadd.f32 %v19780_v51, %v23516_v24  ;;  %v5314_v29 = vadd.f32 %v19447_v42, %v5249_v31  ;;  %v23520_v21 = vld [vmem:[#allocation91_spill] sm:$0xff]  ;;  %v23524_v34 = vld [vmem:[#allocation125_spill] sm:$0xff] }
 0x4a2   :  { %13652 = vmatpush3.bf16.msra.mxu1 %v19782_v37  ;;  %v5247_v35 = vadd.f32 %v19816_v26, %v4749_v49  ;;  %v5446_v14 = vmax.f32 %v5382_v56, 0.0  ;;  %v5380_v3 = vadd.f32 %v5316_v17, %v23517_v43  ;;  %v5299_v45 = vadd.f32 %v19447_v42, %v19855_v2  ;;  %v23521_v2 = vld [vmem:[#allocation73_spill] sm:$0xff] }
 0x4a3   :  { %v5482_v55 = vpack.c.bf16 %v5450_v5, %v5449_v1  ;;  %v5448_v61 = vmax.f32 %v5384_v10, 0.0  ;;  %v4738_v48 = vadd.f32 %v19743_v39, %v23518_v47  ;;  %v5431_v12 = vmax.f32 %v5367_v16, 0.0 }
 0x4a4   :  { %v4741_v51 = vadd.f32 %v19761_v11, %v23519_v46  ;;  %v5313_v26 = vadd.f32 %v19447_v42, %v5248_v44  ;;  %v5246_v54 = vadd.f32 %v19804_v9, %v4746_v18  ;;  %v5445_v60 = vmax.f32 %v5381_v0, 0.0  ;;  %v23529_v18 = vld [vmem:[#allocation168_spill] sm:$0xff] }
 0x4a5   :  { %13701 = vmatprep.subr.bf16.mxu0 %v5482_v55  ;;  %13765 = vmatprep.subr.bf16.mxu1 %v5482_v55  ;;  %v19938_v37 = vpack.c.bf16 %v5448_v61, %v5447_v59  ;;  %v5379_v8 = vadd.f32 %v5315_v20, %v23520_v21  ;;  %v5430_v39 = vmax.f32 %v19877_v63, 0.0  ;;  %v5364_v11 = vadd.f32 %v19882_v38, %v23521_v2  ;;  %v23523_v63 = vld [vmem:[#allocation74_spill] sm:$0xff]  ;;  %v23527_v59 = vld [vmem:[#allocation88_spill] sm:$0xff] }
 0x4a6   :  { %5660 = vmatmul.mubr.bf16.gmra.mxu1 %v19925_v58  ;;  %13702 = vmatpush3.bf16.msra.mxu0 %v19931_v13  ;;  %v5245_v41 = vadd.f32 %v19784_v7, %v4741_v51  ;;  %v19957_v40 = vpack.c.bf16 %v5432_v23, %v5431_v12  ;;  %v5378_v31 = vadd.f32 %v5314_v29, %v23522_v22  ;;  %v5444_v56 = vmax.f32 %v5380_v3, 0.0  ;;  %v19970_v7 = vld [vmem:[#allocation8 + $0x50] ss:$8 sps:$4 sm:$0xff]   ;;  %v23531_v3 = vld [vmem:[#allocation87_spill] sm:$0xff] }
 0x4a7   :  { %13703 = vmatprep.subr.bf16.mxu0 %v19938_v37  ;;  %5667 = vmatprep.mubr.bf16.mxu1 %v19929_v30  ;;  %v5312_v9 = vadd.f32 %v19447_v42, %v5247_v35  ;;  %v19961_v19 = vpack.c.bf16 %v5446_v14, %v5445_v60  ;;  %v5296_v17 = vadd.f32 %v19447_v42, %v19848_v57  ;;  %v5429_v1 = vmax.f32 %v19867_v4, 0.0  ;;  %v19976_v57 = vld [vmem:[#allocation8 + $0x64] ss:$8 sps:$4 sm:$0xff]   ;;  %v23534_v51 = vld [vmem:[#allocation86_spill] sm:$0xff]  ;;  %v20005_v2 = vld [vmem:[#allocation8 + $0x60] ss:$8 sps:$4 sm:$0xff]  }
 0x4a8   :  { %v5363_v5 = vadd.f32 %v5299_v45, %v23523_v63  ;;  %v4733_v38 = vadd.f32 %v19768_v32, %v23524_v34  ;;  %v5244_v10 = vadd.f32 %v19770_v27, %v4738_v48  ;;  %v5377_v16 = vadd.f32 %v5313_v26, %v23525_v50  ;;  %v23528_v23 = vld [vmem:[#allocation117_spill] sm:$0xff]  ;;  %v23537_v63 = vld [vmem:[#allocation83_spill] sm:$0xff] }
 0x4a9   :  { %v5311_v15 = vadd.f32 %v19447_v42, %v5246_v54  ;;  %v5443_v49 = vmax.f32 %v5379_v8, 0.0  ;;  %v19978_v4 = vpack.c.bf16 %v5430_v39, %v5429_v1  ;;  %v5428_v44 = vmax.f32 %v5364_v11, 0.0  ;;  %v23530_v14 = vld [vmem:[#allocation161_spill] sm:$0xff]  ;;  %v15634_v54 = vld [vmem:[#allocation2 + $0x2] ss:$0 sm:$0xff]  ;;  %v23535_v8 = vld [vmem:[#allocation70_spill] sm:$0xff] }
 0x4aa   :  { %13704 = vmatpush3.bf16.msra.mxu0 %v19957_v40  ;;  %v4730_v32 = vadd.f32 %v19752_v6, %v23526_v36  ;;  %v5310_v0 = vadd.f32 %v19447_v42, %v5245_v41  ;;  %v5243_v20 = vadd.f32 %v19794_v52, %v4733_v38  ;;  %v5442_v27 = vmax.f32 %v5378_v31, 0.0  ;;  %v23533_v48 = vld [vmem:[#allocation69_spill] sm:$0xff]  ;;  %v23538_v38 = vld [vmem:[#allocation118_spill] sm:$0xff] }
 0x4ab   :  { %13705 = vmatprep.subr.bf16.mxu0 %v19961_v19  ;;  %v5376_v55 = vadd.f32 %v5312_v9, %v23527_v59  ;;  %v19985_v61 = vpack.c.bf16 %v5444_v56, %v5443_v49  ;;  %v4669_v24 = vadd.f32 %v19597_v62, %v23528_v23  ;;  %v5295_v29 = vadd.f32 %v19447_v42, %v23529_v18  ;;  %v23532_v62 = vld [vmem:[#allocation166_spill] sm:$0xff]  ;;  %v23536_v11 = vld [vmem:[#allocation85_spill] sm:$0xff] }
 0x4ac   :  { %v5427_v35 = vmax.f32 %v5363_v5, 0.0  ;;  %v5309_v6 = vadd.f32 %v19447_v42, %v5244_v10  ;;  %v5242_v52 = vadd.f32 %v23530_v14, %v4730_v32  ;;  %v5441_v43 = vmax.f32 %v5377_v16, 0.0  ;;  %v20008_v9 = vld [vmem:[#allocation8 + $0x74] ss:$8 sps:$4 sm:$0xff]   ;;  %v23539_v16 = vld [vmem:[#allocation120_spill] sm:$0xff]  ;;  %v23541_v36 = vld [vmem:[#allocation65_spill] sm:$0xff] }
 0x4ad   :  { %v5375_v45 = vadd.f32 %v5311_v15, %v23531_v3  ;;  %v5227_v47 = vadd.f32 %v23532_v62, %v4669_v24  ;;  %v5360_v12 = vadd.f32 %v5296_v17, %v23533_v48  ;;  %v5374_v26 = vadd.f32 %v5310_v0, %v23534_v51  ;;  %v23540_v49 = vld [vmem:[#allocation82_spill] sm:$0xff]  ;;  %v20020_v18 = vld [vmem:[#allocation8 + $0x84] ss:$8 sps:$4 sm:$0xff]   ;;  %v23543_v14 = vld [vmem:[#allocation103_spill] sm:$0xff] }
 0x4ae   :  { %5668 = vmatmul.mubr.bf16.gmra.mxu1 %v19970_v7  ;;  %13706 = vmatpush3.bf16.msra.mxu0 %v19978_v4  ;;  %v20000_v46 = vpack.c.bf16 %v5428_v44, %v5427_v35  ;;  %v5308_v60 = vadd.f32 %v15634_v54, %v5243_v20  ;;  %v5478_v42 = vpack.c.bf16 %v5442_v27, %v5441_v43  ;;  %v5440_v21 = vmax.f32 %v5376_v55, 0.0  ;;  %v23542_v59 = vld [vmem:[#allocation66_spill] sm:$0xff]  ;;  %v15297_v43 = vld [vmem:[#allocation8 + $0x80] ss:$8 sps:$4 sm:$0xff]   ;;  %v15305_v48 = vld [vmem:[#allocation8 + $0xa4] ss:$8 sps:$4 sm:$0xff]  }
 0x4af   :  { %13707 = vmatprep.subr.bf16.mxu0 %v19985_v61  ;;  %5675 = vmatprep.mubr.bf16.mxu1 %v19976_v57  ;;  %v5359_v39 = vadd.f32 %v5295_v29, %v23535_v8  ;;  %v5373_v41 = vadd.f32 %v5309_v6, %v23536_v11  ;;  %v5307_v22 = vadd.f32 %v15634_v54, %v5242_v52  ;;  %v5439_v31 = vmax.f32 %v5375_v45, 0.0  ;;  %v20018_v23 = vld [vmem:[#allocation8 + $0x70] ss:$8 sps:$4 sm:$0xff]   ;;  %v15302_v3 = vld [vmem:[#allocation8 + $0x94] ss:$8 sps:$4 sm:$0xff]   ;;  %v23544_v45 = vld [vmem:[#allocation156_spill] sm:$0xff] }
 0x4b0   :  { %v5292_v56 = vadd.f32 %v15634_v54, %v5227_v47  ;;  %v5424_v17 = vmax.f32 %v5360_v12, 0.0  ;;  %v5438_v1 = vmax.f32 %v5374_v26, 0.0  ;;  %v5372_v5 = vadd.f32 %v5308_v60, %v23537_v63  ;;  %v23545_v62 = vld [vmem:[#allocation112_spill] sm:$0xff]  ;;  %v15300_v47 = vld [vmem:[#allocation8 + $0x90] ss:$8 sps:$4 sm:$0xff]   ;;  %v23546_v12 = vld [vmem:[#allocation171_spill] sm:$0xff] }
 0x4b1   :  { %v5477_v34 = vpack.c.bf16 %v5440_v21, %v5439_v31  ;;  %v5291_v10 = vadd.f32 %v15634_v54, %v23538_v38  ;;  %v5423_v50 = vmax.f32 %v5359_v39, 0.0  ;;  %v5437_v15 = vmax.f32 %v5373_v41, 0.0  ;;  %v23547_v51 = vld [vmem:[#allocation104_spill] sm:$0xff] }
 0x4b2   :  { %13708 = vmatpush3.bf16.msra.mxu0 %v20000_v46  ;;  %v5371_v44 = vadd.f32 %v5307_v22, %v23540_v49  ;;  %v5356_v32 = vadd.f32 %v5292_v56, %v23541_v36  ;;  %v5436_v27 = vmax.f32 %v5372_v5, 0.0  ;;  %v15323_v8 = vld [vmem:[#allocation10 + $0x28] sm:$0xff]  }
 0x4b3   :  { %13709 = vmatprep.subr.bf16.mxu0 %v5478_v42  ;;  %v5469_v0 = vpack.c.bf16 %v5424_v17, %v5423_v50  ;;  %v5476_v20 = vpack.c.bf16 %v5438_v1, %v5437_v15  ;;  %v5355_v55 = vadd.f32 %v5291_v10, %v23542_v59  ;;  %v15324_v17 = vld [vmem:[#allocation10 + $0x20] sm:$0xff]  }
 0x4b4   :  { %v5435_v24 = vmax.f32 %v5371_v44, 0.0  ;;  %v5420_v29 = vmax.f32 %v5356_v32, 0.0 }
 0x4b5   :  { %v5419_v6 = vmax.f32 %v5355_v55, 0.0 }
 0x4b6   :  { %5676 = vmatmul.mubr.bf16.gmra.mxu1 %v20005_v2  ;;  %13710 = vmatpush3.bf16.msra.mxu0 %v23539_v16  ;;  %v5475_v35 = vpack.c.bf16 %v5436_v27, %v5435_v24 }
 0x4b7   :  { %13711 = vmatprep.subr.bf16.mxu0 %v5477_v34  ;;  %5683 = vmatprep.mubr.bf16.mxu1 %v20008_v9  ;;  %v5467_v52 = vpack.c.bf16 %v5420_v29, %v5419_v6 }
 0x4ba   :  { %13712 = vmatpush3.bf16.msra.mxu0 %v5469_v0 }
 0x4bb   :  { %13713 = vmatprep.subr.bf16.mxu0 %v5476_v20 }
 0x4be   :  { %5684 = vmatmul.mubr.bf16.gmra.mxu1 %v20018_v23  ;;  %13714 = vmatpush3.bf16.msra.mxu0 %v23543_v14 }
 0x4bf   :  { %13715 = vmatprep.subr.bf16.mxu0 %v5475_v35  ;;  %5804 = vmatprep.mubr.bf16.mxu1 %v20020_v18 }
 0x4c2   :  { %13716 = vmatpush3.bf16.msra.mxu0 %v5467_v52 }
 0x4c5   :  { %5902 = vmatmul.mubr.bf16.vlgmr.msra.gmra.mxu0 %v23544_v45 }
 0x4c6   :  { %5805 = vmatmul.mubr.bf16.vlgmr.msra.gmra.mxu1 %v15297_v43  ;;  %5909 = vmatprep.mubr.bf16.mxu0 %v23545_v62 }
 0x4c7   :  { %13766 = vmatpush3.bf16.msra.mxu1 %v19931_v13  ;;  %5812 = vmatprep.mubr.bf16.mxu1 %v15302_v3  ;;  %v15303_v13 = vld [vmem:[#allocation8 + $0xa0] ss:$8 sps:$4 sm:$0xff]  }
 0x4c8   :  { %13767 = vmatprep.subr.bf16.mxu1 %v19938_v37  ;;  %v15308_v37 = vld [vmem:[#allocation8 + $0xb4] ss:$8 sps:$4 sm:$0xff]  }
 0x4cb   :  { %13768 = vmatpush3.bf16.msra.mxu1 %v19957_v40  ;;  %v15306_v40 = vld [vmem:[#allocation8 + $0xb0] ss:$8 sps:$4 sm:$0xff]  }
 0x4cc   :  { %13769 = vmatprep.subr.bf16.mxu1 %v19961_v19  ;;  %v15311_v19 = vld [vmem:[#allocation8 + $0xc4] ss:$8 sps:$4 sm:$0xff]  }
 0x4cd   :  { %5910 = vmatmul.mubr.bf16.gmra.mxu0 %v23546_v12 }
 0x4ce   :  { %5813 = vmatmul.mubr.bf16.gmra.mxu1 %v15300_v47  ;;  %5917 = vmatprep.mubr.bf16.mxu0 %v23547_v51 }
 0x4cf   :  { %13770 = vmatpush3.bf16.msra.mxu1 %v19978_v4  ;;  %5820 = vmatprep.mubr.bf16.mxu1 %v15305_v48  ;;  %v15312_v4 = vld [vmem:[#allocation8 + $0xd0] ss:$8 sps:$4 sm:$0xff]  }
 0x4d0   :  { %13771 = vmatprep.subr.bf16.mxu1 %v19985_v61  ;;  %v15317_v61 = vld [vmem:[#allocation8 + $0xe4] ss:$8 sps:$4 sm:$0xff]  }
 0x4d3   :  { %13772 = vmatpush3.bf16.msra.mxu1 %v20000_v46 }
 0x4d4   :  { %13773 = vmatprep.subr.bf16.mxu1 %v5478_v42 }
 0x4d5   :  { %5918 = vmatmul.mubr.bf16.gmra.mxu0 %v19837_v28  ;;  %v15309_v28 = vld [vmem:[#allocation8 + $0xc0] ss:$8 sps:$4 sm:$0xff]  }
 0x4d6   :  { %5821 = vmatmul.mubr.bf16.gmra.mxu1 %v15303_v13  ;;  %5925 = vmatprep.mubr.bf16.mxu0 %v19845_v25  ;;  %v15314_v25 = vld [vmem:[#allocation8 + $0xd4] ss:$8 sps:$4 sm:$0xff]  }
 0x4d7   :  { %13774 = vmatpush3.bf16.msra.mxu1 %v23539_v16  ;;  %5828 = vmatprep.mubr.bf16.mxu1 %v15308_v37 }
 0x4d8   :  { %13775 = vmatprep.subr.bf16.mxu1 %v5477_v34 }
 0x4db   :  { %13776 = vmatpush3.bf16.msra.mxu1 %v5469_v0 }
 0x4dc   :  { %13777 = vmatprep.subr.bf16.mxu1 %v5476_v20 }
 0x4dd   :  { %5926 = vmatmul.mubr.bf16.gmra.mxu0 %v19886_v33  ;;  %v15315_v33 = vld [vmem:[#allocation8 + $0xe0] ss:$8 sps:$4 sm:$0xff]  }
 0x4de   :  { %5829 = vmatmul.mubr.bf16.gmra.mxu1 %v15306_v40  ;;  %5933 = vmatprep.mubr.bf16.mxu0 %v19892_v53  ;;  %v15320_v53 = vld [vmem:[#allocation8 + $0xf4] ss:$8 sps:$4 sm:$0xff]  }
 0x4df   :  { %13778 = vmatpush3.bf16.msra.mxu1 %v23543_v14  ;;  %5836 = vmatprep.mubr.bf16.mxu1 %v15311_v19 }
 0x4e0   :  { %13779 = vmatprep.subr.bf16.mxu1 %v5475_v35 }
 0x4e3   :  { %13780 = vmatpush3.bf16.msra.mxu1 %v5467_v52 }
 0x4e5   :  { %5934 = vmatmul.mubr.bf16.gmra.mxu0 %v19925_v58  ;;  %v15318_v58 = vld [vmem:[#allocation8 + $0xf0] ss:$8 sps:$4 sm:$0xff]  }
 0x4e6   :  { %5837 = vmatmul.mubr.bf16.gmra.mxu1 %v15309_v28  ;;  %5941 = vmatprep.mubr.bf16.mxu0 %v19929_v30  ;;  %v15321_v30 = vld [vmem:[#allocation10 + $0x18] sm:$0xff]  }
 0x4e7   :  { %5844 = vmatprep.mubr.bf16.mxu1 %v15314_v25  ;;  %14603 = vmatprep.subr.bf16.mxu0 %v15321_v30 }
 0x4e8   :  { %14604 = vmatpush3.bf16.msra.mxu0 %v15321_v30 }
 0x4ed   :  { %5942 = vmatmul.mubr.bf16.gmra.mxu0 %v19970_v7  ;;  %v15322_v7 = vld [vmem:[#allocation10 + $0x10] sm:$0xff]  }
 0x4ee   :  { %5845 = vmatmul.mubr.bf16.gmra.mxu1 %v15312_v4  ;;  %5949 = vmatprep.mubr.bf16.mxu0 %v19976_v57 }
 0x4ef   :  { %5852 = vmatprep.mubr.bf16.mxu1 %v15317_v61  ;;  %14605 = vmatprep.subr.bf16.mxu0 %v15322_v7 }
 0x4f0   :  { %14606 = vmatpush3.bf16.msra.mxu0 %v15322_v7 }
 0x4f1   :  { %14675 = vmatprep.subr.bf16.mxu0 %v15323_v8 }
 0x4f5   :  { %5950 = vmatmul.mubr.bf16.gmra.mxu0 %v20005_v2 }
 0x4f6   :  { %5853 = vmatmul.mubr.bf16.gmra.mxu1 %v15315_v33  ;;  %5957 = vmatprep.mubr.bf16.mxu0 %v20008_v9 }
 0x4f7   :  { %5860 = vmatprep.mubr.bf16.mxu1 %v15320_v53 }
 0x4fd   :  { %5958 = vmatmul.mubr.bf16.gmra.mxu0 %v20018_v23 }
 0x4fe   :  { %5861 = vmatmul.mubr.bf16.gmra.mxu1 %v15318_v58 }
 0x4ff   :  { %5998 = vmatprep.mubr.bf16.mxu1 %v20020_v18 }
 0x506   :  { %5999 = vmatmul.mubr.bf16.vlgmr.msra.gmra.mxu1 %v15297_v43 }
 0x507   :  { %6006 = vmatprep.mubr.bf16.mxu1 %v15302_v3 }
 0x50e   :  { %6007 = vmatmul.mubr.bf16.gmra.mxu1 %v15300_v47 }
 0x50f   :  { %6014 = vmatprep.mubr.bf16.mxu1 %v15305_v48 }
 0x516   :  { %6015 = vmatmul.mubr.bf16.gmra.mxu1 %v15303_v13 }
 0x517   :  { %6022 = vmatprep.mubr.bf16.mxu1 %v15308_v37 }
 0x51e   :  { %6023 = vmatmul.mubr.bf16.gmra.mxu1 %v15306_v40 }
 0x51f   :  { %6030 = vmatprep.mubr.bf16.mxu1 %v15311_v19 }
 0x526   :  { %6031 = vmatmul.mubr.bf16.gmra.mxu1 %v15309_v28 }
 0x527   :  { %6038 = vmatprep.mubr.bf16.mxu1 %v15314_v25 }
 0x52e   :  { %6039 = vmatmul.mubr.bf16.gmra.mxu1 %v15312_v4 }
 0x52f   :  { %6046 = vmatprep.mubr.bf16.mxu1 %v15317_v61 }
 0x536   :  { %6047 = vmatmul.mubr.bf16.gmra.mxu1 %v15315_v33 }
 0x537   :  { %6054 = vmatprep.mubr.bf16.mxu1 %v15320_v53 }
 0x53e   :  { %6055 = vmatmul.mubr.bf16.gmra.mxu1 %v15318_v58 }
 0x545   :  { %v13589_v57 = vpop.f32.mrf.mxu1 }
 0x547   :  { %v13590_v46 = vpop.f32.mrf.mxu1 }
 0x548   :  { %v13591_v60 = vadd.f32 %v13590_v46, %v13589_v57  ;;  %v15325_v46 = vld [vmem:[#allocation10 + $0x8] sm:$0xff]  }
 0x549   :  { %v13592_v26 = vpop.f32.mrf.mxu1  ;;  %14639 = vmatprep.subr.bf16.mxu1 %v15325_v46 }
 0x54a   :  { %14640 = vmatpush3.bf16.msra.mxu1 %v15325_v46 }
 0x54b   :  { %v13593_v54 = vpop.f32.mrf.mxu1 }
 0x54c   :  { %v13594_v42 = vadd.f32 %v13593_v54, %v13592_v26  ;;  %v15326_v26 = vld [vmem:[#allocation10] sm:$0xff]  }
 0x54d   :  { %v13595_v21 = vpop.f32.mrf.mxu1  ;;  %14641 = vmatprep.subr.bf16.mxu1 %v15326_v26 }
 0x54e   :  { %v20050_v39 = vpack.c.bf16 %v13594_v42, %v13591_v60  ;;  %14642 = vmatpush3.bf16.msra.mxu1 %v15326_v26 }
 0x54f   :  { %v13596_v2 = vpop.f32.mrf.mxu1 }
 0x550   :  { %14607 = vmatprep.mubr.msk.bf16.mxu0 %vm2131_vm3, %v20050_v39  ;;  %v13597_v22 = vadd.f32 %v13596_v2, %v13595_v21 }
 0x551   :  { %v13598_v11 = vpop.f32.mrf.mxu1 }
 0x553   :  { %v13599_v41 = vpop.f32.mrf.mxu1 }
 0x554   :  { %v13600_v31 = vadd.f32 %v13599_v41, %v13598_v11 }
 0x555   :  { %v13601_v9 = vpop.f32.mrf.mxu1 }
 0x556   :  { %v20054_v56 = vpack.c.bf16 %v13600_v31, %v13597_v22 }
 0x557   :  { %v13602_v1 = vpop.f32.mrf.mxu1 }
 0x558   :  { %14608 = vmatmul.mubr.msk.bf16.vlgmr.msra.gmra.mxu0 %vm2131_vm3, %v20054_v56  ;;  %v13603_v34 = vadd.f32 %v13602_v1, %v13601_v9  ;;  %v23548_v1 = vld [vmem:[#allocation44_spill] sm:$0xff] }
 0x559   :  { %v13604_v63 = vpop.f32.mrf.mxu1  ;;  %14676 = vmatpush3.bf16.msra.mxu0 %v15323_v8 }
 0x55a   :  { %14677 = vmatprep.subr.bf16.mxu0 %v15324_v17 }
 0x55b   :  { %v13605_v5 = vpop.f32.mrf.mxu1 }
 0x55c   :  { %v13606_v38 = vadd.f32 %v13605_v5, %v13604_v63 }
 0x55d   :  { %v13607_v10 = vpop.f32.mrf.mxu1  ;;  %14678 = vmatpush3.bf16.msra.mxu0 %v15324_v17 }
 0x55e   :  { %v20058_v50 = vpack.c.bf16 %v13606_v38, %v13603_v34 }
 0x55f   :  { %v13608_v16 = vpop.f32.mrf.mxu1 }
 0x560   :  { %14611 = vmatprep.mubr.msk.bf16.mxu0 %vm2131_vm3, %v20058_v50  ;;  %v13609_v44 = vadd.f32 %v13608_v16, %v13607_v10 }
 0x561   :  { %v13610_v15 = vpop.f32.mrf.mxu1 }
 0x563   :  { %v13611_v49 = vpop.f32.mrf.mxu1 }
 0x564   :  { %v13612_v36 = vadd.f32 %v13611_v49, %v13610_v15 }
 0x566   :  { %v13613_v32 = vpop.f32.mrf.mxu1  ;;  %v20062_v0 = vpack.c.bf16 %v13612_v36, %v13609_v44 }
 0x568   :  { %v13614_v20 = vpop.f32.mrf.mxu1  ;;  %14612 = vmatmul.mubr.msk.bf16.gmra.mxu0 %vm2131_vm3, %v20062_v0 }
 0x569   :  { %v13615_v55 = vadd.f32 %v13614_v20, %v13613_v32 }
 0x56a   :  { %v13616_v27 = vpop.f32.mrf.mxu1 }
 0x56c   :  { %v13617_v59 = vpop.f32.mrf.mxu1 }
 0x56d   :  { %v13618_v23 = vadd.f32 %v13617_v59, %v13616_v27 }
 0x56e   :  { %v13619_v24 = vpop.f32.mrf.mxu1 }
 0x56f   :  { %v20066_v18 = vpack.c.bf16 %v13618_v23, %v13615_v55 }
 0x570   :  { %v13620_v29 = vpop.f32.mrf.mxu1 }
 0x571   :  { %14615 = vmatprep.mubr.msk.bf16.mxu0 %vm2131_vm3, %v20066_v18  ;;  %v13621_v14 = vadd.f32 %v13620_v29, %v13619_v24 }
 0x572   :  { %v13622_v35 = vpop.f32.mrf.mxu1 }
 0x574   :  { %v13623_v6 = vpop.f32.mrf.mxu1 }
 0x575   :  { %v13624_v52 = vadd.f32 %v13623_v6, %v13622_v35 }
 0x576   :  { %v13625_v43 = vpop.f32.mrf.mxu1 }
 0x577   :  { %v20070_v3 = vpack.c.bf16 %v13624_v52, %v13621_v14 }
 0x578   :  { %v13626_v45 = vpop.f32.mrf.mxu1 }
 0x579   :  { %14616 = vmatmul.mubr.msk.bf16.gmra.mxu0 %vm2131_vm3, %v20070_v3  ;;  %v13627_v48 = vadd.f32 %v13626_v45, %v13625_v43 }
 0x57a   :  { %v13628_v62 = vpop.f32.mrf.mxu1 }
 0x57c   :  { %v13629_v47 = vpop.f32.mrf.mxu1 }
 0x57d   :  { %v13630_v12 = vadd.f32 %v13629_v47, %v13628_v62 }
 0x57e   :  { %v13631_v51 = vpop.f32.mrf.mxu1 }
 0x57f   :  { %v20074_v13 = vpack.c.bf16 %v13630_v12, %v13627_v48 }
 0x580   :  { %v13632_v37 = vpop.f32.mrf.mxu1 }
 0x581   :  { %14619 = vmatprep.mubr.msk.bf16.mxu0 %vm2131_vm3, %v20074_v13  ;;  %v13633_v28 = vadd.f32 %v13632_v37, %v13631_v51 }
 0x582   :  { %v13634_v40 = vpop.f32.mrf.mxu1 }
 0x584   :  { %v13635_v19 = vpop.f32.mrf.mxu1 }
 0x585   :  { %v13636_v25 = vadd.f32 %v13635_v19, %v13634_v40  ;;  %v13717_v4 = vpop.f32.mrf.mxu0 }
 0x586   :  { %v13653_v61 = vpop.f32.mrf.mxu1 }
 0x587   :  { %v20078_v33 = vpack.c.bf16 %v13636_v25, %v13633_v28  ;;  %v13718_v53 = vpop.f32.mrf.mxu0 }
 0x588   :  { %v13654_v58 = vpop.f32.mrf.mxu1  ;;  %v13719_v7 = vadd.f32 %v13718_v53, %v13717_v4 }
 0x589   :  { %v13720_v30 = vpop.f32.mrf.mxu0  ;;  %14620 = vmatmul.mubr.msk.bf16.gmra.mxu0 %vm2131_vm3, %v20078_v33  ;;  %v20082_v54 = vadd.f32 %v13654_v58, %v13653_v61 }
 0x58a   :  { %v13656_v57 = vpop.f32.mrf.mxu1 }
 0x58b   :  { %v13721_v60 = vpop.f32.mrf.mxu0  ;;  %v6223_v22 = vrot.slane %v20082_v54, 7 }
 0x58c   :  { %v13657_v42 = vpop.f32.mrf.mxu1  ;;  %v13722_v21 = vadd.f32 %v13721_v60, %v13720_v30 }
 0x58d   :  { %v20084_v8 = vadd.f32 %v13657_v42, %v13656_v57  ;;  %v13723_v2 = vpop.f32.mrf.mxu0 }
 0x58e   :  { %v20086_v11 = vpack.c.bf16 %v13722_v21, %v13719_v7  ;;  %v20088_v41 = vpop.f32.mrf.mxu1 }
 0x58f   :  { %v6224_v31 = vrot.slane %v20084_v8, 7  ;;  %v13724_v9 = vpop.f32.mrf.mxu0 }
 0x590   :  { %v20092_v17 = vpop.f32.mrf.mxu1  ;;  %14623 = vmatprep.mubr.msk.bf16.mxu0 %vm2131_vm3, %v20086_v11  ;;  %v13725_v34 = vadd.f32 %v13724_v9, %v13723_v2 }
 0x591   :  { %v20102_v63 = vsel %vm1468_vm5, %v6223_v22, %v6224_v31  ;;  %v13726_v5 = vpop.f32.mrf.mxu0 }
 0x592   :  { %v20104_v38 = vpop.f32.mrf.mxu1 }
 0x593   :  { %v13727_v10 = vpop.f32.mrf.mxu0 }
 0x594   :  { %v20106_v16 = vpop.f32.mrf.mxu1  ;;  %v13728_v15 = vadd.f32 %v13727_v10, %v13726_v5 }
 0x595   :  { %v13729_v49 = vpop.f32.mrf.mxu0 }
 0x596   :  { %v20108_v44 = vpack.c.bf16 %v13728_v15, %v13725_v34  ;;  %v20110_v36 = vpop.f32.mrf.mxu1 }
 0x597   :  { %v13730_v32 = vpop.f32.mrf.mxu0 }
 0x598   :  { %v20112_v20 = vpop.f32.mrf.mxu1  ;;  %14624 = vmatmul.mubr.msk.bf16.gmra.mxu0 %vm2131_vm3, %v20108_v44  ;;  %v13731_v59 = vadd.f32 %v13730_v32, %v13729_v49 }
 0x599   :  { %v13732_v27 = vpop.f32.mrf.mxu0 }
 0x59a   :  { %v20116_v55 = vpop.f32.mrf.mxu1 }
 0x59b   :  { %v13733_v23 = vpop.f32.mrf.mxu0 }
 0x59c   :  { %v20118_v24 = vpop.f32.mrf.mxu1  ;;  %v13734_v29 = vadd.f32 %v13733_v23, %v13732_v27 }
 0x59d   :  { %v13735_v35 = vpop.f32.mrf.mxu0 }
 0x59e   :  { %v20120_v6 = vpack.c.bf16 %v13734_v29, %v13731_v59  ;;  %v20122_v14 = vpop.f32.mrf.mxu1 }
 0x59f   :  { %v13736_v52 = vpop.f32.mrf.mxu0 }
 0x5a0   :  { %v20124_v43 = vpop.f32.mrf.mxu1  ;;  %14627 = vmatprep.mubr.msk.bf16.mxu0 %vm2131_vm3, %v20120_v6  ;;  %v13737_v62 = vadd.f32 %v13736_v52, %v13735_v35 }
 0x5a1   :  { %v13738_v45 = vpop.f32.mrf.mxu0 }
 0x5a2   :  { %v20128_v47 = vpop.f32.mrf.mxu1 }
 0x5a3   :  { %v13739_v48 = vpop.f32.mrf.mxu0 }
 0x5a4   :  { %v20130_v12 = vpop.f32.mrf.mxu1  ;;  %v13740_v51 = vadd.f32 %v13739_v48, %v13738_v45 }
 0x5a5   :  { %v13741_v37 = vpop.f32.mrf.mxu0 }
 0x5a6   :  { %v20132_v40 = vpack.c.bf16 %v13740_v51, %v13737_v62  ;;  %v20134_v19 = vpop.f32.mrf.mxu1 }
 0x5a7   :  { %v13742_v28 = vpop.f32.mrf.mxu0 }
 0x5a8   :  { %v20136_v25 = vpop.f32.mrf.mxu1  ;;  %14628 = vmatmul.mubr.msk.bf16.gmra.mxu0 %vm2131_vm3, %v20132_v40  ;;  %v13743_v61 = vadd.f32 %v13742_v28, %v13741_v37 }
 0x5a9   :  { %v13744_v4 = vpop.f32.mrf.mxu0 }
 0x5aa   :  { %v13680_v53 = vpop.f32.mrf.mxu1 }
 0x5ab   :  { %v13745_v58 = vpop.f32.mrf.mxu0 }
 0x5ac   :  { %v13681_v30 = vpop.f32.mrf.mxu1  ;;  %v13746_v7 = vadd.f32 %v13745_v58, %v13744_v4 }
 0x5ad   :  { %v13747_v57 = vpop.f32.mrf.mxu0 }
 0x5ae   :  { %v20140_v46 = vpack.c.bf16 %v13746_v7, %v13743_v61  ;;  %v20142_v26 = vpop.f32.mrf.mxu1 }
 0x5af   :  { %v13748_v60 = vpop.f32.mrf.mxu0 }
 0x5b0   :  { %v20144_v42 = vpop.f32.mrf.mxu1  ;;  %14631 = vmatprep.mubr.msk.bf16.mxu0 %vm2131_vm3, %v20140_v46  ;;  %v13749_v2 = vadd.f32 %v13748_v60, %v13747_v57 }
 0x5b1   :  { %v13750_v21 = vpop.f32.mrf.mxu0 }
 0x5b2   :  { %v13686_v9 = vpop.f32.mrf.mxu1 }
 0x5b3   :  { %v13751_v5 = vpop.f32.mrf.mxu0 }
 0x5b4   :  { %v13687_v34 = vpop.f32.mrf.mxu1  ;;  %v13752_v10 = vadd.f32 %v13751_v5, %v13750_v21 }
 0x5b5   :  { %v13753_v15 = vpop.f32.mrf.mxu0 }
 0x5b6   :  { %v20148_v49 = vpack.c.bf16 %v13752_v10, %v13749_v2  ;;  %v13689_v32 = vpop.f32.mrf.mxu1  ;;  %v20158_v10 = vld [vmem:[#allocation13 + $0x8] sm:$0xff]  }
 0x5b7   :  { %v13754_v27 = vpop.f32.mrf.mxu0  ;;  %14711 = vmatprep.subr.bf16.mxu1 %v20158_v10 }
 0x5b8   :  { %v13690_v59 = vpop.f32.mrf.mxu1  ;;  %14632 = vmatmul.mubr.msk.bf16.gmra.mxu0 %vm2131_vm3, %v20148_v49  ;;  %v13755_v29 = vadd.f32 %v13754_v27, %v13753_v15  ;;  %v6207_v15 = vpack.c.bf16 %v20084_v8, %v20082_v54 }
 0x5b9   :  { %v13756_v23 = vpop.f32.mrf.mxu0 }
 0x5ba   :  { %v13692_v35 = vpop.f32.mrf.mxu1 }
 0x5bb   :  { %v13757_v52 = vpop.f32.mrf.mxu0 }
 0x5bc   :  { %v13693_v45 = vpop.f32.mrf.mxu1  ;;  %v13758_v62 = vadd.f32 %v13757_v52, %v13756_v23  ;;  %v20168_v23 = vadd.f32 %v20106_v16, %v20104_v38  ;;  %v20172_v52 = vadd.f32 %v20118_v24, %v20116_v55  ;;  %v20192_v55 = vadd.f32 %v13681_v30, %v13680_v53 }
 0x5bd   :  { %v13759_v48 = vpop.f32.mrf.mxu0  ;;  %v20200_v24 = vadd.f32 %v20136_v25, %v20134_v19  ;;  %v20208_v53 = vadd.f32 %v13687_v34, %v13686_v9  ;;  %v20214_v19 = vadd.f32 %v20144_v42, %v20142_v26  ;;  %v20216_v30 = vadd.f32 %v13690_v59, %v13689_v32 }
 0x5be   :  { %v20152_v51 = vpack.c.bf16 %v13758_v62, %v13755_v29  ;;  %v13695_v37 = vpop.f32.mrf.mxu1  ;;  %v20176_v62 = vadd.f32 %v20092_v17, %v20088_v41  ;;  %v20190_v41 = vadd.f32 %v20130_v12, %v20128_v47 }
 0x5bf   :  { %v13760_v28 = vpop.f32.mrf.mxu0  ;;  %v6211_v47 = vpack.c.bf16 %v20192_v55, %v20200_v24 }
 0x5c0   :  { %v13696_v4 = vpop.f32.mrf.mxu1  ;;  %14635 = vmatprep.mubr.msk.bf16.mxu0 %vm2131_vm3, %v20152_v51  ;;  %v13761_v58 = vadd.f32 %v13760_v28, %v13759_v48  ;;  %v20180_v28 = vadd.f32 %v20112_v20, %v20110_v36  ;;  %v20196_v36 = vadd.f32 %v20124_v43, %v20122_v14  ;;  %v20210_v43 = vadd.f32 %v13693_v45, %v13692_v35 }
 0x5c1   :  { %v13762_v61 = vpop.f32.mrf.mxu0  ;;  %v20228_v42 = vadd.f32 %v13696_v4, %v13695_v37 }
 0x5c2   :  { %v13698_v7 = vpop.f32.mrf.mxu1  ;;  %v6209_v38 = vpack.c.bf16 %v20172_v52, %v20180_v28  ;;  %v6229_v8 = vrot.slane %v20196_v36, 7 }
 0x5c3   :  { %v13763_v57 = vpop.f32.mrf.mxu0 }
 0x5c4   :  { %v13699_v60 = vpop.f32.mrf.mxu1  ;;  %v13764_v21 = vadd.f32 %v13763_v57, %v13762_v61  ;;  %v6208_v61 = vpack.c.bf16 %v20168_v23, %v20176_v62  ;;  %v6210_v57 = vpack.c.bf16 %v20190_v41, %v20196_v36 }
 0x5c5   :  { %v20224_v9 = vadd.f32 %v13699_v60, %v13698_v7 }
 0x5c6   :  { %v20156_v2 = vpack.c.bf16 %v13764_v21, %v13761_v58  ;;  %v13781_v5 = vpop.f32.mrf.mxu1 }
 0x5c7   :  { %v6214_v35 = vpack.c.bf16 %v20224_v9, %v20228_v42 }
 0x5c8   :  { %v13782_v27 = vpop.f32.mrf.mxu1  ;;  %14636 = vmatmul.mubr.msk.bf16.gmra.mxu0 %vm2131_vm3, %v20156_v2 }
 0x5c9   :  { %14679 = vmatprep.mubr.msk.bf16.mxu0 %vm2131_vm3, %v6207_v15  ;;  %v6212_v15 = vpack.c.bf16 %v20208_v53, %v20214_v19  ;;  %v20230_v59 = vadd.f32 %v13782_v27, %v13781_v5 }
 0x5ca   :  { %v13784_v29 = vpop.f32.mrf.mxu1 }
 0x5cc   :  { %v13785_v48 = vpop.f32.mrf.mxu1 }
 0x5cd   :  { %v20226_v26 = vadd.f32 %v13785_v48, %v13784_v29 }
 0x5ce   :  { %v13787_v58 = vpop.f32.mrf.mxu1 }
 0x5d0   :  { %v13788_v16 = vpop.f32.mrf.mxu1  ;;  %14680 = vmatmul.mubr.msk.bf16.vlgmr.msra.gmra.mxu0 %vm2131_vm3, %v6208_v61 }
 0x5d1   :  { %14683 = vmatprep.mubr.msk.bf16.mxu0 %vm2131_vm3, %v6209_v38  ;;  %v6213_v38 = vpack.c.bf16 %v20210_v43, %v20216_v30  ;;  %v20242_v4 = vadd.f32 %v13788_v16, %v13787_v58 }
 0x5d2   :  { %v13790_v17 = vpop.f32.mrf.mxu1 }
 0x5d4   :  { %v13791_v20 = vpop.f32.mrf.mxu1 }
 0x5d5   :  { %v20238_v7 = vadd.f32 %v13791_v20, %v13790_v17 }
 0x5d6   :  { %v13793_v21 = vpop.f32.mrf.mxu1 }
 0x5d7   :  { %v6216_v29 = vpack.c.bf16 %v20238_v7, %v20242_v4 }
 0x5d8   :  { %v13794_v12 = vpop.f32.mrf.mxu1  ;;  %14684 = vmatmul.mubr.msk.bf16.gmra.mxu0 %vm2131_vm3, %v6210_v57 }
 0x5d9   :  { %14687 = vmatprep.mubr.msk.bf16.mxu0 %vm2131_vm3, %v6211_v47  ;;  %v6215_v47 = vpack.c.bf16 %v20226_v26, %v20230_v59  ;;  %v20244_v27 = vadd.f32 %v13794_v12, %v13793_v21 }
 0x5da   :  { %v13796_v14 = vpop.f32.mrf.mxu1 }
 0x5dc   :  { %v13797_v25 = vpop.f32.mrf.mxu1 }
 0x5dd   :  { %v20240_v37 = vadd.f32 %v13797_v25, %v13796_v14 }
 0x5de   :  { %v13799_v61 = vpop.f32.mrf.mxu1 }
 0x5e0   :  { %v13800_v57 = vpop.f32.mrf.mxu1  ;;  %14688 = vmatmul.mubr.msk.bf16.gmra.mxu0 %vm2131_vm3, %v6212_v15 }
 0x5e1   :  { %14691 = vmatprep.mubr.msk.bf16.mxu0 %vm2131_vm3, %v6213_v38  ;;  %v6217_v38 = vpack.c.bf16 %v20240_v37, %v20244_v27  ;;  %v20256_v16 = vadd.f32 %v13800_v57, %v13799_v61 }
 0x5e2   :  { %v13802_v34 = vpop.f32.mrf.mxu1 }
 0x5e4   :  { %v13803_v32 = vpop.f32.mrf.mxu1 }
 0x5e5   :  { %v20252_v17 = vadd.f32 %v13803_v32, %v13802_v34 }
 0x5e6   :  { %v13805_v45 = vpop.f32.mrf.mxu1 }
 0x5e7   :  { %v6218_v14 = vpack.c.bf16 %v20252_v17, %v20256_v16 }
 0x5e8   :  { %v13806_v15 = vpop.f32.mrf.mxu1  ;;  %14692 = vmatmul.mubr.msk.bf16.gmra.mxu0 %vm2131_vm3, %v6214_v35 }
 0x5e9   :  { %14695 = vmatprep.mubr.msk.bf16.mxu0 %vm2131_vm3, %v6215_v47  ;;  %v20258_v12 = vadd.f32 %v13806_v15, %v13805_v45 }
 0x5ea   :  { %v13808_v60 = vpop.f32.mrf.mxu1 }
 0x5ec   :  { %v13809_v5 = vpop.f32.mrf.mxu1 }
 0x5ed   :  { %v20254_v58 = vadd.f32 %v13809_v5, %v13808_v60 }
 0x5ee   :  { %v13811_v48 = vpop.f32.mrf.mxu1 }
 0x5ef   :  { %v6219_v47 = vpack.c.bf16 %v20254_v58, %v20258_v12 }
 0x5f0   :  { %v13812_v35 = vpop.f32.mrf.mxu1  ;;  %14696 = vmatmul.mubr.msk.bf16.gmra.mxu0 %vm2131_vm3, %v6216_v29 }
 0x5f1   :  { %14699 = vmatprep.mubr.msk.bf16.mxu0 %vm2131_vm3, %v6217_v38  ;;  %v20268_v61 = vadd.f32 %v13812_v35, %v13811_v48  ;;  %v6226_v35 = vrot.slane %v20168_v23, 7 }
 0x5f2   :  { %v13814_v20 = vpop.f32.mrf.mxu1 }
 0x5f4   :  { %v13815_v21 = vpop.f32.mrf.mxu1 }
 0x5f5   :  { %v20266_v34 = vadd.f32 %v13815_v21, %v13814_v20 }
 0x5f6   :  { %v13817_v25 = vpop.f32.mrf.mxu1 }
 0x5f7   :  { %v6220_v60 = vpack.c.bf16 %v20266_v34, %v20268_v61 }
 0x5f8   :  { %v13818_v29 = vpop.f32.mrf.mxu1  ;;  %14700 = vmatmul.mubr.msk.bf16.gmra.mxu0 %vm2131_vm3, %v6218_v14 }
 0x5f9   :  { %14703 = vmatprep.mubr.msk.bf16.mxu0 %vm2131_vm3, %v6219_v47  ;;  %v20270_v45 = vadd.f32 %v13818_v29, %v13817_v25  ;;  %v6228_v47 = vrot.slane %v20172_v52, 7  ;;  %v6225_v29 = vrot.slane %v20176_v62, 7 }
 0x5fa   :  { %v13820_v32 = vpop.f32.mrf.mxu1 }
 0x5fc   :  { %v13821_v57 = vpop.f32.mrf.mxu1 }
 0x5fd   :  { %v20272_v15 = vadd.f32 %v13821_v57, %v13820_v32 }
 0x5fe   :  { %v13823_v5 = vpop.f32.mrf.mxu1 }
 0x5ff   :  { %v6221_v38 = vpack.c.bf16 %v20272_v15, %v20270_v45 }
 0x600   :  { %v13824_v14 = vpop.f32.mrf.mxu1  ;;  %14704 = vmatmul.mubr.msk.bf16.gmra.mxu0 %vm2131_vm3, %v6220_v60  ;;  %v6227_v60 = vrot.slane %v20180_v28, 7  ;;  %v6284_v28 = vsel %vm1468_vm5, %v6224_v31, %v6225_v29  ;;  %v6231_v31 = vrot.slane %v20200_v24, 7  ;;  %v6236_v24 = vrot.slane %v20210_v43, 7 }
 0x601   :  { %14707 = vmatprep.mubr.msk.bf16.mxu0 %vm2131_vm3, %v6221_v38  ;;  %v20281_v21 = vadd.f32 %v13824_v14, %v13823_v5  ;;  %v6283_v38 = vsel %vm1468_vm5, %v6225_v29, %v6226_v35  ;;  %v6234_v29 = vrot.slane %v20208_v53, 7 }
 0x602   :  { %v13826_v20 = vpop.f32.mrf.mxu1  ;;  %v6281_v52 = vsel %vm1468_vm5, %v6227_v60, %v6228_v47  ;;  %v6384_v5 = vpack.c.bf16 %v6283_v38, %v6284_v28  ;;  %v6282_v14 = vsel %vm1468_vm5, %v6226_v35, %v6227_v60  ;;  %v6233_v60 = vrot.slane %v20214_v19, 7 }
 0x603   :  { %v6235_v38 = vrot.slane %v20216_v30, 7  ;;  %v20343_v19 = vadd.s32 128, %v23548_v1  ;;  %v6239_v30 = vrot.slane %v20230_v59, 7  ;;  %v20536_v1 = vld [vmem:[#allocation2 + $0x3] ss:$0 sm:$0xff] }
 0x604   :  { %v13827_v48 = vpop.f32.mrf.mxu1 }
 0x605   :  { %v20283_v25 = vadd.f32 %v13827_v48, %v13826_v20  ;;  %v6230_v20 = vrot.slane %v20190_v41, 7  ;;  %v6385_v48 = vpack.c.bf16 %v6281_v52, %v6282_v14  ;;  %v6274_v43 = vsel %vm1468_vm5, %v6234_v29, %v6235_v38  ;;  %23549 = vst [vmem:[#allocation122_spill] sm:$0xff] %v20343_v19 }
 0x606   :  { %vm6111_vm10 = vcmp.eq.s32.totalorder %v20343_v19, 128 }
 0x607   :  { %v6222_v32 = vpack.c.bf16 %v20283_v25, %v20281_v21  ;;  %v6254_v57 = vrot.slane %v20283_v25, 7  ;;  %v6278_v36 = vsel %vm1468_vm5, %v6230_v20, %v6231_v31 }
 0x609   :  { %v6286_v23 = vsel %vm1468_vm5, %v6254_v57, %v6223_v22  ;;  %14708 = vmatmul.mubr.msk.bf16.gmra.mxu0 %vm2131_vm3, %v6222_v32  ;;  %v15328_v22 = vld [vmem:[#allocation13] sm:$0xff]   ;;  %v6232_v32 = vrot.slane %v20192_v55, 7  ;;  %v6280_v55 = vsel %vm1468_vm5, %v6228_v47, %v6229_v8  ;;  %v6275_v47 = vsel %vm1468_vm5, %v6233_v60, %v6234_v29 }
 0x60a   :  { %v6351_v62 = vsel %vm988_vm4, 0.0, %v6286_v23  ;;  %v6273_v23 = vsel %vm1468_vm5, %v6235_v38, %v6236_v24  ;;  %v6245_v38 = vrot.slane %v20256_v16, 7  ;;  %v6250_v16 = vrot.slane %v20266_v34, 7 }
 0x60b   :  { %v6383_v54 = vpack.c.bf16 %v20102_v63, %v6351_v62  ;;  %v6279_v63 = vsel %vm1468_vm5, %v6229_v8, %v6230_v20  ;;  %v6277_v41 = vsel %vm1468_vm5, %v6231_v31, %v6232_v32  ;;  %v6276_v53 = vsel %vm1468_vm5, %v6232_v32, %v6233_v60 }
 0x60c   :  { %v6386_v35 = vpack.c.bf16 %v6279_v63, %v6280_v55  ;;  %v6388_v52 = vpack.c.bf16 %v6275_v47, %v6276_v53  ;;  %v6238_v62 = vrot.slane %v20224_v9, 7  ;;  %v6389_v28 = vpack.c.bf16 %v6273_v23, %v6274_v43 }
 0x60d   :  { %14643 = vmatprep.mubr.msk.bf16.mxu1 %vm2131_vm3, %v6383_v54  ;;  %v6240_v54 = vrot.slane %v20226_v26, 7  ;;  %v6242_v32 = vrot.slane %v20238_v7, 7  ;;  %v6244_v31 = vrot.slane %v20240_v37, 7  ;;  %v6241_v63 = vrot.slane %v20242_v4, 7 }
 0x60e   :  { %14644 = vmatmul.mubr.msk.bf16.vlgmr.msra.gmra.mxu1 %vm2131_vm3, %v6384_v5  ;;  %v6237_v5 = vrot.slane %v20228_v42, 7  ;;  %v6270_v9 = vsel %vm1468_vm5, %v6238_v62, %v6239_v30  ;;  %v6247_v47 = vrot.slane %v20258_v12, 7  ;;  %v6252_v12 = vrot.slane %v20272_v15, 7 }
 0x60f   :  { %14647 = vmatprep.mubr.msk.bf16.mxu1 %vm2131_vm3, %v6385_v48  ;;  %14712 = vmatpush3.bf16.msra.mxu1 %v20158_v10  ;;  %v6387_v10 = vpack.c.bf16 %v6277_v41, %v6278_v36  ;;  %v6269_v59 = vsel %vm1468_vm5, %v6239_v30, %v6240_v54  ;;  %v6367_v42 = vsel %vm6111_vm10, 0.0, %v6270_v9  ;;  %v6243_v41 = vrot.slane %v20244_v27, 7 }
 0x610   :  { %14713 = vmatprep.subr.bf16.mxu1 %v15328_v22  ;;  %v6272_v26 = vsel %vm1468_vm5, %v6236_v24, %v6237_v5  ;;  %v6391_v8 = vpack.c.bf16 %v6269_v59, %v6367_v42  ;;  %v6268_v7 = vsel %vm1468_vm5, %v6240_v54, %v6241_v63  ;;  %v6248_v24 = vrot.slane %v20254_v58, 7 }
 0x611   :  { %v6265_v36 = vsel %vm1468_vm5, %v6243_v41, %v6244_v31  ;;  %v6266_v29 = vsel %vm1468_vm5, %v6242_v32, %v6243_v41  ;;  %v6264_v58 = vsel %vm1468_vm5, %v6244_v31, %v6245_v38  ;;  %v6251_v54 = vrot.slane %v20270_v45, 7 }
 0x612   :  { %v6393_v27 = vpack.c.bf16 %v6265_v36, %v6266_v29  ;;  %v6261_v53 = vsel %vm1468_vm5, %v6247_v47, %v6248_v24  ;;  %v6253_v45 = vrot.slane %v20281_v21, 7 }
 0x613   :  { %14714 = vmatpush3.bf16.msra.mxu1 %v15328_v22  ;;  %v6271_v22 = vsel %vm1468_vm5, %v6237_v5, %v6238_v62  ;;  %v6258_v59 = vsel %vm1468_vm5, %v6250_v16, %v6251_v54 }
 0x614   :  { %v6390_v20 = vpack.c.bf16 %v6271_v22, %v6272_v26  ;;  %v6257_v22 = vsel %vm1468_vm5, %v6251_v54, %v6252_v12  ;;  %v6255_v42 = vsel %vm1468_vm5, %v6253_v45, %v6254_v57 }
 0x615   :  { %v6397_v26 = vpack.c.bf16 %v6257_v22, %v6258_v59 }
 0x616   :  { %14648 = vmatmul.mubr.msk.bf16.gmra.mxu1 %vm2131_vm3, %v6386_v35  ;;  %v6267_v35 = vsel %vm1468_vm5, %v6241_v63, %v6242_v32  ;;  %v6256_v32 = vsel %vm1468_vm5, %v6252_v12, %v6253_v45 }
 0x617   :  { %14651 = vmatprep.mubr.msk.bf16.mxu1 %vm2131_vm3, %v6387_v10  ;;  %v6392_v37 = vpack.c.bf16 %v6267_v35, %v6268_v7  ;;  %v6246_v10 = vrot.slane %v20252_v17, 7  ;;  %v15329_v35 = vld [vmem:[#allocation11 + $0x38] sm:$0xff]   ;;  %v15332_v7 = vld [vmem:[#allocation11 + $0x20] sm:$0xff]  }
 0x618   :  { %v20350_v14 = vpop.f32.mrf.mxu0  ;;  %14747 = vmatprep.subr.bf16.mxu0 %v15329_v35 }
 0x619   :  { %v6263_v23 = vsel %vm1468_vm5, %v6245_v38, %v6246_v10  ;;  %v6262_v43 = vsel %vm1468_vm5, %v6246_v10, %v6247_v47  ;;  %14748 = vmatpush3.bf16.msra.mxu0 %v15329_v35  ;;  %v20509_v47 = vld [vmem:[#allocation11 + $0x58] sm:$0xff]  }
 0x61a   :  { %v20363_v48 = vpop.f32.mrf.mxu0  ;;  %v6395_v62 = vpack.c.bf16 %v6261_v53, %v6262_v43  ;;  %v15338_v53 = vld [vmem:[#allocation11] sm:$0xff]  }
 0x61c   :  { %v20371_v55 = vpop.f32.mrf.mxu0 }
 0x61e   :  { %14652 = vmatmul.mubr.msk.bf16.gmra.mxu1 %vm2131_vm3, %v6388_v52  ;;  %v20381_v4 = vpop.f32.mrf.mxu0  ;;  %v6394_v52 = vpack.c.bf16 %v6263_v23, %v6264_v58 }
 0x61f   :  { %14655 = vmatprep.mubr.msk.bf16.mxu1 %vm2131_vm3, %v6389_v28  ;;  %v6249_v28 = vrot.slane %v20268_v61, 7 }
 0x621   :  { %v6259_v5 = vsel %vm1468_vm5, %v6249_v28, %v6250_v16  ;;  %v6260_v15 = vsel %vm1468_vm5, %v6248_v24, %v6249_v28 }
 0x622   :  { %v6396_v9 = vpack.c.bf16 %v6259_v5, %v6260_v15 }
 0x626   :  { %14656 = vmatmul.mubr.msk.bf16.gmra.mxu1 %vm2131_vm3, %v6390_v20 }
 0x627   :  { %14659 = vmatprep.mubr.msk.bf16.mxu1 %vm2131_vm3, %v6391_v8  ;;  %v6398_v8 = vpack.c.bf16 %v6255_v42, %v6256_v32 }
 0x628   :  { %v20386_v60 = vpop.f32.mrf.mxu0 }
 0x62a   :  { %v20395_v17 = vpop.f32.mrf.mxu0 }
 0x62c   :  { %v20404_v30 = vpop.f32.mrf.mxu0 }
 0x62e   :  { %14660 = vmatmul.mubr.msk.bf16.gmra.mxu1 %vm2131_vm3, %v6392_v37  ;;  %v20413_v34 = vpop.f32.mrf.mxu0 }
 0x62f   :  { %14663 = vmatprep.mubr.msk.bf16.mxu1 %vm2131_vm3, %v6393_v27 }
 0x636   :  { %14664 = vmatmul.mubr.msk.bf16.gmra.mxu1 %vm2131_vm3, %v6394_v52 }
 0x637   :  { %14667 = vmatprep.mubr.msk.bf16.mxu1 %vm2131_vm3, %v6395_v62 }
 0x639   :  { %v20419_v61 = vpop.f32.mrf.mxu0 }
 0x63b   :  { %v20424_v20 = vpop.f32.mrf.mxu0 }
 0x63d   :  { %v20432_v31 = vpop.f32.mrf.mxu0 }
 0x63e   :  { %14668 = vmatmul.mubr.msk.bf16.gmra.mxu1 %vm2131_vm3, %v6396_v9 }
 0x63f   :  { %14671 = vmatprep.mubr.msk.bf16.mxu1 %vm2131_vm3, %v6397_v26  ;;  %v20437_v21 = vpop.f32.mrf.mxu0 }
 0x646   :  { %14672 = vmatmul.mubr.msk.bf16.gmra.mxu1 %vm2131_vm3, %v6398_v8 }
 0x647   :  { %14715 = vmatprep.mubr.msk.bf16.mxu1 %vm2131_vm3, %v20050_v39 }
 0x649   :  { %v20439_v63 = vpop.f32.mrf.mxu0 }
 0x64b   :  { %v20443_v25 = vpop.f32.mrf.mxu0 }
 0x64d   :  { %v20447_v57 = vpop.f32.mrf.mxu0 }
 0x64e   :  { %14716 = vmatmul.mubr.msk.bf16.vlgmr.msra.gmra.mxu1 %vm2131_vm3, %v20054_v56 }
 0x64f   :  { %14719 = vmatprep.mubr.msk.bf16.mxu1 %vm2131_vm3, %v20058_v50  ;;  %v20451_v41 = vpop.f32.mrf.mxu0 }
 0x656   :  { %14720 = vmatmul.mubr.msk.bf16.gmra.mxu1 %vm2131_vm3, %v20062_v0  ;;  %v15330_v0 = vld [vmem:[#allocation11 + $0x30] sm:$0xff]  }
 0x657   :  { %14723 = vmatprep.mubr.msk.bf16.mxu1 %vm2131_vm3, %v20066_v18  ;;  %14749 = vmatprep.subr.bf16.mxu0 %v15330_v0  ;;  %v15331_v18 = vld [vmem:[#allocation11 + $0x28] sm:$0xff]  }
 0x658   :  { %v20455_v39 = vpop.f32.mrf.mxu0  ;;  %14750 = vmatpush3.bf16.msra.mxu0 %v15330_v0 }
 0x659   :  { %14751 = vmatprep.subr.bf16.mxu0 %v15331_v18 }
 0x65a   :  { %v20457_v56 = vpop.f32.mrf.mxu0 }
 0x65c   :  { %v20463_v50 = vpop.f32.mrf.mxu0  ;;  %14752 = vmatpush3.bf16.msra.mxu0 %v15331_v18 }
 0x65d   :  { %14753 = vmatprep.subr.bf16.mxu0 %v15332_v7 }
 0x65e   :  { %14724 = vmatmul.mubr.msk.bf16.gmra.mxu1 %vm2131_vm3, %v20070_v3  ;;  %v20465_v36 = vpop.f32.mrf.mxu0 }
 0x65f   :  { %14727 = vmatprep.mubr.msk.bf16.mxu1 %vm2131_vm3, %v20074_v13 }
 0x660   :  { %14754 = vmatpush3.bf16.msra.mxu0 %v15332_v7 }
 0x661   :  { %14827 = vmatprep.subr.bf16.mxu0 %v20509_v47 }
 0x666   :  { %14728 = vmatmul.mubr.msk.bf16.gmra.mxu1 %vm2131_vm3, %v20078_v33 }
 0x667   :  { %14731 = vmatprep.mubr.msk.bf16.mxu1 %vm2131_vm3, %v20086_v11 }
 0x668   :  { %v20471_v3 = vpop.f32.mrf.mxu0 }
 0x66a   :  { %v20473_v13 = vpop.f32.mrf.mxu0 }
 0x66c   :  { %v20479_v37 = vpop.f32.mrf.mxu0 }
 0x66e   :  { %14732 = vmatmul.mubr.msk.bf16.gmra.mxu1 %vm2131_vm3, %v20108_v44  ;;  %v20481_v33 = vpop.f32.mrf.mxu0 }
 0x66f   :  { %14735 = vmatprep.mubr.msk.bf16.mxu1 %vm2131_vm3, %v20120_v6 }
 0x676   :  { %14736 = vmatmul.mubr.msk.bf16.gmra.mxu1 %vm2131_vm3, %v20132_v40 }
 0x677   :  { %14739 = vmatprep.mubr.msk.bf16.mxu1 %vm2131_vm3, %v20140_v46 }
 0x678   :  { %v20487_v11 = vpop.f32.mrf.mxu0 }
 0x67a   :  { %v20489_v29 = vpop.f32.mrf.mxu0 }
 0x67c   :  { %v20495_v44 = vpop.f32.mrf.mxu0 }
 0x67e   :  { %14740 = vmatmul.mubr.msk.bf16.gmra.mxu1 %vm2131_vm3, %v20148_v49  ;;  %v20497_v6 = vpop.f32.mrf.mxu0  ;;  %v15333_v49 = vld [vmem:[#allocation11 + $0x18] sm:$0xff]  }
 0x67f   :  { %14743 = vmatprep.mubr.msk.bf16.mxu1 %vm2131_vm3, %v20152_v51  ;;  %14787 = vmatprep.subr.bf16.mxu1 %v15333_v49  ;;  %v15334_v51 = vld [vmem:[#allocation11 + $0x10] sm:$0xff]  }
 0x680   :  { %14788 = vmatpush3.bf16.msra.mxu1 %v15333_v49 }
 0x681   :  { %14789 = vmatprep.subr.bf16.mxu1 %v15334_v51 }
 0x684   :  { %14790 = vmatpush3.bf16.msra.mxu1 %v15334_v51 }
 0x686   :  { %14744 = vmatmul.mubr.msk.bf16.gmra.mxu1 %vm2131_vm3, %v20156_v2  ;;  %v15336_v2 = vld [vmem:[#allocation11 + $0x8] sm:$0xff]  }
 0x687   :  { %14791 = vmatprep.subr.bf16.mxu1 %v15336_v2 }
 0x688   :  { %v20501_v40 = vpop.f32.mrf.mxu0  ;;  %14792 = vmatpush3.bf16.msra.mxu1 %v15336_v2 }
 0x689   :  { %14793 = vmatprep.subr.bf16.mxu1 %v15338_v53 }
 0x68a   :  { %v20503_v46 = vpop.f32.mrf.mxu0 }
 0x68c   :  { %v20505_v10 = vpop.f32.mrf.mxu0  ;;  %14794 = vmatpush3.bf16.msra.mxu1 %v15338_v53 }
 0x68e   :  { %v20507_v27 = vpop.f32.mrf.mxu0 }
 0x68f   :  { %23550 = vst [vmem:[#allocation172_spill] sm:$0xff] %v20507_v27 }
 0x690   :  { %v14681_v24 = vpop.f32.mrf.mxu0 }
 0x692   :  { %v6949_v38 = vpop.f32.mrf.mxu0 }
 0x694   :  { %v14682_v23 = vpop.f32.mrf.mxu0 }
 0x696   :  { %v6952_v58 = vpop.f32.mrf.mxu0 }
 0x698   :  { %v14685_v52 = vpop.f32.mrf.mxu0 }
 0x69a   :  { %v6965_v43 = vpop.f32.mrf.mxu0 }
 0x69c   :  { %v14686_v16 = vpop.f32.mrf.mxu0 }
 0x69e   :  { %v6968_v62 = vpop.f32.mrf.mxu0 }
 0x6a0   :  { %v20512_v12 = vpop.f32.mrf.mxu0 }
 0x6a2   :  { %v20514_v28 = vpop.f32.mrf.mxu0 }
 0x6a4   :  { %v20516_v54 = vpop.f32.mrf.mxu0 }
 0x6a6   :  { %v20518_v5 = vpop.f32.mrf.mxu0 }
 0x6a8   :  { %v20520_v22 = vpop.f32.mrf.mxu0 }
 0x6aa   :  { %v20522_v15 = vpop.f32.mrf.mxu0 }
 0x6ac   :  { %v20524_v9 = vpop.f32.mrf.mxu0 }
 0x6ae   :  { %v20526_v59 = vpop.f32.mrf.mxu0 }
 0x6b0   :  { %v20530_v8 = vpop.f32.mrf.mxu0 }
 0x6b2   :  { %v20534_v53 = vpop.f32.mrf.mxu0 }
 0x6ce   :  { %v14645_v26 = vpop.f32.mrf.mxu1 }
 0x6cf   :  { %v6732_v32 = vadd.f32 %v14645_v26, %v20350_v14 }
 0x6d0   :  { %v6723_v45 = vpop.f32.mrf.mxu1 }
 0x6d1   :  { %v6724_v42 = vadd.f32 %v6723_v45, %v20363_v48  ;;  %v7078_v2 = vadd.f32 %v14681_v24, %v6732_v32 }
 0x6d2   :  { %v14646_v35 = vpop.f32.mrf.mxu1 }
 0x6d3   :  { %v6735_v0 = vadd.f32 %v14646_v35, %v20371_v55  ;;  %v7076_v7 = vadd.f32 %v6949_v38, %v6724_v42  ;;  %v7111_v38 = vadd.f32 %v20536_v1, %v7078_v2 }
 0x6d4   :  { %v6726_v18 = vpop.f32.mrf.mxu1 }
 0x6d5   :  { %v7079_v49 = vadd.f32 %v14682_v23, %v6735_v0  ;;  %v6727_v51 = vadd.f32 %v6726_v18, %v20381_v4  ;;  %v7109_v26 = vadd.f32 %v20536_v1, %v7076_v7  ;;  %v20543_v23 = vpop.f32.mrf.mxu0 }
 0x6d6   :  { %v14649_v19 = vpop.f32.mrf.mxu1 }
 0x6d7   :  { %v7112_v48 = vadd.f32 %v20536_v1, %v7079_v49  ;;  %v7077_v45 = vadd.f32 %v6952_v58, %v6727_v51  ;;  %v6748_v27 = vadd.f32 %v14649_v19, %v20386_v60  ;;  %v20551_v18 = vmax.f32 %v7109_v26, 0.0  ;;  %v20556_v7 = vpop.f32.mrf.mxu0 }
 0x6d8   :  { %v6739_v14 = vpop.f32.mrf.mxu1 }
 0x6d9   :  { %v6740_v55 = vadd.f32 %v6739_v14, %v20395_v17  ;;  %v7110_v4 = vadd.f32 %v20536_v1, %v7077_v45  ;;  %v20546_v42 = vmax.f32 %v7112_v48, 0.0  ;;  %v7082_v19 = vadd.f32 %v14685_v52, %v6748_v27 }
 0x6da   :  { %v14650_v24 = vpop.f32.mrf.mxu1  ;;  %v20554_v17 = vmax.f32 %v7111_v38, 0.0 }
 0x6db   :  { %v20548_v32 = vmax.f32 %v7110_v4, 0.0  ;;  %v7080_v35 = vadd.f32 %v6965_v43, %v6740_v55  ;;  %v6751_v58 = vadd.f32 %v14650_v24, %v20404_v30  ;;  %v7115_v45 = vadd.f32 %v20536_v1, %v7082_v19 }
 0x6dc   :  { %v6742_v0 = vpop.f32.mrf.mxu1  ;;  %v7352_v30 = vpack.c.bf16 %v20546_v42, %v20554_v17 }
 0x6dd   :  { %v6743_v60 = vadd.f32 %v6742_v0, %v20413_v34  ;;  %v7083_v49 = vadd.f32 %v14686_v16, %v6751_v58  ;;  %v7351_v48 = vpack.c.bf16 %v20548_v32, %v20551_v18  ;;  %v7113_v43 = vadd.f32 %v20536_v1, %v7080_v35  ;;  %v15337_v34 = vld [vmem:[#allocation11 + $0x50] sm:$0xff]  }
 0x6de   :  { %v14653_v51 = vpop.f32.mrf.mxu1  ;;  %v20580_v0 = vmax.f32 %v7115_v45, 0.0 }
 0x6df   :  { %v7081_v2 = vadd.f32 %v6968_v62, %v6743_v60  ;;  %v7116_v27 = vadd.f32 %v20536_v1, %v7083_v49  ;;  %14755 = vmatprep.mubr.msk.bf16.mxu0 %vm7696_vm11, %v7351_v48  ;;  %v6764_v16 = vadd.f32 %v14653_v51, %v20419_v61  ;;  %v20568_v62 = vpop.f32.mrf.mxu0  ;;  %v20578_v35 = vmax.f32 %v7113_v43, 0.0  ;;  %v15339_v61 = vld [vmem:[#allocation11 + $0x48] sm:$0xff]  }
 0x6e0   :  { %v6755_v52 = vpop.f32.mrf.mxu1  ;;  %14756 = vmatmul.mubr.msk.bf16.vlgmr.msra.gmra.mxu0 %vm7696_vm11, %v7352_v30 }
 0x6e1   :  { %v7114_v14 = vadd.f32 %v20536_v1, %v7081_v2  ;;  %v6756_v26 = vadd.f32 %v6755_v52, %v20424_v20  ;;  %v20572_v38 = vmax.f32 %v7116_v27, 0.0  ;;  %14828 = vmatpush3.bf16.msra.mxu0 %v20509_v47  ;;  %v7086_v19 = vadd.f32 %v20512_v12, %v6764_v16  ;;  %v20584_v60 = vpop.f32.mrf.mxu0 }
 0x6e2   :  { %v14654_v55 = vpop.f32.mrf.mxu1  ;;  %14829 = vmatprep.subr.bf16.mxu0 %v15337_v34 }
 0x6e3   :  { %v20574_v4 = vmax.f32 %v7114_v14, 0.0  ;;  %v6767_v24 = vadd.f32 %v14654_v55, %v20432_v31  ;;  %v7084_v20 = vadd.f32 %v20514_v28, %v6756_v26  ;;  %v7354_v2 = vpack.c.bf16 %v20572_v38, %v20580_v0  ;;  %v20597_v43 = vpop.f32.mrf.mxu0 }
 0x6e4   :  { %v6758_v58 = vpop.f32.mrf.mxu1 }
 0x6e5   :  { %v7087_v49 = vadd.f32 %v20516_v54, %v6767_v24  ;;  %v6759_v51 = vadd.f32 %v6758_v58, %v20437_v21  ;;  %v7353_v47 = vpack.c.bf16 %v20574_v4, %v20578_v35  ;;  %14830 = vmatpush3.bf16.msra.mxu0 %v15337_v34  ;;  %v7117_v48 = vadd.f32 %v20536_v1, %v7084_v20  ;;  %v15340_v54 = vld [vmem:[#allocation11 + $0x40] sm:$0xff]   ;;  %v7032_v20 = vpop.f32.mrf.mxu0 }
 0x6e6   :  { %v14657_v31 = vpop.f32.mrf.mxu1  ;;  %14831 = vmatprep.subr.bf16.mxu0 %v15339_v61  ;;  %v7119_v21 = vadd.f32 %v20536_v1, %v7086_v19 }
 0x6e7   :  { %v7120_v28 = vadd.f32 %v20536_v1, %v7087_v49  ;;  %v7085_v12 = vadd.f32 %v20518_v5, %v6759_v51  ;;  %14759 = vmatprep.mubr.msk.bf16.mxu0 %vm7696_vm11, %v7353_v47  ;;  %v6780_v52 = vadd.f32 %v14657_v31, %v20439_v63  ;;  %v20604_v14 = vmax.f32 %v7117_v48, 0.0  ;;  %v20628_v48 = vpop.f32.mrf.mxu0 }
 0x6e8   :  { %v6771_v30 = vpop.f32.mrf.mxu1  ;;  %14760 = vmatmul.mubr.msk.bf16.gmra.mxu0 %vm7696_vm11, %v7354_v2  ;;  %v20613_v58 = vmax.f32 %v7119_v21, 0.0 }
 0x6e9   :  { %v7118_v27 = vadd.f32 %v20536_v1, %v7085_v12  ;;  %v6772_v34 = vadd.f32 %v6771_v30, %v20443_v25  ;;  %14832 = vmatpush3.bf16.msra.mxu0 %v15339_v61  ;;  %v20606_v16 = vmax.f32 %v7120_v28, 0.0 }
 0x6ea   :  { %v14658_v45 = vpop.f32.mrf.mxu1  ;;  %14833 = vmatprep.subr.bf16.mxu0 %v15340_v54 }
 0x6eb   :  { %v6783_v5 = vadd.f32 %v14658_v45, %v20447_v57  ;;  %v20608_v26 = vmax.f32 %v7118_v27, 0.0  ;;  %v7088_v24 = vadd.f32 %v20522_v15, %v6772_v34  ;;  %v7090_v57 = vadd.f32 %v20520_v22, %v6780_v52  ;;  %v7045_v34 = vpop.f32.mrf.mxu0 }
 0x6ec   :  { %v6774_v55 = vpop.f32.mrf.mxu1  ;;  %v7356_v49 = vpack.c.bf16 %v20606_v16, %v20613_v58 }
 0x6ed   :  { %v7091_v63 = vadd.f32 %v20524_v9, %v6783_v5  ;;  %v6775_v25 = vadd.f32 %v6774_v55, %v20451_v41  ;;  %v7355_v19 = vpack.c.bf16 %v20608_v26, %v20604_v14  ;;  %14834 = vmatpush3.bf16.msra.mxu0 %v15340_v54  ;;  %v7121_v9 = vadd.f32 %v20536_v1, %v7088_v24 }
 0x6ee   :  { %v14661_v61 = vpop.f32.mrf.mxu1  ;;  %v7123_v22 = vadd.f32 %v20536_v1, %v7090_v57 }
 0x6ef   :  { %v7124_v51 = vadd.f32 %v20536_v1, %v7091_v63  ;;  %v7089_v15 = vadd.f32 %v20526_v59, %v6775_v25  ;;  %14763 = vmatprep.mubr.msk.bf16.mxu0 %vm7696_vm11, %v7355_v19  ;;  %v6796_v2 = vadd.f32 %v14661_v61, %v20455_v39  ;;  %v20635_v54 = vmax.f32 %v7121_v9, 0.0 }
 0x6f0   :  { %v6787_v41 = vpop.f32.mrf.mxu1  ;;  %14764 = vmatmul.mubr.msk.bf16.gmra.mxu0 %vm7696_vm11, %v7356_v49  ;;  %v20640_v52 = vmax.f32 %v7123_v22, 0.0 }
 0x6f1   :  { %v6788_v31 = vadd.f32 %v6787_v41, %v20457_v56  ;;  %v7122_v47 = vadd.f32 %v20536_v1, %v7089_v15  ;;  %v20631_v12 = vmax.f32 %v7124_v51, 0.0  ;;  %v7094_v39 = vadd.f32 %v20530_v8, %v6796_v2 }
 0x6f2   :  { %v14662_v28 = vpop.f32.mrf.mxu1 }
 0x6f3   :  { %v20633_v59 = vmax.f32 %v7122_v47, 0.0  ;;  %v7092_v56 = vadd.f32 %v20534_v53, %v6788_v31  ;;  %v6799_v21 = vadd.f32 %v14662_v28, %v20463_v50  ;;  %v7358_v53 = vpack.c.bf16 %v20631_v12, %v20640_v52 }
 0x6f4   :  { %v6790_v30 = vpop.f32.mrf.mxu1  ;;  %v7127_v8 = vadd.f32 %v20536_v1, %v7094_v39 }
 0x6f5   :  { %v6791_v27 = vadd.f32 %v6790_v30, %v20465_v36  ;;  %v7095_v5 = vadd.f32 %v20543_v23, %v6799_v21  ;;  %v7357_v24 = vpack.c.bf16 %v20633_v59, %v20635_v54  ;;  %v7125_v50 = vadd.f32 %v20536_v1, %v7092_v56  ;;  %v14706_v23 = vpop.f32.mrf.mxu0 }
 0x6f6   :  { %v14665_v45 = vpop.f32.mrf.mxu1  ;;  %v20664_v9 = vmax.f32 %v7127_v8, 0.0 }
 0x6f7   :  { %v7093_v55 = vadd.f32 %v20556_v7, %v6791_v27  ;;  %v7128_v36 = vadd.f32 %v20536_v1, %v7095_v5  ;;  %14767 = vmatprep.mubr.msk.bf16.mxu0 %vm7696_vm11, %v7357_v24  ;;  %v6812_v49 = vadd.f32 %v14665_v45, %v20471_v3  ;;  %v20662_v41 = vmax.f32 %v7125_v50, 0.0  ;;  %v7048_v31 = vpop.f32.mrf.mxu0 }
 0x6f8   :  { %v6803_v63 = vpop.f32.mrf.mxu1  ;;  %14768 = vmatmul.mubr.msk.bf16.gmra.mxu0 %vm7696_vm11, %v7358_v53 }
 0x6f9   :  { %v7126_v25 = vadd.f32 %v20536_v1, %v7093_v55  ;;  %v6804_v61 = vadd.f32 %v6803_v63, %v20473_v13  ;;  %v20658_v19 = vmax.f32 %v7128_v36, 0.0  ;;  %v14709_v27 = vpop.f32.mrf.mxu0 }
 0x6fa   :  { %v14666_v7 = vpop.f32.mrf.mxu1 }
 0x6fb   :  { %v20655_v57 = vmax.f32 %v7126_v25, 0.0  ;;  %v6815_v51 = vadd.f32 %v14666_v7, %v20479_v37  ;;  %v7096_v2 = vadd.f32 %v20584_v60, %v6804_v61  ;;  %v7360_v3 = vpack.c.bf16 %v20658_v19, %v20664_v9  ;;  %v7061_v53 = vpop.f32.mrf.mxu0 }
 0x6fc   :  { %v6806_v15 = vpop.f32.mrf.mxu1  ;;  %v7098_v37 = vadd.f32 %v20568_v62, %v6812_v49 }
 0x6fd   :  { %v7099_v22 = vadd.f32 %v20597_v43, %v6815_v51  ;;  %v6807_v28 = vadd.f32 %v6806_v15, %v20481_v33  ;;  %v7359_v13 = vpack.c.bf16 %v20655_v57, %v20662_v41  ;;  %v7129_v60 = vadd.f32 %v20536_v1, %v7096_v2  ;;  %v14710_v51 = vpop.f32.mrf.mxu0 }
 0x6fe   :  { %v14669_v47 = vpop.f32.mrf.mxu1 }
 0x6ff   :  { %v7097_v56 = vadd.f32 %v7032_v20, %v6807_v28  ;;  %14771 = vmatprep.mubr.msk.bf16.mxu0 %vm7696_vm11, %v7359_v13  ;;  %v7132_v43 = vadd.f32 %v20536_v1, %v7099_v22  ;;  %v6828_v45 = vadd.f32 %v14669_v47, %v20487_v11  ;;  %v7131_v20 = vadd.f32 %v20536_v1, %v7098_v37  ;;  %v23551_v37 = vld [vmem:[#allocation172_spill] sm:$0xff] }
 0x700   :  { %v6819_v30 = vpop.f32.mrf.mxu1  ;;  %14772 = vmatmul.mubr.msk.bf16.gmra.mxu0 %vm7696_vm11, %v7360_v3  ;;  %v20688_v25 = vmax.f32 %v7129_v60, 0.0 }
 0x701   :  { %v6820_v21 = vadd.f32 %v6819_v30, %v20489_v29  ;;  %v7130_v39 = vadd.f32 %v20536_v1, %v7097_v56  ;;  %v20685_v29 = vmax.f32 %v7132_v43, 0.0  ;;  %v7102_v8 = vadd.f32 %v20628_v48, %v6828_v45 }
 0x702   :  { %v14670_v33 = vpop.f32.mrf.mxu1  ;;  %v20691_v11 = vmax.f32 %v7131_v20, 0.0  ;;  %v7369_v45 = vrot.slane %v20554_v17, 7 }
 0x703   :  { %v6831_v62 = vadd.f32 %v14670_v33, %v20495_v44  ;;  %v7100_v5 = vadd.f32 %v7045_v34, %v6820_v21  ;;  %v20683_v24 = vmax.f32 %v7130_v39, 0.0  ;;  %v7135_v22 = vadd.f32 %v20536_v1, %v7102_v8  ;;  %v7064_v21 = vpop.f32.mrf.mxu0 }
 0x704   :  { %v6822_v55 = vpop.f32.mrf.mxu1 }
 0x705   :  { %v7103_v63 = vadd.f32 %v14706_v23, %v6831_v62  ;;  %v6823_v50 = vadd.f32 %v6822_v55, %v20497_v6  ;;  %v7133_v44 = vadd.f32 %v20536_v1, %v7100_v5  ;;  %v7361_v61 = vpack.c.bf16 %v20683_v24, %v20688_v25 }
 0x706   :  { %v14673_v36 = vpop.f32.mrf.mxu1  ;;  %v7362_v23 = vpack.c.bf16 %v20685_v29, %v20691_v11  ;;  %v20716_v60 = vmax.f32 %v7135_v22, 0.0  ;;  %v7368_v62 = vrot.slane %v20548_v32, 7 }
 0x707   :  { %v7101_v7 = vadd.f32 %v7048_v31, %v6823_v50  ;;  %v7136_v6 = vadd.f32 %v20536_v1, %v7103_v63  ;;  %14775 = vmatprep.mubr.msk.bf16.mxu0 %vm7696_vm11, %v7361_v61  ;;  %v20704_v47 = vmax.f32 %v7133_v44, 0.0  ;;  %v7370_v63 = vrot.slane %v20546_v42, 7 }
 0x708   :  { %v6835_v34 = vpop.f32.mrf.mxu1  ;;  %14776 = vmatmul.mubr.msk.bf16.gmra.mxu0 %vm7696_vm11, %v7362_v23  ;;  %v7372_v50 = vrot.slane %v20574_v4, 7  ;;  %v7371_v61 = vrot.slane %v20578_v35, 7  ;;  %v23552_v23 = vld [vmem:[#allocation44_spill] sm:$0xff] }
 0x709   :  { %v6836_v49 = vadd.f32 %v6835_v34, %v20503_v46  ;;  %v7134_v15 = vadd.f32 %v20536_v1, %v7101_v7  ;;  %v6844_v46 = vadd.f32 %v14673_v36, %v20501_v40  ;;  %v20711_v56 = vmax.f32 %v7136_v6, 0.0 }
 0x70a   :  { %v14674_v48 = vpop.f32.mrf.mxu1  ;;  %v7481_v34 = vrot.slane %v20554_v17, 1 }
 0x70b   :  { %v6847_v31 = vadd.f32 %v14674_v48, %v20505_v10  ;;  %v20706_v2 = vmax.f32 %v7134_v15, 0.0  ;;  %v7104_v28 = vadd.f32 %v7061_v53, %v6836_v49  ;;  %v7106_v39 = vadd.f32 %v14709_v27, %v6844_v46 }
 0x70c   :  { %v6838_v13 = vpop.f32.mrf.mxu1  ;;  %v7364_v20 = vpack.c.bf16 %v20711_v56, %v20716_v60  ;;  %v7367_v53 = vrot.slane %v20551_v18, 7  ;;  %v7480_v27 = vrot.slane %v20548_v32, 1  ;;  %v7479_v49 = vrot.slane %v20551_v18, 1 }
 0x70d   :  { %v7107_v3 = vadd.f32 %v14710_v51, %v6847_v31  ;;  %v6839_v30 = vadd.f32 %v6838_v13, %v23551_v37  ;;  %v7363_v43 = vpack.c.bf16 %v20706_v2, %v20704_v47  ;;  %v7137_v40 = vadd.f32 %v20536_v1, %v7104_v28 }
 0x70e   :  { %v7139_v36 = vadd.f32 %v20536_v1, %v7106_v39  ;;  %v7428_v32 = vsel %vm1468_vm5, %v7368_v62, %v7369_v45  ;;  %v7427_v51 = vsel %vm1468_vm5, %v7369_v45, %v7370_v63  ;;  %v7429_v17 = vsel %vm1468_vm5, %v7367_v53, %v7368_v62 }
 0x70f   :  { %v7140_v10 = vadd.f32 %v20536_v1, %v7107_v3  ;;  %v7105_v33 = vadd.f32 %v7064_v21, %v6839_v30  ;;  %14779 = vmatprep.mubr.msk.bf16.mxu0 %vm7696_vm11, %v7363_v43  ;;  %v20732_v8 = vmax.f32 %v7137_v40, 0.0  ;;  %v7425_v48 = vsel %vm1468_vm5, %v7371_v61, %v7372_v50 }
 0x710   :  { %14780 = vmatmul.mubr.msk.bf16.gmra.mxu0 %vm7696_vm11, %v7364_v20  ;;  %v20757_v22 = vmax.f32 %v7139_v36, 0.0  ;;  %v7540_v46 = vsel %vm1821_vm7, %v7480_v27, %v7481_v34  ;;  %v7541_v28 = vsel %vm1821_vm7, %v7479_v49, %v7480_v27  ;;  %v7464_v13 = vpack.c.bf16 %v7427_v51, %v7428_v32 }
 0x711   :  { %v20724_v5 = vmax.f32 %v7140_v10, 0.0  ;;  %v7138_v55 = vadd.f32 %v20536_v1, %v7105_v33  ;;  %v7426_v3 = vsel %vm1468_vm5, %v7370_v63, %v7371_v61  ;;  %v7483_v21 = vrot.slane %v20578_v35, 1 }
 0x712   :  { %v7465_v30 = vpack.c.bf16 %v7425_v48, %v7426_v3  ;;  %v7376_v43 = vrot.slane %v20608_v26, 7  ;;  %v7639_v10 = vpack.c.bf16 %v7540_v46, %v7541_v28  ;;  %v7373_v33 = vrot.slane %v20580_v0, 7 }
 0x713   :  { %v7398_v44 = vrot.slane %v20724_v5, 7  ;;  %v20735_v7 = vmax.f32 %v7138_v55, 0.0  ;;  %v7366_v37 = vpack.c.bf16 %v20724_v5, %v20757_v22  ;;  %v7374_v39 = vrot.slane %v20572_v38, 7 }
 0x714   :  { %v7484_v40 = vrot.slane %v20574_v4, 1  ;;  %v7482_v45 = vrot.slane %v20546_v42, 1  ;;  %v7375_v62 = vrot.slane %v20604_v14, 7  ;;  %v7485_v35 = vrot.slane %v20580_v0, 1 }
 0x715   :  { %v7365_v1 = vpack.c.bf16 %v20735_v7, %v20732_v8  ;;  %v7430_v6 = vsel %vm1468_vm5, %v7398_v44, %v7367_v53  ;;  %v7424_v20 = vsel %vm1468_vm5, %v7372_v50, %v7373_v33  ;;  %v7423_v63 = vsel %vm1468_vm5, %v7373_v33, %v7374_v39 }
 0x716   :  { %v7431_v15 = vsel %vm988_vm4, 0.0, %v7430_v6  ;;  %v7538_v55 = vsel %vm1821_vm7, %v7482_v45, %v7483_v21  ;;  %v7421_v4 = vsel %vm1468_vm5, %v7375_v62, %v7376_v43  ;;  %v7536_v53 = vsel %vm1821_vm7, %v7484_v40, %v7485_v35 }
 0x717   :  { %14783 = vmatprep.mubr.msk.bf16.mxu0 %vm7696_vm11, %v7365_v1  ;;  %v7463_v31 = vpack.c.bf16 %v7429_v17, %v7431_v15  ;;  %v7537_v42 = vsel %vm1821_vm7, %v7483_v21, %v7484_v40  ;;  %v7539_v0 = vsel %vm1821_vm7, %v7481_v34, %v7482_v45  ;;  %v7466_v27 = vpack.c.bf16 %v7423_v63, %v7424_v20 }
 0x718   :  { %14784 = vmatmul.mubr.msk.bf16.gmra.mxu0 %vm7696_vm11, %v7366_v37  ;;  %v7422_v50 = vsel %vm1468_vm5, %v7374_v39, %v7375_v62  ;;  %v7640_v36 = vpack.c.bf16 %v7538_v55, %v7539_v0  ;;  %v7487_v32 = vrot.slane %v20604_v14, 1  ;;  %v7380_v1 = vrot.slane %v20633_v59, 7 }
 0x719   :  { %14795 = vmatprep.mubr.msk.bf16.mxu1 %vm7696_vm11, %v7463_v31  ;;  %14835 = vmatprep.mubr.msk.bf16.mxu0 %vm7696_vm11, %v7639_v10  ;;  %v7467_v61 = vpack.c.bf16 %v7421_v4, %v7422_v50  ;;  %v7641_v6 = vpack.c.bf16 %v7536_v53, %v7537_v42  ;;  %v7377_v51 = vrot.slane %v20613_v58, 7  ;;  %v7378_v17 = vrot.slane %v20606_v16, 7 }
 0x71a   :  { %14796 = vmatmul.mubr.msk.bf16.vlgmr.msra.gmra.mxu1 %vm7696_vm11, %v7464_v13  ;;  %v7488_v15 = vrot.slane %v20608_v26, 1  ;;  %v7486_v34 = vrot.slane %v20572_v38, 1  ;;  %v7379_v48 = vrot.slane %v20635_v54, 7  ;;  %v7489_v14 = vrot.slane %v20613_v58, 1 }
 0x71b   :  { %14799 = vmatprep.mubr.msk.bf16.mxu1 %vm7696_vm11, %v7465_v30  ;;  %v7420_v31 = vsel %vm1468_vm5, %v7376_v43, %v7377_v51  ;;  %v7419_v13 = vsel %vm1468_vm5, %v7377_v51, %v7378_v17  ;;  %v7383_v30 = vrot.slane %v20662_v41, 7  ;;  %v7491_v10 = vrot.slane %v20635_v54, 1 }
 0x71c   :  { %v7534_v46 = vsel %vm1821_vm7, %v7486_v34, %v7487_v32  ;;  %v7417_v26 = vsel %vm1468_vm5, %v7379_v48, %v7380_v1  ;;  %v7532_v28 = vsel %vm1821_vm7, %v7488_v15, %v7489_v14  ;;  %v7533_v38 = vsel %vm1821_vm7, %v7487_v32, %v7488_v15 }
 0x71d   :  { %v7535_v58 = vsel %vm1821_vm7, %v7485_v35, %v7486_v34  ;;  %v7468_v3 = vpack.c.bf16 %v7419_v13, %v7420_v31  ;;  %v7418_v37 = vsel %vm1468_vm5, %v7378_v17, %v7379_v48  ;;  %v7384_v33 = vrot.slane %v20655_v57, 7 }
 0x71e   :  { %v7642_v21 = vpack.c.bf16 %v7534_v46, %v7535_v58  ;;  %v7469_v43 = vpack.c.bf16 %v7417_v26, %v7418_v37  ;;  %v7643_v39 = vpack.c.bf16 %v7532_v28, %v7533_v38  ;;  %v7381_v40 = vrot.slane %v20640_v52, 7 }
 0x71f   :  { %v7382_v45 = vrot.slane %v20631_v12, 7  ;;  %v7492_v62 = vrot.slane %v20633_v59, 1  ;;  %v7490_v35 = vrot.slane %v20606_v16, 1  ;;  %v7493_v54 = vrot.slane %v20640_v52, 1 }
 0x720   :  { %14836 = vmatmul.mubr.msk.bf16.vlgmr.msra.gmra.mxu0 %vm7696_vm11, %v7640_v36  ;;  %v7416_v20 = vsel %vm1468_vm5, %v7380_v1, %v7381_v40  ;;  %v7413_v59 = vsel %vm1468_vm5, %v7383_v30, %v7384_v33  ;;  %v20848_v53 = vadd.s32 120, %v23552_v23  ;;  %v7495_v16 = vrot.slane %v20662_v41, 1 }
 0x721   :  { %14839 = vmatprep.mubr.msk.bf16.mxu0 %vm7696_vm11, %v7641_v6  ;;  %v7414_v55 = vsel %vm1468_vm5, %v7382_v45, %v7383_v30  ;;  %v7530_v4 = vsel %vm1821_vm7, %v7490_v35, %v7491_v10  ;;  %v7528_v52 = vsel %vm1821_vm7, %v7492_v62, %v7493_v54  ;;  %v7529_v42 = vsel %vm1821_vm7, %v7491_v10, %v7492_v62 }
 0x722   :  { %14800 = vmatmul.mubr.msk.bf16.gmra.mxu1 %vm7696_vm11, %v7466_v27  ;;  %23553 = vst [vmem:[#allocation126_spill] sm:$0xff] %v20848_v53  ;;  %v7415_v63 = vsel %vm1468_vm5, %v7381_v40, %v7382_v45  ;;  %v7531_v0 = vsel %vm1821_vm7, %v7489_v14, %v7490_v35  ;;  %v7447_v36 = vsel %vm6111_vm10, 0.0, %v7414_v55  ;;  %v7388_v1 = vrot.slane %v20683_v24, 7 }
 0x723   :  { %14803 = vmatprep.mubr.msk.bf16.mxu1 %vm7696_vm11, %v7467_v61  ;;  %v7470_v27 = vpack.c.bf16 %v7415_v63, %v7416_v20  ;;  %v7494_v61 = vrot.slane %v20631_v12, 1  ;;  %v7644_v32 = vpack.c.bf16 %v7530_v4, %v7531_v0  ;;  %v7471_v41 = vpack.c.bf16 %v7413_v59, %v7447_v36 }
 0x724   :  { %v7645_v6 = vpack.c.bf16 %v7528_v52, %v7529_v42  ;;  %vm6078_vm12 = vcmp.eq.s32.totalorder %v20848_v53, 127  ;;  %v7385_v51 = vrot.slane %v20664_v9, 7  ;;  %v7386_v17 = vrot.slane %v20658_v19, 7 }
 0x725   :  { %v7496_v15 = vrot.slane %v20655_v57, 1  ;;  %v7526_v12 = vsel %vm1821_vm7, %v7494_v61, %v7495_v16  ;;  %v7387_v34 = vrot.slane %v20688_v25, 7  ;;  %v7497_v48 = vrot.slane %v20664_v9, 1  ;;  %vm13084_vm6 = vmneg %vm6078_vm12 }
 0x726   :  { %v7412_v14 = vsel %vm1468_vm5, %v7384_v33, %v7385_v51  ;;  %v7622_v31 = vsel %vm6078_vm12, 0.0, %v7526_v12  ;;  %v7411_v28 = vsel %vm1468_vm5, %v7385_v51, %v7386_v17  ;;  %v7527_v9 = vsel %vm1821_vm7, %v7493_v54, %v7494_v61 }
 0x727   :  { %v7409_v57 = vsel %vm1468_vm5, %v7387_v34, %v7388_v1  ;;  %v7524_v46 = vsel %vm1821_vm7, %v7496_v15, %v7497_v48  ;;  %v7525_v26 = vsel %vm1821_vm7, %v7495_v16, %v7496_v15  ;;  %v7472_v38 = vpack.c.bf16 %v7411_v28, %v7412_v14 }
 0x728   :  { %14840 = vmatmul.mubr.msk.bf16.gmra.mxu0 %vm7696_vm11, %v7642_v21  ;;  %v7410_v13 = vsel %vm1468_vm5, %v7386_v17, %v7387_v34  ;;  %v7646_v58 = vpack.c.bf16 %v7622_v31, %v7527_v9  ;;  %v7499_v37 = vrot.slane %v20688_v25, 1  ;;  %v7392_v30 = vrot.slane %v20706_v2, 7 }
 0x729   :  { %14843 = vmatprep.mubr.msk.bf16.mxu0 %vm7696_vm11, %v7643_v39  ;;  %v7647_v21 = vpack.c.bf16 %v7524_v46, %v7525_v26  ;;  %v7390_v10 = vrot.slane %v20685_v29, 7  ;;  %v7500_v33 = vrot.slane %v20683_v24, 1  ;;  %v7498_v39 = vrot.slane %v20658_v19, 1 }
 0x72a   :  { %14804 = vmatmul.mubr.msk.bf16.gmra.mxu1 %vm7696_vm11, %v7468_v3  ;;  %v7473_v3 = vpack.c.bf16 %v7409_v57, %v7410_v13  ;;  %v7391_v40 = vrot.slane %v20704_v47, 7  ;;  %v7501_v25 = vrot.slane %v20691_v11, 1  ;;  %v7503_v16 = vrot.slane %v20704_v47, 1 }
 0x72b   :  { %14807 = vmatprep.mubr.msk.bf16.mxu1 %vm7696_vm11, %v7469_v43  ;;  %v7389_v43 = vrot.slane %v20691_v11, 7  ;;  %v7522_v62 = vsel %vm1821_vm7, %v7498_v39, %v7499_v37  ;;  %v7521_v19 = vsel %vm1821_vm7, %v7499_v37, %v7500_v33  ;;  %v7523_v11 = vsel %vm1821_vm7, %v7497_v48, %v7498_v39 }
 0x72c   :  { %v7405_v24 = vsel %vm1468_vm5, %v7391_v40, %v7392_v30  ;;  %v7520_v35 = vsel %vm1821_vm7, %v7500_v33, %v7501_v25  ;;  %v7406_v55 = vsel %vm1468_vm5, %v7390_v10, %v7391_v40  ;;  %v7648_v4 = vpack.c.bf16 %v7522_v62, %v7523_v11 }
 0x72d   :  { %v7408_v45 = vsel %vm1468_vm5, %v7388_v1, %v7389_v43  ;;  %v7407_v54 = vsel %vm1468_vm5, %v7389_v43, %v7390_v10  ;;  %v7475_v59 = vpack.c.bf16 %v7405_v24, %v7406_v55  ;;  %v7396_v52 = vrot.slane %v20735_v7, 7 }
 0x72e   :  { %v7474_v20 = vpack.c.bf16 %v7407_v54, %v7408_v45  ;;  %v7649_v42 = vpack.c.bf16 %v7520_v35, %v7521_v19  ;;  %v7393_v63 = vrot.slane %v20716_v60, 7  ;;  %v7394_v0 = vrot.slane %v20711_v56, 7 }
 0x72f   :  { %v7502_v50 = vrot.slane %v20685_v29, 1  ;;  %v7395_v36 = vrot.slane %v20732_v8, 7  ;;  %v7505_v47 = vrot.slane %v20716_v60, 1  ;;  %v7507_v12 = vrot.slane %v20732_v8, 1 }
 0x730   :  { %14844 = vmatmul.mubr.msk.bf16.gmra.mxu0 %vm7696_vm11, %v7644_v32  ;;  %v7404_v61 = vsel %vm1468_vm5, %v7392_v30, %v7393_v63  ;;  %v7403_v1 = vsel %vm1468_vm5, %v7393_v63, %v7394_v0  ;;  %v7397_v48 = vrot.slane %v20757_v22, 7  ;;  %v7508_v14 = vrot.slane %v20735_v7, 1  ;;  %v20983_v30 = vpop.f32.mrf.mxu1 }
 0x731   :  { %14847 = vmatprep.mubr.msk.bf16.mxu0 %vm7696_vm11, %v7645_v6  ;;  %v7518_v32 = vsel %vm1821_vm7, %v7502_v50, %v7503_v16  ;;  %v7519_v60 = vsel %vm1821_vm7, %v7501_v25, %v7502_v50  ;;  %v7476_v6 = vpack.c.bf16 %v7403_v1, %v7404_v61  ;;  %v7402_v51 = vsel %vm1468_vm5, %v7394_v0, %v7395_v36  ;;  %v15341_v0 = vld [vmem:[#allocation14] sm:$0xff]  }
 0x732   :  { %14808 = vmatmul.mubr.msk.bf16.gmra.mxu1 %vm7696_vm11, %v7470_v27  ;;  %v7504_v27 = vrot.slane %v20706_v2, 1  ;;  %v7401_v2 = vsel %vm1468_vm5, %v7395_v36, %v7396_v52  ;;  %v7650_v17 = vpack.c.bf16 %v7518_v32, %v7519_v60  ;;  %v7506_v31 = vrot.slane %v20711_v56, 1 }
 0x733   :  { %14811 = vmatprep.mubr.msk.bf16.mxu1 %vm7696_vm11, %v7471_v41  ;;  %v7477_v15 = vpack.c.bf16 %v7401_v2, %v7402_v51  ;;  %v7509_v57 = vrot.slane %v20757_v22, 1  ;;  %v7400_v8 = vsel %vm1468_vm5, %v7396_v52, %v7397_v48  ;;  %v7510_v26 = vrot.slane %v20724_v5, 1 }
 0x734   :  { %v7516_v41 = vsel %vm1821_vm7, %v7504_v27, %v7505_v47  ;;  %v7517_v29 = vsel %vm1821_vm7, %v7503_v16, %v7504_v27  ;;  %v7514_v46 = vsel %vm1821_vm7, %v7506_v31, %v7507_v12  ;;  %v7513_v28 = vsel %vm1821_vm7, %v7507_v12, %v7508_v14 }
 0x735   :  { %v7651_v34 = vpack.c.bf16 %v7516_v41, %v7517_v29  ;;  %v7512_v7 = vsel %vm1821_vm7, %v7508_v14, %v7509_v57  ;;  %v7399_v56 = vsel %vm1468_vm5, %v7397_v48, %v7398_v44  ;;  %v7515_v22 = vsel %vm1821_vm7, %v7505_v47, %v7506_v31 }
 0x736   :  { %v7478_v9 = vpack.c.bf16 %v7399_v56, %v7400_v8  ;;  %v7653_v13 = vpack.c.bf16 %v7512_v7, %v7513_v28  ;;  %v7511_v5 = vsel %vm1821_vm7, %v7509_v57, %v7510_v26 }
 0x738   :  { %14848 = vmatmul.mubr.msk.bf16.gmra.mxu0 %vm7696_vm11, %v7646_v58  ;;  %v7542_v58 = vsel %vm1821_vm7, %v7510_v26, %v7479_v49 }
 0x739   :  { %14851 = vmatprep.mubr.msk.bf16.mxu0 %vm7696_vm11, %v7647_v21  ;;  %v20985_v21 = vpop.f32.mrf.mxu1 }
 0x73a   :  { %14812 = vmatmul.mubr.msk.bf16.gmra.mxu1 %vm7696_vm11, %v7472_v38  ;;  %v7652_v38 = vpack.c.bf16 %v7514_v46, %v7515_v22 }
 0x73b   :  { %14815 = vmatprep.mubr.msk.bf16.mxu1 %vm7696_vm11, %v7473_v3  ;;  %v7638_v3 = vsel %vm1083_vm8, 0.0, %v7542_v58  ;;  %v20987_v43 = vpop.f32.mrf.mxu1  ;;  %vm13085_vm8 = vmpackc.low %vm13084_vm6, %vm15951_vm15 }
 0x73c   :  { %v7654_v37 = vpack.c.bf16 %v7638_v3, %v7511_v5 }
 0x73d   :  { %v20989_v18 = vpop.f32.mrf.mxu1 }
 0x73e   :  { %23556 = vst [vmem:[#allocation105_spill] sm:$0xff] %v20989_v18 }
 0x73f   :  { %v20991_v49 = vpop.f32.mrf.mxu1 }
 0x740   :  { %14852 = vmatmul.mubr.msk.bf16.gmra.mxu0 %vm7696_vm11, %v7648_v4 }
 0x741   :  { %14855 = vmatprep.mubr.msk.bf16.mxu0 %vm7696_vm11, %v7649_v42  ;;  %v20993_v10 = vpop.f32.mrf.mxu1 }
 0x742   :  { %14816 = vmatmul.mubr.msk.bf16.gmra.mxu1 %vm7696_vm11, %v7474_v20 }
 0x743   :  { %14819 = vmatprep.mubr.msk.bf16.mxu1 %vm7696_vm11, %v7475_v59  ;;  %v20995_v33 = vpop.f32.mrf.mxu1 }
 0x745   :  { %v20997_v39 = vpop.f32.mrf.mxu1 }
 0x747   :  { %v20999_v40 = vpop.f32.mrf.mxu1 }
 0x748   :  { %14856 = vmatmul.mubr.msk.bf16.gmra.mxu0 %vm7696_vm11, %v7650_v17 }
 0x749   :  { %14859 = vmatprep.mubr.msk.bf16.mxu0 %vm7696_vm11, %v7651_v34  ;;  %v21001_v25 = vpop.f32.mrf.mxu1 }
 0x74a   :  { %14820 = vmatmul.mubr.msk.bf16.gmra.mxu1 %vm7696_vm11, %v7476_v6 }
 0x74b   :  { %14823 = vmatprep.mubr.msk.bf16.mxu1 %vm7696_vm11, %v7477_v15  ;;  %v21003_v45 = vpop.f32.mrf.mxu1 }
 0x74d   :  { %v21005_v62 = vpop.f32.mrf.mxu1 }
 0x74f   :  { %v21007_v24 = vpop.f32.mrf.mxu1 }
 0x750   :  { %14860 = vmatmul.mubr.msk.bf16.gmra.mxu0 %vm7696_vm11, %v7652_v38 }
 0x751   :  { %14863 = vmatprep.mubr.msk.bf16.mxu0 %vm7696_vm11, %v7653_v13  ;;  %v21009_v35 = vpop.f32.mrf.mxu1 }
 0x752   :  { %14824 = vmatmul.mubr.msk.bf16.gmra.mxu1 %vm7696_vm11, %v7478_v9 }
 0x753   :  { %v21011_v19 = vpop.f32.mrf.mxu1  ;;  %14883 = vmatprep.mubr.bf16.mxu1 %v15341_v0 }
 0x755   :  { %v21013_v54 = vpop.f32.mrf.mxu1 }
 0x757   :  { %v21015_v11 = vpop.f32.mrf.mxu1 }
 0x758   :  { %14864 = vmatmul.mubr.msk.bf16.gmra.mxu0 %vm7696_vm11, %v7654_v37 }
 0x759   :  { %v21017_v20 = vpop.f32.mrf.mxu1  ;;  %14931 = vmatprep.mubr.bf16.mxu0 %v15341_v0 }
 0x75b   :  { %v21019_v59 = vpop.f32.mrf.mxu1 }
 0x75d   :  { %v21023_v42 = vpop.f32.mrf.mxu1 }
 0x75e   :  { %23557 = vst [vmem:[#allocation162_spill] sm:$0xff] %v21023_v42 }
 0x75f   :  { %v21029_v50 = vpop.f32.mrf.mxu1 }
 0x761   :  { %v21035_v61 = vpop.f32.mrf.mxu1 }
 0x763   :  { %v21041_v41 = vpop.f32.mrf.mxu1 }
 0x765   :  { %v21047_v60 = vpop.f32.mrf.mxu1 }
 0x766   :  { %23558 = vst [vmem:[#allocation116_spill] sm:$0xff] %v21047_v60 }
 0x767   :  { %v21053_v17 = vpop.f32.mrf.mxu1 }
 0x768   :  { %23559 = vst [vmem:[#allocation76_spill] sm:$0xff] %v21053_v17 }
 0x769   :  { %v21059_v34 = vpop.f32.mrf.mxu1 }
 0x76a   :  { %23560 = vst [vmem:[#allocation124_spill] sm:$0xff] %v21059_v34 }
 0x76b   :  { %v21065_v31 = vpop.f32.mrf.mxu1 }
 0x76c   :  { %23561 = vst [vmem:[#allocation107_spill] sm:$0xff] %v21065_v31 }
 0x76d   :  { %v21071_v46 = vpop.f32.mrf.mxu1 }
 0x76e   :  { %23563 = vst [vmem:[#allocation108_spill] sm:$0xff] %v21071_v46 }
 0x76f   :  { %v21075_v7 = vpop.f32.mrf.mxu1 }
 0x770   :  { %23564 = vst [vmem:[#allocation167_spill] sm:$0xff] %v21075_v7  ;;  %v21109_v7 = vld [vmem:[#allocation2 + $0x4] ss:$0 sm:$0xff] }
 0x771   :  { %v21081_v22 = vpop.f32.mrf.mxu1 }
 0x772   :  { %23565 = vst [vmem:[#allocation164_spill] sm:$0xff] %v21081_v22  ;;  %v21107_v22 = vld [vmem:[#allocation2 + $0x5] ss:$0 sm:$0xff] }
 0x773   :  { %v21087_v13 = vpop.f32.mrf.mxu1 }
 0x774   :  { %23568 = vst [vmem:[#allocation169_spill] sm:$0xff] %v21087_v13 }
 0x775   :  { %v21093_v44 = vpop.f32.mrf.mxu1 }
 0x776   :  { %23571 = vst [vmem:[#allocation174_spill] sm:$0xff] %v21093_v44 }
 0x7a0   :  { %v14757_v55 = vpop.f32.mrf.mxu0 }
 0x7a2   :  { %v7779_v4 = vpop.f32.mrf.mxu0 }
 0x7a4   :  { %v14758_v16 = vpop.f32.mrf.mxu0 }
 0x7a6   :  { %v21021_v52 = vpop.f32.mrf.mxu0 }
 0x7a8   :  { %v21025_v63 = vpop.f32.mrf.mxu0 }
 0x7aa   :  { %v21027_v27 = vpop.f32.mrf.mxu0 }
 0x7ac   :  { %v21031_v36 = vpop.f32.mrf.mxu0 }
 0x7ae   :  { %v21033_v47 = vpop.f32.mrf.mxu0 }
 0x7b0   :  { %v21037_v32 = vpop.f32.mrf.mxu0 }
 0x7b2   :  { %v21039_v2 = vpop.f32.mrf.mxu0 }
 0x7b4   :  { %v21043_v29 = vpop.f32.mrf.mxu0 }
 0x7b6   :  { %v21045_v1 = vpop.f32.mrf.mxu0 }
 0x7b8   :  { %v21049_v6 = vpop.f32.mrf.mxu0 }
 0x7ba   :  { %v21051_v51 = vpop.f32.mrf.mxu0 }
 0x7bc   :  { %v21055_v15 = vpop.f32.mrf.mxu0 }
 0x7be   :  { %v21057_v12 = vpop.f32.mrf.mxu0 }
 0x7c0   :  { %v21061_v48 = vpop.f32.mrf.mxu0 }
 0x7c2   :  { %v21063_v14 = vpop.f32.mrf.mxu0 }
 0x7c4   :  { %v21067_v57 = vpop.f32.mrf.mxu0 }
 0x7c6   :  { %v21069_v8 = vpop.f32.mrf.mxu0 }
 0x7c7   :  { %23562 = vst [vmem:[#allocation128_spill] sm:$0xff] %v21069_v8 }
 0x7c8   :  { %v21073_v26 = vpop.f32.mrf.mxu0 }
 0x7ca   :  { %v21077_v28 = vpop.f32.mrf.mxu0 }
 0x7cc   :  { %v21079_v56 = vpop.f32.mrf.mxu0 }
 0x7ce   :  { %v21083_v9 = vpop.f32.mrf.mxu0 }
 0x7cf   :  { %23566 = vst [vmem:[#allocation130_spill] sm:$0xff] %v21083_v9 }
 0x7d0   :  { %v21085_v38 = vpop.f32.mrf.mxu0 }
 0x7d1   :  { %23567 = vst [vmem:[#allocation109_spill] sm:$0xff] %v21085_v38 }
 0x7d2   :  { %v21089_v58 = vpop.f32.mrf.mxu0 }
 0x7d3   :  { %23569 = vst [vmem:[#allocation134_spill] sm:$0xff] %v21089_v58 }
 0x7d4   :  { %v21091_v5 = vpop.f32.mrf.mxu0 }
 0x7d5   :  { %23570 = vst [vmem:[#allocation111_spill] sm:$0xff] %v21091_v5 }
 0x7d6   :  { %v21095_v3 = vpop.f32.mrf.mxu0 }
 0x7d7   :  { %23572 = vst [vmem:[#allocation173_spill] sm:$0xff] %v21095_v3 }
 0x7d8   :  { %v21097_v0 = vpop.f32.mrf.mxu0 }
 0x7d9   :  { %23573 = vst [vmem:[#allocation170_spill] sm:$0xff] %v21097_v0 }
 0x7da   :  { %v14797_v37 = vpop.f32.mrf.mxu1  ;;  %v21099_v23 = vpop.f32.mrf.mxu0 }
 0x7db   :  { %23574 = vst [vmem:[#allocation35_spill] sm:$0xff] %v21099_v23  ;;  %v8021_v46 = vadd.f32 %v14797_v37, %v14757_v55  ;;  %v7233_v23 = vadd.f32 %v20983_v30, %v21107_v22  ;;  %v7225_v55 = vadd.f32 %v20985_v21, %v21107_v22  ;;  %v7236_v30 = vadd.f32 %v20987_v43, %v21107_v22 }
 0x7dc   :  { %v8012_v53 = vpop.f32.mrf.mxu1  ;;  %v21101_v8 = vpop.f32.mrf.mxu0 }
 0x7dd   :  { %23575 = vst [vmem:[#allocation33_spill] sm:$0xff] %v21101_v8  ;;  %v8013_v3 = vadd.f32 %v8012_v53, %v7779_v4 }
 0x7de   :  { %v14798_v42 = vpop.f32.mrf.mxu1  ;;  %v21105_v9 = vpop.f32.mrf.mxu0 }
 0x7df   :  { %23576 = vst [vmem:[#allocation39_spill] sm:$0xff] %v21105_v9  ;;  %v8024_v34 = vadd.f32 %v14798_v42, %v14758_v16 }
 0x7e0   :  { %v21103_v60 = vpop.f32.mrf.mxu1  ;;  %v14837_v44 = vpop.f32.mrf.mxu0 }
 0x7e1   :  { %v8383_v31 = vadd.f32 %v14837_v44, %v8021_v46 }
 0x7e2   :  { %v14801_v13 = vpop.f32.mrf.mxu1  ;;  %v8254_v18 = vpop.f32.mrf.mxu0 }
 0x7e3   :  { %v8416_v8 = vadd.f32 %v21109_v7, %v8383_v31  ;;  %v8381_v5 = vadd.f32 %v8254_v18, %v8013_v3  ;;  %v8037_v16 = vadd.f32 %v14801_v13, %v21025_v63 }
 0x7e4   :  { %v8028_v0 = vpop.f32.mrf.mxu1  ;;  %v14838_v9 = vpop.f32.mrf.mxu0 }
 0x7e5   :  { %v8448_v37 = vadd.f32 %v8416_v8, %v7233_v23  ;;  %v8414_v58 = vadd.f32 %v21109_v7, %v8381_v5  ;;  %v8384_v38 = vadd.f32 %v14838_v9, %v8024_v34  ;;  %v8029_v23 = vadd.f32 %v8028_v0, %v21027_v27 }
 0x7e6   :  { %v14802_v17 = vpop.f32.mrf.mxu1  ;;  %v21119_v4 = vpop.f32.mrf.mxu0  ;;  %v7249_v9 = vadd.f32 %v20991_v49, %v21107_v22 }
 0x7e7   :  { %v21124_v42 = vadd.f32 %v8414_v58, %v7225_v55  ;;  %v8417_v18 = vadd.f32 %v21109_v7, %v8384_v38  ;;  %v8480_v44 = vmax.f32 %v8448_v37, 0.0  ;;  %v8040_v58 = vadd.f32 %v14802_v17, %v21031_v36 }
 0x7e8   :  { %v21117_v53 = vpop.f32.mrf.mxu1  ;;  %v14841_v46 = vpop.f32.mrf.mxu0  ;;  %v7241_v55 = vadd.f32 %v20993_v10, %v21107_v22  ;;  %v7252_v36 = vadd.f32 %v20995_v33, %v21107_v22 }
 0x7e9   :  { %v8449_v21 = vadd.f32 %v8417_v18, %v7236_v30  ;;  %v8387_v8 = vadd.f32 %v14841_v46, %v8037_v16 }
 0x7ea   :  { %v14805_v31 = vpop.f32.mrf.mxu1  ;;  %v8270_v5 = vpop.f32.mrf.mxu0 }
 0x7eb   :  { %v8481_v3 = vmax.f32 %v8449_v21, 0.0  ;;  %v8420_v43 = vadd.f32 %v21109_v7, %v8387_v8  ;;  %v8385_v63 = vadd.f32 %v8270_v5, %v8029_v23  ;;  %v8053_v37 = vadd.f32 %v14805_v31, %v21037_v32 }
 0x7ec   :  { %v8044_v34 = vpop.f32.mrf.mxu1  ;;  %v14842_v38 = vpop.f32.mrf.mxu0 }
 0x7ed   :  { %v21134_v27 = vpack.c.bf16 %v8481_v3, %v8480_v44  ;;  %v8452_v0 = vadd.f32 %v8420_v43, %v7249_v9  ;;  %v8418_v30 = vadd.f32 %v21109_v7, %v8385_v63  ;;  %v8388_v49 = vadd.f32 %v14842_v38, %v8040_v58 }
 0x7ee   :  { %v14806_v13 = vpop.f32.mrf.mxu1  ;;  %v21137_v18 = vpop.f32.mrf.mxu0  ;;  %v8045_v21 = vadd.f32 %v8044_v34, %v21039_v2  ;;  %v7265_v3 = vadd.f32 %v20999_v40, %v21107_v22 }
 0x7ef   :  { %v21140_v46 = vadd.f32 %v8418_v30, %v7241_v55  ;;  %v8421_v17 = vadd.f32 %v21109_v7, %v8388_v49  ;;  %v8056_v32 = vadd.f32 %v14806_v13, %v21043_v29  ;;  %v8484_v58 = vmax.f32 %v8452_v0, 0.0 }
 0x7f0   :  { %v8047_v16 = vpop.f32.mrf.mxu1  ;;  %v14845_v10 = vpop.f32.mrf.mxu0  ;;  %v7257_v55 = vadd.f32 %v21001_v25, %v21107_v22  ;;  %v7268_v29 = vadd.f32 %v21003_v45, %v21107_v22 }
 0x7f1   :  { %v8391_v8 = vadd.f32 %v14845_v10, %v8053_v37  ;;  %v8453_v5 = vadd.f32 %v8421_v17, %v7252_v36 }
 0x7f2   :  { %v14809_v23 = vpop.f32.mrf.mxu1  ;;  %v8286_v44 = vpop.f32.mrf.mxu0 }
 0x7f3   :  { %v8424_v31 = vadd.f32 %v21109_v7, %v8391_v8  ;;  %v8389_v43 = vadd.f32 %v8286_v44, %v8045_v21  ;;  %v8485_v33 = vmax.f32 %v8453_v5, 0.0  ;;  %v8069_v13 = vadd.f32 %v14809_v23, %v21049_v6 }
 0x7f4   :  { %v8060_v9 = vpop.f32.mrf.mxu1  ;;  %v14846_v38 = vpop.f32.mrf.mxu0  ;;  %v7281_v44 = vadd.f32 %v21007_v24, %v21107_v22 }
 0x7f5   :  { %v8456_v2 = vadd.f32 %v8424_v31, %v7265_v3  ;;  %v8422_v34 = vadd.f32 %v21109_v7, %v8389_v43  ;;  %v8392_v30 = vadd.f32 %v14846_v38, %v8056_v32  ;;  %v21153_v37 = vpack.c.bf16 %v8485_v33, %v8484_v58 }
 0x7f6   :  { %v14810_v63 = vpop.f32.mrf.mxu1  ;;  %v8289_v40 = vpop.f32.mrf.mxu0  ;;  %v8061_v25 = vadd.f32 %v8060_v9, %v21051_v51  ;;  %v7273_v43 = vadd.f32 %v21009_v35, %v21107_v22 }
 0x7f7   :  { %v21158_v36 = vadd.f32 %v8422_v34, %v7257_v55  ;;  %v8425_v0 = vadd.f32 %v21109_v7, %v8392_v30  ;;  %v8488_v32 = vmax.f32 %v8456_v2, 0.0  ;;  %v8072_v58 = vadd.f32 %v14810_v63, %v21055_v15 }
 0x7f8   :  { %v8063_v49 = vpop.f32.mrf.mxu1  ;;  %v14849_v10 = vpop.f32.mrf.mxu0  ;;  %v8048_v2 = vadd.f32 %v8047_v16, %v21045_v1  ;;  %v7284_v15 = vadd.f32 %v21011_v19, %v21107_v22 }
 0x7f9   :  { %v8457_v21 = vadd.f32 %v8425_v0, %v7268_v29  ;;  %v8395_v8 = vadd.f32 %v14849_v10, %v8069_v13  ;;  %v8064_v9 = vadd.f32 %v8063_v49, %v21057_v12  ;;  %v7276_v10 = vadd.f32 %v21013_v54, %v21107_v22 }
 0x7fa   :  { %v14813_v17 = vpop.f32.mrf.mxu1  ;;  %v8302_v3 = vpop.f32.mrf.mxu0  ;;  %v8390_v63 = vadd.f32 %v8289_v40, %v8048_v2  ;;  %v7289_v54 = vadd.f32 %v21017_v20, %v21107_v22 }
 0x7fb   :  { %v8489_v31 = vmax.f32 %v8457_v21, 0.0  ;;  %v8428_v45 = vadd.f32 %v21109_v7, %v8395_v8  ;;  %v8393_v6 = vadd.f32 %v8302_v3, %v8061_v25  ;;  %v8085_v29 = vadd.f32 %v14813_v17, %v21061_v48 }
 0x7fc   :  { %v8076_v5 = vpop.f32.mrf.mxu1  ;;  %v14850_v33 = vpop.f32.mrf.mxu0  ;;  %v7297_v48 = vadd.f32 %v21015_v11, %v21107_v22 }
 0x7fd   :  { %v21168_v51 = vpack.c.bf16 %v8489_v31, %v8488_v32  ;;  %v8460_v38 = vadd.f32 %v8428_v45, %v7281_v44  ;;  %v8426_v24 = vadd.f32 %v21109_v7, %v8393_v6  ;;  %v8396_v34 = vadd.f32 %v14850_v33, %v8072_v58 }
 0x7fe   :  { %v14814_v23 = vpop.f32.mrf.mxu1  ;;  %v8305_v30 = vpop.f32.mrf.mxu0  ;;  %v8077_v25 = vadd.f32 %v8076_v5, %v21063_v14  ;;  %v8423_v14 = vadd.f32 %v21109_v7, %v8390_v63 }
 0x7ff   :  { %v8458_v13 = vadd.f32 %v8426_v24, %v7273_v43  ;;  %v8394_v35 = vadd.f32 %v8305_v30, %v8064_v9  ;;  %v8429_v12 = vadd.f32 %v21109_v7, %v8396_v34  ;;  %v8088_v19 = vadd.f32 %v14814_v23, %v21067_v57 }
 0x800   :  { %v21172_v55 = vpop.f32.mrf.mxu1  ;;  %v14853_v49 = vpop.f32.mrf.mxu0  ;;  %v8492_v5 = vmax.f32 %v8460_v38, 0.0  ;;  %v7260_v57 = vadd.f32 %v21005_v62, %v21107_v22  ;;  %v8032_v23 = vadd.f32 %v21117_v53, %v21033_v47  ;;  %v7300_v38 = vadd.f32 %v21019_v59, %v21107_v22 }
 0x801   :  { %v8427_v1 = vadd.f32 %v21109_v7, %v8394_v35  ;;  %v8399_v16 = vadd.f32 %v14853_v49, %v8085_v29  ;;  %v8461_v17 = vadd.f32 %v8429_v12, %v7284_v15  ;;  %v8490_v9 = vmax.f32 %v8458_v13, 0.0 }
 0x802   :  { %v14817_v0 = vpop.f32.mrf.mxu1  ;;  %v8318_v8 = vpop.f32.mrf.mxu0  ;;  %v8386_v62 = vadd.f32 %v21137_v18, %v8032_v23  ;;  %v8455_v35 = vadd.f32 %v8423_v14, %v7260_v57  ;;  %v23579_v23 = vld [vmem:[#allocation76_spill] sm:$0xff] }
 0x803   :  { %v8459_v40 = vadd.f32 %v8427_v1, %v7276_v10  ;;  %v8432_v44 = vadd.f32 %v21109_v7, %v8399_v16  ;;  %v8397_v3 = vadd.f32 %v8318_v8, %v8077_v25  ;;  %v8493_v31 = vmax.f32 %v8461_v17, 0.0 }
 0x804   :  { %v8092_v21 = vpop.f32.mrf.mxu1  ;;  %v14854_v45 = vpop.f32.mrf.mxu0  ;;  %v8101_v2 = vadd.f32 %v14817_v0, %v21073_v26  ;;  %v7313_v26 = vadd.f32 %v21029_v50, %v21107_v22  ;;  %v8419_v1 = vadd.f32 %v21109_v7, %v8386_v62 }
 0x805   :  { %v8491_v6 = vmax.f32 %v8459_v40, 0.0  ;;  %v8464_v43 = vadd.f32 %v8432_v44, %v7297_v48  ;;  %v8430_v11 = vadd.f32 %v21109_v7, %v8397_v3  ;;  %v8400_v58 = vadd.f32 %v14854_v45, %v8088_v19 }
 0x806   :  { %v14818_v32 = vpop.f32.mrf.mxu1  ;;  %v21197_v20 = vpack.c.bf16 %v8493_v31, %v8492_v5  ;;  %v21199_v24 = vpop.f32.mrf.mxu0  ;;  %v8093_v13 = vadd.f32 %v8092_v21, %v21077_v28  ;;  %v8487_v28 = vmax.f32 %v8455_v35, 0.0  ;;  %v7305_v48 = vadd.f32 %v21035_v61, %v21107_v22 }
 0x807   :  { %v21204_v34 = vadd.f32 %v8430_v11, %v7289_v54  ;;  %v8433_v30 = vadd.f32 %v21109_v7, %v8400_v58  ;;  %v21209_v53 = vpack.c.bf16 %v8491_v6, %v8490_v9  ;;  %v8496_v18 = vmax.f32 %v8464_v43, 0.0  ;;  %v23577_v54 = vld [vmem:[#allocation109_spill] sm:$0xff]  ;;  %v23578_v6 = vld [vmem:[#allocation134_spill] sm:$0xff] }
 0x808   :  { %v21191_v33 = vpop.f32.mrf.mxu1  ;;  %14867 = vmatprep.subr.bf16.mxu1 %v21197_v20  ;;  %v14857_v47 = vpop.f32.mrf.mxu0  ;;  %v8104_v16 = vadd.f32 %v14818_v32, %v21079_v56  ;;  %v7244_v40 = vadd.f32 %v20997_v39, %v21107_v22  ;;  %v8016_v44 = vadd.f32 %v21103_v60, %v21021_v52  ;;  %v8486_v56 = vmax.f32 %v21158_v36, 0.0 }
 0x809   :  { %v8465_v15 = vadd.f32 %v8433_v30, %v7300_v38  ;;  %v8403_v63 = vadd.f32 %v14857_v47, %v8101_v2  ;;  %14868 = vmatpush3.bf16.msra.mxu1 %v21197_v20  ;;  %v7316_v32 = vadd.f32 %v21041_v41, %v21107_v22  ;;  %v7329_v9 = vadd.f32 %v23579_v23, %v21107_v22 }
 0x80a   :  { %v14821_v29 = vpop.f32.mrf.mxu1  ;;  %14869 = vmatprep.subr.bf16.mxu1 %v21209_v53  ;;  %v8334_v0 = vpop.f32.mrf.mxu0  ;;  %v8382_v39 = vadd.f32 %v21119_v4, %v8016_v44  ;;  %v8451_v45 = vadd.f32 %v8419_v1, %v7244_v40  ;;  %v21242_v36 = vpack.c.bf16 %v8487_v28, %v8486_v56  ;;  %v23580_v4 = vld [vmem:[#allocation111_spill] sm:$0xff] }
 0x80b   :  { %v8497_v12 = vmax.f32 %v8465_v15, 0.0  ;;  %v8436_v49 = vadd.f32 %v21109_v7, %v8403_v63  ;;  %v8401_v10 = vadd.f32 %v8334_v0, %v8093_v13  ;;  %v8117_v14 = vadd.f32 %v14821_v29, %v23577_v54  ;;  %v23581_v15 = vld [vmem:[#allocation124_spill] sm:$0xff]  ;;  %v23583_v28 = vld [vmem:[#allocation107_spill] sm:$0xff] }
 0x80c   :  { %v8108_v59 = vpop.f32.mrf.mxu1  ;;  %v14858_v21 = vpop.f32.mrf.mxu0  ;;  %v8415_v29 = vadd.f32 %v21109_v7, %v8382_v39  ;;  %v8483_v62 = vmax.f32 %v8451_v45, 0.0  ;;  %v7321_v63 = vadd.f32 %v23581_v15, %v21107_v22 }
 0x80d   :  { %v21221_v17 = vpack.c.bf16 %v8497_v12, %v8496_v18  ;;  %v8468_v50 = vadd.f32 %v8436_v49, %v7313_v26  ;;  %v8434_v8 = vadd.f32 %v21109_v7, %v8401_v10  ;;  %14870 = vmatpush3.bf16.msra.mxu1 %v21209_v53  ;;  %v8404_v3 = vadd.f32 %v14858_v21, %v8104_v16  ;;  %v23582_v18 = vld [vmem:[#allocation105_spill] sm:$0xff]  ;;  %v23584_v21 = vld [vmem:[#allocation170_spill] sm:$0xff] }
 0x80e   :  { %v14822_v25 = vpop.f32.mrf.mxu1  ;;  %14871 = vmatprep.subr.bf16.mxu1 %v21168_v51  ;;  %v21233_v61 = vpop.f32.mrf.mxu0  ;;  %v8109_v43 = vadd.f32 %v8108_v59, %v23578_v6  ;;  %v7228_v12 = vadd.f32 %v23582_v18, %v21107_v22  ;;  %v8482_v49 = vmax.f32 %v21140_v46, 0.0  ;;  %v7332_v16 = vadd.f32 %v23583_v28, %v21107_v22  ;;  %v23585_v46 = vld [vmem:[#allocation35_spill] sm:$0xff] }
 0x80f   :  { %v21238_v5 = vadd.f32 %v8434_v8, %v7305_v48  ;;  %v8437_v52 = vadd.f32 %v21109_v7, %v8404_v3  ;;  %v8120_v38 = vadd.f32 %v14822_v25, %v23580_v4  ;;  %v8500_v35 = vmax.f32 %v8468_v50, 0.0 }
 0x810   :  { %v21225_v19 = vpop.f32.mrf.mxu1  ;;  %v14861_v60 = vpop.f32.mrf.mxu0  ;;  %v8447_v40 = vadd.f32 %v8415_v29, %v7228_v12  ;;  %v21268_v56 = vpack.c.bf16 %v8483_v62, %v8482_v49  ;;  %v8478_v62 = vmax.f32 %v21124_v42, 0.0 }
 0x811   :  { %v8407_v11 = vadd.f32 %v14861_v60, %v8117_v14  ;;  %14872 = vmatpush3.bf16.msra.mxu1 %v21168_v51  ;;  %v8469_v58 = vadd.f32 %v8437_v52, %v7316_v32  ;;  %v23586_v14 = vld [vmem:[#allocation167_spill] sm:$0xff] }
 0x812   :  { %v14825_v31 = vpop.f32.mrf.mxu1  ;;  %14873 = vmatprep.subr.bf16.mxu1 %v21242_v36  ;;  %v8350_v41 = vpop.f32.mrf.mxu0  ;;  %v7345_v39 = vadd.f32 %v23586_v14, %v21107_v22 }
 0x813   :  { %v8440_v2 = vadd.f32 %v21109_v7, %v8407_v11  ;;  %v8405_v30 = vadd.f32 %v8350_v41, %v8109_v43  ;;  %v8501_v47 = vmax.f32 %v8469_v58, 0.0  ;;  %v8133_v48 = vadd.f32 %v14825_v31, %v23584_v21  ;;  %v23587_v11 = vld [vmem:[#allocation164_spill] sm:$0xff] }
 0x814   :  { %v8124_v57 = vpop.f32.mrf.mxu1  ;;  %v14862_v13 = vpop.f32.mrf.mxu0  ;;  %v7337_v58 = vadd.f32 %v23587_v11, %v21107_v22  ;;  %v8479_v41 = vmax.f32 %v8447_v40, 0.0 }
 0x815   :  { %v8472_v59 = vadd.f32 %v8440_v2, %v7329_v9  ;;  %v8438_v26 = vadd.f32 %v21109_v7, %v8405_v30  ;;  %v8408_v0 = vadd.f32 %v14862_v13, %v8120_v38  ;;  %14874 = vmatpush3.bf16.msra.mxu1 %v21242_v36  ;;  %v21259_v10 = vpack.c.bf16 %v8501_v47, %v8500_v35  ;;  %v23589_v38 = vld [vmem:[#allocation39_spill] sm:$0xff]  ;;  %v23590_v35 = vld [vmem:[#allocation173_spill] sm:$0xff] }
 0x816   :  { %14875 = vmatprep.subr.bf16.mxu1 %v21153_v37  ;;  %v14826_v25 = vpop.f32.mrf.mxu1  ;;  %v8353_v1 = vpop.f32.mrf.mxu0  ;;  %v8125_v3 = vadd.f32 %v8124_v57, %v23585_v46  ;;  %v23588_v57 = vld [vmem:[#allocation33_spill] sm:$0xff]  ;;  %v8112_v47 = vadd.f32 %v21225_v19, %v23590_v35  ;;  %v21291_v49 = vpack.c.bf16 %v8479_v41, %v8478_v62  ;;  %v23593_v46 = vld [vmem:[#allocation108_spill] sm:$0xff] }
 0x817   :  { %v21265_v50 = vadd.f32 %v8438_v26, %v7321_v63  ;;  %v8441_v8 = vadd.f32 %v21109_v7, %v8408_v0  ;;  %v8504_v52 = vmax.f32 %v8472_v59, 0.0  ;;  %v8136_v23 = vadd.f32 %v14826_v25, %v23588_v57  ;;  %v23591_v26 = vld [vmem:[#allocation169_spill] sm:$0xff]  ;;  %v23592_v25 = vld [vmem:[#allocation174_spill] sm:$0xff]  ;;  %v15345_v41 = vld [vmem:[#allocation14 + $0x20] sm:$0xff]  }
 0x818   :  { %v14865_v44 = vpop.f32.mrf.mxu0  ;;  %v8127_v45 = vpop.f32.mrf.mxu1  ;;  %v7348_v0 = vadd.f32 %v23591_v26, %v21107_v22  ;;  %v8406_v18 = vadd.f32 %v8353_v1, %v8112_v47  ;;  %v7340_v42 = vadd.f32 %v23592_v25, %v21107_v22  ;;  %v21299_v1 = vld [vmem:[#allocation14 + $0x8] sm:$0xff]   ;;  %v15359_v35 = vld [vmem:[#allocation16] sm:$0xff]   ;;  %v21365_v47 = vld [vmem:[#allocation17 + $0x18] sm:$0xff]  }
 0x819   :  { %v8473_v32 = vadd.f32 %v8441_v8, %v7332_v16  ;;  %v8411_v54 = vadd.f32 %v14865_v44, %v8133_v48  ;;  %14876 = vmatpush3.bf16.msra.mxu1 %v21153_v37  ;;  %v8128_v2 = vadd.f32 %v8127_v45, %v23589_v38  ;;  %v21311_v45 = vld [vmem:[#allocation14 + $0x10] sm:$0xff]   ;;  %v8498_v38 = vmax.f32 %v21238_v5, 0.0  ;;  %v15357_v62 = vld [vmem:[#allocation16 + $0x8] sm:$0xff]  }
 0x81a   :  { %14877 = vmatprep.subr.bf16.mxu1 %v21268_v56  ;;  %v8366_v31 = vpop.f32.mrf.mxu0  ;;  %v8439_v21 = vadd.f32 %v21109_v7, %v8406_v18 }
 0x81b   :  { %v8505_v60 = vmax.f32 %v8473_v32, 0.0  ;;  %v8444_v6 = vadd.f32 %v21109_v7, %v8411_v54  ;;  %v8409_v43 = vadd.f32 %v8366_v31, %v8125_v3  ;;  %v7324_v3 = vadd.f32 %v23593_v46, %v21107_v22  ;;  %v23594_v32 = vld [vmem:[#allocation130_spill] sm:$0xff] }
 0x81c   :  { %v14866_v9 = vpop.f32.mrf.mxu0  ;;  %v8096_v54 = vadd.f32 %v21191_v33, %v23594_v32 }
 0x81d   :  { %v21279_v4 = vpack.c.bf16 %v8505_v60, %v8504_v52  ;;  %v8476_v30 = vadd.f32 %v8444_v6, %v7345_v39  ;;  %v8442_v29 = vadd.f32 %v21109_v7, %v8409_v43  ;;  %14878 = vmatpush3.bf16.msra.mxu1 %v21268_v56  ;;  %v8412_v13 = vadd.f32 %v14866_v9, %v8136_v23  ;;  %v15344_v6 = vld [vmem:[#allocation14 + $0x18] sm:$0xff]  }
 0x81e   :  { %14879 = vmatprep.subr.bf16.mxu1 %v21134_v27  ;;  %v8369_v15 = vpop.f32.mrf.mxu0  ;;  %v8402_v31 = vadd.f32 %v21233_v61, %v8096_v54  ;;  %v8471_v52 = vadd.f32 %v8439_v21, %v7324_v3  ;;  %v23595_v61 = vld [vmem:[#allocation116_spill] sm:$0xff] }
 0x81f   :  { %v8474_v63 = vadd.f32 %v8442_v29, %v7337_v58  ;;  %v8410_v59 = vadd.f32 %v8369_v15, %v8128_v2  ;;  %v8445_v12 = vadd.f32 %v21109_v7, %v8412_v13  ;;  %v8508_v48 = vmax.f32 %v8476_v30, 0.0  ;;  %v15353_v30 = vld [vmem:[#allocation16 + $0x18] sm:$0xff]   ;;  %v15355_v29 = vld [vmem:[#allocation16 + $0x10] sm:$0xff]   ;;  %v15360_v21 = vld [vmem:[#allocation16 + $0x40] sm:$0xff]  }
 0x820   :  { %v8435_v33 = vadd.f32 %v21109_v7, %v8402_v31  ;;  %v8503_v60 = vmax.f32 %v8471_v52, 0.0  ;;  %v7308_v43 = vadd.f32 %v23595_v61, %v21107_v22  ;;  %v8502_v58 = vmax.f32 %v21265_v50, 0.0  ;;  %v23597_v50 = vld [vmem:[#allocation162_spill] sm:$0xff] }
 0x821   :  { %v8443_v28 = vadd.f32 %v21109_v7, %v8410_v59  ;;  %14880 = vmatpush3.bf16.msra.mxu1 %v21134_v27  ;;  %v8477_v19 = vadd.f32 %v8445_v12, %v7348_v0  ;;  %v8506_v40 = vmax.f32 %v8474_v63, 0.0  ;;  %v15356_v12 = vld [vmem:[#allocation16 + $0x50] sm:$0xff]  }
 0x822   :  { %14881 = vmatprep.subr.bf16.mxu1 %v21291_v49  ;;  %v8467_v23 = vadd.f32 %v8435_v33, %v7308_v43  ;;  %v8522_v9 = vpack.c.bf16 %v8503_v60, %v8502_v58 }
 0x823   :  { %v8475_v16 = vadd.f32 %v8443_v28, %v7340_v42  ;;  %v8509_v8 = vmax.f32 %v8477_v19, 0.0  ;;  %v15358_v42 = vld [vmem:[#allocation16 + $0x48] sm:$0xff]  }
 0x825   :  { %v8507_v44 = vmax.f32 %v8475_v16, 0.0  ;;  %14882 = vmatpush3.bf16.msra.mxu1 %v21291_v49  ;;  %v21306_v14 = vpack.c.bf16 %v8509_v8, %v8508_v48 }
 0x826   :  { %14891 = vmatprep.subr.bf16.mxu1 %v21197_v20 }
 0x827   :  { %v21309_v39 = vpack.c.bf16 %v8507_v44, %v8506_v40  ;;  %14915 = vmatprep.subr.bf16.mxu0 %v21306_v14 }
 0x828   :  { %14884 = vmatmul.mubr.bf16.vlgmr.msra.gmra.mxu1 %v21299_v1  ;;  %14916 = vmatpush3.bf16.msra.mxu0 %v21306_v14 }
 0x829   :  { %14892 = vmatpush3.bf16.msra.mxu1 %v21197_v20  ;;  %14917 = vmatprep.subr.bf16.mxu0 %v21309_v39  ;;  %v23596_v20 = vld [vmem:[#allocation128_spill] sm:$0xff] }
 0x82a   :  { %14893 = vmatprep.subr.bf16.mxu1 %v21209_v53  ;;  %14887 = vmatprep.mubr.bf16.mxu1 %v21311_v45  ;;  %v8080_v11 = vadd.f32 %v21172_v55, %v23596_v20 }
 0x82c   :  { %14918 = vmatpush3.bf16.msra.mxu0 %v21309_v39  ;;  %v8398_v57 = vadd.f32 %v21199_v24, %v8080_v11  ;;  %v7292_v24 = vadd.f32 %v23597_v50, %v21107_v22  ;;  %v8494_v22 = vmax.f32 %v21204_v34, 0.0  ;;  %v15349_v34 = vld [vmem:[#allocation16 + $0x38] sm:$0xff]  }
 0x82d   :  { %14894 = vmatpush3.bf16.msra.mxu1 %v21209_v53  ;;  %14919 = vmatprep.subr.bf16.mxu0 %v21279_v4  ;;  %v8499_v53 = vmax.f32 %v8467_v23, 0.0 }
 0x82e   :  { %14895 = vmatprep.subr.bf16.mxu1 %v21168_v51  ;;  %v8431_v55 = vadd.f32 %v21109_v7, %v8398_v57 }
 0x82f   :  { %v8520_v2 = vpack.c.bf16 %v8499_v53, %v8498_v38 }
 0x830   :  { %14888 = vmatmul.mubr.bf16.gmra.mxu1 %v15344_v6  ;;  %14920 = vmatpush3.bf16.msra.mxu0 %v21279_v4 }
 0x831   :  { %14896 = vmatpush3.bf16.msra.mxu1 %v21168_v51  ;;  %14921 = vmatprep.subr.bf16.mxu0 %v8522_v9  ;;  %v8463_v51 = vadd.f32 %v8431_v55, %v7292_v24 }
 0x832   :  { %14897 = vmatprep.subr.bf16.mxu1 %v21242_v36  ;;  %14907 = vmatprep.mubr.bf16.mxu1 %v15345_v41 }
 0x833   :  { %v8495_v7 = vmax.f32 %v8463_v51, 0.0 }
 0x834   :  { %14922 = vmatpush3.bf16.msra.mxu0 %v8522_v9 }
 0x835   :  { %14898 = vmatpush3.bf16.msra.mxu1 %v21242_v36  ;;  %14923 = vmatprep.subr.bf16.mxu0 %v21259_v10  ;;  %v8518_v5 = vpack.c.bf16 %v8495_v7, %v8494_v22  ;;  %v15347_v36 = vld [vmem:[#allocation14 + $0x30] sm:$0xff]  }
 0x836   :  { %14899 = vmatprep.subr.bf16.mxu1 %v21153_v37 }
 0x838   :  { %14924 = vmatpush3.bf16.msra.mxu0 %v21259_v10 }
 0x839   :  { %14900 = vmatpush3.bf16.msra.mxu1 %v21153_v37  ;;  %14925 = vmatprep.subr.bf16.mxu0 %v8520_v2  ;;  %v15346_v37 = vld [vmem:[#allocation14 + $0x28] sm:$0xff]  }
 0x83a   :  { %14901 = vmatprep.subr.bf16.mxu1 %v21268_v56 }
 0x83c   :  { %14926 = vmatpush3.bf16.msra.mxu0 %v8520_v2 }
 0x83d   :  { %14902 = vmatpush3.bf16.msra.mxu1 %v21268_v56  ;;  %14927 = vmatprep.subr.bf16.mxu0 %v21221_v17  ;;  %v15350_v56 = vld [vmem:[#allocation16 + $0x30] sm:$0xff]  }
 0x83e   :  { %14903 = vmatprep.subr.bf16.mxu1 %v21134_v27 }
 0x840   :  { %14928 = vmatpush3.bf16.msra.mxu0 %v21221_v17 }
 0x841   :  { %14904 = vmatpush3.bf16.msra.mxu1 %v21134_v27  ;;  %14929 = vmatprep.subr.bf16.mxu0 %v8518_v5  ;;  %v15348_v27 = vld [vmem:[#allocation14 + $0x38] sm:$0xff]  }
 0x842   :  { %14905 = vmatprep.subr.bf16.mxu1 %v21291_v49 }
 0x844   :  { %14930 = vmatpush3.bf16.msra.mxu0 %v8518_v5 }
 0x845   :  { %14906 = vmatpush3.bf16.msra.mxu1 %v21291_v49  ;;  %14963 = vmatprep.subr.bf16.mxu0 %v15349_v34 }
 0x846   :  { %14939 = vmatprep.subr.bf16.mxu1 %v21306_v14 }
 0x847   :  { %14932 = vmatmul.mubr.bf16.vlgmr.msra.gmra.mxu0 %v21299_v1 }
 0x848   :  { %14908 = vmatmul.mubr.bf16.vlgmr.msra.gmra.mxu1 %v15346_v37  ;;  %14935 = vmatprep.mubr.bf16.mxu0 %v21311_v45 }
 0x849   :  { %14940 = vmatpush3.bf16.msra.mxu1 %v21306_v14  ;;  %14911 = vmatprep.mubr.bf16.mxu1 %v15347_v36 }
 0x84a   :  { %14941 = vmatprep.subr.bf16.mxu1 %v21309_v39  ;;  %14964 = vmatpush3.bf16.msra.mxu0 %v15349_v34 }
 0x84b   :  { %14965 = vmatprep.subr.bf16.mxu0 %v15350_v56 }
 0x84d   :  { %14942 = vmatpush3.bf16.msra.mxu1 %v21309_v39 }
 0x84e   :  { %14943 = vmatprep.subr.bf16.mxu1 %v21279_v4  ;;  %14966 = vmatpush3.bf16.msra.mxu0 %v15350_v56 }
 0x84f   :  { %14936 = vmatmul.mubr.bf16.gmra.mxu0 %v15344_v6 }
 0x850   :  { %14912 = vmatmul.mubr.bf16.gmra.mxu1 %v15348_v27 }
 0x851   :  { %14944 = vmatpush3.bf16.msra.mxu1 %v21279_v4  ;;  %14955 = vmatprep.mubr.bf16.mxu1 %v15345_v41  ;;  %v15351_v4 = vld [vmem:[#allocation16 + $0x28] sm:$0xff]  }
 0x852   :  { %14945 = vmatprep.subr.bf16.mxu1 %v8522_v9  ;;  %14967 = vmatprep.subr.bf16.mxu0 %v15351_v4 }
 0x853   :  { %14968 = vmatpush3.bf16.msra.mxu0 %v15351_v4  ;;  %v23598_v4 = vld [vmem:[#allocation44_spill] sm:$0xff] }
 0x855   :  { %14946 = vmatpush3.bf16.msra.mxu1 %v8522_v9 }
 0x856   :  { %14947 = vmatprep.subr.bf16.mxu1 %v21259_v10 }
 0x859   :  { %14948 = vmatpush3.bf16.msra.mxu1 %v21259_v10  ;;  %v15352_v10 = vld [vmem:[#allocation16 + $0x20] sm:$0xff]  }
 0x85a   :  { %14949 = vmatprep.subr.bf16.mxu1 %v8520_v2  ;;  %14969 = vmatprep.subr.bf16.mxu0 %v15352_v10 }
 0x85b   :  { %14970 = vmatpush3.bf16.msra.mxu0 %v15352_v10 }
 0x85d   :  { %14950 = vmatpush3.bf16.msra.mxu1 %v8520_v2 }
 0x85e   :  { %14951 = vmatprep.subr.bf16.mxu1 %v21221_v17 }
 0x861   :  { %14952 = vmatpush3.bf16.msra.mxu1 %v21221_v17  ;;  %v15354_v17 = vld [vmem:[#allocation16 + $0x58] sm:$0xff]  }
 0x862   :  { %14953 = vmatprep.subr.bf16.mxu1 %v8518_v5  ;;  %15011 = vmatprep.subr.bf16.mxu0 %v15354_v17 }
 0x865   :  { %14954 = vmatpush3.bf16.msra.mxu1 %v8518_v5 }
 0x866   :  { %14987 = vmatprep.subr.bf16.mxu1 %v15353_v30 }
 0x868   :  { %14956 = vmatmul.mubr.bf16.vlgmr.msra.gmra.mxu1 %v15346_v37 }
 0x869   :  { %14959 = vmatprep.mubr.bf16.mxu1 %v15347_v36  ;;  %14988 = vmatpush3.bf16.msra.mxu1 %v15353_v30 }
 0x86a   :  { %14989 = vmatprep.subr.bf16.mxu1 %v15355_v29 }
 0x86d   :  { %14990 = vmatpush3.bf16.msra.mxu1 %v15355_v29 }
 0x86e   :  { %14991 = vmatprep.subr.bf16.mxu1 %v15357_v62 }
 0x870   :  { %14960 = vmatmul.mubr.bf16.gmra.mxu1 %v15348_v27 }
 0x871   :  { %14992 = vmatpush3.bf16.msra.mxu1 %v15357_v62 }
 0x872   :  { %14993 = vmatprep.subr.bf16.mxu1 %v15359_v35 }
 0x875   :  { %14994 = vmatpush3.bf16.msra.mxu1 %v15359_v35 }
 0x876   :  { %15035 = vmatprep.subr.bf16.mxu1 %v21365_v47 }
 0x8e8   :  { %v14885_v13 = vpop.f32.mrf.mxu1 }
 0x8ea   :  { %v8600_v15 = vpop.f32.mrf.mxu1 }
 0x8ec   :  { %v14886_v63 = vpop.f32.mrf.mxu1 }
 0x8ed   :  { %v21370_v0 = vpack.c.bf16 %v14886_v63, %v14885_v13 }
 0x8ee   :  { %v8603_v59 = vpop.f32.mrf.mxu1 }
 0x8ef   :  { %v21368_v26 = vpack.c.bf16 %v8603_v59, %v8600_v15 }
 0x8f0   :  { %v14889_v18 = vpop.f32.mrf.mxu1 }
 0x8f1   :  { %14971 = vmatprep.mubr.msk.bf16.mxu0 %vm7696_vm11, %v21368_v26 }
 0x8f2   :  { %v8616_v49 = vpop.f32.mrf.mxu1  ;;  %14972 = vmatmul.mubr.msk.bf16.vlgmr.msra.gmra.mxu0 %vm7696_vm11, %v21370_v0 }
 0x8f3   :  { %15012 = vmatpush3.bf16.msra.mxu0 %v15354_v17 }
 0x8f4   :  { %v14890_v25 = vpop.f32.mrf.mxu1  ;;  %15013 = vmatprep.subr.bf16.mxu0 %v15356_v12 }
 0x8f5   :  { %v21376_v28 = vpack.c.bf16 %v14890_v25, %v14889_v18 }
 0x8f6   :  { %v8619_v19 = vpop.f32.mrf.mxu1 }
 0x8f7   :  { %v21378_v16 = vpack.c.bf16 %v8619_v19, %v8616_v49  ;;  %15014 = vmatpush3.bf16.msra.mxu0 %v15356_v12  ;;  %v21444_v12 = vadd.s32 64, %v23598_v4  ;;  %v15362_v49 = vld [vmem:[#allocation17 + $0x10] sm:$0xff]  }
 0x8f8   :  { %15015 = vmatprep.subr.bf16.mxu0 %v15358_v42 }
 0x8f9   :  { %14975 = vmatprep.mubr.msk.bf16.mxu0 %vm7696_vm11, %v21378_v16  ;;  %vm8874_vm13 = vcmp.eq.s32.totalorder %v21444_v12, 64 }
 0x8fa   :  { %14976 = vmatmul.mubr.msk.bf16.gmra.mxu0 %vm7696_vm11, %v21376_v28  ;;  %vm13052_vm1 = vmneg %vm8874_vm13 }
 0x8fb   :  { %15016 = vmatpush3.bf16.msra.mxu0 %v15358_v42  ;;  %vm13053_vm2 = vmpackc.low %vm15951_vm15, %vm13052_vm1 }
 0x8fc   :  { %15017 = vmatprep.subr.bf16.mxu0 %v15360_v21 }
 0x8ff   :  { %15018 = vmatpush3.bf16.msra.mxu0 %v15360_v21 }
 0x907   :  { %v14933_v8 = vpop.f32.mrf.mxu0 }
 0x908   :  { %v14909_v48 = vpop.f32.mrf.mxu1 }
 0x909   :  { %v8754_v40 = vpop.f32.mrf.mxu0  ;;  %v8932_v5 = vrot.slane %v14909_v48, 7 }
 0x90a   :  { %v8689_v1 = vpop.f32.mrf.mxu1 }
 0x90b   :  { %v14934_v46 = vpop.f32.mrf.mxu0  ;;  %v8930_v37 = vrot.slane %v8689_v1, 7 }
 0x90c   :  { %v14910_v44 = vpop.f32.mrf.mxu1  ;;  %v21384_v32 = vpack.c.bf16 %v14934_v46, %v14933_v8  ;;  %v15363_v8 = vld [vmem:[#allocation17 + $0x8] sm:$0xff]  }
 0x90d   :  { %v8757_v54 = vpop.f32.mrf.mxu0  ;;  %v8923_v41 = vpack.c.bf16 %v14910_v44, %v14909_v48  ;;  %v8933_v36 = vrot.slane %v14910_v44, 7 }
 0x90e   :  { %v8692_v3 = vpop.f32.mrf.mxu1  ;;  %v21386_v14 = vpack.c.bf16 %v8757_v54, %v8754_v40  ;;  %v15364_v54 = vld [vmem:[#allocation17] sm:$0xff]  }
 0x90f   :  { %v14937_v39 = vpop.f32.mrf.mxu0  ;;  %v8922_v43 = vpack.c.bf16 %v8692_v3, %v8689_v1  ;;  %v8931_v2 = vrot.slane %v8692_v3, 7  ;;  %v8958_v15 = vsel %vm1468_vm5, %v8932_v5, %v8933_v36 }
 0x910   :  { %14979 = vmatprep.mubr.msk.bf16.mxu0 %vm7696_vm11, %v21386_v14  ;;  %v21390_v45 = vpop.f32.mrf.mxu1 }
 0x911   :  { %v8770_v31 = vpop.f32.mrf.mxu0  ;;  %14980 = vmatmul.mubr.msk.bf16.gmra.mxu0 %vm7696_vm11, %v21384_v32  ;;  %v8959_v10 = vsel %vm1468_vm5, %v8931_v2, %v8932_v5  ;;  %v8960_v29 = vsel %vm1468_vm5, %v8930_v37, %v8931_v2  ;;  %v8936_v25 = vrot.slane %v21390_v45, 7  ;;  %v15380_v2 = vld [vmem:[%s22522_s10 + $0x18] sm:$0xff]   ;;  %v15386_v5 = vld [vmem:[%s22522_s10] sm:$0xff]  }
 0x912   :  { %v8705_v33 = vpop.f32.mrf.mxu1  ;;  %v9011_v59 = vpack.c.bf16 %v8958_v15, %v8959_v10 }
 0x913   :  { %v14938_v52 = vpop.f32.mrf.mxu0  ;;  %v8934_v34 = vrot.slane %v8705_v33, 7 }
 0x914   :  { %v21394_v60 = vpack.c.bf16 %v14938_v52, %v14937_v39  ;;  %v14914_v20 = vpop.f32.mrf.mxu1 }
 0x915   :  { %v8773_v6 = vpop.f32.mrf.mxu0  ;;  %v8925_v57 = vpack.c.bf16 %v14914_v20, %v21390_v45  ;;  %v8957_v18 = vsel %vm1468_vm5, %v8933_v36, %v8934_v34  ;;  %v8937_v42 = vrot.slane %v14914_v20, 7 }
 0x916   :  { %v21396_v61 = vpack.c.bf16 %v8773_v6, %v8770_v31  ;;  %v8708_v11 = vpop.f32.mrf.mxu1 }
 0x917   :  { %v8924_v58 = vpack.c.bf16 %v8708_v11, %v8705_v33  ;;  %v8935_v7 = vrot.slane %v8708_v11, 7  ;;  %v8954_v1 = vsel %vm1468_vm5, %v8936_v25, %v8937_v42 }
 0x918   :  { %14983 = vmatprep.mubr.msk.bf16.mxu0 %vm7696_vm11, %v21396_v61 }
 0x919   :  { %14984 = vmatmul.mubr.msk.bf16.gmra.mxu0 %vm7696_vm11, %v21394_v60  ;;  %v8956_v62 = vsel %vm1468_vm5, %v8934_v34, %v8935_v7  ;;  %v8955_v40 = vsel %vm1468_vm5, %v8935_v7, %v8936_v25  ;;  %v15382_v7 = vld [vmem:[%s22522_s10 + $0x10] sm:$0xff]  }
 0x91a   :  { %15019 = vmatprep.mubr.msk.bf16.mxu0 %vm7696_vm11, %v8922_v43  ;;  %v9012_v21 = vpack.c.bf16 %v8956_v62, %v8957_v18  ;;  %v9013_v3 = vpack.c.bf16 %v8954_v1, %v8955_v40 }
 0x921   :  { %15020 = vmatmul.mubr.msk.bf16.vlgmr.msra.gmra.mxu0 %vm7696_vm11, %v8923_v41 }
 0x922   :  { %15023 = vmatprep.mubr.msk.bf16.mxu0 %vm7696_vm11, %v8924_v58 }
 0x928   :  { %v21406_v23 = vpop.f32.mrf.mxu1 }
 0x929   :  { %15024 = vmatmul.mubr.msk.bf16.gmra.mxu0 %vm7696_vm11, %v8925_v57  ;;  %v8940_v31 = vrot.slane %v21406_v23, 7 }
 0x92a   :  { %v8819_v9 = vpop.f32.mrf.mxu1 }
 0x92b   :  { %v8938_v19 = vrot.slane %v8819_v9, 7 }
 0x92c   :  { %v21409_v55 = vpop.f32.mrf.mxu1 }
 0x92d   :  { %v8927_v24 = vpack.c.bf16 %v21409_v55, %v21406_v23  ;;  %v8953_v44 = vsel %vm1468_vm5, %v8937_v42, %v8938_v19  ;;  %v8941_v52 = vrot.slane %v21409_v55, 7 }
 0x92e   :  { %v21411_v53 = vpop.f32.mrf.mxu1 }
 0x92f   :  { %v8926_v50 = vpack.c.bf16 %v21411_v53, %v8819_v9  ;;  %v8939_v48 = vrot.slane %v21411_v53, 7  ;;  %v8950_v20 = vsel %vm1468_vm5, %v8940_v31, %v8941_v52  ;;  %v15365_v53 = vld [vmem:[%s22522_s10 + $0x78] sm:$0xff]  }
 0x930   :  { %v21416_v38 = vpop.f32.mrf.mxu1  ;;  %15059 = vmatprep.subr.bf16.mxu0 %v15365_v53 }
 0x931   :  { %15027 = vmatprep.mubr.msk.bf16.mxu0 %vm7696_vm11, %v8926_v50  ;;  %v8952_v46 = vsel %vm1468_vm5, %v8938_v19, %v8939_v48  ;;  %v8951_v6 = vsel %vm1468_vm5, %v8939_v48, %v8940_v31  ;;  %v8944_v57 = vrot.slane %v21416_v38, 7  ;;  %15060 = vmatpush3.bf16.msra.mxu0 %v15365_v53  ;;  %v15366_v50 = vld [vmem:[%s22522_s10 + $0x70] sm:$0xff]  }
 0x932   :  { %v21419_v51 = vpop.f32.mrf.mxu1  ;;  %15028 = vmatmul.mubr.msk.bf16.gmra.mxu0 %vm7696_vm11, %v8927_v24  ;;  %v9015_v11 = vpack.c.bf16 %v8950_v20, %v8951_v6  ;;  %15061 = vmatprep.subr.bf16.mxu0 %v15366_v50  ;;  %v15367_v24 = vld [vmem:[%s22522_s10 + $0x68] sm:$0xff]   ;;  %v21571_v20 = vld [vmem:[#allocation2 + $0x6] ss:$0 sm:$0xff] }
 0x933   :  { %v8942_v33 = vrot.slane %v21419_v51, 7 }
 0x934   :  { %v21422_v22 = vpop.f32.mrf.mxu1 }
 0x935   :  { %v8945_v27 = vrot.slane %v21422_v22, 7  ;;  %v8929_v35 = vpack.c.bf16 %v21422_v22, %v21416_v38  ;;  %v8949_v58 = vsel %vm1468_vm5, %v8941_v52, %v8942_v33  ;;  %15062 = vmatpush3.bf16.msra.mxu0 %v15366_v50  ;;  %v15376_v38 = vld [vmem:[%s22522_s10 + $0x28] sm:$0xff]  }
 0x936   :  { %v8838_v56 = vpop.f32.mrf.mxu1  ;;  %15063 = vmatprep.subr.bf16.mxu0 %v15367_v24  ;;  %v15384_v22 = vld [vmem:[%s22522_s10 + $0x8] sm:$0xff]  }
 0x937   :  { %v8961_v30 = vsel %vm1468_vm5, %v8945_v27, %v8930_v37  ;;  %v8928_v17 = vpack.c.bf16 %v8838_v56, %v21419_v51  ;;  %v8943_v45 = vrot.slane %v8838_v56, 7  ;;  %v8946_v9 = vsel %vm1468_vm5, %v8944_v57, %v8945_v27  ;;  %v15378_v51 = vld [vmem:[%s22522_s10 + $0x20] sm:$0xff]  }
 0x938   :  { %v8994_v13 = vsel %vm988_vm4, 0.0, %v8961_v30 }
 0x939   :  { %v9010_v63 = vpack.c.bf16 %v8960_v29, %v8994_v13  ;;  %15031 = vmatprep.mubr.msk.bf16.mxu0 %vm7696_vm11, %v8928_v17  ;;  %v8948_v43 = vsel %vm1468_vm5, %v8942_v33, %v8943_v45  ;;  %v8947_v23 = vsel %vm1468_vm5, %v8943_v45, %v8944_v57  ;;  %15064 = vmatpush3.bf16.msra.mxu0 %v15367_v24 }
 0x93a   :  { %15032 = vmatmul.mubr.msk.bf16.gmra.mxu0 %vm7696_vm11, %v8929_v35  ;;  %v9016_v41 = vpack.c.bf16 %v8948_v43, %v8949_v58  ;;  %v9017_v55 = vpack.c.bf16 %v8946_v9, %v8947_v23 }
 0x93b   :  { %14995 = vmatprep.mubr.msk.bf16.mxu1 %vm7696_vm11, %v9010_v63 }
 0x93c   :  { %14996 = vmatmul.mubr.msk.bf16.vlgmr.msra.gmra.mxu1 %vm7696_vm11, %v9011_v59 }
 0x93d   :  { %14999 = vmatprep.mubr.msk.bf16.mxu1 %vm7696_vm11, %v9012_v21  ;;  %15036 = vmatpush3.bf16.msra.mxu1 %v21365_v47  ;;  %v9002_v47 = vsel %vm8874_vm13, 0.0, %v8953_v44 }
 0x93e   :  { %15037 = vmatprep.subr.bf16.mxu1 %v15362_v49  ;;  %v9014_v39 = vpack.c.bf16 %v8952_v46, %v9002_v47 }
 0x941   :  { %15038 = vmatpush3.bf16.msra.mxu1 %v15362_v49 }
 0x942   :  { %15039 = vmatprep.subr.bf16.mxu1 %v15363_v8 }
 0x944   :  { %15000 = vmatmul.mubr.msk.bf16.gmra.mxu1 %vm7696_vm11, %v9013_v3 }
 0x945   :  { %15003 = vmatprep.mubr.msk.bf16.mxu1 %vm7696_vm11, %v9014_v39  ;;  %15040 = vmatpush3.bf16.msra.mxu1 %v15363_v8 }
 0x946   :  { %15041 = vmatprep.subr.bf16.mxu1 %v15364_v54 }
 0x949   :  { %15042 = vmatpush3.bf16.msra.mxu1 %v15364_v54 }
 0x94c   :  { %15004 = vmatmul.mubr.msk.bf16.gmra.mxu1 %vm7696_vm11, %v9015_v11 }
 0x94d   :  { %15007 = vmatprep.mubr.msk.bf16.mxu1 %vm7696_vm11, %v9016_v41 }
 0x954   :  { %15008 = vmatmul.mubr.msk.bf16.gmra.mxu1 %vm7696_vm11, %v9017_v55 }
 0x955   :  { %15043 = vmatprep.mubr.msk.bf16.mxu1 %vm7696_vm11, %v21368_v26  ;;  %v15368_v26 = vld [vmem:[%s22522_s10 + $0x60] sm:$0xff]  }
 0x956   :  { %15065 = vmatprep.subr.bf16.mxu0 %v15368_v26 }
 0x957   :  { %15066 = vmatpush3.bf16.msra.mxu0 %v15368_v26 }
 0x95c   :  { %15044 = vmatmul.mubr.msk.bf16.vlgmr.msra.gmra.mxu1 %vm7696_vm11, %v21370_v0  ;;  %v15369_v0 = vld [vmem:[%s22522_s10 + $0x58] sm:$0xff]  }
 0x95d   :  { %15047 = vmatprep.mubr.msk.bf16.mxu1 %vm7696_vm11, %v21378_v16  ;;  %15067 = vmatprep.subr.bf16.mxu0 %v15369_v0  ;;  %v15371_v16 = vld [vmem:[%s22522_s10 + $0x48] sm:$0xff]  }
 0x95e   :  { %15068 = vmatpush3.bf16.msra.mxu0 %v15369_v0 }
 0x964   :  { %15048 = vmatmul.mubr.msk.bf16.gmra.mxu1 %vm7696_vm11, %v21376_v28  ;;  %v15370_v28 = vld [vmem:[%s22522_s10 + $0x50] sm:$0xff]  }
 0x965   :  { %15051 = vmatprep.mubr.msk.bf16.mxu1 %vm7696_vm11, %v21386_v14  ;;  %15069 = vmatprep.subr.bf16.mxu0 %v15370_v28  ;;  %v15373_v14 = vld [vmem:[%s22522_s10 + $0x40] sm:$0xff]  }
 0x966   :  { %15070 = vmatpush3.bf16.msra.mxu0 %v15370_v28 }
 0x967   :  { %15071 = vmatprep.subr.bf16.mxu0 %v15371_v16 }
 0x96a   :  { %15072 = vmatpush3.bf16.msra.mxu0 %v15371_v16 }
 0x96b   :  { %15073 = vmatprep.subr.bf16.mxu0 %v15373_v14 }
 0x96c   :  { %15052 = vmatmul.mubr.msk.bf16.gmra.mxu1 %vm7696_vm11, %v21384_v32  ;;  %v15372_v32 = vld [vmem:[%s22522_s10 + $0x38] sm:$0xff]  }
 0x96d   :  { %15055 = vmatprep.mubr.msk.bf16.mxu1 %vm7696_vm11, %v21396_v61  ;;  %15091 = vmatprep.subr.bf16.mxu1 %v15372_v32  ;;  %v21534_v61 = vld [vmem:[%s22522_s10 + $0xb8] sm:$0xff]  }
 0x96e   :  { %15092 = vmatpush3.bf16.msra.mxu1 %v15372_v32  ;;  %15074 = vmatpush3.bf16.msra.mxu0 %v15373_v14 }
 0x96f   :  { %15123 = vmatprep.subr.bf16.mxu0 %v21534_v61 }
 0x974   :  { %15056 = vmatmul.mubr.msk.bf16.gmra.mxu1 %vm7696_vm11, %v21394_v60  ;;  %v15374_v60 = vld [vmem:[%s22522_s10 + $0x30] sm:$0xff]  }
 0x975   :  { %15093 = vmatprep.subr.bf16.mxu1 %v15374_v60 }
 0x976   :  { %15094 = vmatpush3.bf16.msra.mxu1 %v15374_v60 }
 0x977   :  { %15095 = vmatprep.subr.bf16.mxu1 %v15376_v38 }
 0x97a   :  { %15096 = vmatpush3.bf16.msra.mxu1 %v15376_v38 }
 0x97b   :  { %15097 = vmatprep.subr.bf16.mxu1 %v15378_v51 }
 0x97e   :  { %15098 = vmatpush3.bf16.msra.mxu1 %v15378_v51 }
 0x97f   :  { %15099 = vmatprep.subr.bf16.mxu1 %v15380_v2 }
 0x982   :  { %15100 = vmatpush3.bf16.msra.mxu1 %v15380_v2 }
 0x983   :  { %15101 = vmatprep.subr.bf16.mxu1 %v15382_v7 }
 0x986   :  { %15102 = vmatpush3.bf16.msra.mxu1 %v15382_v7 }
 0x987   :  { %15103 = vmatprep.subr.bf16.mxu1 %v15384_v22 }
 0x98a   :  { %15104 = vmatpush3.bf16.msra.mxu1 %v15384_v22 }
 0x98b   :  { %15105 = vmatprep.subr.bf16.mxu1 %v15386_v5 }
 0x98e   :  { %15106 = vmatpush3.bf16.msra.mxu1 %v15386_v5 }
 0x9b2   :  { %v14973_v37 = vpop.f32.mrf.mxu0 }
 0x9b4   :  { %v9117_v36 = vpop.f32.mrf.mxu0 }
 0x9b6   :  { %v14974_v27 = vpop.f32.mrf.mxu0 }
 0x9b8   :  { %v9120_v34 = vpop.f32.mrf.mxu0 }
 0x9ba   :  { %v14977_v56 = vpop.f32.mrf.mxu0 }
 0x9bc   :  { %v9133_v10 = vpop.f32.mrf.mxu0 }
 0x9be   :  { %v14978_v30 = vpop.f32.mrf.mxu0 }
 0x9c0   :  { %v9136_v17 = vpop.f32.mrf.mxu0 }
 0x9d1   :  { %v21555_v29 = vpop.f32.mrf.mxu0 }
 0x9d3   :  { %v21557_v62 = vpop.f32.mrf.mxu0 }
 0x9d5   :  { %v21559_v35 = vpop.f32.mrf.mxu0 }
 0x9d7   :  { %v21561_v13 = vpop.f32.mrf.mxu0 }
 0x9d9   :  { %v21563_v15 = vpop.f32.mrf.mxu0 }
 0x9db   :  { %v21565_v63 = vpop.f32.mrf.mxu0 }
 0x9dd   :  { %v21567_v59 = vpop.f32.mrf.mxu0 }
 0x9df   :  { %v21569_v18 = vpop.f32.mrf.mxu0 }
 0x9e1   :  { %v15021_v49 = vpop.f32.mrf.mxu0 }
 0x9e3   :  { %v9416_v25 = vpop.f32.mrf.mxu0 }
 0x9e5   :  { %v15022_v42 = vpop.f32.mrf.mxu0 }
 0x9e7   :  { %v9419_v19 = vpop.f32.mrf.mxu0 }
 0x9e9   :  { %v15025_v21 = vpop.f32.mrf.mxu0 }
 0x9eb   :  { %v9432_v48 = vpop.f32.mrf.mxu0 }
 0x9ed   :  { %v15026_v8 = vpop.f32.mrf.mxu0 }
 0x9ef   :  { %v9435_v40 = vpop.f32.mrf.mxu0 }
 0x9f2   :  { %v15029_v39 = vpop.f32.mrf.mxu0 }
 0x9f4   :  { %v9448_v11 = vpop.f32.mrf.mxu0 }
 0x9f6   :  { %v15030_v0 = vpop.f32.mrf.mxu0 }
 0x9fc   :  { %v14997_v1 = vpop.f32.mrf.mxu1 }
 0x9fd   :  { %v9271_v3 = vadd.f32 %v14997_v1, %v14973_v37 }
 0x9fe   :  { %v9262_v44 = vpop.f32.mrf.mxu1 }
 0x9ff   :  { %v9263_v46 = vadd.f32 %v9262_v44, %v9117_v36  ;;  %v9481_v6 = vadd.f32 %v15021_v49, %v9271_v3  ;;  %v9451_v36 = vpop.f32.mrf.mxu0  ;;  %v15379_v44 = vld [vmem:[%s22522_s10 + $0xa8] sm:$0xff]  }
 0xa00   :  { %v14998_v47 = vpop.f32.mrf.mxu1 }
 0xa01   :  { %v9274_v54 = vadd.f32 %v14998_v47, %v14974_v27  ;;  %v9479_v31 = vadd.f32 %v9416_v25, %v9263_v46  ;;  %v9498_v55 = vadd.f32 %v21571_v20, %v9481_v6 }
 0xa02   :  { %v9265_v45 = vpop.f32.mrf.mxu1 }
 0xa03   :  { %v9266_v52 = vadd.f32 %v9265_v45, %v9120_v34  ;;  %v9482_v33 = vadd.f32 %v15022_v42, %v9274_v54  ;;  %v9496_v23 = vadd.f32 %v21571_v20, %v9479_v31  ;;  %v21583_v2 = vmax.f32 %v9498_v55, 0.0 }
 0xa04   :  { %v15001_v43 = vpop.f32.mrf.mxu1 }
 0xa05   :  { %v9499_v58 = vadd.f32 %v21571_v20, %v9482_v33  ;;  %v9480_v41 = vadd.f32 %v9419_v19, %v9266_v52  ;;  %v9287_v53 = vadd.f32 %v15001_v43, %v14977_v56  ;;  %v21581_v14 = vmax.f32 %v9496_v23, 0.0  ;;  %v15381_v33 = vld [vmem:[%s22522_s10 + $0xa0] sm:$0xff]  }
 0xa06   :  { %v9278_v57 = vpop.f32.mrf.mxu1 }
 0xa07   :  { %v9279_v9 = vadd.f32 %v9278_v57, %v9133_v10  ;;  %v9497_v50 = vadd.f32 %v21571_v20, %v9480_v41  ;;  %v21577_v28 = vmax.f32 %v9499_v58, 0.0  ;;  %v9485_v7 = vadd.f32 %v15025_v21, %v9287_v53  ;;  %v15377_v10 = vld [vmem:[%s22522_s10 + $0xb0] sm:$0xff]  }
 0xa08   :  { %v15002_v24 = vpop.f32.mrf.mxu1 }
 0xa09   :  { %v9290_v26 = vadd.f32 %v15002_v24, %v14978_v30  ;;  %v21579_v16 = vmax.f32 %v9497_v50, 0.0  ;;  %v9483_v60 = vadd.f32 %v9432_v48, %v9279_v9  ;;  %v9659_v27 = vpack.c.bf16 %v21577_v28, %v21583_v2  ;;  %v15033_v48 = vpop.f32.mrf.mxu0 }
 0xa0a   :  { %v9281_v32 = vpop.f32.mrf.mxu1  ;;  %v9502_v49 = vadd.f32 %v21571_v20, %v9485_v7  ;;  %v15385_v7 = vld [vmem:[%s22522_s10 + $0x90] sm:$0xff]  }
 0xa0b   :  { %v9282_v38 = vadd.f32 %v9281_v32, %v9136_v17  ;;  %v9486_v51 = vadd.f32 %v15026_v8, %v9290_v26  ;;  %v9658_v37 = vpack.c.bf16 %v21579_v16, %v21581_v14  ;;  %v9500_v30 = vadd.f32 %v21571_v20, %v9483_v60 }
 0xa0c   :  { %v15005_v22 = vpop.f32.mrf.mxu1  ;;  %v21609_v3 = vmax.f32 %v9502_v49, 0.0 }
 0xa0d   :  { %v9484_v5 = vadd.f32 %v9435_v40, %v9282_v38  ;;  %v9503_v34 = vadd.f32 %v21571_v20, %v9486_v51  ;;  %15075 = vmatprep.mubr.bf16.mxu0 %v9658_v37  ;;  %v9303_v1 = vadd.f32 %v15005_v22, %v21555_v29  ;;  %v21607_v46 = vmax.f32 %v9500_v30, 0.0  ;;  %v9464_v29 = vpop.f32.mrf.mxu0 }
 0xa0e   :  { %v9294_v56 = vpop.f32.mrf.mxu1  ;;  %15076 = vmatmul.mubr.bf16.vlgmr.msra.gmra.mxu0 %v9659_v27  ;;  %v9667_v37 = vrot.slane %v21579_v16, 7  ;;  %v9723_v30 = vrot.slane %v21579_v16, 1 }
 0xa0f   :  { %v9501_v17 = vadd.f32 %v21571_v20, %v9484_v5  ;;  %v9295_v19 = vadd.f32 %v9294_v56, %v21557_v62  ;;  %15124 = vmatpush3.bf16.msra.mxu0 %v21534_v61  ;;  %v21601_v8 = vmax.f32 %v9503_v34, 0.0  ;;  %v9489_v45 = vadd.f32 %v15029_v39, %v9303_v1  ;;  %v15034_v57 = vpop.f32.mrf.mxu0 }
 0xa10   :  { %v15006_v25 = vpop.f32.mrf.mxu1  ;;  %15125 = vmatprep.subr.bf16.mxu0 %v15377_v10  ;;  %v9668_v56 = vrot.slane %v21583_v2, 7  ;;  %v9722_v1 = vrot.slane %v21581_v14, 1 }
 0xa11   :  { %v21596_v42 = vmax.f32 %v9501_v17, 0.0  ;;  %v9306_v21 = vadd.f32 %v15006_v25, %v21559_v35  ;;  %v9487_v35 = vadd.f32 %v9448_v11, %v9295_v19  ;;  %v9661_v52 = vpack.c.bf16 %v21601_v8, %v21609_v3  ;;  %v9467_v32 = vpop.f32.mrf.mxu0  ;;  %v15387_v19 = vld [vmem:[%s22522_s10 + $0x88] sm:$0xff]  }
 0xa12   :  { %v9297_v40 = vpop.f32.mrf.mxu1  ;;  %v9506_v23 = vadd.f32 %v21571_v20, %v9489_v45 }
 0xa13   :  { %v9298_v62 = vadd.f32 %v9297_v40, %v21561_v13  ;;  %v9490_v61 = vadd.f32 %v15030_v0, %v9306_v21  ;;  %15126 = vmatpush3.bf16.msra.mxu0 %v15377_v10  ;;  %v9660_v54 = vpack.c.bf16 %v21596_v42, %v21607_v46  ;;  %v9504_v58 = vadd.f32 %v21571_v20, %v9487_v35 }
 0xa14   :  { %v15009_v47 = vpop.f32.mrf.mxu1  ;;  %15127 = vmatprep.subr.bf16.mxu0 %v15379_v44  ;;  %v21636_v60 = vmax.f32 %v9506_v23, 0.0  ;;  %v9671_v10 = vrot.slane %v21596_v42, 7  ;;  %v9666_v21 = vrot.slane %v21581_v14, 7  ;;  %v9727_v23 = vrot.slane %v21596_v42, 1 }
 0xa15   :  { %v9488_v6 = vadd.f32 %v9451_v36, %v9298_v62  ;;  %15079 = vmatprep.mubr.bf16.mxu0 %v9660_v54  ;;  %v9507_v43 = vadd.f32 %v21571_v20, %v9490_v61  ;;  %v9319_v9 = vadd.f32 %v15009_v47, %v21563_v15 }
 0xa16   :  { %v9310_v31 = vpop.f32.mrf.mxu1  ;;  %15080 = vmatmul.mubr.bf16.gmra.mxu0 %v9661_v52  ;;  %v9696_v61 = vsel %vm1468_vm5, %v9666_v21, %v9667_v37 }
 0xa17   :  { %v9311_v13 = vadd.f32 %v9310_v31, %v21565_v63  ;;  %v9505_v39 = vadd.f32 %v21571_v20, %v9488_v6  ;;  %15128 = vmatpush3.bf16.msra.mxu0 %v15379_v44  ;;  %v15383_v63 = vld [vmem:[%s22522_s10 + $0x98] sm:$0xff]   ;;  %v21632_v26 = vmax.f32 %v9507_v43, 0.0  ;;  %v9493_v15 = vadd.f32 %v15033_v48, %v9319_v9  ;;  %v15388_v6 = vld [vmem:[%s22522_s10 + $0x80] sm:$0xff]  }
 0xa18   :  { %v15010_v11 = vpop.f32.mrf.mxu1  ;;  %15129 = vmatprep.subr.bf16.mxu0 %v15381_v33  ;;  %v9670_v48 = vrot.slane %v21607_v46, 7  ;;  %v9695_v44 = vsel %vm1468_vm5, %v9667_v37, %v9668_v56  ;;  %v9752_v31 = vsel %vm1821_vm7, %v9722_v1, %v9723_v30  ;;  %v9725_v9 = vrot.slane %v21577_v28, 1 }
 0xa19   :  { %v9322_v41 = vadd.f32 %v15010_v11, %v21567_v59  ;;  %v21629_v53 = vmax.f32 %v9505_v39, 0.0  ;;  %v9491_v50 = vadd.f32 %v9464_v29, %v9311_v13  ;;  %v21634_v59 = vmax.f32 %v9504_v58, 0.0 }
 0xa1a   :  { %v9313_v55 = vpop.f32.mrf.mxu1  ;;  %v9663_v34 = vpack.c.bf16 %v21632_v26, %v21636_v60  ;;  %v9510_v17 = vadd.f32 %v21571_v20, %v9493_v15  ;;  %v9692_v35 = vsel %vm1468_vm5, %v9670_v48, %v9671_v10  ;;  %v9726_v11 = vrot.slane %v21607_v46, 1 }
 0xa1b   :  { %v9314_v24 = vadd.f32 %v9313_v55, %v21569_v18  ;;  %v9494_v0 = vadd.f32 %v15034_v57, %v9322_v41  ;;  %15130 = vmatpush3.bf16.msra.mxu0 %v15381_v33  ;;  %v9669_v18 = vrot.slane %v21577_v28, 7  ;;  %v9508_v22 = vadd.f32 %v21571_v20, %v9491_v50 }
 0xa1c   :  { %15131 = vmatprep.subr.bf16.mxu0 %v15383_v63  ;;  %v9662_v5 = vpack.c.bf16 %v21629_v53, %v21634_v59  ;;  %v21689_v54 = vmax.f32 %v9510_v17, 0.0  ;;  %v9675_v58 = vrot.slane %v21629_v53, 7  ;;  %v9672_v41 = vrot.slane %v21609_v3, 7 }
 0xa1d   :  { %v9511_v38 = vadd.f32 %v21571_v20, %v9494_v0  ;;  %v9492_v51 = vadd.f32 %v9467_v32, %v9314_v24  ;;  %v21666_v16 = vmax.f32 %v9508_v22, 0.0  ;;  %v9694_v40 = vsel %vm1468_vm5, %v9668_v56, %v9669_v18 }
 0xa1e   :  { %15083 = vmatprep.mubr.bf16.mxu0 %v9662_v5  ;;  %v9715_v52 = vpack.c.bf16 %v9694_v40, %v9695_v44  ;;  %v9693_v33 = vsel %vm1468_vm5, %v9669_v18, %v9670_v48  ;;  %v9673_v57 = vrot.slane %v21601_v8, 7  ;;  %v9674_v55 = vrot.slane %v21634_v59, 7 }
 0xa1f   :  { %v21647_v36 = vmax.f32 %v9511_v38, 0.0  ;;  %v9509_v27 = vadd.f32 %v21571_v20, %v9492_v51  ;;  %15132 = vmatpush3.bf16.msra.mxu0 %v15383_v63  ;;  %v9724_v20 = vrot.slane %v21583_v2, 1  ;;  %v9716_v43 = vpack.c.bf16 %v9692_v35, %v9693_v33 }
 0xa20   :  { %15084 = vmatmul.mubr.bf16.gmra.mxu0 %v9663_v34  ;;  %15133 = vmatprep.subr.bf16.mxu0 %v15385_v7  ;;  %v9728_v46 = vrot.slane %v21609_v3, 1  ;;  %v9691_v63 = vsel %vm1468_vm5, %v9671_v10, %v9672_v41  ;;  %v9749_v50 = vsel %vm1821_vm7, %v9725_v9, %v9726_v11  ;;  %v9688_v42 = vsel %vm1468_vm5, %v9674_v55, %v9675_v58 }
 0xa21   :  { %v9681_v49 = vrot.slane %v21647_v36, 7  ;;  %v21657_v25 = vmax.f32 %v9509_v27, 0.0  ;;  %v9751_v45 = vsel %vm1821_vm7, %v9723_v30, %v9724_v20  ;;  %v9665_v13 = vpack.c.bf16 %v21647_v36, %v21689_v54 }
 0xa22   :  { %v9802_v39 = vpack.c.bf16 %v9751_v45, %v9752_v31  ;;  %v9690_v28 = vsel %vm1468_vm5, %v9672_v41, %v9673_v57  ;;  %v9747_v24 = vsel %vm1821_vm7, %v9727_v23, %v9728_v46  ;;  %v9748_v3 = vsel %vm1821_vm7, %v9726_v11, %v9727_v23  ;;  %v21796_v41 = vpop.f32.mrf.mxu1 }
 0xa23   :  { %15134 = vmatpush3.bf16.msra.mxu0 %v15385_v7  ;;  %v9664_v62 = vpack.c.bf16 %v21657_v25, %v21666_v16  ;;  %v9697_v2 = vsel %vm1468_vm5, %v9681_v49, %v9666_v21  ;;  %v9750_v12 = vsel %vm1821_vm7, %v9724_v20, %v9725_v9  ;;  %v9717_v0 = vpack.c.bf16 %v9690_v28, %v9691_v63 }
 0xa24   :  { %v13050_v29 = vpack.c.bf16 %v9696_v61, %v9697_v2  ;;  %15135 = vmatprep.subr.bf16.mxu0 %v15387_v19  ;;  %v9689_v32 = vsel %vm1468_vm5, %v9673_v57, %v9674_v55  ;;  %v9803_v15 = vpack.c.bf16 %v9749_v50, %v9750_v12  ;;  %v931_v51 = vadd.s32 56, %v23598_v4  ;;  %v21798_v57 = vpop.f32.mrf.mxu1 }
 0xa25   :  { %15087 = vmatprep.mubr.bf16.mxu0 %v9664_v62  ;;  %v13054_v38 = vpack.c.bf16 %v9688_v42, %v9689_v32  ;;  %v9730_v7 = vrot.slane %v21634_v59, 1  ;;  %v9679_v18 = vrot.slane %v21657_v25, 7  ;;  %v9804_v22 = vpack.c.bf16 %v9747_v24, %v9748_v3 }
 0xa26   :  { %15107 = vmatprep.mubr.msk.bf16.mxu1 %vm21683_vm0, %v13050_v29  ;;  %v9676_v5 = vrot.slane %v21636_v60, 7  ;;  %v9677_v37 = vrot.slane %v21632_v26, 7  ;;  %v9731_v27 = vrot.slane %v21629_v53, 1  ;;  %v9729_v34 = vrot.slane %v21601_v8, 1  ;;  %v21800_v23 = vpop.f32.mrf.mxu1 }
 0xa27   :  { %15108 = vmatmul.mubr.bf16.vlgmr.msra.gmra.mxu1 %v9715_v52  ;;  %15136 = vmatpush3.bf16.msra.mxu0 %v15387_v19  ;;  %v9678_v56 = vrot.slane %v21666_v16, 7  ;;  %v9732_v10 = vrot.slane %v21636_v60, 1  ;;  %vm13333_vm3 = vcmp.ne.s32.totalorder %v931_v51, 63  ;;  %v9734_v62 = vrot.slane %v21666_v16, 1 }
 0xa28   :  { %15088 = vmatmul.mubr.bf16.gmra.mxu0 %v9665_v13  ;;  %15111 = vmatprep.mubr.bf16.mxu1 %v9716_v43  ;;  %v9687_v59 = vsel %vm1468_vm5, %v9675_v58, %v9676_v5  ;;  %v9745_v30 = vsel %vm1821_vm7, %v9729_v34, %v9730_v7  ;;  %v9686_v53 = vsel %vm1468_vm5, %v9676_v5, %v9677_v37  ;;  %vm21757_vm4 = vmpackc.low %vm13333_vm3, %vm15951_vm15  ;;  %v9680_v2 = vrot.slane %v21689_v54, 7  ;;  %v21802_v9 = vpop.f32.mrf.mxu1 }
 0xa29   :  { %15139 = vmatprep.mubr.bf16.mxu0 %v9802_v39  ;;  %15137 = vmatprep.subr.bf16.mxu0 %v15388_v6  ;;  %v9684_v17 = vsel %vm1468_vm5, %v9678_v56, %v9679_v18  ;;  %v9743_v8 = vsel %vm1821_vm7, %v9731_v27, %v9732_v10  ;;  %v9744_v19 = vsel %vm1821_vm7, %v9730_v7, %v9731_v27  ;;  %v9735_v35 = vrot.slane %v21657_v25, 1 }
 0xa2a   :  { %v9746_v60 = vsel %vm1821_vm7, %v9728_v46, %v9729_v34  ;;  %v9719_v48 = vpack.c.bf16 %v9686_v53, %v9687_v59  ;;  %v9685_v20 = vsel %vm1468_vm5, %v9677_v37, %v9678_v56  ;;  %v9806_v61 = vpack.c.bf16 %v9743_v8, %v9744_v19  ;;  %v15049_v14 = vpop.f32.mrf.mxu1 }
 0xa2b   :  { %15138 = vmatpush3.bf16.msra.mxu0 %v15388_v6  ;;  %v13082_v40 = vpack.c.bf16 %v9745_v30, %v9746_v60  ;;  %v9720_v44 = vpack.c.bf16 %v9684_v17, %v9685_v20  ;;  %v9733_v29 = vrot.slane %v21632_v26, 1  ;;  %v9736_v45 = vrot.slane %v21689_v54, 1 }
 0xa2c   :  { %v9683_v31 = vsel %vm1468_vm5, %v9679_v18, %v9680_v2  ;;  %v9682_v25 = vsel %vm1468_vm5, %v9680_v2, %v9681_v49  ;;  %v9740_v26 = vsel %vm1821_vm7, %v9734_v62, %v9735_v35  ;;  %v9737_v13 = vrot.slane %v21647_v36, 1  ;;  %v15389_v36 = vld [vmem:[#allocation19] sm:$0xff]   ;;  %v21804_v55 = vpop.f32.mrf.mxu1 }
 0xa2d   :  { %v9741_v16 = vsel %vm1821_vm7, %v9733_v29, %v9734_v62  ;;  %v9739_v52 = vsel %vm1821_vm7, %v9735_v35, %v9736_v45  ;;  %v9742_v54 = vsel %vm1821_vm7, %v9732_v10, %v9733_v29  ;;  %v9721_v33 = vpack.c.bf16 %v9682_v25, %v9683_v31 }
 0xa2e   :  { %v9807_v6 = vpack.c.bf16 %v9741_v16, %v9742_v54  ;;  %v9808_v43 = vpack.c.bf16 %v9739_v52, %v9740_v26  ;;  %v9738_v49 = vsel %vm1821_vm7, %v9736_v45, %v9737_v13  ;;  %v9753_v58 = vsel %vm1821_vm7, %v9737_v13, %v9722_v1  ;;  %v21806_v1 = vpop.f32.mrf.mxu1 }
 0xa2f   :  { %15112 = vmatmul.mubr.bf16.gmra.mxu1 %v9717_v0  ;;  %v13086_v39 = vpack.c.bf16 %v9753_v58, %v9738_v49 }
 0xa30   :  { %15140 = vmatmul.mubr.bf16.vlgmr.msra.gmra.mxu0 %v9803_v15  ;;  %15115 = vmatprep.mubr.msk.bf16.mxu1 %vm13053_vm2, %v13054_v38  ;;  %v21808_v46 = vpop.f32.mrf.mxu1 }
 0xa31   :  { %15143 = vmatprep.mubr.bf16.mxu0 %v9804_v22 }
 0xa32   :  { %v21810_v63 = vpop.f32.mrf.mxu1 }
 0xa34   :  { %v21812_v50 = vpop.f32.mrf.mxu1 }
 0xa36   :  { %v21814_v24 = vpop.f32.mrf.mxu1 }
 0xa37   :  { %15116 = vmatmul.mubr.bf16.gmra.mxu1 %v9719_v48 }
 0xa38   :  { %15144 = vmatmul.mubr.msk.bf16.gmra.mxu0 %vm21757_vm4, %v13082_v40  ;;  %15119 = vmatprep.mubr.bf16.mxu1 %v9720_v44  ;;  %v21816_v0 = vpop.f32.mrf.mxu1 }
 0xa39   :  { %15147 = vmatprep.mubr.bf16.mxu0 %v9806_v61 }
 0xa3a   :  { %v21818_v38 = vpop.f32.mrf.mxu1 }
 0xa3c   :  { %v21820_v18 = vpop.f32.mrf.mxu1 }
 0xa3e   :  { %v21824_v5 = vpop.f32.mrf.mxu1 }
 0xa3f   :  { %15120 = vmatmul.mubr.bf16.gmra.mxu1 %v9721_v33  ;;  %v21846_v33 = vld [vmem:[#allocation2 + $0x7] ss:$0 sm:$0xff] }
 0xa40   :  { %15148 = vmatmul.mubr.bf16.gmra.mxu0 %v9807_v6  ;;  %15163 = vmatprep.mubr.msk.bf16.mxu1 %vm7696_vm11, %v15389_v36  ;;  %v21830_v34 = vpop.f32.mrf.mxu1 }
 0xa41   :  { %15151 = vmatprep.mubr.bf16.mxu0 %v9808_v43 }
 0xa48   :  { %15152 = vmatmul.mubr.msk.bf16.gmra.mxu0 %vm13085_vm8, %v13086_v39 }
 0xa49   :  { %15187 = vmatprep.mubr.msk.bf16.mxu0 %vm7696_vm11, %v15389_v36  ;;  %v21849_v36 = vld [vmem:[#allocation2 + $0x10] ss:$0 sm:$0xff] }
 0xace   :  { %v15077_v42 = vpop.f32.mrf.mxu0 }
 0xad0   :  { %v9925_v28 = vpop.f32.mrf.mxu0 }
 0xad2   :  { %v15078_v3 = vpop.f32.mrf.mxu0 }
 0xad4   :  { %v9928_v12 = vpop.f32.mrf.mxu0 }
 0xad6   :  { %v15081_v32 = vpop.f32.mrf.mxu0 }
 0xad8   :  { %v9941_v15 = vpop.f32.mrf.mxu0 }
 0xada   :  { %v15082_v51 = vpop.f32.mrf.mxu0 }
 0xadc   :  { %v9944_v7 = vpop.f32.mrf.mxu0 }
 0xae0   :  { %v21822_v22 = vpop.f32.mrf.mxu0 }
 0xae2   :  { %v21826_v37 = vpop.f32.mrf.mxu0 }
 0xae4   :  { %v21828_v27 = vpop.f32.mrf.mxu0 }
 0xae6   :  { %v21832_v56 = vpop.f32.mrf.mxu0 }
 0xae7   :  { %v15109_v10 = vpop.f32.mrf.mxu1 }
 0xae8   :  { %v21834_v59 = vpop.f32.mrf.mxu0  ;;  %v10079_v43 = vadd.f32 %v15109_v10, %v15077_v42  ;;  %v9612_v42 = vadd.f32 %v21804_v55, %v21849_v36  ;;  %v9607_v55 = vadd.f32 %v21800_v23, %v21849_v36  ;;  %v9599_v23 = vadd.f32 %v21802_v9, %v21849_v36 }
 0xae9   :  { %v10070_v30 = vpop.f32.mrf.mxu1 }
 0xaea   :  { %v21836_v17 = vpop.f32.mrf.mxu0  ;;  %v10071_v10 = vadd.f32 %v10070_v30, %v9925_v28 }
 0xaeb   :  { %v15110_v53 = vpop.f32.mrf.mxu1 }
 0xaec   :  { %v21838_v8 = vpop.f32.mrf.mxu0  ;;  %v10082_v26 = vadd.f32 %v15110_v53, %v15078_v3  ;;  %v9620_v3 = vadd.f32 %v15049_v14, %v21849_v36 }
 0xaed   :  { %v10073_v19 = vpop.f32.mrf.mxu1 }
 0xaee   :  { %v21840_v60 = vpop.f32.mrf.mxu0  ;;  %v10074_v53 = vadd.f32 %v10073_v19, %v9928_v12  ;;  %v9615_v12 = vadd.f32 %v21808_v46, %v21849_v36 }
 0xaef   :  { %v15113_v48 = vpop.f32.mrf.mxu1 }
 0xaf0   :  { %v15141_v20 = vpop.f32.mrf.mxu0  ;;  %v10095_v29 = vadd.f32 %v15113_v48, %v15081_v32 }
 0xaf1   :  { %v10086_v40 = vpop.f32.mrf.mxu1 }
 0xaf2   :  { %v10232_v44 = vpop.f32.mrf.mxu0  ;;  %v10087_v16 = vadd.f32 %v10086_v40, %v9941_v15  ;;  %v10297_v40 = vadd.f32 %v15141_v20, %v10079_v43 }
 0xaf3   :  { %v15114_v62 = vpop.f32.mrf.mxu1  ;;  %v10295_v28 = vadd.f32 %v10232_v44, %v10071_v10 }
 0xaf4   :  { %v15142_v61 = vpop.f32.mrf.mxu0  ;;  %v10098_v49 = vadd.f32 %v15114_v62, %v15082_v51  ;;  %v9623_v51 = vadd.f32 %v21806_v1, %v21849_v36  ;;  %v10314_v1 = vadd.f32 %v21846_v33, %v10297_v40 }
 0xaf5   :  { %v10089_v2 = vpop.f32.mrf.mxu1  ;;  %v10298_v11 = vadd.f32 %v15142_v61, %v10082_v26 }
 0xaf6   :  { %v10235_v35 = vpop.f32.mrf.mxu0  ;;  %v10090_v32 = vadd.f32 %v10089_v2, %v9944_v7 }
 0xaf7   :  { %v21842_v45 = vpop.f32.mrf.mxu1  ;;  %v10315_v7 = vadd.f32 %v21846_v33, %v10298_v11  ;;  %v10296_v2 = vadd.f32 %v10235_v35, %v10074_v53 }
 0xaf8   :  { %v15145_v31 = vpop.f32.mrf.mxu0 }
 0xaf9   :  { %v10301_v25 = vadd.f32 %v15145_v31, %v10095_v29  ;;  %v21844_v52 = vpop.f32.mrf.mxu1  ;;  %v10331_v43 = vadd.f32 %v10315_v7, %v9607_v55  ;;  %v10313_v46 = vadd.f32 %v21846_v33, %v10296_v2 }
 0xafa   :  { %v10248_v54 = vpop.f32.mrf.mxu0 }
 0xafb   :  { %v10299_v6 = vadd.f32 %v10248_v54, %v10087_v16  ;;  %v15118_v13 = vpop.f32.mrf.mxu1  ;;  %v10318_v58 = vadd.f32 %v21846_v33, %v10301_v25  ;;  %v9604_v54 = vadd.f32 %v21796_v41, %v21849_v36 }
 0xafc   :  { %v15146_v39 = vpop.f32.mrf.mxu0  ;;  %v10114_v10 = vadd.f32 %v15118_v13, %v21828_v27  ;;  %v9652_v27 = vadd.f32 %v21818_v38, %v21849_v36 }
 0xafd   :  { %v10316_v15 = vadd.f32 %v21846_v33, %v10299_v6  ;;  %v21852_v48 = vpop.f32.mrf.mxu1  ;;  %v10302_v29 = vadd.f32 %v15146_v39, %v10098_v49  ;;  %v10334_v16 = vadd.f32 %v10318_v58, %v9620_v3  ;;  %v10330_v44 = vadd.f32 %v10314_v1, %v9604_v54 }
 0xafe   :  { %v10251_v31 = vpop.f32.mrf.mxu0  ;;  %v10106_v1 = vadd.f32 %v21852_v48, %v21832_v56 }
 0xaff   :  { %v10300_v62 = vadd.f32 %v10251_v31, %v10090_v32  ;;  %v15121_v61 = vpop.f32.mrf.mxu1  ;;  %v10319_v25 = vadd.f32 %v21846_v33, %v10302_v29  ;;  %v10332_v19 = vadd.f32 %v10316_v15, %v9612_v42  ;;  %v10350_v11 = vmax.f32 %v10334_v16, 0.0 }
 0xb00   :  { %v15149_v14 = vpop.f32.mrf.mxu0  ;;  %v10312_v15 = vadd.f32 %v21846_v33, %v10295_v28  ;;  %v10127_v29 = vadd.f32 %v15121_v61, %v21834_v59  ;;  %v9596_v31 = vadd.f32 %v21798_v57, %v21849_v36  ;;  %v10347_v42 = vmax.f32 %v10331_v43, 0.0 }
 0xb01   :  { %v10317_v20 = vadd.f32 %v21846_v33, %v10300_v62  ;;  %v10335_v30 = vadd.f32 %v10319_v25, %v9623_v51  ;;  %v10118_v35 = vpop.f32.mrf.mxu1  ;;  %v10348_v39 = vmax.f32 %v10332_v19, 0.0  ;;  %v10329_v51 = vadd.f32 %v10313_v46, %v9599_v23 }
 0xb02   :  { %v21867_v26 = vpop.f32.mrf.mxu0  ;;  %v10119_v62 = vadd.f32 %v10118_v35, %v21836_v17  ;;  %v10346_v2 = vmax.f32 %v10330_v44, 0.0  ;;  %v10328_v16 = vadd.f32 %v10312_v15, %v9596_v31  ;;  %v10111_v59 = vadd.f32 %v21842_v45, %v21822_v22 }
 0xb03   :  { %v10333_v6 = vadd.f32 %v10317_v20, %v9615_v12  ;;  %v10351_v49 = vmax.f32 %v10335_v30, 0.0  ;;  %v15122_v40 = vpop.f32.mrf.mxu1  ;;  %v9644_v19 = vadd.f32 %v21820_v18, %v21849_v36  ;;  %v10345_v55 = vmax.f32 %v10329_v51, 0.0 }
 0xb04   :  { %v15150_v58 = vpop.f32.mrf.mxu0  ;;  %v10130_v17 = vadd.f32 %v15122_v40, %v21838_v8  ;;  %v21895_v20 = vpack.c.bf16 %v10347_v42, %v10346_v2  ;;  %v10305_v22 = vadd.f32 %v15149_v14, %v10111_v59  ;;  %v9655_v8 = vadd.f32 %v21824_v5, %v21849_v36  ;;  %v15393_v59 = vld [vmem:[%s22525_s13 + $0xf0] ss:$8 sps:$4 sm:$0xff]  }
 0xb05   :  { %v10349_v32 = vmax.f32 %v10333_v6, 0.0  ;;  %v21875_v3 = vpack.c.bf16 %v10351_v49, %v10350_v11  ;;  %v10306_v61 = vadd.f32 %v15150_v58, %v10114_v10  ;;  %v10121_v25 = vpop.f32.mrf.mxu1  ;;  %v10344_v35 = vmax.f32 %v10328_v16, 0.0  ;;  %v15392_v16 = vld [vmem:[#allocation19 + $0x18] sm:$0xff]  }
 0xb06   :  { %v10267_v53 = vpop.f32.mrf.mxu0  ;;  %v10122_v38 = vadd.f32 %v10121_v25, %v21840_v60  ;;  %v10103_v18 = vadd.f32 %v21844_v52, %v21826_v37  ;;  %v9639_v43 = vadd.f32 %v21814_v24, %v21849_v36  ;;  %v9647_v5 = vadd.f32 %v21830_v34, %v21849_v36  ;;  %v15399_v25 = vld [vmem:[%s22525_s13 + $0xd0] ss:$8 sps:$4 sm:$0xff]  }
 0xb07   :  { %v21877_v41 = vpack.c.bf16 %v10349_v32, %v10348_v39  ;;  %15155 = vmatprep.subr.bf16.mxu1 %v21875_v3  ;;  %v10323_v14 = vadd.f32 %v21846_v33, %v10306_v61  ;;  %v10304_v56 = vadd.f32 %v10267_v53, %v10106_v1  ;;  %v10360_v46 = vpack.c.bf16 %v10345_v55, %v10344_v35  ;;  %v15390_v53 = vld [vmem:[#allocation19 + $0x8] sm:$0xff]   ;;  %v15411_v55 = vld [vmem:[%s22525_s13 + $0x90] ss:$8 sps:$4 sm:$0xff]  }
 0xb08   :  { %v15153_v9 = vpop.f32.mrf.mxu0  ;;  %15156 = vmatpush3.bf16.msra.mxu1 %v21875_v3  ;;  %v10322_v11 = vadd.f32 %v21846_v33, %v10305_v22  ;;  %v10303_v37 = vadd.f32 %v21867_v26, %v10103_v18  ;;  %v9636_v39 = vadd.f32 %v21810_v63, %v21849_v36  ;;  %v9631_v15 = vadd.f32 %v21816_v0, %v21849_v36  ;;  %v15391_v63 = vld [vmem:[#allocation19 + $0x10] sm:$0xff]   ;;  %v15396_v61 = vld [vmem:[%s22525_s13 + $0xe0] ss:$8 sps:$4 sm:$0xff]   ;;  %v15416_v1 = vld [vmem:[%s22525_s13 + $0x84] ss:$8 sps:$4 sm:$0xff]  }
 0xb09   :  { %v10309_v7 = vadd.f32 %v15153_v9, %v10127_v29  ;;  %15157 = vmatprep.subr.bf16.mxu1 %v21877_v41  ;;  %v10339_v32 = vadd.f32 %v10323_v14, %v9639_v43  ;;  %v10321_v24 = vadd.f32 %v21846_v33, %v10304_v56  ;;  %v9628_v51 = vadd.f32 %v21812_v50, %v21849_v36  ;;  %v15413_v22 = vld [vmem:[%s22525_s13 + $0x94] ss:$8 sps:$4 sm:$0xff]   ;;  %v15423_v35 = vld [vmem:[%s22525_s13 + $0x60] ss:$8 sps:$4 sm:$0xff]   ;;  %v15425_v18 = vld [vmem:[%s22525_s13 + $0x64] ss:$8 sps:$4 sm:$0xff]  }
 0xb0a   :  { %v10280_v57 = vpop.f32.mrf.mxu0  ;;  %v10338_v26 = vadd.f32 %v10322_v11, %v9636_v39  ;;  %v10320_v40 = vadd.f32 %v21846_v33, %v10303_v37  ;;  %v15429_v14 = vld [vmem:[%s22525_s13 + $0x50] ss:$8 sps:$4 sm:$0xff]   ;;  %v15435_v56 = vld [vmem:[%s22525_s13 + $0x40] ss:$8 sps:$4 sm:$0xff]   ;;  %v15455_v11 = vld [vmem:[%s22525_s13 + $0x14] ss:$8 sps:$4 sm:$0xff]  }
 0xb0b   :  { %v10326_v13 = vadd.f32 %v21846_v33, %v10309_v7  ;;  %v10307_v12 = vadd.f32 %v10280_v57, %v10119_v62  ;;  %v10355_v10 = vmax.f32 %v10339_v32, 0.0  ;;  %v10337_v9 = vadd.f32 %v10321_v24, %v9631_v15  ;;  %v15401_v57 = vld [vmem:[%s22525_s13 + $0xd4] ss:$8 sps:$4 sm:$0xff]   ;;  %v15447_v43 = vld [vmem:[%s22525_s13 + $0x20] ss:$8 sps:$4 sm:$0xff]  }
 0xb0c   :  { %v15154_v45 = vpop.f32.mrf.mxu0  ;;  %15158 = vmatpush3.bf16.msra.mxu1 %v21877_v41  ;;  %v10354_v0 = vmax.f32 %v10338_v26, 0.0  ;;  %v10336_v7 = vadd.f32 %v10320_v40, %v9628_v51  ;;  %v15459_v37 = vld [vmem:[%s22525_s13] ss:$8 sps:$4 sm:$0xff]   ;;  %v15434_v26 = vld [vmem:[%s22525_s13 + $0x154] ss:$8 sps:$4 sm:$0xff]  }
 0xb0d   :  { %v10324_v28 = vadd.f32 %v21846_v33, %v10307_v12  ;;  %v10310_v30 = vadd.f32 %v15154_v45, %v10130_v17  ;;  %15159 = vmatprep.subr.bf16.mxu1 %v21895_v20  ;;  %v10342_v48 = vadd.f32 %v10326_v13, %v9652_v27  ;;  %v10353_v2 = vmax.f32 %v10337_v9, 0.0  ;;  %v15404_v27 = vld [vmem:[%s22525_s13 + $0xc4] ss:$8 sps:$4 sm:$0xff]   ;;  %v15402_v13 = vld [vmem:[%s22525_s13 + $0xc0] ss:$8 sps:$4 sm:$0xff]  }
 0xb0e   :  { %v10283_v54 = vpop.f32.mrf.mxu0  ;;  %v10352_v50 = vmax.f32 %v10336_v7, 0.0  ;;  %v15407_v17 = vld [vmem:[%s22525_s13 + $0xb4] ss:$8 sps:$4 sm:$0xff]   ;;  %v15405_v12 = vld [vmem:[%s22525_s13 + $0xb0] ss:$8 sps:$4 sm:$0xff]  }
 0xb0f   :  { %v10327_v6 = vadd.f32 %v21846_v33, %v10310_v30  ;;  %v10308_v60 = vadd.f32 %v10283_v54, %v10122_v38  ;;  %v10340_v52 = vadd.f32 %v10324_v28, %v9644_v19  ;;  %v10358_v23 = vmax.f32 %v10342_v48, 0.0  ;;  %v15410_v19 = vld [vmem:[%s22525_s13 + $0xa4] ss:$8 sps:$4 sm:$0xff]   ;;  %v15414_v45 = vld [vmem:[%s22525_s13 + $0x80] ss:$8 sps:$4 sm:$0xff]  }
 0xb10   :  { %15160 = vmatpush3.bf16.msra.mxu1 %v21895_v20  ;;  %v10364_v36 = vpack.c.bf16 %v10353_v2, %v10352_v50  ;;  %v15417_v28 = vld [vmem:[%s22525_s13 + $0x70] ss:$8 sps:$4 sm:$0xff]   ;;  %v15419_v38 = vld [vmem:[%s22525_s13 + $0x74] ss:$8 sps:$4 sm:$0xff]   ;;  %v15952_v30 = vmov 0  }
 0xb11   :  { %v10343_v49 = vadd.f32 %v10327_v6, %v9655_v8  ;;  %v10325_v58 = vadd.f32 %v21846_v33, %v10308_v60  ;;  %15161 = vmatprep.subr.bf16.mxu1 %v10360_v46  ;;  %v10356_v29 = vmax.f32 %v10340_v52, 0.0  ;;  %v10365_v33 = vpack.c.bf16 %v10355_v10, %v10354_v0  ;;  %v15422_v8 = vld [vmem:[%s22525_s13 + $0x174] ss:$8 sps:$4 sm:$0xff]   ;;  %v15437_v48 = vld [vmem:[%s22525_s13 + $0x44] ss:$8 sps:$4 sm:$0xff]  }
 0xb12   :  { %v15431_v54 = vld [vmem:[%s22525_s13 + $0x54] ss:$8 sps:$4 sm:$0xff]   ;;  %v15441_v6 = vld [vmem:[%s22525_s13 + $0x30] ss:$8 sps:$4 sm:$0xff]   ;;  %v15461_v52 = vld [vmem:[%s22525_s13 + $0x4] ss:$8 sps:$4 sm:$0xff]  }
 0xb13   :  { %v10359_v34 = vmax.f32 %v10343_v49, 0.0  ;;  %v10341_v44 = vadd.f32 %v10325_v58, %v9647_v5  ;;  %v15443_v60 = vld [vmem:[%s22525_s13 + $0x34] ss:$8 sps:$4 sm:$0xff]   ;;  %v15449_v5 = vld [vmem:[%s22525_s13 + $0x24] ss:$8 sps:$4 sm:$0xff]  }
 0xb14   :  { %15162 = vmatpush3.bf16.msra.mxu1 %v10360_v46  ;;  %v15467_v49 = vld [vmem:[#allocation22 + $0x74] ss:$8 sps:$4 sm:$0xff]   ;;  %v15426_v15 = vld [vmem:[%s22525_s13 + $0x160] ss:$8 sps:$4 sm:$0xff]   ;;  %v15452_v2 = vld [vmem:[%s22525_s13 + $0x124] ss:$8 sps:$4 sm:$0xff]  }
 0xb15   :  { %v10367_v31 = vpack.c.bf16 %v10359_v34, %v10358_v23  ;;  %v10357_v42 = vmax.f32 %v10341_v44, 0.0  ;;  %15167 = vmatprep.subr.bf16.mxu1 %v21875_v3  ;;  %v15420_v23 = vld [vmem:[%s22525_s13 + $0x170] ss:$8 sps:$4 sm:$0xff]   ;;  %v15428_v44 = vld [vmem:[%s22525_s13 + $0x164] ss:$8 sps:$4 sm:$0xff]  }
 0xb16   :  { %v15438_v51 = vld [vmem:[%s22525_s13 + $0x140] ss:$8 sps:$4 sm:$0xff]   ;;  %v15446_v9 = vld [vmem:[%s22525_s13 + $0x134] ss:$8 sps:$4 sm:$0xff]  }
 0xb17   :  { %v10366_v62 = vpack.c.bf16 %v10357_v42, %v10356_v29  ;;  %15179 = vmatprep.subr.bf16.mxu0 %v10367_v31  ;;  %15164 = vmatmul.mubr.msk.bf16.vlgmr.msra.gmra.mxu1 %vm7696_vm11, %v15390_v53 }
 0xb18   :  { %15180 = vmatpush3.bf16.msra.mxu0 %v10367_v31  ;;  %15168 = vmatpush3.bf16.msra.mxu1 %v21875_v3  ;;  %v15395_v3 = vld [vmem:[%s22525_s13 + $0xf4] ss:$8 sps:$4 sm:$0xff]  }
 0xb19   :  { %15181 = vmatprep.subr.bf16.mxu0 %v10366_v62  ;;  %15169 = vmatprep.subr.bf16.mxu1 %v21877_v41 }
 0xb1a   :  { %15175 = vmatprep.mubr.msk.bf16.mxu1 %vm7696_vm11, %v15391_v63 }
 0xb1c   :  { %15182 = vmatpush3.bf16.msra.mxu0 %v10366_v62  ;;  %15170 = vmatpush3.bf16.msra.mxu1 %v21877_v41  ;;  %v15398_v41 = vld [vmem:[%s22525_s13 + $0xe4] ss:$8 sps:$4 sm:$0xff]  }
 0xb1d   :  { %15183 = vmatprep.subr.bf16.mxu0 %v10365_v33  ;;  %15171 = vmatprep.subr.bf16.mxu1 %v21895_v20 }
 0xb20   :  { %15184 = vmatpush3.bf16.msra.mxu0 %v10365_v33  ;;  %15172 = vmatpush3.bf16.msra.mxu1 %v21895_v20  ;;  %v15408_v20 = vld [vmem:[%s22525_s13 + $0xa0] ss:$8 sps:$4 sm:$0xff]  }
 0xb21   :  { %15185 = vmatprep.subr.bf16.mxu0 %v10364_v36  ;;  %15173 = vmatprep.subr.bf16.mxu1 %v10360_v46 }
 0xb24   :  { %15186 = vmatpush3.bf16.msra.mxu0 %v10364_v36  ;;  %15174 = vmatpush3.bf16.msra.mxu1 %v10360_v46  ;;  %v15453_v46 = vld [vmem:[%s22525_s13 + $0x10] ss:$8 sps:$4 sm:$0xff]  }
 0xb25   :  { %10801 = vmatprep.subr.bf16.mxu0 %v15395_v3  ;;  %15191 = vmatprep.subr.bf16.mxu1 %v10367_v31  ;;  %v15458_v3 = vld [vmem:[%s22525_s13 + $0x114] ss:$8 sps:$4 sm:$0xff]  }
 0xb27   :  { %15188 = vmatmul.mubr.msk.bf16.vlgmr.msra.gmra.mxu0 %vm7696_vm11, %v15390_v53  ;;  %15176 = vmatmul.mubr.msk.bf16.vlgmr.msra.gmra.mxu1 %vm7696_vm11, %v15392_v16  ;;  %v15432_v53 = vld [vmem:[%s22525_s13 + $0x150] ss:$8 sps:$4 sm:$0xff]  }
 0xb28   :  { %10802 = vmatpush1.bf16.msra.mxu0 %v15393_v59  ;;  %15192 = vmatpush3.bf16.msra.mxu1 %v10367_v31  ;;  %v15440_v31 = vld [vmem:[%s22525_s13 + $0x144] ss:$8 sps:$4 sm:$0xff]   ;;  %v15456_v59 = vld [vmem:[%s22525_s13 + $0x110] ss:$8 sps:$4 sm:$0xff]  }
 0xb29   :  { %15199 = vmatprep.mubr.msk.bf16.mxu1 %vm7696_vm11, %v15391_v63  ;;  %15193 = vmatprep.subr.bf16.mxu1 %v10366_v62 }
 0xb2a   :  { %10803 = vmatprep.subr.bf16.mxu0 %v15398_v41  ;;  %10833 = vmatprep.mubr.bf16.mxu0 %v15952_v30 }
 0xb2c   :  { %10804 = vmatpush1.bf16.msra.mxu0 %v15396_v61  ;;  %15194 = vmatpush3.bf16.msra.mxu1 %v10366_v62  ;;  %v15464_v61 = vld [vmem:[%s22525_s13 + $0x104] ss:$8 sps:$4 sm:$0xff]  }
 0xb2d   :  { %10805 = vmatprep.subr.bf16.mxu0 %v15401_v57  ;;  %15195 = vmatprep.subr.bf16.mxu1 %v10365_v33 }
 0xb30   :  { %10806 = vmatpush1.bf16.msra.mxu0 %v15399_v25  ;;  %15196 = vmatpush3.bf16.msra.mxu1 %v10365_v33  ;;  %v15444_v33 = vld [vmem:[%s22525_s13 + $0x130] ss:$8 sps:$4 sm:$0xff]  }
 0xb31   :  { %10807 = vmatprep.subr.bf16.mxu0 %v15404_v27  ;;  %15197 = vmatprep.subr.bf16.mxu1 %v10364_v36  ;;  %v15462_v27 = vld [vmem:[%s22525_s13 + $0x100] ss:$8 sps:$4 sm:$0xff]  }
 0xb34   :  { %10808 = vmatpush1.bf16.msra.mxu0 %v15402_v13  ;;  %15198 = vmatpush3.bf16.msra.mxu1 %v10364_v36  ;;  %v15450_v36 = vld [vmem:[%s22525_s13 + $0x120] ss:$8 sps:$4 sm:$0xff]   ;;  %s15953_s13 = smov [#allocation23]  }
 0xb35   :  { %10809 = vmatprep.subr.bf16.mxu0 %v15407_v17  ;;  %10954 = vmatprep.subr.bf16.mxu1 %v15419_v38  ;;  %v15491_v17 = vld [vmem:[#allocation20 + $0x174] ss:$8 sps:$4 sm:$0xff]   ;;  %v15470_v38 = vld [vmem:[#allocation22 + $0x64] ss:$8 sps:$4 sm:$0xff]   ;;  %s12512_s1 = sshll.u32 %s15953_s13, 4  ;;  %s12513_s1 = int_to_ptr.vmem [resolvable:$true] %s12512_s1 }
 0xb36   :  { %s15895_s18 = scalar_lea.vmem %s12513_s1, 64  ;;  %p15900_p10 = scmp.lt.s32.totalorder %s12513_s1, %s12513_s1 }
 0xb37   :  { %15200 = vmatmul.mubr.msk.bf16.vlgmr.msra.gmra.mxu1 %vm7696_vm11, %v15392_v16  ;;  %p15896_p9 = scmp.ne.s32.totalorder %s12513_s1, %s15895_s18  ;;  %p15901_p11 = scmp.lt.s32.totalorder %s15895_s18, %s15895_s18 }
 0xb38   :  { %10810 = vmatpush1.bf16.msra.mxu0 %v15405_v12  ;;  %10986 = vmatprep.mubr.bf16.mxu1 %v15952_v30 }
 0xb39   :  { %10811 = vmatprep.subr.bf16.mxu0 %v15410_v19  ;;  %10955 = vmatpush1.bf16.msra.mxu1 %v15417_v28  ;;  %p15902_p12 = por %p15901_p11, %p15900_p10 }
 0xb3a   :  { %10956 = vmatprep.subr.bf16.mxu1 %v15425_v18 }
 0xb3b   :  { %p15903_p13 = pnand %p15902_p12, %p15896_p9 }
 0xb3c   :  { %10812 = vmatpush1.bf16.msra.mxu0 %v15408_v20 }
 0xb3d   :  { %10813 = vmatprep.subr.bf16.mxu0 %v15413_v22  ;;  %10957 = vmatpush1.bf16.msra.mxu1 %v15423_v35  ;;  %v15494_v35 = vld [vmem:[#allocation20 + $0x164] ss:$8 sps:$4 sm:$0xff]  }
 0xb3e   :  { %10958 = vmatprep.subr.bf16.mxu1 %v15431_v54  ;;  %v15468_v54 = vld [vmem:[#allocation22 + $0x60] ss:$8 sps:$4 sm:$0xff]  }
 0xb40   :  { %10814 = vmatpush1.bf16.msra.mxu0 %v15411_v55 }
 0xb41   :  { %10815 = vmatprep.subr.bf16.mxu0 %v15416_v1  ;;  %10959 = vmatpush1.bf16.msra.mxu1 %v15429_v14  ;;  %v15465_v1 = vld [vmem:[#allocation22 + $0x70] ss:$8 sps:$4 sm:$0xff]  }
 0xb42   :  { %10960 = vmatprep.subr.bf16.mxu1 %v15437_v48  ;;  %v15492_v48 = vld [vmem:[#allocation20 + $0x160] ss:$8 sps:$4 sm:$0xff]  }
 0xb44   :  { %10816 = vmatpush1.bf16.msra.mxu0 %v15414_v45 }
 0xb45   :  { %11124 = vmatprep.subr.bf16.mxu0 %v15422_v8  ;;  %10961 = vmatpush1.bf16.msra.mxu1 %v15435_v56  ;;  %v15489_v8 = vld [vmem:[#allocation20 + $0x170] ss:$8 sps:$4 sm:$0xff]   ;;  %v15473_v56 = vld [vmem:[#allocation22 + $0x54] ss:$8 sps:$4 sm:$0xff]  }
 0xb46   :  { %10962 = vmatprep.subr.bf16.mxu1 %v15443_v60  ;;  %v15497_v60 = vld [vmem:[#allocation20 + $0x154] ss:$8 sps:$4 sm:$0xff]  }
 0xb49   :  { %10963 = vmatpush1.bf16.msra.mxu1 %v15441_v6 }
 0xb4a   :  { %10964 = vmatprep.subr.bf16.mxu1 %v15449_v5 }
 0xb4d   :  { %10965 = vmatpush1.bf16.msra.mxu1 %v15447_v43 }
 0xb4e   :  { %10966 = vmatprep.subr.bf16.mxu1 %v15455_v11  ;;  %v15471_v11 = vld [vmem:[#allocation22 + $0x50] ss:$8 sps:$4 sm:$0xff]  }
 0xb51   :  { %10967 = vmatpush1.bf16.msra.mxu1 %v15453_v46 }
 0xb52   :  { %10968 = vmatprep.subr.bf16.mxu1 %v15461_v52  ;;  %v928_v52 = vadd.s32 32, %v23598_v4 }
 0xb54   :  { %vm13334_vm9 = vcmp.ne.s32.totalorder %v928_v52, 32  ;;  %v15557_v52 = vld [vmem:[#allocation20 + $0x184] ss:$8 sps:$4 sm:$0xff]  }
 0xb55   :  { %10969 = vmatpush1.bf16.msra.mxu1 %v15459_v37  ;;  %vm22138_vm10 = vmpackc.low %vm15951_vm15, %vm13334_vm9 }
 0xb56   :  { %11367 = vmatprep.subr.bf16.mxu1 %v15467_v49  ;;  %v15476_v49 = vld [vmem:[#allocation22 + $0x44] ss:$8 sps:$4 sm:$0xff]  }
 0xbd7   :  { %v15165_v58 = vpop.f32.mrf.mxu1 }
 0xbd9   :  { %v10426_v39 = vpop.f32.mrf.mxu1 }
 0xbdb   :  { %v15166_v32 = vpop.f32.mrf.mxu1 }
 0xbdc   :  { %v22057_v40 = vpack.c.bf16 %v15166_v32, %v15165_v58  ;;  %v15495_v58 = vld [vmem:[#allocation20 + $0x150] ss:$8 sps:$4 sm:$0xff]   ;;  %v15500_v32 = vld [vmem:[#allocation20 + $0x144] ss:$8 sps:$4 sm:$0xff]  }
 0xbdd   :  { %v10429_v24 = vpop.f32.mrf.mxu1 }
 0xbde   :  { %v22041_v34 = vpack.c.bf16 %v10429_v24, %v10426_v39 }
 0xbe0   :  { %10834 = vmatmul.mubr.bf16.vlgmr.msra.gmra.mxu0 %v22041_v34 }
 0xbe1   :  { %11125 = vmatpush1.bf16.msra.mxu0 %v15420_v23  ;;  %10843 = vmatprep.mubr.bf16.mxu0 %v15952_v30  ;;  %v15474_v23 = vld [vmem:[#allocation22 + $0x40] ss:$8 sps:$4 sm:$0xff]  }
 0xbe2   :  { %11126 = vmatprep.subr.bf16.mxu0 %v15428_v44  ;;  %v15479_v44 = vld [vmem:[#allocation22 + $0x34] ss:$8 sps:$4 sm:$0xff]  }
 0xbe5   :  { %11127 = vmatpush1.bf16.msra.mxu0 %v15426_v15  ;;  %v15498_v15 = vld [vmem:[#allocation20 + $0x140] ss:$8 sps:$4 sm:$0xff]  }
 0xbe6   :  { %11128 = vmatprep.subr.bf16.mxu0 %v15434_v26 }
 0xbe7   :  { %v15189_v29 = vpop.f32.mrf.mxu0  ;;  %v22063_v63 = vpop.f32.mrf.mxu1 }
 0xbe8   :  { %10844 = vmatmul.mubr.bf16.gmra.mxu0 %v22057_v40  ;;  %v10646_v18 = vrot.slane %v22063_v63, 7 }
 0xbe9   :  { %v10540_v42 = vpop.f32.mrf.mxu0  ;;  %11129 = vmatpush1.bf16.msra.mxu0 %v15432_v53  ;;  %10853 = vmatprep.mubr.bf16.mxu0 %v15952_v30  ;;  %v10491_v7 = vpop.f32.mrf.mxu1  ;;  %v15503_v53 = vld [vmem:[#allocation20 + $0x134] ss:$8 sps:$4 sm:$0xff]  }
 0xbea   :  { %11130 = vmatprep.subr.bf16.mxu0 %v15440_v31  ;;  %v10644_v19 = vrot.slane %v10491_v7, 7 }
 0xbeb   :  { %v15190_v10 = vpop.f32.mrf.mxu0  ;;  %v22081_v50 = vpop.f32.mrf.mxu1 }
 0xbec   :  { %v22093_v41 = vpack.c.bf16 %v15190_v10, %v15189_v29  ;;  %v10647_v14 = vrot.slane %v22081_v50, 7  ;;  %v10641_v5 = vpack.c.bf16 %v22081_v50, %v22063_v63  ;;  %v15477_v63 = vld [vmem:[#allocation22 + $0x30] ss:$8 sps:$4 sm:$0xff]   ;;  %v15482_v10 = vld [vmem:[#allocation22 + $0x24] ss:$8 sps:$4 sm:$0xff]  }
 0xbed   :  { %v10543_v62 = vpop.f32.mrf.mxu0  ;;  %11131 = vmatpush1.bf16.msra.mxu0 %v15438_v51  ;;  %v10494_v16 = vpop.f32.mrf.mxu1 }
 0xbee   :  { %v22072_v0 = vpack.c.bf16 %v10543_v62, %v10540_v42  ;;  %11132 = vmatprep.subr.bf16.mxu0 %v15446_v9  ;;  %v10645_v13 = vrot.slane %v10494_v16, 7  ;;  %v10640_v55 = vpack.c.bf16 %v10494_v16, %v10491_v7  ;;  %v10656_v46 = vsel %vm1468_vm5, %v10646_v18, %v10647_v14  ;;  %v15501_v9 = vld [vmem:[#allocation20 + $0x130] ss:$8 sps:$4 sm:$0xff]   ;;  %v15480_v7 = vld [vmem:[#allocation22 + $0x20] ss:$8 sps:$4 sm:$0xff]  }
 0xbef   :  { %v15629_v42 = vld [vmem:[#allocation20 + $0x294] ss:$8 sps:$4 sm:$0xff]  }
 0xbf0   :  { %10854 = vmatmul.mubr.bf16.gmra.mxu0 %v22072_v0  ;;  %v10658_v22 = vsel %vm1468_vm5, %v10644_v19, %v10645_v13  ;;  %v10657_v6 = vsel %vm1468_vm5, %v10645_v13, %v10646_v18  ;;  %v15509_v13 = vld [vmem:[#allocation20 + $0x114] ss:$8 sps:$4 sm:$0xff]   ;;  %v15534_v18 = vld [vmem:[#allocation20 + $0x40] ss:$8 sps:$4 sm:$0xff]  }
 0xbf1   :  { %11133 = vmatpush1.bf16.msra.mxu0 %v15444_v33  ;;  %10863 = vmatprep.mubr.bf16.mxu0 %v15952_v30  ;;  %v10685_v37 = vpack.c.bf16 %v10656_v46, %v10657_v6  ;;  %v15485_v33 = vld [vmem:[#allocation22 + $0x14] ss:$8 sps:$4 sm:$0xff]   ;;  %v15549_v46 = vld [vmem:[#allocation20 + $0x190] ss:$8 sps:$4 sm:$0xff]  }
 0xbf2   :  { %11134 = vmatprep.subr.bf16.mxu0 %v15452_v2  ;;  %v15542_v6 = vld [vmem:[#allocation20 + $0x34] ss:$8 sps:$4 sm:$0xff]  }
 0xbf5   :  { %11135 = vmatpush1.bf16.msra.mxu0 %v15450_v36 }
 0xbf6   :  { %11136 = vmatprep.subr.bf16.mxu0 %v15458_v3  ;;  %v15483_v3 = vld [vmem:[#allocation22 + $0x10] ss:$8 sps:$4 sm:$0xff]  }
 0xbf7   :  { %v22098_v57 = vpop.f32.mrf.mxu1 }
 0xbf8   :  { %10864 = vmatmul.mubr.bf16.gmra.mxu0 %v22093_v41  ;;  %v10650_v62 = vrot.slane %v22098_v57, 7 }
 0xbf9   :  { %v22101_v25 = vpop.f32.mrf.mxu1  ;;  %11137 = vmatpush1.bf16.msra.mxu0 %v15456_v59  ;;  %11156 = vmatprep.mubr.bf16.mxu0 %v15952_v30  ;;  %v15488_v59 = vld [vmem:[#allocation22 + $0x4] ss:$8 sps:$4 sm:$0xff]  }
 0xbfa   :  { %11138 = vmatprep.subr.bf16.mxu0 %v15464_v61  ;;  %v10648_v24 = vrot.slane %v22101_v25, 7  ;;  %v15486_v61 = vld [vmem:[#allocation22] ss:$8 sps:$4 sm:$0xff]  }
 0xbfb   :  { %v22107_v12 = vpop.f32.mrf.mxu1 }
 0xbfc   :  { %v10651_v20 = vrot.slane %v22107_v12, 7  ;;  %v10655_v29 = vsel %vm1468_vm5, %v10647_v14, %v10648_v24  ;;  %v10643_v50 = vpack.c.bf16 %v22107_v12, %v22098_v57  ;;  %v15504_v57 = vld [vmem:[#allocation20 + $0x120] ss:$8 sps:$4 sm:$0xff]   ;;  %v15512_v12 = vld [vmem:[#allocation20 + $0x104] ss:$8 sps:$4 sm:$0xff]  }
 0xbfd   :  { %11139 = vmatpush1.bf16.msra.mxu0 %v15462_v27  ;;  %v10592_v43 = vpop.f32.mrf.mxu1  ;;  %v15507_v27 = vld [vmem:[#allocation20 + $0x110] ss:$8 sps:$4 sm:$0xff]   ;;  %v15536_v14 = vld [vmem:[#allocation20 + $0x44] ss:$8 sps:$4 sm:$0xff]  }
 0xbfe   :  { %v10659_v45 = vsel %vm1468_vm5, %v10651_v20, %v10644_v19  ;;  %11801 = vmatprep.subr.bf16.mxu0 %v15491_v17  ;;  %v10649_v39 = vrot.slane %v10592_v43, 7  ;;  %v10642_v31 = vpack.c.bf16 %v10592_v43, %v22101_v25  ;;  %v10652_v36 = vsel %vm1468_vm5, %v10650_v62, %v10651_v20  ;;  %v15506_v25 = vld [vmem:[#allocation20 + $0x124] ss:$8 sps:$4 sm:$0xff]   ;;  %v15510_v17 = vld [vmem:[#allocation20 + $0x100] ss:$8 sps:$4 sm:$0xff]  }
 0xbff   :  { %v13150_v28 = vpack.c.bf16 %v10658_v22, %v10659_v45  ;;  %v15513_v19 = vld [vmem:[#allocation20 + $0x1f0] ss:$8 sps:$4 sm:$0xff]   ;;  %v15519_v22 = vld [vmem:[#allocation20 + $0x1e0] ss:$8 sps:$4 sm:$0xff]  }
 0xc00   :  { %11157 = vmatmul.mubr.bf16.vlgmr.msra.gmra.mxu0 %v10640_v55  ;;  %v10654_v26 = vsel %vm1468_vm5, %v10648_v24, %v10649_v39  ;;  %v10653_v2 = vsel %vm1468_vm5, %v10649_v39, %v10650_v62  ;;  %v15516_v20 = vld [vmem:[#allocation20 + $0x70] ss:$8 sps:$4 sm:$0xff]   ;;  %v15518_v55 = vld [vmem:[#allocation20 + $0x74] ss:$8 sps:$4 sm:$0xff]   ;;  %v15522_v45 = vld [vmem:[#allocation20 + $0x60] ss:$8 sps:$4 sm:$0xff]  }
 0xc01   :  { %13151 = vmatmul.mubr.msk.bf16.vlgmr.msra.gmra.mxu1 %vm21683_vm0, %v13150_v28  ;;  %11166 = vmatprep.mubr.bf16.mxu0 %v15952_v30  ;;  %v13154_v51 = vpack.c.bf16 %v10654_v26, %v10655_v29  ;;  %v10687_v16 = vpack.c.bf16 %v10652_v36, %v10653_v2  ;;  %v15525_v28 = vld [vmem:[#allocation20 + $0x1d0] ss:$8 sps:$4 sm:$0xff]   ;;  %v15546_v43 = vld [vmem:[#allocation20 + $0x20] ss:$8 sps:$4 sm:$0xff]   ;;  %v15560_v39 = vld [vmem:[#allocation20 + $0x4] ss:$8 sps:$4 sm:$0xff]  }
 0xc02   :  { %10996 = vmatprep.mubr.bf16.mxu1 %v15952_v30  ;;  %11368 = vmatpush1.bf16.msra.mxu1 %v15465_v1  ;;  %v15524_v1 = vld [vmem:[#allocation20 + $0x64] ss:$8 sps:$4 sm:$0xff]   ;;  %v15558_v24 = vld [vmem:[#allocation20] ss:$8 sps:$4 sm:$0xff]   ;;  %v15576_v29 = vld [vmem:[#allocation20 + $0xd0] ss:$8 sps:$4 sm:$0xff]  }
 0xc03   :  { %11369 = vmatprep.subr.bf16.mxu1 %v15470_v38  ;;  %11802 = vmatpush1.bf16.msra.mxu0 %v15489_v8  ;;  %v15527_v38 = vld [vmem:[#allocation20 + $0x1d4] ss:$8 sps:$4 sm:$0xff]   ;;  %v15528_v8 = vld [vmem:[#allocation20 + $0x50] ss:$8 sps:$4 sm:$0xff]   ;;  %v15570_v26 = vld [vmem:[#allocation20 + $0xe0] ss:$8 sps:$4 sm:$0xff]  }
 0xc04   :  { %11803 = vmatprep.subr.bf16.mxu0 %v15494_v35  ;;  %v15530_v35 = vld [vmem:[#allocation20 + $0x54] ss:$8 sps:$4 sm:$0xff]   ;;  %v15594_v62 = vld [vmem:[#allocation20 + $0xa0] ss:$8 sps:$4 sm:$0xff]   ;;  %v15608_v2 = vld [vmem:[#allocation20 + $0x84] ss:$8 sps:$4 sm:$0xff]  }
 0xc06   :  { %11370 = vmatpush1.bf16.msra.mxu1 %v15468_v54  ;;  %v15537_v54 = vld [vmem:[#allocation20 + $0x1b0] ss:$8 sps:$4 sm:$0xff]  }
 0xc07   :  { %11371 = vmatprep.subr.bf16.mxu1 %v15473_v56  ;;  %11804 = vmatpush1.bf16.msra.mxu0 %v15492_v48  ;;  %v15539_v56 = vld [vmem:[#allocation20 + $0x1b4] ss:$8 sps:$4 sm:$0xff]   ;;  %v15540_v48 = vld [vmem:[#allocation20 + $0x30] ss:$8 sps:$4 sm:$0xff]  }
 0xc08   :  { %11167 = vmatmul.mubr.bf16.gmra.mxu0 %v10641_v5  ;;  %11805 = vmatprep.subr.bf16.mxu0 %v15497_v60  ;;  %v15543_v60 = vld [vmem:[#allocation20 + $0x1a0] ss:$8 sps:$4 sm:$0xff]   ;;  %v15548_v5 = vld [vmem:[#allocation20 + $0x24] ss:$8 sps:$4 sm:$0xff]  }
 0xc09   :  { %10997 = vmatmul.mubr.bf16.gmra.mxu1 %v10685_v37  ;;  %11176 = vmatprep.mubr.bf16.mxu0 %v15952_v30  ;;  %v15554_v37 = vld [vmem:[#allocation20 + $0x14] ss:$8 sps:$4 sm:$0xff]  }
 0xc0a   :  { %11006 = vmatprep.mubr.bf16.mxu1 %v15952_v30  ;;  %11372 = vmatpush1.bf16.msra.mxu1 %v15471_v11  ;;  %v15551_v11 = vld [vmem:[#allocation20 + $0x194] ss:$8 sps:$4 sm:$0xff]  }
 0xc0b   :  { %11373 = vmatprep.subr.bf16.mxu1 %v15476_v49  ;;  %11806 = vmatpush1.bf16.msra.mxu0 %v15495_v58  ;;  %v15552_v49 = vld [vmem:[#allocation20 + $0x10] ss:$8 sps:$4 sm:$0xff]   ;;  %v15555_v58 = vld [vmem:[#allocation20 + $0x180] ss:$8 sps:$4 sm:$0xff]  }
 0xc0c   :  { %11807 = vmatprep.subr.bf16.mxu0 %v15500_v32  ;;  %v15563_v32 = vld [vmem:[#allocation20 + $0x274] ss:$8 sps:$4 sm:$0xff]  }
 0xc0e   :  { %11374 = vmatpush1.bf16.msra.mxu1 %v15474_v23  ;;  %v15566_v23 = vld [vmem:[#allocation20 + $0xf4] ss:$8 sps:$4 sm:$0xff]  }
 0xc0f   :  { %11375 = vmatprep.subr.bf16.mxu1 %v15479_v44  ;;  %11808 = vmatpush1.bf16.msra.mxu0 %v15498_v15  ;;  %v15564_v44 = vld [vmem:[#allocation20 + $0xf0] ss:$8 sps:$4 sm:$0xff]   ;;  %v15572_v15 = vld [vmem:[#allocation20 + $0xe4] ss:$8 sps:$4 sm:$0xff]  }
 0xc10   :  { %11177 = vmatmul.mubr.bf16.gmra.mxu0 %v10642_v31  ;;  %11809 = vmatprep.subr.bf16.mxu0 %v15503_v53  ;;  %v15578_v53 = vld [vmem:[#allocation20 + $0xd4] ss:$8 sps:$4 sm:$0xff]   ;;  %v15584_v31 = vld [vmem:[#allocation20 + $0xc4] ss:$8 sps:$4 sm:$0xff]  }
 0xc11   :  { %13155 = vmatmul.mubr.msk.bf16.gmra.mxu1 %vm22138_vm10, %v13154_v51  ;;  %11186 = vmatprep.mubr.bf16.mxu0 %v15952_v30  ;;  %v15590_v51 = vld [vmem:[#allocation20 + $0xb4] ss:$8 sps:$4 sm:$0xff]  }
 0xc12   :  { %11016 = vmatprep.mubr.bf16.mxu1 %v15952_v30  ;;  %11376 = vmatpush1.bf16.msra.mxu1 %v15477_v63  ;;  %v15582_v63 = vld [vmem:[#allocation20 + $0xc0] ss:$8 sps:$4 sm:$0xff]  }
 0xc13   :  { %11377 = vmatprep.subr.bf16.mxu1 %v15482_v10  ;;  %11810 = vmatpush1.bf16.msra.mxu0 %v15501_v9  ;;  %v15588_v10 = vld [vmem:[#allocation20 + $0xb0] ss:$8 sps:$4 sm:$0xff]   ;;  %v15596_v9 = vld [vmem:[#allocation20 + $0xa4] ss:$8 sps:$4 sm:$0xff]  }
 0xc14   :  { %11811 = vmatprep.subr.bf16.mxu0 %v15506_v25 }
 0xc16   :  { %11378 = vmatpush1.bf16.msra.mxu1 %v15480_v7  ;;  %v15602_v7 = vld [vmem:[#allocation20 + $0x94] ss:$8 sps:$4 sm:$0xff]  }
 0xc17   :  { %11379 = vmatprep.subr.bf16.mxu1 %v15485_v33  ;;  %11812 = vmatpush1.bf16.msra.mxu0 %v15504_v57  ;;  %v15600_v33 = vld [vmem:[#allocation20 + $0x90] ss:$8 sps:$4 sm:$0xff]  }
 0xc18   :  { %11187 = vmatmul.mubr.bf16.gmra.mxu0 %v10643_v50  ;;  %11813 = vmatprep.subr.bf16.mxu0 %v15509_v13  ;;  %v15606_v50 = vld [vmem:[#allocation20 + $0x80] ss:$8 sps:$4 sm:$0xff]  }
 0xc19   :  { %11017 = vmatmul.mubr.bf16.gmra.mxu1 %v10687_v16 }
 0xc1a   :  { %11380 = vmatpush1.bf16.msra.mxu1 %v15483_v3  ;;  %11399 = vmatprep.mubr.bf16.mxu1 %v15952_v30 }
 0xc1b   :  { %11381 = vmatprep.subr.bf16.mxu1 %v15488_v59  ;;  %11814 = vmatpush1.bf16.msra.mxu0 %v15507_v27 }
 0xc1c   :  { %11815 = vmatprep.subr.bf16.mxu0 %v15512_v12 }
 0xc1e   :  { %11382 = vmatpush1.bf16.msra.mxu1 %v15486_v61 }
 0xc1f   :  { %11816 = vmatpush1.bf16.msra.mxu0 %v15510_v17  ;;  %12034 = vmatprep.subr.bf16.mxu1 %v15518_v55 }
 0xc21   :  { %11400 = vmatmul.mubr.bf16.vlgmr.msra.gmra.mxu1 %v22041_v34  ;;  %v15515_v34 = vld [vmem:[#allocation20 + $0x1f4] ss:$8 sps:$4 sm:$0xff]  }
 0xc22   :  { %11409 = vmatprep.mubr.bf16.mxu1 %v15952_v30  ;;  %11817 = vmatprep.subr.bf16.mxu0 %v15515_v34 }
 0xc23   :  { %11818 = vmatpush2.bf16.msra.mxu0 %v15513_v19  ;;  %12035 = vmatpush1.bf16.msra.mxu1 %v15516_v20 }
 0xc24   :  { %12036 = vmatprep.subr.bf16.mxu1 %v15524_v1 }
 0xc27   :  { %12037 = vmatpush1.bf16.msra.mxu1 %v15522_v45 }
 0xc28   :  { %12038 = vmatprep.subr.bf16.mxu1 %v15530_v35 }
 0xc29   :  { %11410 = vmatmul.mubr.bf16.gmra.mxu1 %v22057_v40  ;;  %v15521_v40 = vld [vmem:[#allocation20 + $0x1e4] ss:$8 sps:$4 sm:$0xff]  }
 0xc2a   :  { %11419 = vmatprep.mubr.bf16.mxu1 %v15952_v30  ;;  %11819 = vmatprep.subr.bf16.mxu0 %v15521_v40 }
 0xc2b   :  { %11820 = vmatpush2.bf16.msra.mxu0 %v15519_v22  ;;  %12039 = vmatpush1.bf16.msra.mxu1 %v15528_v8 }
 0xc2c   :  { %11821 = vmatprep.subr.bf16.mxu0 %v15527_v38  ;;  %12040 = vmatprep.subr.bf16.mxu1 %v15536_v14  ;;  %v22180_v38 = vsub.s32 1, %v23598_v4 }
 0xc2f   :  { %11822 = vmatpush2.bf16.msra.mxu0 %v15525_v28  ;;  %12041 = vmatpush1.bf16.msra.mxu1 %v15534_v18  ;;  %v11214_v18 = vld [vmem:[#allocation2 + $0x11] ss:$8 sm:$0x3] }
 0xc30   :  { %12042 = vmatprep.subr.bf16.mxu1 %v15542_v6  ;;  %v22186_v6 = vrot.slane %v11214_v18, %v22180_v38 }
 0xc31   :  { %11420 = vmatmul.mubr.bf16.gmra.mxu1 %v22072_v0  ;;  %v15533_v0 = vld [vmem:[#allocation20 + $0x1c4] ss:$8 sps:$4 sm:$0xff]  }
 0xc32   :  { %11429 = vmatprep.mubr.bf16.mxu1 %v15952_v30  ;;  %v15531_v30 = vld [vmem:[#allocation20 + $0x1c0] ss:$8 sps:$4 sm:$0xff]   ;;  %11823 = vmatprep.subr.bf16.mxu0 %v15533_v0 }
 0xc33   :  { %11824 = vmatpush2.bf16.msra.mxu0 %v15531_v30  ;;  %12043 = vmatpush1.bf16.msra.mxu1 %v15540_v48  ;;  %v22183_v30 = vsub.s32 0, %v23598_v4 }
 0xc34   :  { %11825 = vmatprep.subr.bf16.mxu0 %v15539_v56  ;;  %12044 = vmatprep.subr.bf16.mxu1 %v15548_v5 }
 0xc37   :  { %11826 = vmatpush2.bf16.msra.mxu0 %v15537_v54  ;;  %12045 = vmatpush1.bf16.msra.mxu1 %v15546_v43  ;;  %v22189_v43 = vrot.slane %v11214_v18, %v22183_v30 }
 0xc38   :  { %12046 = vmatprep.subr.bf16.mxu1 %v15554_v37 }
 0xc39   :  { %11430 = vmatmul.mubr.bf16.gmra.mxu1 %v22093_v41  ;;  %v15545_v41 = vld [vmem:[#allocation20 + $0x1a4] ss:$8 sps:$4 sm:$0xff]  }
 0xc3a   :  { %11827 = vmatprep.subr.bf16.mxu0 %v15545_v41 }
 0xc3b   :  { %11828 = vmatpush2.bf16.msra.mxu0 %v15543_v60  ;;  %12047 = vmatpush1.bf16.msra.mxu1 %v15552_v49 }
 0xc3c   :  { %11829 = vmatprep.subr.bf16.mxu0 %v15551_v11  ;;  %12048 = vmatprep.subr.bf16.mxu1 %v15560_v39 }
 0xc3f   :  { %11830 = vmatpush2.bf16.msra.mxu0 %v15549_v46  ;;  %12049 = vmatpush1.bf16.msra.mxu1 %v15558_v24 }
 0xc40   :  { %11831 = vmatprep.subr.bf16.mxu0 %v15557_v52  ;;  %12050 = vmatprep.subr.bf16.mxu1 %v15566_v23 }
 0xc43   :  { %11832 = vmatpush2.bf16.msra.mxu0 %v15555_v58  ;;  %12051 = vmatpush2.bf16.msra.mxu1 %v15564_v44 }
 0xc44   :  { %12300 = vmatprep.subr.bf16.mxu0 %v15563_v32  ;;  %12052 = vmatprep.subr.bf16.mxu1 %v15572_v15 }
 0xc47   :  { %12053 = vmatpush2.bf16.msra.mxu1 %v15570_v26 }
 0xc48   :  { %12054 = vmatprep.subr.bf16.mxu1 %v15578_v53 }
 0xc4b   :  { %12055 = vmatpush2.bf16.msra.mxu1 %v15576_v29 }
 0xc4c   :  { %12056 = vmatprep.subr.bf16.mxu1 %v15584_v31 }
 0xc4f   :  { %12057 = vmatpush2.bf16.msra.mxu1 %v15582_v63 }
 0xc50   :  { %12058 = vmatprep.subr.bf16.mxu1 %v15590_v51 }
 0xc53   :  { %12059 = vmatpush2.bf16.msra.mxu1 %v15588_v10 }
 0xc54   :  { %12060 = vmatprep.subr.bf16.mxu1 %v15596_v9 }
 0xc57   :  { %12061 = vmatpush2.bf16.msra.mxu1 %v15594_v62 }
 0xc58   :  { %12062 = vmatprep.subr.bf16.mxu1 %v15602_v7 }
 0xc5b   :  { %12063 = vmatpush2.bf16.msra.mxu1 %v15600_v33 }
 0xc5c   :  { %12064 = vmatprep.subr.bf16.mxu1 %v15608_v2 }
 0xc5f   :  { %12065 = vmatpush2.bf16.msra.mxu1 %v15606_v50 }
 0xca0   :  { %v10835_v36 = vpop.f32.mrf.mxu0 }
 0xca2   :  { %v10837_v3 = vpop.f32.mrf.mxu0 }
 0xca4   :  { %v10839_v16 = vpop.f32.mrf.mxu0 }
 0xca6   :  { %v10841_v59 = vpop.f32.mrf.mxu0 }
 0xca8   :  { %v10845_v61 = vpop.f32.mrf.mxu0 }
 0xcaa   :  { %v10847_v57 = vpop.f32.mrf.mxu0 }
 0xcac   :  { %v10849_v25 = vpop.f32.mrf.mxu0 }
 0xcae   :  { %v10851_v27 = vpop.f32.mrf.mxu0 }
 0xcb0   :  { %v22163_v13 = vpop.f32.mrf.mxu0 }
 0xcb2   :  { %v22165_v17 = vpop.f32.mrf.mxu0 }
 0xcb4   :  { %v22167_v12 = vpop.f32.mrf.mxu0 }
 0xcb6   :  { %v22169_v19 = vpop.f32.mrf.mxu0 }
 0xcb8   :  { %v22171_v34 = vpop.f32.mrf.mxu0 }
 0xcba   :  { %v22173_v20 = vpop.f32.mrf.mxu0 }
 0xcbc   :  { %v22175_v55 = vpop.f32.mrf.mxu0 }
 0xcbe   :  { %v22177_v22 = vpop.f32.mrf.mxu0 }
 0xcc0   :  { %v11158_v40 = vpop.f32.mrf.mxu0 }
 0xcc1   :  { %v10988_v45 = vpop.f32.mrf.mxu1 }
 0xcc2   :  { %v11160_v1 = vpop.f32.mrf.mxu0  ;;  %v10989_v8 = vadd.f32 %v10988_v45, %v10835_v36  ;;  %v15561_v36 = vld [vmem:[#allocation20 + $0x270] ss:$8 sps:$4 sm:$0xff]  }
 0xcc3   :  { %v10990_v28 = vpop.f32.mrf.mxu1 }
 0xcc4   :  { %v10991_v35 = vadd.f32 %v10990_v28, %v10837_v3  ;;  %v11162_v0 = vpop.f32.mrf.mxu0  ;;  %v11197_v41 = vadd.f32 %v11158_v40, %v10989_v8 }
 0xcc5   :  { %v10992_v14 = vpop.f32.mrf.mxu1 }
 0xcc6   :  { %v10993_v54 = vadd.f32 %v10992_v14, %v10839_v16  ;;  %v11164_v56 = vpop.f32.mrf.mxu0  ;;  %v11198_v48 = vadd.f32 %v11160_v1, %v10991_v35  ;;  %v11226_v24 = vadd.f32 %v22189_v43, %v11197_v41 }
 0xcc7   :  { %v10994_v60 = vpop.f32.mrf.mxu1 }
 0xcc8   :  { %v10995_v5 = vadd.f32 %v10994_v60, %v10841_v59  ;;  %v11199_v46 = vadd.f32 %v11162_v0, %v10993_v54  ;;  %v11168_v11 = vpop.f32.mrf.mxu0  ;;  %v11227_v58 = vadd.f32 %v22186_v6, %v11198_v48  ;;  %v22201_v62 = vmax.f32 %v11226_v24, 0.0  ;;  %v15567_v0 = vld [vmem:[#allocation20 + $0x260] ss:$8 sps:$4 sm:$0xff]   ;;  %v15581_v24 = vld [vmem:[#allocation20 + $0x244] ss:$8 sps:$4 sm:$0xff]  }
 0xcc9   :  { %v10998_v37 = vpop.f32.mrf.mxu1 }
 0xcca   :  { %v11228_v52 = vadd.f32 %v22189_v43, %v11199_v46  ;;  %v11170_v49 = vpop.f32.mrf.mxu0  ;;  %v11200_v39 = vadd.f32 %v11164_v56, %v10995_v5  ;;  %v10999_v29 = vadd.f32 %v10998_v37, %v10845_v61  ;;  %v22197_v51 = vmax.f32 %v11227_v58, 0.0  ;;  %v15575_v56 = vld [vmem:[#allocation20 + $0x254] ss:$8 sps:$4 sm:$0xff]  }
 0xccb   :  { %v11000_v32 = vpop.f32.mrf.mxu1 }
 0xccc   :  { %v11172_v23 = vpop.f32.mrf.mxu0  ;;  %v11229_v44 = vadd.f32 %v22186_v6, %v11200_v39  ;;  %v11001_v15 = vadd.f32 %v11000_v32, %v10847_v57  ;;  %v22195_v53 = vmax.f32 %v11228_v52, 0.0  ;;  %v11201_v61 = vadd.f32 %v11168_v11, %v10999_v29  ;;  %v15569_v57 = vld [vmem:[#allocation20 + $0x264] ss:$8 sps:$4 sm:$0xff]  }
 0xccd   :  { %v11002_v26 = vpop.f32.mrf.mxu1 }
 0xcce   :  { %v11003_v31 = vadd.f32 %v11002_v26, %v10849_v25  ;;  %v11174_v63 = vpop.f32.mrf.mxu0  ;;  %v22199_v10 = vmax.f32 %v11229_v44, 0.0  ;;  %v11202_v3 = vadd.f32 %v11170_v49, %v11001_v15  ;;  %v11440_v59 = vpack.c.bf16 %v22195_v53, %v22201_v62  ;;  %v15573_v49 = vld [vmem:[#allocation20 + $0x250] ss:$8 sps:$4 sm:$0xff]  }
 0xccf   :  { %v11004_v9 = vpop.f32.mrf.mxu1  ;;  %v11230_v14 = vadd.f32 %v22189_v43, %v11201_v61 }
 0xcd0   :  { %v11005_v7 = vadd.f32 %v11004_v9, %v10851_v27  ;;  %v11203_v33 = vadd.f32 %v11172_v23, %v11003_v31  ;;  %v11178_v2 = vpop.f32.mrf.mxu0  ;;  %v11441_v50 = vpack.c.bf16 %v22199_v10, %v22197_v51  ;;  %v11231_v35 = vadd.f32 %v22186_v6, %v11202_v3 }
 0xcd1   :  { %v11008_v16 = vpop.f32.mrf.mxu1  ;;  %v22221_v39 = vmax.f32 %v11230_v14, 0.0  ;;  %v15591_v14 = vld [vmem:[#allocation20 + $0x220] ss:$8 sps:$4 sm:$0xff]  }
 0xcd2   :  { %v11204_v25 = vadd.f32 %v11174_v63, %v11005_v7  ;;  %v11180_v40 = vpop.f32.mrf.mxu0  ;;  %11833 = vmatprep.mubr.bf16.mxu0 %v11441_v50  ;;  %v11232_v27 = vadd.f32 %v22189_v43, %v11203_v33  ;;  %v11009_v54 = vadd.f32 %v11008_v16, %v22163_v13  ;;  %v22219_v52 = vmax.f32 %v11231_v35, 0.0  ;;  %v15579_v63 = vld [vmem:[#allocation20 + $0x240] ss:$8 sps:$4 sm:$0xff]  }
 0xcd3   :  { %v11010_v45 = vpop.f32.mrf.mxu1  ;;  %11834 = vmatmul.mubr.bf16.vlgmr.msra.gmra.mxu0 %v11440_v59 }
 0xcd4   :  { %v11233_v1 = vadd.f32 %v22186_v6, %v11204_v25  ;;  %v11011_v28 = vadd.f32 %v11010_v45, %v22165_v17  ;;  %v11182_v8 = vpop.f32.mrf.mxu0  ;;  %12301 = vmatpush1.bf16.msra.mxu0 %v15561_v36  ;;  %v22216_v46 = vmax.f32 %v11232_v27, 0.0  ;;  %v11205_v13 = vadd.f32 %v11178_v2, %v11009_v54  ;;  %v15587_v36 = vld [vmem:[#allocation20 + $0x234] ss:$8 sps:$4 sm:$0xff]  }
 0xcd5   :  { %v11012_v18 = vpop.f32.mrf.mxu1  ;;  %12302 = vmatprep.subr.bf16.mxu0 %v15569_v57  ;;  %v11509_v54 = vrot.slane %v22219_v52, 1 }
 0xcd6   :  { %v11184_v48 = vpop.f32.mrf.mxu0  ;;  %v22213_v60 = vmax.f32 %v11233_v1, 0.0  ;;  %v11013_v41 = vadd.f32 %v11012_v18, %v22167_v12  ;;  %v11206_v17 = vadd.f32 %v11180_v40, %v11011_v28  ;;  %v11442_v31 = vpack.c.bf16 %v22216_v46, %v22221_v39  ;;  %v15593_v1 = vld [vmem:[#allocation20 + $0x224] ss:$8 sps:$4 sm:$0xff]  }
 0xcd7   :  { %v11014_v5 = vpop.f32.mrf.mxu1  ;;  %v11234_v33 = vadd.f32 %v22189_v43, %v11205_v13  ;;  %v11449_v13 = vrot.slane %v22197_v51, 7 }
 0xcd8   :  { %v11015_v11 = vadd.f32 %v11014_v5, %v22169_v19  ;;  %v11188_v37 = vpop.f32.mrf.mxu0  ;;  %12303 = vmatpush1.bf16.msra.mxu0 %v15567_v0  ;;  %v11207_v32 = vadd.f32 %v11182_v8, %v11013_v41  ;;  %v11443_v15 = vpack.c.bf16 %v22213_v60, %v22219_v52  ;;  %v11235_v19 = vadd.f32 %v22186_v6, %v11206_v17  ;;  %v15599_v41 = vld [vmem:[#allocation20 + $0x214] ss:$8 sps:$4 sm:$0xff]  }
 0xcd9   :  { %v11018_v58 = vpop.f32.mrf.mxu1  ;;  %12304 = vmatprep.subr.bf16.mxu0 %v15575_v56  ;;  %v22241_v27 = vmax.f32 %v11234_v33, 0.0  ;;  %v11451_v5 = vrot.slane %v22199_v10, 7 }
 0xcda   :  { %v11208_v23 = vadd.f32 %v11184_v48, %v11015_v11  ;;  %v11190_v44 = vpop.f32.mrf.mxu0  ;;  %v11236_v26 = vadd.f32 %v22189_v43, %v11207_v32  ;;  %11843 = vmatprep.mubr.bf16.mxu0 %v11443_v15  ;;  %v11019_v2 = vadd.f32 %v11018_v58, %v22171_v34  ;;  %v22236_v61 = vmax.f32 %v11235_v19, 0.0 }
 0xcdb   :  { %v11020_v12 = vpop.f32.mrf.mxu1  ;;  %11844 = vmatmul.mubr.bf16.gmra.mxu0 %v11442_v31  ;;  %v11448_v11 = vrot.slane %v22201_v62, 7 }
 0xcdc   :  { %v11237_v29 = vadd.f32 %v22186_v6, %v11208_v23  ;;  %12305 = vmatpush1.bf16.msra.mxu0 %v15573_v49  ;;  %v11021_v9 = vadd.f32 %v11020_v12, %v22173_v20  ;;  %v11192_v59 = vpop.f32.mrf.mxu0  ;;  %v22238_v57 = vmax.f32 %v11236_v26, 0.0  ;;  %v15585_v20 = vld [vmem:[#allocation20 + $0x230] ss:$8 sps:$4 sm:$0xff]   ;;  %v11209_v34 = vadd.f32 %v11188_v37, %v11019_v2  ;;  %v15603_v2 = vld [vmem:[#allocation20 + $0x200] ss:$8 sps:$4 sm:$0xff]  }
 0xcdd   :  { %v11022_v7 = vpop.f32.mrf.mxu1  ;;  %12306 = vmatprep.subr.bf16.mxu0 %v15581_v24  ;;  %v11507_v37 = vrot.slane %v22199_v10, 1  ;;  %v11455_v49 = vrot.slane %v22213_v60, 7  ;;  %v15597_v24 = vld [vmem:[#allocation20 + $0x210] ss:$8 sps:$4 sm:$0xff]   ;;  %v11453_v23 = vrot.slane %v22219_v52, 7  ;;  %v11477_v26 = vsel %vm1468_vm5, %v11449_v13, %v11451_v5 }
 0xcde   :  { %v22233_v50 = vmax.f32 %v11237_v29, 0.0  ;;  %v11023_v3 = vadd.f32 %v11022_v7, %v22175_v55  ;;  %v11210_v25 = vadd.f32 %v11190_v44, %v11021_v9  ;;  %v11194_v8 = vpop.f32.mrf.mxu0  ;;  %v11444_v0 = vpack.c.bf16 %v22238_v57, %v22241_v27  ;;  %v15605_v44 = vld [vmem:[#allocation20 + $0x204] ss:$8 sps:$4 sm:$0xff]  }
 0xcdf   :  { %v11024_v16 = vpop.f32.mrf.mxu1  ;;  %v11238_v56 = vadd.f32 %v22189_v43, %v11209_v34  ;;  %v11531_v15 = vsel %vm1821_vm7, %v11507_v37, %v11509_v54  ;;  %v11452_v34 = vrot.slane %v22221_v39, 7 }
 0xce0   :  { %12307 = vmatpush1.bf16.msra.mxu0 %v15579_v63  ;;  %v11025_v40 = vadd.f32 %v11024_v16, %v22177_v22  ;;  %v11211_v45 = vadd.f32 %v11192_v59, %v11023_v3  ;;  %v11445_v55 = vpack.c.bf16 %v22233_v50, %v22236_v61  ;;  %v11239_v18 = vadd.f32 %v22186_v6, %v11210_v25  ;;  %v15611_v59 = vld [vmem:[#allocation20 + $0x2f4] ss:$8 sps:$4 sm:$0xff]  }
 0xce1   :  { %12308 = vmatprep.subr.bf16.mxu0 %v15587_v36  ;;  %v22267_v12 = vmax.f32 %v11238_v56, 0.0  ;;  %v11473_v63 = vsel %vm1468_vm5, %v11453_v23, %v11455_v49  ;;  %v11454_v25 = vrot.slane %v22216_v46, 7  ;;  %v11515_v52 = vrot.slane %v22233_v50, 1 }
 0xce2   :  { %v11240_v28 = vadd.f32 %v22189_v43, %v11211_v45  ;;  %v11212_v35 = vadd.f32 %v11194_v8, %v11025_v40  ;;  %11853 = vmatprep.mubr.bf16.mxu0 %v11445_v55  ;;  %v11505_v43 = vrot.slane %v22197_v51, 1  ;;  %v22264_v32 = vmax.f32 %v11239_v18, 0.0  ;;  %v15617_v18 = vld [vmem:[#allocation20 + $0x2d4] ss:$8 sps:$4 sm:$0xff]  }
 0xce3   :  { %11854 = vmatmul.mubr.bf16.gmra.mxu0 %v11444_v0  ;;  %v11459_v45 = vrot.slane %v22233_v50, 7  ;;  %v11457_v55 = vrot.slane %v22236_v61, 7  ;;  %v11472_v8 = vsel %vm1468_vm5, %v11452_v34, %v11454_v25  ;;  %v15612_v0 = vld [vmem:[#allocation20 + $0x2e0] ss:$8 sps:$4 sm:$0xff]   ;;  %v11514_v50 = vrot.slane %v22238_v57, 1 }
 0xce4   :  { %12309 = vmatpush1.bf16.msra.mxu0 %v15585_v20  ;;  %v22249_v22 = vmax.f32 %v11240_v28, 0.0  ;;  %v11241_v48 = vadd.f32 %v22186_v6, %v11212_v35  ;;  %v11450_v6 = vrot.slane %v22195_v53, 7  ;;  %v11533_v7 = vsel %vm1821_vm7, %v11505_v43, %v11507_v37  ;;  %v15614_v28 = vld [vmem:[#allocation20 + $0x2e4] ss:$8 sps:$4 sm:$0xff]  }
 0xce5   :  { %12310 = vmatprep.subr.bf16.mxu0 %v15593_v1  ;;  %v11569_v3 = vpack.c.bf16 %v11531_v15, %v11533_v7  ;;  %v11475_v20 = vsel %vm1468_vm5, %v11451_v5, %v11453_v23  ;;  %v15609_v1 = vld [vmem:[#allocation20 + $0x2f0] ss:$8 sps:$4 sm:$0xff]   ;;  %v11469_v35 = vsel %vm1468_vm5, %v11457_v55, %v11459_v45  ;;  %v11471_v56 = vsel %vm1468_vm5, %v11455_v49, %v11457_v55  ;;  %v15618_v23 = vld [vmem:[#allocation20 + $0x2c0] ss:$8 sps:$4 sm:$0xff]  }
 0xce6   :  { %v11462_v17 = vrot.slane %v22249_v22, 7  ;;  %v22259_v58 = vmax.f32 %v11241_v48, 0.0  ;;  %v11446_v9 = vpack.c.bf16 %v22249_v22, %v22267_v12  ;;  %v11476_v33 = vsel %vm1468_vm5, %v11448_v11, %v11450_v6 }
 0xce7   :  { %v11499_v40 = vpack.c.bf16 %v11473_v63, %v11475_v20  ;;  %v11474_v47 = vsel %vm1468_vm5, %v11450_v6, %v11452_v34  ;;  %v11458_v48 = vrot.slane %v22238_v57, 7  ;;  %v11456_v5 = vrot.slane %v22241_v27, 7  ;;  %v15630_v20 = vld [vmem:[#allocation20 + $0x280] ss:$8 sps:$4 sm:$0xff]  }
 0xce8   :  { %12311 = vmatpush1.bf16.msra.mxu0 %v15591_v14  ;;  %v11463_v10 = vrot.slane %v22259_v58, 7  ;;  %v11478_v19 = vsel %vm1468_vm5, %v11462_v17, %v11448_v11  ;;  %v11447_v29 = vpack.c.bf16 %v22259_v58, %v22264_v32  ;;  %v11498_v14 = vpack.c.bf16 %v11472_v8, %v11474_v47  ;;  %v15615_v11 = vld [vmem:[#allocation20 + $0x2d0] ss:$8 sps:$4 sm:$0xff]  }
 0xce9   :  { %12312 = vmatprep.subr.bf16.mxu0 %v15599_v41  ;;  %v13274_v16 = vpack.c.bf16 %v11476_v33, %v11478_v19  ;;  %v13278_v41 = vpack.c.bf16 %v11469_v35, %v11471_v56  ;;  %v11461_v37 = vrot.slane %v22264_v32, 7  ;;  %v11468_v6 = vsel %vm1468_vm5, %v11456_v5, %v11458_v48 }
 0xcea   :  { %v11479_v31 = vsel %vm1468_vm5, %v11463_v10, %v11449_v13  ;;  %11863 = vmatprep.mubr.bf16.mxu0 %v11447_v29  ;;  %v15620_v13 = vld [vmem:[#allocation20 + $0x2c4] ss:$8 sps:$4 sm:$0xff]   ;;  %v11460_v29 = vrot.slane %v22267_v12, 7  ;;  %v11517_v55 = vrot.slane %v22264_v32, 1  ;;  %v11519_v47 = vrot.slane %v22259_v58, 1 }
 0xceb   :  { %v13270_v36 = vpack.c.bf16 %v11477_v26, %v11479_v31  ;;  %11864 = vmatmul.mubr.bf16.gmra.mxu0 %v11446_v9  ;;  %v11465_v49 = vsel %vm1468_vm5, %v11461_v37, %v11463_v10  ;;  %v11467_v19 = vsel %vm1468_vm5, %v11459_v45, %v11461_v37  ;;  %v15621_v31 = vld [vmem:[#allocation20 + $0x2b0] ss:$8 sps:$4 sm:$0xff]   ;;  %v15626_v10 = vld [vmem:[#allocation20 + $0x2a4] ss:$8 sps:$4 sm:$0xff]   ;;  %v15624_v9 = vld [vmem:[#allocation20 + $0x2a0] ss:$8 sps:$4 sm:$0xff]  }
 0xcec   :  { %12313 = vmatpush1.bf16.msra.mxu0 %v15597_v24  ;;  %12332 = vmatprep.mubr.bf16.mxu0 %v11569_v3  ;;  %v11470_v24 = vsel %vm1468_vm5, %v11454_v25, %v11456_v5  ;;  %v11503_v26 = vpack.c.bf16 %v11465_v49, %v11467_v19  ;;  %v11464_v63 = vsel %vm1468_vm5, %v11460_v29, %v11462_v17  ;;  %v11508_v3 = vrot.slane %v22221_v39, 1 }
 0xced   :  { %12314 = vmatprep.subr.bf16.mxu0 %v15605_v44  ;;  %13271 = vmatprep.mubr.msk.bf16.mxu1 %vm21683_vm0, %v13270_v36  ;;  %v15623_v44 = vld [vmem:[#allocation20 + $0x2b4] ss:$8 sps:$4 sm:$0xff]   ;;  %v13282_v15 = vpack.c.bf16 %v11468_v6, %v11470_v24  ;;  %v11466_v7 = vsel %vm1468_vm5, %v11458_v48, %v11460_v29  ;;  %v15632_v36 = vld [vmem:[#allocation20 + $0x284] ss:$8 sps:$4 sm:$0xff]   ;;  %v11506_v17 = vrot.slane %v22195_v53, 1  ;;  %v11511_v25 = vrot.slane %v22213_v60, 1 }
 0xcee   :  { %13275 = vmatmul.mubr.msk.bf16.vlgmr.msra.gmra.mxu1 %vm21683_vm0, %v13274_v16  ;;  %v11502_v33 = vpack.c.bf16 %v11464_v63, %v11466_v7  ;;  %v927_v16 = vadd.s32 24, %v23598_v4  ;;  %v11512_v60 = vrot.slane %v22241_v27, 1  ;;  %v11523_v8 = vsel %vm1821_vm7, %v11515_v52, %v11517_v55 }
 0xcef   :  { %12076 = vmatprep.mubr.bf16.mxu1 %v11499_v40  ;;  %v11504_v40 = vrot.slane %v22201_v62, 1  ;;  %v11530_v45 = vsel %vm1821_vm7, %v11506_v17, %v11508_v3  ;;  %v11529_v53 = vsel %vm1821_vm7, %v11509_v54, %v11511_v25  ;;  %v11518_v48 = vrot.slane %v22249_v22, 1 }
 0xcf0   :  { %12315 = vmatpush1.bf16.msra.mxu0 %v15603_v2  ;;  %v15627_v2 = vld [vmem:[#allocation20 + $0x290] ss:$8 sps:$4 sm:$0xff]   ;;  %vm13335_vm5 = vcmp.ne.s32.totalorder %v927_v16, 31  ;;  %v11524_v58 = vsel %vm1821_vm7, %v11512_v60, %v11514_v50 }
 0xcf1   :  { %12316 = vmatprep.subr.bf16.mxu0 %v15611_v59  ;;  %v11513_v59 = vrot.slane %v22236_v61, 1  ;;  %v11532_v34 = vsel %vm1821_vm7, %v11504_v40, %v11506_v17  ;;  %vm22351_vm11 = vmpackc.low %vm13335_vm5, %vm15951_vm15  ;;  %v11534_v51 = vsel %vm1821_vm7, %v11518_v48, %v11504_v40 }
 0xcf2   :  { %v11568_v61 = vpack.c.bf16 %v11530_v45, %v11532_v34 }
 0xcf3   :  { %v11527_v39 = vsel %vm1821_vm7, %v11511_v25, %v11513_v59  ;;  %v11525_v32 = vsel %vm1821_vm7, %v11513_v59, %v11515_v52 }
 0xcf4   :  { %12317 = vmatpush2.bf16.msra.mxu0 %v15609_v1  ;;  %v13318_v1 = vpack.c.bf16 %v11527_v39, %v11529_v53 }
 0xcf5   :  { %12318 = vmatprep.subr.bf16.mxu0 %v15614_v28  ;;  %v11510_v28 = vrot.slane %v22216_v46, 1  ;;  %v11516_v46 = vrot.slane %v22267_v12, 1  ;;  %v11535_v12 = vsel %vm1821_vm7, %v11519_v47, %v11505_v43  ;;  %v22393_v43 = vpop.f32.mrf.mxu1 }
 0xcf6   :  { %12077 = vmatmul.mubr.bf16.gmra.mxu1 %v11498_v14  ;;  %v11521_v14 = vsel %vm1821_vm7, %v11517_v55, %v11519_v47 }
 0xcf7   :  { %13279 = vmatprep.mubr.msk.bf16.mxu1 %vm22138_vm10, %v13278_v41  ;;  %v11526_v54 = vsel %vm1821_vm7, %v11510_v28, %v11512_v60  ;;  %v11528_v27 = vsel %vm1821_vm7, %v11508_v3, %v11510_v28  ;;  %v13326_v41 = vpack.c.bf16 %v11535_v12, %v11521_v14  ;;  %v11520_v57 = vsel %vm1821_vm7, %v11516_v46, %v11518_v48 }
 0xcf8   :  { %12319 = vmatpush2.bf16.msra.mxu0 %v15612_v0  ;;  %v13322_v35 = vpack.c.bf16 %v11526_v54, %v11528_v27  ;;  %v11573_v0 = vpack.c.bf16 %v11523_v8, %v11525_v32  ;;  %v13330_v5 = vpack.c.bf16 %v11534_v51, %v11520_v57  ;;  %v11275_v8 = vld [vmem:[#allocation2 + $0x13] ss:$8 sm:$0x3] }
 0xcf9   :  { %12320 = vmatprep.subr.bf16.mxu0 %v15617_v18  ;;  %v11522_v18 = vsel %vm1821_vm7, %v11514_v50, %v11516_v46  ;;  %v22442_v14 = vrot.slane %v11275_v8, %v22183_v30  ;;  %vm12491_vm7 = vcmask 1040384  }
 0xcfa   :  { %v11572_v56 = vpack.c.bf16 %v11522_v18, %v11524_v58 }
 0xcfc   :  { %12321 = vmatpush2.bf16.msra.mxu0 %v15615_v11  ;;  %v22395_v11 = vpop.f32.mrf.mxu1 }
 0xcfd   :  { %12322 = vmatprep.subr.bf16.mxu0 %v15620_v13 }
 0xcfe   :  { %13283 = vmatmul.mubr.msk.bf16.gmra.mxu1 %vm22138_vm10, %v13282_v15  ;;  %v22397_v22 = vpop.f32.mrf.mxu1 }
 0xcff   :  { %12096 = vmatprep.mubr.bf16.mxu1 %v11503_v26 }
 0xd00   :  { %12323 = vmatpush2.bf16.msra.mxu0 %v15618_v23  ;;  %v22399_v37 = vpop.f32.mrf.mxu1 }
 0xd01   :  { %12324 = vmatprep.subr.bf16.mxu0 %v15623_v44 }
 0xd02   :  { %v22401_v13 = vpop.f32.mrf.mxu1 }
 0xd04   :  { %12325 = vmatpush2.bf16.msra.mxu0 %v15621_v31  ;;  %v22403_v6 = vpop.f32.mrf.mxu1 }
 0xd05   :  { %12326 = vmatprep.subr.bf16.mxu0 %v15626_v10 }
 0xd06   :  { %12097 = vmatmul.mubr.bf16.gmra.mxu1 %v11502_v33  ;;  %v22405_v49 = vpop.f32.mrf.mxu1 }
 0xd08   :  { %12327 = vmatpush2.bf16.msra.mxu0 %v15624_v9  ;;  %v22407_v4 = vpop.f32.mrf.mxu1 }
 0xd09   :  { %12328 = vmatprep.subr.bf16.mxu0 %v15629_v42 }
 0xd0a   :  { %v22409_v24 = vpop.f32.mrf.mxu1 }
 0xd0c   :  { %12329 = vmatpush2.bf16.msra.mxu0 %v15627_v2  ;;  %v22411_v23 = vpop.f32.mrf.mxu1 }
 0xd0d   :  { %12330 = vmatprep.subr.bf16.mxu0 %v15632_v36 }
 0xd0e   :  { %v22413_v15 = vpop.f32.mrf.mxu1 }
 0xd10   :  { %12331 = vmatpush2.bf16.msra.mxu0 %v15630_v20  ;;  %v22415_v26 = vpop.f32.mrf.mxu1 }
 0xd12   :  { %v22417_v31 = vpop.f32.mrf.mxu1 }
 0xd13   :  { %12333 = vmatmul.mubr.bf16.vlgmr.msra.gmra.mxu0 %v11568_v61 }
 0xd14   :  { %13319 = vmatprep.mubr.msk.bf16.mxu0 %vm22351_vm11, %v13318_v1  ;;  %v22419_v63 = vpop.f32.mrf.mxu1 }
 0xd16   :  { %v22421_v7 = vpop.f32.mrf.mxu1 }
 0xd18   :  { %v22423_v33 = vpop.f32.mrf.mxu1 }
 0xd1b   :  { %13323 = vmatmul.mubr.msk.bf16.gmra.mxu0 %vm22351_vm11, %v13322_v35  ;;  %v12390_v35 = vld [vmem:[#allocation2 + $0x12] ss:$8 sm:$0x3] }
 0xd1c   :  { %12352 = vmatprep.mubr.bf16.mxu0 %v11573_v0  ;;  %v22445_v58 = vrot.slane %v12390_v35, %v22183_v30  ;;  %v22448_v57 = vrot.slane %v12390_v35, %v22180_v38  ;;  %v11402_v30 = vadd.f32 %v22393_v43, %v22442_v14  ;;  %v11412_v43 = vadd.f32 %v22401_v13, %v22442_v14 }
 0xd1d   :  { %v11416_v13 = vadd.f32 %v22405_v49, %v22442_v14 }
 0xd23   :  { %12353 = vmatmul.mubr.bf16.gmra.mxu0 %v11572_v56 }
 0xd24   :  { %13327 = vmatprep.mubr.msk.bf16.mxu0 %vm21757_vm4, %v13326_v41 }
 0xd2b   :  { %13331 = vmatmul.mubr.msk.bf16.gmra.mxu0 %vm21757_vm4, %v13330_v5  ;;  %v22451_v5 = vrot.slane %v11275_v8, %v22180_v38 }
 0xd2d   :  { %v11408_v38 = vadd.f32 %v22399_v37, %v22451_v5 }
 0xd93   :  { %v11835_v21 = vpop.f32.mrf.mxu0 }
 0xd95   :  { %v11837_v44 = vpop.f32.mrf.mxu0 }
 0xd97   :  { %v11839_v19 = vpop.f32.mrf.mxu0 }
 0xd99   :  { %v11841_v29 = vpop.f32.mrf.mxu0 }
 0xd9b   :  { %v11845_v10 = vpop.f32.mrf.mxu0 }
 0xd9d   :  { %v11847_v9 = vpop.f32.mrf.mxu0 }
 0xd9f   :  { %v11849_v42 = vpop.f32.mrf.mxu0 }
 0xda1   :  { %v11851_v36 = vpop.f32.mrf.mxu0 }
 0xda3   :  { %v22425_v16 = vpop.f32.mrf.mxu0 }
 0xda5   :  { %v22427_v17 = vpop.f32.mrf.mxu0 }
 0xda7   :  { %v22429_v25 = vpop.f32.mrf.mxu0 }
 0xda9   :  { %v22431_v45 = vpop.f32.mrf.mxu0 }
 0xdab   :  { %v22433_v34 = vpop.f32.mrf.mxu0 }
 0xdad   :  { %v22435_v53 = vpop.f32.mrf.mxu0 }
 0xdae   :  { %v12068_v2 = vpop.f32.mrf.mxu1 }
 0xdaf   :  { %v22437_v60 = vpop.f32.mrf.mxu0  ;;  %v12069_v32 = vadd.f32 %v12068_v2, %v11835_v21 }
 0xdb0   :  { %v12070_v3 = vpop.f32.mrf.mxu1 }
 0xdb1   :  { %v22439_v55 = vpop.f32.mrf.mxu0  ;;  %v12071_v0 = vadd.f32 %v12070_v3, %v11837_v44 }
 0xdb2   :  { %v12072_v59 = vpop.f32.mrf.mxu1 }
 0xdb3   :  { %v12073_v27 = vadd.f32 %v12072_v59, %v11839_v19 }
 0xdb4   :  { %v12074_v20 = vpop.f32.mrf.mxu1 }
 0xdb5   :  { %v12075_v47 = vadd.f32 %v12074_v20, %v11841_v29 }
 0xdb6   :  { %v12078_v40 = vpop.f32.mrf.mxu1 }
 0xdb7   :  { %v12079_v48 = vadd.f32 %v12078_v40, %v11845_v10  ;;  %v11406_v10 = vadd.f32 %v22397_v22, %v22442_v14 }
 0xdb8   :  { %v12080_v39 = vpop.f32.mrf.mxu1 }
 0xdb9   :  { %v12081_v19 = vadd.f32 %v12080_v39, %v11847_v9 }
 0xdba   :  { %v12082_v61 = vpop.f32.mrf.mxu1 }
 0xdbc   :  { %v12084_v62 = vpop.f32.mrf.mxu1 }
 0xdbd   :  { %v12085_v35 = vadd.f32 %v12084_v62, %v11851_v36 }
 0xdbe   :  { %v12088_v1 = vpop.f32.mrf.mxu1 }
 0xdbf   :  { %v12089_v36 = vadd.f32 %v12088_v1, %v22425_v16 }
 0xdc0   :  { %v12090_v52 = vpop.f32.mrf.mxu1 }
 0xdc2   :  { %v12092_v50 = vpop.f32.mrf.mxu1 }
 0xdc4   :  { %v12094_v29 = vpop.f32.mrf.mxu1 }
 0xdd3   :  { %v12334_v28 = vpop.f32.mrf.mxu0 }
 0xdd4   :  { %v12373_v12 = vadd.f32 %v12334_v28, %v12069_v32  ;;  %v11404_v28 = vadd.f32 %v22395_v11, %v22451_v5  ;;  %v12098_v32 = vpop.f32.mrf.mxu1 }
 0xdd5   :  { %v12336_v54 = vpop.f32.mrf.mxu0 }
 0xdd6   :  { %v12374_v41 = vadd.f32 %v12336_v54, %v12071_v0  ;;  %v12402_v59 = vadd.f32 %v22445_v58, %v12373_v12  ;;  %v12083_v54 = vadd.f32 %v12082_v61, %v11849_v42  ;;  %v12100_v62 = vpop.f32.mrf.mxu1 }
 0xdd7   :  { %v12338_v46 = vpop.f32.mrf.mxu0 }
 0xdd8   :  { %v12375_v18 = vadd.f32 %v12338_v46, %v12073_v27  ;;  %v12403_v40 = vadd.f32 %v22448_v57, %v12374_v41  ;;  %v11414_v27 = vadd.f32 %v22403_v6, %v22451_v5  ;;  %v12418_v0 = vadd.f32 %v12402_v59, %v11402_v30  ;;  %v12102_v16 = vpop.f32.mrf.mxu1 }
 0xdd9   :  { %v12340_v56 = vpop.f32.mrf.mxu0  ;;  %v11418_v6 = vadd.f32 %v22407_v4, %v22451_v5 }
 0xdda   :  { %v12376_v51 = vadd.f32 %v12340_v56, %v12075_v47  ;;  %v12404_v21 = vadd.f32 %v22445_v58, %v12375_v18  ;;  %v12419_v12 = vadd.f32 %v12403_v40, %v11404_v28 }
 0xddb   :  { %v12344_v44 = vpop.f32.mrf.mxu0 }
 0xddc   :  { %v12405_v2 = vadd.f32 %v22448_v57, %v12376_v51  ;;  %v12377_v3 = vadd.f32 %v12344_v44, %v12079_v48  ;;  %v12420_v8 = vadd.f32 %v12404_v21, %v11406_v10  ;;  %v12091_v44 = vadd.f32 %v12090_v52, %v22427_v17 }
 0xddd   :  { %v12346_v20 = vpop.f32.mrf.mxu0  ;;  %v12435_v30 = vmax.f32 %v12419_v12, 0.0  ;;  %v11422_v17 = vadd.f32 %v22409_v24, %v22442_v14  ;;  %v12095_v52 = vadd.f32 %v12094_v29, %v22431_v45 }
 0xdde   :  { %v12406_v9 = vadd.f32 %v22445_v58, %v12377_v3  ;;  %v12378_v39 = vadd.f32 %v12346_v20, %v12081_v19  ;;  %v12421_v37 = vadd.f32 %v12405_v2, %v11408_v38  ;;  %v12436_v42 = vmax.f32 %v12420_v8, 0.0 }
 0xddf   :  { %v12348_v22 = vpop.f32.mrf.mxu0  ;;  %v12093_v19 = vadd.f32 %v12092_v50, %v22429_v25  ;;  %v12434_v2 = vmax.f32 %v12418_v0, 0.0  ;;  %v11424_v25 = vadd.f32 %v22411_v23, %v22451_v5  ;;  %v12101_v23 = vadd.f32 %v12100_v62, %v22435_v53 }
 0xde0   :  { %v12407_v46 = vadd.f32 %v22448_v57, %v12378_v39  ;;  %v12379_v47 = vadd.f32 %v12348_v22, %v12083_v54  ;;  %v12422_v56 = vadd.f32 %v12406_v9, %v11412_v43  ;;  %v12437_v51 = vmax.f32 %v12421_v37, 0.0 }
 0xde1   :  { %v12350_v18 = vpop.f32.mrf.mxu0  ;;  %v12450_v38 = vadd.f32 %v12436_v42, %v12434_v2  ;;  %v12099_v54 = vadd.f32 %v12098_v32, %v22433_v34  ;;  %v11428_v34 = vadd.f32 %v22415_v26, %v22451_v5  ;;  %v11432_v32 = vadd.f32 %v22417_v31, %v22442_v14 }
 0xde2   :  { %v12423_v11 = vadd.f32 %v12407_v46, %v11414_v27  ;;  %v12380_v48 = vadd.f32 %v12350_v18, %v12085_v35  ;;  %v12408_v61 = vadd.f32 %v22445_v58, %v12379_v47  ;;  %v12438_v10 = vmax.f32 %v12422_v56, 0.0  ;;  %v12104_v47 = vpop.f32.mrf.mxu1 }
 0xde3   :  { %v12354_v41 = vpop.f32.mrf.mxu0  ;;  %v12459_v1 = vadd.f32 %v12437_v51, %v12435_v30  ;;  %v11426_v35 = vadd.f32 %v22413_v15, %v22442_v14  ;;  %v12105_v42 = vadd.f32 %v12104_v47, %v22439_v55 }
 0xde4   :  { %v12409_v21 = vadd.f32 %v22448_v57, %v12380_v48  ;;  %v12424_v3 = vadd.f32 %v12408_v61, %v11416_v13  ;;  %v12439_v59 = vmax.f32 %v12423_v11, 0.0  ;;  %v12381_v40 = vadd.f32 %v12354_v41, %v12089_v36 }
 0xde5   :  { %v12356_v49 = vpop.f32.mrf.mxu0  ;;  %v12451_v8 = vadd.f32 %v12450_v38, %v12438_v10  ;;  %v11434_v11 = vadd.f32 %v22419_v63, %v22451_v5  ;;  %v12103_v48 = vadd.f32 %v12102_v16, %v22437_v60 }
 0xde6   :  { %v12425_v20 = vadd.f32 %v12409_v21, %v11418_v6  ;;  %v12382_v4 = vadd.f32 %v12356_v49, %v12091_v44  ;;  %v12440_v39 = vmax.f32 %v12424_v3, 0.0  ;;  %v12460_v22 = vadd.f32 %v12459_v1, %v12439_v59 }
 0xde7   :  { %v12358_v9 = vpop.f32.mrf.mxu0  ;;  %v12410_v37 = vadd.f32 %v22445_v58, %v12381_v40  ;;  %v11436_v21 = vadd.f32 %v22421_v7, %v22442_v14 }
 0xde8   :  { %v12441_v28 = vmax.f32 %v12425_v20, 0.0  ;;  %v12383_v43 = vadd.f32 %v12358_v9, %v12093_v19  ;;  %v12411_v46 = vadd.f32 %v22448_v57, %v12382_v4  ;;  %v12452_v45 = vadd.f32 %v12451_v8, %v12440_v39 }
 0xde9   :  { %v12360_v50 = vpop.f32.mrf.mxu0  ;;  %v12426_v61 = vadd.f32 %v12410_v37, %v11422_v17  ;;  %v11438_v19 = vadd.f32 %v22423_v33, %v22451_v5 }
 0xdea   :  { %v12412_v27 = vadd.f32 %v22445_v58, %v12383_v43  ;;  %v12384_v24 = vadd.f32 %v12360_v50, %v12095_v52  ;;  %v12461_v29 = vadd.f32 %v12460_v22, %v12441_v28  ;;  %v12427_v41 = vadd.f32 %v12411_v46, %v11424_v25 }
 0xdeb   :  { %v12364_v0 = vpop.f32.mrf.mxu0  ;;  %v12453_v36 = vrot.slane %v12452_v45, 4  ;;  %v12442_v49 = vmax.f32 %v12426_v61, 0.0 }
 0xdec   :  { %v12385_v18 = vadd.f32 %v12364_v0, %v12099_v54  ;;  %v12428_v12 = vadd.f32 %v12412_v27, %v11426_v35  ;;  %v12413_v15 = vadd.f32 %v22448_v57, %v12384_v24  ;;  %v12462_v31 = vrot.slane %v12461_v29, 4 }
 0xded   :  { %v12366_v56 = vpop.f32.mrf.mxu0  ;;  %v12443_v30 = vmax.f32 %v12427_v41, 0.0  ;;  %v12454_v20 = vadd.f32 %v12453_v36, %v12452_v45 }
 0xdee   :  { %v12414_v53 = vadd.f32 %v22445_v58, %v12385_v18  ;;  %v12386_v13 = vadd.f32 %v12366_v56, %v12101_v23  ;;  %v12429_v26 = vadd.f32 %v12413_v15, %v11428_v34  ;;  %v12444_v63 = vmax.f32 %v12428_v12, 0.0 }
 0xdef   :  { %v12368_v6 = vpop.f32.mrf.mxu0  ;;  %v12463_v38 = vadd.f32 %v12462_v31, %v12461_v29  ;;  %v12455_v33 = vrot.slane %v12454_v20, 2 }
 0xdf0   :  { %v12430_v62 = vadd.f32 %v12414_v53, %v11432_v32  ;;  %v12415_v51 = vadd.f32 %v22448_v57, %v12386_v13  ;;  %v12387_v44 = vadd.f32 %v12368_v6, %v12103_v48  ;;  %v12445_v2 = vmax.f32 %v12429_v26, 0.0 }
 0xdf1   :  { %v12370_v60 = vpop.f32.mrf.mxu0  ;;  %v12471_v7 = vadd.f32 %v12444_v63, %v12442_v49  ;;  %v12464_v5 = vrot.slane %v12463_v38, 2  ;;  %v12456_v50 = vadd.f32 %v12455_v33, %v12454_v20 }
 0xdf2   :  { %v12431_v55 = vadd.f32 %v12415_v51, %v11434_v11  ;;  %v12388_v3 = vadd.f32 %v12370_v60, %v12105_v42  ;;  %v12446_v10 = vmax.f32 %v12430_v62, 0.0  ;;  %v12416_v59 = vadd.f32 %v22445_v58, %v12387_v44 }
 0xdf3   :  { %v12480_v9 = vadd.f32 %v12445_v2, %v12443_v30  ;;  %v12465_v58 = vadd.f32 %v12464_v5, %v12463_v38  ;;  %v12457_v35 = vrot.slane %v12456_v50, 1 }
 0xdf4   :  { %v12447_v40 = vmax.f32 %v12431_v55, 0.0  ;;  %v12417_v4 = vadd.f32 %v22448_v57, %v12388_v3  ;;  %v12432_v14 = vadd.f32 %v12416_v59, %v11436_v21  ;;  %v12472_v1 = vadd.f32 %v12471_v7, %v12446_v10 }
 0xdf5   :  { %v12466_v37 = vrot.slane %v12465_v58, 1  ;;  %v12458_v23 = vadd.f32 %v12457_v35, %v12456_v50 }
 0xdf6   :  { %v12433_v16 = vadd.f32 %v12417_v4, %v11438_v19  ;;  %v12448_v39 = vmax.f32 %v12432_v14, 0.0  ;;  %v12481_v28 = vadd.f32 %v12480_v9, %v12447_v40 }
 0xdf7   :  { %v12467_v47 = vadd.f32 %v12466_v37, %v12465_v58  ;;  %v12469_v32 = vmul.f32 0.03125, %v12458_v23 }
 0xdf8   :  { %v12449_v43 = vmax.f32 %v12433_v16, 0.0  ;;  %v12473_v17 = vadd.f32 %v12472_v1, %v12448_v39 }
 0xdf9   :  { %v12470_v12 = vmul.f32 0.03125, %v12467_v47 }
 0xdfa   :  { %v12482_v25 = vadd.f32 %v12481_v28, %v12449_v43  ;;  %v12474_v52 = vrot.slane %v12473_v17, 4 }
 0xdfc   :  { %v12483_v54 = vrot.slane %v12482_v25, 4  ;;  %v12475_v8 = vadd.f32 %v12474_v52, %v12473_v17 }
 0xdfe   :  { %v12484_v22 = vadd.f32 %v12483_v54, %v12482_v25  ;;  %v12476_v27 = vrot.slane %v12475_v8, 2 }
 0xe00   :  { %v12485_v57 = vrot.slane %v12484_v22, 2  ;;  %v12477_v46 = vadd.f32 %v12476_v27, %v12475_v8 }
 0xe02   :  { %v12486_v24 = vadd.f32 %v12485_v57, %v12484_v22  ;;  %v12478_v0 = vrot.slane %v12477_v46, 1 }
 0xe04   :  { %v12487_v45 = vrot.slane %v12486_v24, 1  ;;  %v12479_v29 = vadd.f32 %v12478_v0, %v12477_v46 }
 0xe06   :  { %v12488_v18 = vadd.f32 %v12487_v45, %v12486_v24  ;;  %v12489_v34 = vmul.f32 0.03125, %v12479_v29 }
 0xe08   :  { %v12490_v15 = vmul.f32 0.03125, %v12488_v18  ;;  %v12492_v56 = vsel %vm12491_vm7, %v12469_v32, %v12489_v34 }
 0xe0a   :  { %v12493_v11 = vsel %vm12491_vm7, %v12470_v12, %v12490_v15 }
 0xe0b   :  { %v12496_v48 = vcombine.low %v12492_v56, %v12493_v11 }
 0xe0d   :  { %13332 = vst.sshfl [vmem:[#allocation23] sm:$0x33 pattern:$0x76325410] %v12496_v48 }
 0xe0e   :  { %15906 = shalt.err (!%p15903_p13)
}
 0xe0f   :  { %12515 = dma.vmem_to_hbm [thread:$0]  %s12513_s1, 64, %s22529_s17, [#allocation4]  }
 0xe10   :  { %15929 = dma.done.wait [#allocation4], 64  }
 0xe11   :  { %15930 = vsyncadd [#allocation4], 4294967232 }
 0xe12   :  { %12519 = vsyncpa [#allocation3], 1 }
 0xe13   :  { %12520 = vsyncpa [#allocation6], 1 }
 0xe14   :  { %12521 = vsyncpa [#allocation9], 1 }
 0xe15   :  { %12522 = vsyncpa [#allocation12], 1 }
 0xe16   :  { %12523 = vsyncpa [#allocation15], 1 }
 0xe17   :  { %12524 = vsyncpa [#allocation18], 1 }
 0xe18   :  { %12525 = vsyncpa [#allocation21], 1 }
 0xe19   :  { %12526 = vsyncpa [#allocation4], 1 }

</bundles_post_ra>
